<compile_context>
chip_gen: v6e
topology: v6e:2x2x1
jax: 0.10.0
libtpu: 0.0.40
codegen_flags: <defaults>
</compile_context>

<pallas_src>
import functools

import jax
import jax.numpy as jnp
from jax.experimental import pallas as pl
from jax.experimental.pallas import tpu as pltpu

K = 3           # conv kernel size
PAD = 1         # conv padding
CIN = 3
COUT = 4
BN_EPS = 1e-5   # torch.nn.BatchNorm2d default


def _reduce_hw(x):
    """[Cout, H, W] -> [Cout, 1, 1] sum over the two minor (spatial) axes."""
    return jnp.sum(jnp.sum(x, axis=2, keepdims=True), axis=1, keepdims=True)


def _fused_kernel(xp_ref, w_ref, gamma_ref, beta_ref, out_ref, conv_sc,
                  *, n_batch, h, w):
    """Single-invocation fused forward.

    xp_ref:   [N, CIN, H+2, W+2] halo-padded input (VMEM).
    w_ref:    [COUT, CIN*K*K] conv taps (SMEM, PyTorch OIHW row-major).
    gamma_ref/beta_ref: [COUT, 1, 1] BN affine params (VMEM).
    out_ref:  [N, COUT, 1, 1] pooled output (VMEM).
    conv_sc:  [N, COUT, H, W] VMEM scratch stashing the conv tiles so the
              BN/ReLU/pool pass does not recompute the 27-tap conv.
    """
    sum_c = jnp.zeros((COUT, 1, 1), jnp.float32)
    sq_c = jnp.zeros((COUT, 1, 1), jnp.float32)

    # ---- Pass 1: conv (tap-major scalar FMAs) + single-pass BN statistics ----
    for b in range(n_batch):                        # static; N is tiny
        xb = xp_ref[b]                              # [CIN, Hp, Wp]
        accs = [jnp.zeros((h, w), jnp.float32) for _ in range(COUT)]
        for ci in range(CIN):
            xc = xb[ci]                             # [Hp, Wp]
            for di in range(K):
                for dj in range(K):
                    # One shifted tap live at a time -> low vreg pressure.
                    tap = xc[di:di + h, dj:dj + w]  # [H, W]
                    t = (ci * K + di) * K + dj
                    for co in range(COUT):
                        accs[co] = accs[co] + tap * w_ref[co, t]
        conv = jnp.stack(accs, axis=0)              # [COUT, H, W] f32
        conv_sc[b] = conv                           # stash (no recompute later)
        sum_c = sum_c + _reduce_hw(conv)
        sq_c = sq_c + _reduce_hw(conv * conv)

    # ---- Folded train-mode BN affine, computed exactly once ----
    inv_cnt = 1.0 / float(n_batch * h * w)
    mean = sum_c * inv_cnt                          # [COUT,1,1]
    var = sq_c * inv_cnt - mean * mean              # biased (train-mode) var
    scale = gamma_ref[...] * jax.lax.rsqrt(var + BN_EPS)
    shift = beta_ref[...] - mean * scale

    # ---- Pass 2: BN + ReLU + adaptive avg pool, straight from the stash ----
    inv_hw = 1.0 / float(h * w)
    for b in range(n_batch):
        y = jnp.maximum(conv_sc[b] * scale + shift, 0.0)
        out_ref[b] = _reduce_hw(y) * inv_hw         # [COUT,1,1]


@jax.jit
def test_arch_forward(x, conv_w, conv_b, bn_gamma, bn_beta):
    """x: [N, 3, H, W] float32.  Returns [N, 4, 1, 1] float32 (train-mode BN)."""
    n, c, h, w = x.shape
    assert c == CIN

    # Halo padding only (same byte count as the input, fused under this jit).
    xp = jnp.pad(x, ((0, 0), (0, 0), (PAD, PAD), (PAD, PAD)))
    w_taps = conv_w.reshape(COUT, CIN * K * K)      # OIHW row-major taps
    gamma3 = bn_gamma.reshape(COUT, 1, 1)
    beta3 = bn_beta.reshape(COUT, 1, 1)
    # conv_b intentionally unused: a constant per-channel bias is cancelled
    # exactly by training-mode BatchNorm's mean subtraction.
    del conv_b

    kernel = functools.partial(_fused_kernel, n_batch=n, h=h, w=w)

    out = pl.pallas_call(
        kernel,
        out_shape=jax.ShapeDtypeStruct((n, COUT, 1, 1), jnp.float32),
        in_specs=[
            pl.BlockSpec(memory_space=pltpu.MemorySpace.VMEM),   # padded input
            pl.BlockSpec(memory_space=pltpu.MemorySpace.SMEM),   # conv taps (scalars)
            pl.BlockSpec(memory_space=pltpu.MemorySpace.VMEM),   # gamma [Cout,1,1]
            pl.BlockSpec(memory_space=pltpu.MemorySpace.VMEM),   # beta  [Cout,1,1]
        ],
        out_specs=pl.BlockSpec(memory_space=pltpu.MemorySpace.VMEM),
        scratch_shapes=[
            pltpu.VMEM((n, COUT, h, w), jnp.float32),            # conv stash
        ],
    )(xp, w_taps, gamma3, beta3)
    return out


def _reference_forward(x, conv_w, conv_b, bn_gamma, bn_beta):
    """Pure-JAX reference mirroring the PyTorch module (train-mode BN)."""
    conv = jax.lax.conv_general_dilated(
        x, conv_w, window_strides=(1, 1), padding=((PAD, PAD), (PAD, PAD)),
        dimension_numbers=("NCHW", "OIHW", "NCHW"))
    conv = conv + conv_b.reshape(1, COUT, 1, 1)
    mean = jnp.mean(conv, axis=(0, 2, 3), keepdims=True)
    var = jnp.mean((conv - mean) ** 2, axis=(0, 2, 3), keepdims=True)
    y = (conv - mean) * jax.lax.rsqrt(var + BN_EPS)
    y = y * bn_gamma.reshape(1, COUT, 1, 1) + bn_beta.reshape(1, COUT, 1, 1)
    y = jnp.maximum(y, 0.0)
    return jnp.mean(y, axis=(2, 3), keepdims=True)


if __name__ == "__main__":
    key = jax.random.PRNGKey(0)
    kx, kw, kb = jax.random.split(key, 3)

    # Small shapes consistent with the module: batch=2, in-channels=3, spatial=16.
    x = jax.random.normal(kx, (2, CIN, 16, 16), dtype=jnp.float32)

    # Deterministic parameter init (shapes match nn.Conv2d / nn.BatchNorm2d).
    fan_in = CIN * K * K
    conv_w = jax.random.uniform(kw, (COUT, CIN, K, K), jnp.float32,
                                -1.0 / jnp.sqrt(fan_in), 1.0 / jnp.sqrt(fan_in))
    conv_b = jax.random.uniform(kb, (COUT,), jnp.float32,
                                -1.0 / jnp.sqrt(fan_in), 1.0 / jnp.sqrt(fan_in))
    bn_gamma = jnp.ones((COUT,), jnp.float32)   # PyTorch default init
    bn_beta = jnp.zeros((COUT,), jnp.float32)

    out = test_arch_forward(x, conv_w, conv_b, bn_gamma, bn_beta)
    out = jax.block_until_ready(out)
    assert out.shape == (2, COUT, 1, 1)

    ref = _reference_forward(x, conv_w, conv_b, bn_gamma, bn_beta)
    assert jnp.allclose(out, ref, atol=1e-4, rtol=1e-4), "mismatch vs JAX reference"

    print("KERNEL_OK")
</pallas_src>

<mosaic_0001>
module attributes {stable_mosaic.version = 11 : i64} {
  func.func @_fused_kernel(%arg0: memref<2x3x18x18xf32, #tpu.memory_space<vmem>>, %arg1: memref<4x27xf32, #tpu.memory_space<smem>>, %arg2: memref<4x1x1xf32, #tpu.memory_space<vmem>>, %arg3: memref<4x1x1xf32, #tpu.memory_space<vmem>>, %arg4: memref<2x4x1x1xf32, #tpu.memory_space<vmem>>, %arg5: memref<2x4x16x16xf32, #tpu.memory_space<vmem>>) attributes {dimension_semantics = [], scalar_prefetch = 0 : i64, scratch_operands = 1 : i64, tpu.core_type = #tpu.core_type<tc>} {
    %cst = arith.constant 0.000000e+00 : f32
    %0 = vector.broadcast %cst : f32 to vector<4x1x1xf32>
    %cst_0 = arith.constant 0.000000e+00 : f32
    %1 = vector.broadcast %cst_0 : f32 to vector<4x1x1xf32>
    %c0 = arith.constant 0 : index
    %c0_1 = arith.constant 0 : index
    %c0_2 = arith.constant 0 : index
    %c0_3 = arith.constant 0 : index
    %2 = vector.load %arg0[%c0, %c0_1, %c0_2, %c0_3] : memref<2x3x18x18xf32, #tpu.memory_space<vmem>>, vector<1x3x18x18xf32>
    %3 = vector.shape_cast %2 : vector<1x3x18x18xf32> to vector<3x18x18xf32>
    %cst_4 = arith.constant 0.000000e+00 : f32
    %4 = vector.broadcast %cst_4 : f32 to vector<16x16xf32>
    %cst_5 = arith.constant 0.000000e+00 : f32
    %5 = vector.broadcast %cst_5 : f32 to vector<16x16xf32>
    %cst_6 = arith.constant 0.000000e+00 : f32
    %6 = vector.broadcast %cst_6 : f32 to vector<16x16xf32>
    %cst_7 = arith.constant 0.000000e+00 : f32
    %7 = vector.broadcast %cst_7 : f32 to vector<16x16xf32>
    %8 = vector.extract_strided_slice %3 {offsets = [0, 0, 0], sizes = [1, 18, 18], strides = [1, 1, 1]} : vector<3x18x18xf32> to vector<1x18x18xf32>
    %9 = vector.shape_cast %8 : vector<1x18x18xf32> to vector<18x18xf32>
    %10 = vector.extract_strided_slice %9 {offsets = [0, 0], sizes = [16, 16], strides = [1, 1]} : vector<18x18xf32> to vector<16x16xf32>
    %c0_8 = arith.constant 0 : index
    %c0_9 = arith.constant 0 : index
    %11 = memref.load %arg1[%c0_8, %c0_9] : memref<4x27xf32, #tpu.memory_space<smem>>
    %12 = vector.broadcast %11 : f32 to vector<16x16xf32>
    %13 = arith.mulf %10, %12 : vector<16x16xf32>
    %14 = arith.addf %4, %13 : vector<16x16xf32>
    %c1 = arith.constant 1 : index
    %c0_10 = arith.constant 0 : index
    %15 = memref.load %arg1[%c1, %c0_10] : memref<4x27xf32, #tpu.memory_space<smem>>
    %16 = vector.broadcast %15 : f32 to vector<16x16xf32>
    %17 = arith.mulf %10, %16 : vector<16x16xf32>
    %18 = arith.addf %5, %17 : vector<16x16xf32>
    %c2 = arith.constant 2 : index
    %c0_11 = arith.constant 0 : index
    %19 = memref.load %arg1[%c2, %c0_11] : memref<4x27xf32, #tpu.memory_space<smem>>
    %20 = vector.broadcast %19 : f32 to vector<16x16xf32>
    %21 = arith.mulf %10, %20 : vector<16x16xf32>
    %22 = arith.addf %6, %21 : vector<16x16xf32>
    %c3 = arith.constant 3 : index
    %c0_12 = arith.constant 0 : index
    %23 = memref.load %arg1[%c3, %c0_12] : memref<4x27xf32, #tpu.memory_space<smem>>
    %24 = vector.broadcast %23 : f32 to vector<16x16xf32>
    %25 = arith.mulf %10, %24 : vector<16x16xf32>
    %26 = arith.addf %7, %25 : vector<16x16xf32>
    %27 = vector.extract_strided_slice %9 {offsets = [0, 1], sizes = [16, 16], strides = [1, 1]} : vector<18x18xf32> to vector<16x16xf32>
    %c0_13 = arith.constant 0 : index
    %c1_14 = arith.constant 1 : index
    %28 = memref.load %arg1[%c0_13, %c1_14] : memref<4x27xf32, #tpu.memory_space<smem>>
    %29 = vector.broadcast %28 : f32 to vector<16x16xf32>
    %30 = arith.mulf %27, %29 : vector<16x16xf32>
    %31 = arith.addf %14, %30 : vector<16x16xf32>
    %c1_15 = arith.constant 1 : index
    %c1_16 = arith.constant 1 : index
    %32 = memref.load %arg1[%c1_15, %c1_16] : memref<4x27xf32, #tpu.memory_space<smem>>
    %33 = vector.broadcast %32 : f32 to vector<16x16xf32>
    %34 = arith.mulf %27, %33 : vector<16x16xf32>
    %35 = arith.addf %18, %34 : vector<16x16xf32>
    %c2_17 = arith.constant 2 : index
    %c1_18 = arith.constant 1 : index
    %36 = memref.load %arg1[%c2_17, %c1_18] : memref<4x27xf32, #tpu.memory_space<smem>>
    %37 = vector.broadcast %36 : f32 to vector<16x16xf32>
    %38 = arith.mulf %27, %37 : vector<16x16xf32>
    %39 = arith.addf %22, %38 : vector<16x16xf32>
    %c3_19 = arith.constant 3 : index
    %c1_20 = arith.constant 1 : index
    %40 = memref.load %arg1[%c3_19, %c1_20] : memref<4x27xf32, #tpu.memory_space<smem>>
    %41 = vector.broadcast %40 : f32 to vector<16x16xf32>
    %42 = arith.mulf %27, %41 : vector<16x16xf32>
    %43 = arith.addf %26, %42 : vector<16x16xf32>
    %44 = vector.extract_strided_slice %9 {offsets = [0, 2], sizes = [16, 16], strides = [1, 1]} : vector<18x18xf32> to vector<16x16xf32>
    %c0_21 = arith.constant 0 : index
    %c2_22 = arith.constant 2 : index
    %45 = memref.load %arg1[%c0_21, %c2_22] : memref<4x27xf32, #tpu.memory_space<smem>>
    %46 = vector.broadcast %45 : f32 to vector<16x16xf32>
    %47 = arith.mulf %44, %46 : vector<16x16xf32>
    %48 = arith.addf %31, %47 : vector<16x16xf32>
    %c1_23 = arith.constant 1 : index
    %c2_24 = arith.constant 2 : index
    %49 = memref.load %arg1[%c1_23, %c2_24] : memref<4x27xf32, #tpu.memory_space<smem>>
    %50 = vector.broadcast %49 : f32 to vector<16x16xf32>
    %51 = arith.mulf %44, %50 : vector<16x16xf32>
    %52 = arith.addf %35, %51 : vector<16x16xf32>
    %c2_25 = arith.constant 2 : index
    %c2_26 = arith.constant 2 : index
    %53 = memref.load %arg1[%c2_25, %c2_26] : memref<4x27xf32, #tpu.memory_space<smem>>
    %54 = vector.broadcast %53 : f32 to vector<16x16xf32>
    %55 = arith.mulf %44, %54 : vector<16x16xf32>
    %56 = arith.addf %39, %55 : vector<16x16xf32>
    %c3_27 = arith.constant 3 : index
    %c2_28 = arith.constant 2 : index
    %57 = memref.load %arg1[%c3_27, %c2_28] : memref<4x27xf32, #tpu.memory_space<smem>>
    %58 = vector.broadcast %57 : f32 to vector<16x16xf32>
    %59 = arith.mulf %44, %58 : vector<16x16xf32>
    %60 = arith.addf %43, %59 : vector<16x16xf32>
    %61 = vector.extract_strided_slice %9 {offsets = [1, 0], sizes = [16, 16], strides = [1, 1]} : vector<18x18xf32> to vector<16x16xf32>
    %c0_29 = arith.constant 0 : index
    %c3_30 = arith.constant 3 : index
    %62 = memref.load %arg1[%c0_29, %c3_30] : memref<4x27xf32, #tpu.memory_space<smem>>
    %63 = vector.broadcast %62 : f32 to vector<16x16xf32>
    %64 = arith.mulf %61, %63 : vector<16x16xf32>
    %65 = arith.addf %48, %64 : vector<16x16xf32>
    %c1_31 = arith.constant 1 : index
    %c3_32 = arith.constant 3 : index
    %66 = memref.load %arg1[%c1_31, %c3_32] : memref<4x27xf32, #tpu.memory_space<smem>>
    %67 = vector.broadcast %66 : f32 to vector<16x16xf32>
    %68 = arith.mulf %61, %67 : vector<16x16xf32>
    %69 = arith.addf %52, %68 : vector<16x16xf32>
    %c2_33 = arith.constant 2 : index
    %c3_34 = arith.constant 3 : index
    %70 = memref.load %arg1[%c2_33, %c3_34] : memref<4x27xf32, #tpu.memory_space<smem>>
    %71 = vector.broadcast %70 : f32 to vector<16x16xf32>
    %72 = arith.mulf %61, %71 : vector<16x16xf32>
    %73 = arith.addf %56, %72 : vector<16x16xf32>
    %c3_35 = arith.constant 3 : index
    %c3_36 = arith.constant 3 : index
    %74 = memref.load %arg1[%c3_35, %c3_36] : memref<4x27xf32, #tpu.memory_space<smem>>
    %75 = vector.broadcast %74 : f32 to vector<16x16xf32>
    %76 = arith.mulf %61, %75 : vector<16x16xf32>
    %77 = arith.addf %60, %76 : vector<16x16xf32>
    %78 = vector.extract_strided_slice %9 {offsets = [1, 1], sizes = [16, 16], strides = [1, 1]} : vector<18x18xf32> to vector<16x16xf32>
    %c0_37 = arith.constant 0 : index
    %c4 = arith.constant 4 : index
    %79 = memref.load %arg1[%c0_37, %c4] : memref<4x27xf32, #tpu.memory_space<smem>>
    %80 = vector.broadcast %79 : f32 to vector<16x16xf32>
    %81 = arith.mulf %78, %80 : vector<16x16xf32>
    %82 = arith.addf %65, %81 : vector<16x16xf32>
    %c1_38 = arith.constant 1 : index
    %c4_39 = arith.constant 4 : index
    %83 = memref.load %arg1[%c1_38, %c4_39] : memref<4x27xf32, #tpu.memory_space<smem>>
    %84 = vector.broadcast %83 : f32 to vector<16x16xf32>
    %85 = arith.mulf %78, %84 : vector<16x16xf32>
    %86 = arith.addf %69, %85 : vector<16x16xf32>
    %c2_40 = arith.constant 2 : index
    %c4_41 = arith.constant 4 : index
    %87 = memref.load %arg1[%c2_40, %c4_41] : memref<4x27xf32, #tpu.memory_space<smem>>
    %88 = vector.broadcast %87 : f32 to vector<16x16xf32>
    %89 = arith.mulf %78, %88 : vector<16x16xf32>
    %90 = arith.addf %73, %89 : vector<16x16xf32>
    %c3_42 = arith.constant 3 : index
    %c4_43 = arith.constant 4 : index
    %91 = memref.load %arg1[%c3_42, %c4_43] : memref<4x27xf32, #tpu.memory_space<smem>>
    %92 = vector.broadcast %91 : f32 to vector<16x16xf32>
    %93 = arith.mulf %78, %92 : vector<16x16xf32>
    %94 = arith.addf %77, %93 : vector<16x16xf32>
    %95 = vector.extract_strided_slice %9 {offsets = [1, 2], sizes = [16, 16], strides = [1, 1]} : vector<18x18xf32> to vector<16x16xf32>
    %c0_44 = arith.constant 0 : index
    %c5 = arith.constant 5 : index
    %96 = memref.load %arg1[%c0_44, %c5] : memref<4x27xf32, #tpu.memory_space<smem>>
    %97 = vector.broadcast %96 : f32 to vector<16x16xf32>
    %98 = arith.mulf %95, %97 : vector<16x16xf32>
    %99 = arith.addf %82, %98 : vector<16x16xf32>
    %c1_45 = arith.constant 1 : index
    %c5_46 = arith.constant 5 : index
    %100 = memref.load %arg1[%c1_45, %c5_46] : memref<4x27xf32, #tpu.memory_space<smem>>
    %101 = vector.broadcast %100 : f32 to vector<16x16xf32>
    %102 = arith.mulf %95, %101 : vector<16x16xf32>
    %103 = arith.addf %86, %102 : vector<16x16xf32>
    %c2_47 = arith.constant 2 : index
    %c5_48 = arith.constant 5 : index
    %104 = memref.load %arg1[%c2_47, %c5_48] : memref<4x27xf32, #tpu.memory_space<smem>>
    %105 = vector.broadcast %104 : f32 to vector<16x16xf32>
    %106 = arith.mulf %95, %105 : vector<16x16xf32>
    %107 = arith.addf %90, %106 : vector<16x16xf32>
    %c3_49 = arith.constant 3 : index
    %c5_50 = arith.constant 5 : index
    %108 = memref.load %arg1[%c3_49, %c5_50] : memref<4x27xf32, #tpu.memory_space<smem>>
    %109 = vector.broadcast %108 : f32 to vector<16x16xf32>
    %110 = arith.mulf %95, %109 : vector<16x16xf32>
    %111 = arith.addf %94, %110 : vector<16x16xf32>
    %112 = vector.extract_strided_slice %9 {offsets = [2, 0], sizes = [16, 16], strides = [1, 1]} : vector<18x18xf32> to vector<16x16xf32>
    %c0_51 = arith.constant 0 : index
    %c6 = arith.constant 6 : index
    %113 = memref.load %arg1[%c0_51, %c6] : memref<4x27xf32, #tpu.memory_space<smem>>
    %114 = vector.broadcast %113 : f32 to vector<16x16xf32>
    %115 = arith.mulf %112, %114 : vector<16x16xf32>
    %116 = arith.addf %99, %115 : vector<16x16xf32>
    %c1_52 = arith.constant 1 : index
    %c6_53 = arith.constant 6 : index
    %117 = memref.load %arg1[%c1_52, %c6_53] : memref<4x27xf32, #tpu.memory_space<smem>>
    %118 = vector.broadcast %117 : f32 to vector<16x16xf32>
    %119 = arith.mulf %112, %118 : vector<16x16xf32>
    %120 = arith.addf %103, %119 : vector<16x16xf32>
    %c2_54 = arith.constant 2 : index
    %c6_55 = arith.constant 6 : index
    %121 = memref.load %arg1[%c2_54, %c6_55] : memref<4x27xf32, #tpu.memory_space<smem>>
    %122 = vector.broadcast %121 : f32 to vector<16x16xf32>
    %123 = arith.mulf %112, %122 : vector<16x16xf32>
    %124 = arith.addf %107, %123 : vector<16x16xf32>
    %c3_56 = arith.constant 3 : index
    %c6_57 = arith.constant 6 : index
    %125 = memref.load %arg1[%c3_56, %c6_57] : memref<4x27xf32, #tpu.memory_space<smem>>
    %126 = vector.broadcast %125 : f32 to vector<16x16xf32>
    %127 = arith.mulf %112, %126 : vector<16x16xf32>
    %128 = arith.addf %111, %127 : vector<16x16xf32>
    %129 = vector.extract_strided_slice %9 {offsets = [2, 1], sizes = [16, 16], strides = [1, 1]} : vector<18x18xf32> to vector<16x16xf32>
    %c0_58 = arith.constant 0 : index
    %c7 = arith.constant 7 : index
    %130 = memref.load %arg1[%c0_58, %c7] : memref<4x27xf32, #tpu.memory_space<smem>>
    %131 = vector.broadcast %130 : f32 to vector<16x16xf32>
    %132 = arith.mulf %129, %131 : vector<16x16xf32>
    %133 = arith.addf %116, %132 : vector<16x16xf32>
    %c1_59 = arith.constant 1 : index
    %c7_60 = arith.constant 7 : index
    %134 = memref.load %arg1[%c1_59, %c7_60] : memref<4x27xf32, #tpu.memory_space<smem>>
    %135 = vector.broadcast %134 : f32 to vector<16x16xf32>
    %136 = arith.mulf %129, %135 : vector<16x16xf32>
    %137 = arith.addf %120, %136 : vector<16x16xf32>
    %c2_61 = arith.constant 2 : index
    %c7_62 = arith.constant 7 : index
    %138 = memref.load %arg1[%c2_61, %c7_62] : memref<4x27xf32, #tpu.memory_space<smem>>
    %139 = vector.broadcast %138 : f32 to vector<16x16xf32>
    %140 = arith.mulf %129, %139 : vector<16x16xf32>
    %141 = arith.addf %124, %140 : vector<16x16xf32>
    %c3_63 = arith.constant 3 : index
    %c7_64 = arith.constant 7 : index
    %142 = memref.load %arg1[%c3_63, %c7_64] : memref<4x27xf32, #tpu.memory_space<smem>>
    %143 = vector.broadcast %142 : f32 to vector<16x16xf32>
    %144 = arith.mulf %129, %143 : vector<16x16xf32>
    %145 = arith.addf %128, %144 : vector<16x16xf32>
    %146 = vector.extract_strided_slice %9 {offsets = [2, 2], sizes = [16, 16], strides = [1, 1]} : vector<18x18xf32> to vector<16x16xf32>
    %c0_65 = arith.constant 0 : index
    %c8 = arith.constant 8 : index
    %147 = memref.load %arg1[%c0_65, %c8] : memref<4x27xf32, #tpu.memory_space<smem>>
    %148 = vector.broadcast %147 : f32 to vector<16x16xf32>
    %149 = arith.mulf %146, %148 : vector<16x16xf32>
    %150 = arith.addf %133, %149 : vector<16x16xf32>
    %c1_66 = arith.constant 1 : index
    %c8_67 = arith.constant 8 : index
    %151 = memref.load %arg1[%c1_66, %c8_67] : memref<4x27xf32, #tpu.memory_space<smem>>
    %152 = vector.broadcast %151 : f32 to vector<16x16xf32>
    %153 = arith.mulf %146, %152 : vector<16x16xf32>
    %154 = arith.addf %137, %153 : vector<16x16xf32>
    %c2_68 = arith.constant 2 : index
    %c8_69 = arith.constant 8 : index
    %155 = memref.load %arg1[%c2_68, %c8_69] : memref<4x27xf32, #tpu.memory_space<smem>>
    %156 = vector.broadcast %155 : f32 to vector<16x16xf32>
    %157 = arith.mulf %146, %156 : vector<16x16xf32>
    %158 = arith.addf %141, %157 : vector<16x16xf32>
    %c3_70 = arith.constant 3 : index
    %c8_71 = arith.constant 8 : index
    %159 = memref.load %arg1[%c3_70, %c8_71] : memref<4x27xf32, #tpu.memory_space<smem>>
    %160 = vector.broadcast %159 : f32 to vector<16x16xf32>
    %161 = arith.mulf %146, %160 : vector<16x16xf32>
    %162 = arith.addf %145, %161 : vector<16x16xf32>
    %163 = vector.extract_strided_slice %3 {offsets = [1, 0, 0], sizes = [1, 18, 18], strides = [1, 1, 1]} : vector<3x18x18xf32> to vector<1x18x18xf32>
    %164 = vector.shape_cast %163 : vector<1x18x18xf32> to vector<18x18xf32>
    %165 = vector.extract_strided_slice %164 {offsets = [0, 0], sizes = [16, 16], strides = [1, 1]} : vector<18x18xf32> to vector<16x16xf32>
    %c0_72 = arith.constant 0 : index
    %c9 = arith.constant 9 : index
    %166 = memref.load %arg1[%c0_72, %c9] : memref<4x27xf32, #tpu.memory_space<smem>>
    %167 = vector.broadcast %166 : f32 to vector<16x16xf32>
    %168 = arith.mulf %165, %167 : vector<16x16xf32>
    %169 = arith.addf %150, %168 : vector<16x16xf32>
    %c1_73 = arith.constant 1 : index
    %c9_74 = arith.constant 9 : index
    %170 = memref.load %arg1[%c1_73, %c9_74] : memref<4x27xf32, #tpu.memory_space<smem>>
    %171 = vector.broadcast %170 : f32 to vector<16x16xf32>
    %172 = arith.mulf %165, %171 : vector<16x16xf32>
    %173 = arith.addf %154, %172 : vector<16x16xf32>
    %c2_75 = arith.constant 2 : index
    %c9_76 = arith.constant 9 : index
    %174 = memref.load %arg1[%c2_75, %c9_76] : memref<4x27xf32, #tpu.memory_space<smem>>
    %175 = vector.broadcast %174 : f32 to vector<16x16xf32>
    %176 = arith.mulf %165, %175 : vector<16x16xf32>
    %177 = arith.addf %158, %176 : vector<16x16xf32>
    %c3_77 = arith.constant 3 : index
    %c9_78 = arith.constant 9 : index
    %178 = memref.load %arg1[%c3_77, %c9_78] : memref<4x27xf32, #tpu.memory_space<smem>>
    %179 = vector.broadcast %178 : f32 to vector<16x16xf32>
    %180 = arith.mulf %165, %179 : vector<16x16xf32>
    %181 = arith.addf %162, %180 : vector<16x16xf32>
    %182 = vector.extract_strided_slice %164 {offsets = [0, 1], sizes = [16, 16], strides = [1, 1]} : vector<18x18xf32> to vector<16x16xf32>
    %c0_79 = arith.constant 0 : index
    %c10 = arith.constant 10 : index
    %183 = memref.load %arg1[%c0_79, %c10] : memref<4x27xf32, #tpu.memory_space<smem>>
    %184 = vector.broadcast %183 : f32 to vector<16x16xf32>
    %185 = arith.mulf %182, %184 : vector<16x16xf32>
    %186 = arith.addf %169, %185 : vector<16x16xf32>
    %c1_80 = arith.constant 1 : index
    %c10_81 = arith.constant 10 : index
    %187 = memref.load %arg1[%c1_80, %c10_81] : memref<4x27xf32, #tpu.memory_space<smem>>
    %188 = vector.broadcast %187 : f32 to vector<16x16xf32>
    %189 = arith.mulf %182, %188 : vector<16x16xf32>
    %190 = arith.addf %173, %189 : vector<16x16xf32>
    %c2_82 = arith.constant 2 : index
    %c10_83 = arith.constant 10 : index
    %191 = memref.load %arg1[%c2_82, %c10_83] : memref<4x27xf32, #tpu.memory_space<smem>>
    %192 = vector.broadcast %191 : f32 to vector<16x16xf32>
    %193 = arith.mulf %182, %192 : vector<16x16xf32>
    %194 = arith.addf %177, %193 : vector<16x16xf32>
    %c3_84 = arith.constant 3 : index
    %c10_85 = arith.constant 10 : index
    %195 = memref.load %arg1[%c3_84, %c10_85] : memref<4x27xf32, #tpu.memory_space<smem>>
    %196 = vector.broadcast %195 : f32 to vector<16x16xf32>
    %197 = arith.mulf %182, %196 : vector<16x16xf32>
    %198 = arith.addf %181, %197 : vector<16x16xf32>
    %199 = vector.extract_strided_slice %164 {offsets = [0, 2], sizes = [16, 16], strides = [1, 1]} : vector<18x18xf32> to vector<16x16xf32>
    %c0_86 = arith.constant 0 : index
    %c11 = arith.constant 11 : index
    %200 = memref.load %arg1[%c0_86, %c11] : memref<4x27xf32, #tpu.memory_space<smem>>
    %201 = vector.broadcast %200 : f32 to vector<16x16xf32>
    %202 = arith.mulf %199, %201 : vector<16x16xf32>
    %203 = arith.addf %186, %202 : vector<16x16xf32>
    %c1_87 = arith.constant 1 : index
    %c11_88 = arith.constant 11 : index
    %204 = memref.load %arg1[%c1_87, %c11_88] : memref<4x27xf32, #tpu.memory_space<smem>>
    %205 = vector.broadcast %204 : f32 to vector<16x16xf32>
    %206 = arith.mulf %199, %205 : vector<16x16xf32>
    %207 = arith.addf %190, %206 : vector<16x16xf32>
    %c2_89 = arith.constant 2 : index
    %c11_90 = arith.constant 11 : index
    %208 = memref.load %arg1[%c2_89, %c11_90] : memref<4x27xf32, #tpu.memory_space<smem>>
    %209 = vector.broadcast %208 : f32 to vector<16x16xf32>
    %210 = arith.mulf %199, %209 : vector<16x16xf32>
    %211 = arith.addf %194, %210 : vector<16x16xf32>
    %c3_91 = arith.constant 3 : index
    %c11_92 = arith.constant 11 : index
    %212 = memref.load %arg1[%c3_91, %c11_92] : memref<4x27xf32, #tpu.memory_space<smem>>
    %213 = vector.broadcast %212 : f32 to vector<16x16xf32>
    %214 = arith.mulf %199, %213 : vector<16x16xf32>
    %215 = arith.addf %198, %214 : vector<16x16xf32>
    %216 = vector.extract_strided_slice %164 {offsets = [1, 0], sizes = [16, 16], strides = [1, 1]} : vector<18x18xf32> to vector<16x16xf32>
    %c0_93 = arith.constant 0 : index
    %c12 = arith.constant 12 : index
    %217 = memref.load %arg1[%c0_93, %c12] : memref<4x27xf32, #tpu.memory_space<smem>>
    %218 = vector.broadcast %217 : f32 to vector<16x16xf32>
    %219 = arith.mulf %216, %218 : vector<16x16xf32>
    %220 = arith.addf %203, %219 : vector<16x16xf32>
    %c1_94 = arith.constant 1 : index
    %c12_95 = arith.constant 12 : index
    %221 = memref.load %arg1[%c1_94, %c12_95] : memref<4x27xf32, #tpu.memory_space<smem>>
    %222 = vector.broadcast %221 : f32 to vector<16x16xf32>
    %223 = arith.mulf %216, %222 : vector<16x16xf32>
    %224 = arith.addf %207, %223 : vector<16x16xf32>
    %c2_96 = arith.constant 2 : index
    %c12_97 = arith.constant 12 : index
    %225 = memref.load %arg1[%c2_96, %c12_97] : memref<4x27xf32, #tpu.memory_space<smem>>
    %226 = vector.broadcast %225 : f32 to vector<16x16xf32>
    %227 = arith.mulf %216, %226 : vector<16x16xf32>
    %228 = arith.addf %211, %227 : vector<16x16xf32>
    %c3_98 = arith.constant 3 : index
    %c12_99 = arith.constant 12 : index
    %229 = memref.load %arg1[%c3_98, %c12_99] : memref<4x27xf32, #tpu.memory_space<smem>>
    %230 = vector.broadcast %229 : f32 to vector<16x16xf32>
    %231 = arith.mulf %216, %230 : vector<16x16xf32>
    %232 = arith.addf %215, %231 : vector<16x16xf32>
    %233 = vector.extract_strided_slice %164 {offsets = [1, 1], sizes = [16, 16], strides = [1, 1]} : vector<18x18xf32> to vector<16x16xf32>
    %c0_100 = arith.constant 0 : index
    %c13 = arith.constant 13 : index
    %234 = memref.load %arg1[%c0_100, %c13] : memref<4x27xf32, #tpu.memory_space<smem>>
    %235 = vector.broadcast %234 : f32 to vector<16x16xf32>
    %236 = arith.mulf %233, %235 : vector<16x16xf32>
    %237 = arith.addf %220, %236 : vector<16x16xf32>
    %c1_101 = arith.constant 1 : index
    %c13_102 = arith.constant 13 : index
    %238 = memref.load %arg1[%c1_101, %c13_102] : memref<4x27xf32, #tpu.memory_space<smem>>
    %239 = vector.broadcast %238 : f32 to vector<16x16xf32>
    %240 = arith.mulf %233, %239 : vector<16x16xf32>
    %241 = arith.addf %224, %240 : vector<16x16xf32>
    %c2_103 = arith.constant 2 : index
    %c13_104 = arith.constant 13 : index
    %242 = memref.load %arg1[%c2_103, %c13_104] : memref<4x27xf32, #tpu.memory_space<smem>>
    %243 = vector.broadcast %242 : f32 to vector<16x16xf32>
    %244 = arith.mulf %233, %243 : vector<16x16xf32>
    %245 = arith.addf %228, %244 : vector<16x16xf32>
    %c3_105 = arith.constant 3 : index
    %c13_106 = arith.constant 13 : index
    %246 = memref.load %arg1[%c3_105, %c13_106] : memref<4x27xf32, #tpu.memory_space<smem>>
    %247 = vector.broadcast %246 : f32 to vector<16x16xf32>
    %248 = arith.mulf %233, %247 : vector<16x16xf32>
    %249 = arith.addf %232, %248 : vector<16x16xf32>
    %250 = vector.extract_strided_slice %164 {offsets = [1, 2], sizes = [16, 16], strides = [1, 1]} : vector<18x18xf32> to vector<16x16xf32>
    %c0_107 = arith.constant 0 : index
    %c14 = arith.constant 14 : index
    %251 = memref.load %arg1[%c0_107, %c14] : memref<4x27xf32, #tpu.memory_space<smem>>
    %252 = vector.broadcast %251 : f32 to vector<16x16xf32>
    %253 = arith.mulf %250, %252 : vector<16x16xf32>
    %254 = arith.addf %237, %253 : vector<16x16xf32>
    %c1_108 = arith.constant 1 : index
    %c14_109 = arith.constant 14 : index
    %255 = memref.load %arg1[%c1_108, %c14_109] : memref<4x27xf32, #tpu.memory_space<smem>>
    %256 = vector.broadcast %255 : f32 to vector<16x16xf32>
    %257 = arith.mulf %250, %256 : vector<16x16xf32>
    %258 = arith.addf %241, %257 : vector<16x16xf32>
    %c2_110 = arith.constant 2 : index
    %c14_111 = arith.constant 14 : index
    %259 = memref.load %arg1[%c2_110, %c14_111] : memref<4x27xf32, #tpu.memory_space<smem>>
    %260 = vector.broadcast %259 : f32 to vector<16x16xf32>
    %261 = arith.mulf %250, %260 : vector<16x16xf32>
    %262 = arith.addf %245, %261 : vector<16x16xf32>
    %c3_112 = arith.constant 3 : index
    %c14_113 = arith.constant 14 : index
    %263 = memref.load %arg1[%c3_112, %c14_113] : memref<4x27xf32, #tpu.memory_space<smem>>
    %264 = vector.broadcast %263 : f32 to vector<16x16xf32>
    %265 = arith.mulf %250, %264 : vector<16x16xf32>
    %266 = arith.addf %249, %265 : vector<16x16xf32>
    %267 = vector.extract_strided_slice %164 {offsets = [2, 0], sizes = [16, 16], strides = [1, 1]} : vector<18x18xf32> to vector<16x16xf32>
    %c0_114 = arith.constant 0 : index
    %c15 = arith.constant 15 : index
    %268 = memref.load %arg1[%c0_114, %c15] : memref<4x27xf32, #tpu.memory_space<smem>>
    %269 = vector.broadcast %268 : f32 to vector<16x16xf32>
    %270 = arith.mulf %267, %269 : vector<16x16xf32>
    %271 = arith.addf %254, %270 : vector<16x16xf32>
    %c1_115 = arith.constant 1 : index
    %c15_116 = arith.constant 15 : index
    %272 = memref.load %arg1[%c1_115, %c15_116] : memref<4x27xf32, #tpu.memory_space<smem>>
    %273 = vector.broadcast %272 : f32 to vector<16x16xf32>
    %274 = arith.mulf %267, %273 : vector<16x16xf32>
    %275 = arith.addf %258, %274 : vector<16x16xf32>
    %c2_117 = arith.constant 2 : index
    %c15_118 = arith.constant 15 : index
    %276 = memref.load %arg1[%c2_117, %c15_118] : memref<4x27xf32, #tpu.memory_space<smem>>
    %277 = vector.broadcast %276 : f32 to vector<16x16xf32>
    %278 = arith.mulf %267, %277 : vector<16x16xf32>
    %279 = arith.addf %262, %278 : vector<16x16xf32>
    %c3_119 = arith.constant 3 : index
    %c15_120 = arith.constant 15 : index
    %280 = memref.load %arg1[%c3_119, %c15_120] : memref<4x27xf32, #tpu.memory_space<smem>>
    %281 = vector.broadcast %280 : f32 to vector<16x16xf32>
    %282 = arith.mulf %267, %281 : vector<16x16xf32>
    %283 = arith.addf %266, %282 : vector<16x16xf32>
    %284 = vector.extract_strided_slice %164 {offsets = [2, 1], sizes = [16, 16], strides = [1, 1]} : vector<18x18xf32> to vector<16x16xf32>
    %c0_121 = arith.constant 0 : index
    %c16 = arith.constant 16 : index
    %285 = memref.load %arg1[%c0_121, %c16] : memref<4x27xf32, #tpu.memory_space<smem>>
    %286 = vector.broadcast %285 : f32 to vector<16x16xf32>
    %287 = arith.mulf %284, %286 : vector<16x16xf32>
    %288 = arith.addf %271, %287 : vector<16x16xf32>
    %c1_122 = arith.constant 1 : index
    %c16_123 = arith.constant 16 : index
    %289 = memref.load %arg1[%c1_122, %c16_123] : memref<4x27xf32, #tpu.memory_space<smem>>
    %290 = vector.broadcast %289 : f32 to vector<16x16xf32>
    %291 = arith.mulf %284, %290 : vector<16x16xf32>
    %292 = arith.addf %275, %291 : vector<16x16xf32>
    %c2_124 = arith.constant 2 : index
    %c16_125 = arith.constant 16 : index
    %293 = memref.load %arg1[%c2_124, %c16_125] : memref<4x27xf32, #tpu.memory_space<smem>>
    %294 = vector.broadcast %293 : f32 to vector<16x16xf32>
    %295 = arith.mulf %284, %294 : vector<16x16xf32>
    %296 = arith.addf %279, %295 : vector<16x16xf32>
    %c3_126 = arith.constant 3 : index
    %c16_127 = arith.constant 16 : index
    %297 = memref.load %arg1[%c3_126, %c16_127] : memref<4x27xf32, #tpu.memory_space<smem>>
    %298 = vector.broadcast %297 : f32 to vector<16x16xf32>
    %299 = arith.mulf %284, %298 : vector<16x16xf32>
    %300 = arith.addf %283, %299 : vector<16x16xf32>
    %301 = vector.extract_strided_slice %164 {offsets = [2, 2], sizes = [16, 16], strides = [1, 1]} : vector<18x18xf32> to vector<16x16xf32>
    %c0_128 = arith.constant 0 : index
    %c17 = arith.constant 17 : index
    %302 = memref.load %arg1[%c0_128, %c17] : memref<4x27xf32, #tpu.memory_space<smem>>
    %303 = vector.broadcast %302 : f32 to vector<16x16xf32>
    %304 = arith.mulf %301, %303 : vector<16x16xf32>
    %305 = arith.addf %288, %304 : vector<16x16xf32>
    %c1_129 = arith.constant 1 : index
    %c17_130 = arith.constant 17 : index
    %306 = memref.load %arg1[%c1_129, %c17_130] : memref<4x27xf32, #tpu.memory_space<smem>>
    %307 = vector.broadcast %306 : f32 to vector<16x16xf32>
    %308 = arith.mulf %301, %307 : vector<16x16xf32>
    %309 = arith.addf %292, %308 : vector<16x16xf32>
    %c2_131 = arith.constant 2 : index
    %c17_132 = arith.constant 17 : index
    %310 = memref.load %arg1[%c2_131, %c17_132] : memref<4x27xf32, #tpu.memory_space<smem>>
    %311 = vector.broadcast %310 : f32 to vector<16x16xf32>
    %312 = arith.mulf %301, %311 : vector<16x16xf32>
    %313 = arith.addf %296, %312 : vector<16x16xf32>
    %c3_133 = arith.constant 3 : index
    %c17_134 = arith.constant 17 : index
    %314 = memref.load %arg1[%c3_133, %c17_134] : memref<4x27xf32, #tpu.memory_space<smem>>
    %315 = vector.broadcast %314 : f32 to vector<16x16xf32>
    %316 = arith.mulf %301, %315 : vector<16x16xf32>
    %317 = arith.addf %300, %316 : vector<16x16xf32>
    %318 = vector.extract_strided_slice %3 {offsets = [2, 0, 0], sizes = [1, 18, 18], strides = [1, 1, 1]} : vector<3x18x18xf32> to vector<1x18x18xf32>
    %319 = vector.shape_cast %318 : vector<1x18x18xf32> to vector<18x18xf32>
    %320 = vector.extract_strided_slice %319 {offsets = [0, 0], sizes = [16, 16], strides = [1, 1]} : vector<18x18xf32> to vector<16x16xf32>
    %c0_135 = arith.constant 0 : index
    %c18 = arith.constant 18 : index
    %321 = memref.load %arg1[%c0_135, %c18] : memref<4x27xf32, #tpu.memory_space<smem>>
    %322 = vector.broadcast %321 : f32 to vector<16x16xf32>
    %323 = arith.mulf %320, %322 : vector<16x16xf32>
    %324 = arith.addf %305, %323 : vector<16x16xf32>
    %c1_136 = arith.constant 1 : index
    %c18_137 = arith.constant 18 : index
    %325 = memref.load %arg1[%c1_136, %c18_137] : memref<4x27xf32, #tpu.memory_space<smem>>
    %326 = vector.broadcast %325 : f32 to vector<16x16xf32>
    %327 = arith.mulf %320, %326 : vector<16x16xf32>
    %328 = arith.addf %309, %327 : vector<16x16xf32>
    %c2_138 = arith.constant 2 : index
    %c18_139 = arith.constant 18 : index
    %329 = memref.load %arg1[%c2_138, %c18_139] : memref<4x27xf32, #tpu.memory_space<smem>>
    %330 = vector.broadcast %329 : f32 to vector<16x16xf32>
    %331 = arith.mulf %320, %330 : vector<16x16xf32>
    %332 = arith.addf %313, %331 : vector<16x16xf32>
    %c3_140 = arith.constant 3 : index
    %c18_141 = arith.constant 18 : index
    %333 = memref.load %arg1[%c3_140, %c18_141] : memref<4x27xf32, #tpu.memory_space<smem>>
    %334 = vector.broadcast %333 : f32 to vector<16x16xf32>
    %335 = arith.mulf %320, %334 : vector<16x16xf32>
    %336 = arith.addf %317, %335 : vector<16x16xf32>
    %337 = vector.extract_strided_slice %319 {offsets = [0, 1], sizes = [16, 16], strides = [1, 1]} : vector<18x18xf32> to vector<16x16xf32>
    %c0_142 = arith.constant 0 : index
    %c19 = arith.constant 19 : index
    %338 = memref.load %arg1[%c0_142, %c19] : memref<4x27xf32, #tpu.memory_space<smem>>
    %339 = vector.broadcast %338 : f32 to vector<16x16xf32>
    %340 = arith.mulf %337, %339 : vector<16x16xf32>
    %341 = arith.addf %324, %340 : vector<16x16xf32>
    %c1_143 = arith.constant 1 : index
    %c19_144 = arith.constant 19 : index
    %342 = memref.load %arg1[%c1_143, %c19_144] : memref<4x27xf32, #tpu.memory_space<smem>>
    %343 = vector.broadcast %342 : f32 to vector<16x16xf32>
    %344 = arith.mulf %337, %343 : vector<16x16xf32>
    %345 = arith.addf %328, %344 : vector<16x16xf32>
    %c2_145 = arith.constant 2 : index
    %c19_146 = arith.constant 19 : index
    %346 = memref.load %arg1[%c2_145, %c19_146] : memref<4x27xf32, #tpu.memory_space<smem>>
    %347 = vector.broadcast %346 : f32 to vector<16x16xf32>
    %348 = arith.mulf %337, %347 : vector<16x16xf32>
    %349 = arith.addf %332, %348 : vector<16x16xf32>
    %c3_147 = arith.constant 3 : index
    %c19_148 = arith.constant 19 : index
    %350 = memref.load %arg1[%c3_147, %c19_148] : memref<4x27xf32, #tpu.memory_space<smem>>
    %351 = vector.broadcast %350 : f32 to vector<16x16xf32>
    %352 = arith.mulf %337, %351 : vector<16x16xf32>
    %353 = arith.addf %336, %352 : vector<16x16xf32>
    %354 = vector.extract_strided_slice %319 {offsets = [0, 2], sizes = [16, 16], strides = [1, 1]} : vector<18x18xf32> to vector<16x16xf32>
    %c0_149 = arith.constant 0 : index
    %c20 = arith.constant 20 : index
    %355 = memref.load %arg1[%c0_149, %c20] : memref<4x27xf32, #tpu.memory_space<smem>>
    %356 = vector.broadcast %355 : f32 to vector<16x16xf32>
    %357 = arith.mulf %354, %356 : vector<16x16xf32>
    %358 = arith.addf %341, %357 : vector<16x16xf32>
    %c1_150 = arith.constant 1 : index
    %c20_151 = arith.constant 20 : index
    %359 = memref.load %arg1[%c1_150, %c20_151] : memref<4x27xf32, #tpu.memory_space<smem>>
    %360 = vector.broadcast %359 : f32 to vector<16x16xf32>
    %361 = arith.mulf %354, %360 : vector<16x16xf32>
    %362 = arith.addf %345, %361 : vector<16x16xf32>
    %c2_152 = arith.constant 2 : index
    %c20_153 = arith.constant 20 : index
    %363 = memref.load %arg1[%c2_152, %c20_153] : memref<4x27xf32, #tpu.memory_space<smem>>
    %364 = vector.broadcast %363 : f32 to vector<16x16xf32>
    %365 = arith.mulf %354, %364 : vector<16x16xf32>
    %366 = arith.addf %349, %365 : vector<16x16xf32>
    %c3_154 = arith.constant 3 : index
    %c20_155 = arith.constant 20 : index
    %367 = memref.load %arg1[%c3_154, %c20_155] : memref<4x27xf32, #tpu.memory_space<smem>>
    %368 = vector.broadcast %367 : f32 to vector<16x16xf32>
    %369 = arith.mulf %354, %368 : vector<16x16xf32>
    %370 = arith.addf %353, %369 : vector<16x16xf32>
    %371 = vector.extract_strided_slice %319 {offsets = [1, 0], sizes = [16, 16], strides = [1, 1]} : vector<18x18xf32> to vector<16x16xf32>
    %c0_156 = arith.constant 0 : index
    %c21 = arith.constant 21 : index
    %372 = memref.load %arg1[%c0_156, %c21] : memref<4x27xf32, #tpu.memory_space<smem>>
    %373 = vector.broadcast %372 : f32 to vector<16x16xf32>
    %374 = arith.mulf %371, %373 : vector<16x16xf32>
    %375 = arith.addf %358, %374 : vector<16x16xf32>
    %c1_157 = arith.constant 1 : index
    %c21_158 = arith.constant 21 : index
    %376 = memref.load %arg1[%c1_157, %c21_158] : memref<4x27xf32, #tpu.memory_space<smem>>
    %377 = vector.broadcast %376 : f32 to vector<16x16xf32>
    %378 = arith.mulf %371, %377 : vector<16x16xf32>
    %379 = arith.addf %362, %378 : vector<16x16xf32>
    %c2_159 = arith.constant 2 : index
    %c21_160 = arith.constant 21 : index
    %380 = memref.load %arg1[%c2_159, %c21_160] : memref<4x27xf32, #tpu.memory_space<smem>>
    %381 = vector.broadcast %380 : f32 to vector<16x16xf32>
    %382 = arith.mulf %371, %381 : vector<16x16xf32>
    %383 = arith.addf %366, %382 : vector<16x16xf32>
    %c3_161 = arith.constant 3 : index
    %c21_162 = arith.constant 21 : index
    %384 = memref.load %arg1[%c3_161, %c21_162] : memref<4x27xf32, #tpu.memory_space<smem>>
    %385 = vector.broadcast %384 : f32 to vector<16x16xf32>
    %386 = arith.mulf %371, %385 : vector<16x16xf32>
    %387 = arith.addf %370, %386 : vector<16x16xf32>
    %388 = vector.extract_strided_slice %319 {offsets = [1, 1], sizes = [16, 16], strides = [1, 1]} : vector<18x18xf32> to vector<16x16xf32>
    %c0_163 = arith.constant 0 : index
    %c22 = arith.constant 22 : index
    %389 = memref.load %arg1[%c0_163, %c22] : memref<4x27xf32, #tpu.memory_space<smem>>
    %390 = vector.broadcast %389 : f32 to vector<16x16xf32>
    %391 = arith.mulf %388, %390 : vector<16x16xf32>
    %392 = arith.addf %375, %391 : vector<16x16xf32>
    %c1_164 = arith.constant 1 : index
    %c22_165 = arith.constant 22 : index
    %393 = memref.load %arg1[%c1_164, %c22_165] : memref<4x27xf32, #tpu.memory_space<smem>>
    %394 = vector.broadcast %393 : f32 to vector<16x16xf32>
    %395 = arith.mulf %388, %394 : vector<16x16xf32>
    %396 = arith.addf %379, %395 : vector<16x16xf32>
    %c2_166 = arith.constant 2 : index
    %c22_167 = arith.constant 22 : index
    %397 = memref.load %arg1[%c2_166, %c22_167] : memref<4x27xf32, #tpu.memory_space<smem>>
    %398 = vector.broadcast %397 : f32 to vector<16x16xf32>
    %399 = arith.mulf %388, %398 : vector<16x16xf32>
    %400 = arith.addf %383, %399 : vector<16x16xf32>
    %c3_168 = arith.constant 3 : index
    %c22_169 = arith.constant 22 : index
    %401 = memref.load %arg1[%c3_168, %c22_169] : memref<4x27xf32, #tpu.memory_space<smem>>
    %402 = vector.broadcast %401 : f32 to vector<16x16xf32>
    %403 = arith.mulf %388, %402 : vector<16x16xf32>
    %404 = arith.addf %387, %403 : vector<16x16xf32>
    %405 = vector.extract_strided_slice %319 {offsets = [1, 2], sizes = [16, 16], strides = [1, 1]} : vector<18x18xf32> to vector<16x16xf32>
    %c0_170 = arith.constant 0 : index
    %c23 = arith.constant 23 : index
    %406 = memref.load %arg1[%c0_170, %c23] : memref<4x27xf32, #tpu.memory_space<smem>>
    %407 = vector.broadcast %406 : f32 to vector<16x16xf32>
    %408 = arith.mulf %405, %407 : vector<16x16xf32>
    %409 = arith.addf %392, %408 : vector<16x16xf32>
    %c1_171 = arith.constant 1 : index
    %c23_172 = arith.constant 23 : index
    %410 = memref.load %arg1[%c1_171, %c23_172] : memref<4x27xf32, #tpu.memory_space<smem>>
    %411 = vector.broadcast %410 : f32 to vector<16x16xf32>
    %412 = arith.mulf %405, %411 : vector<16x16xf32>
    %413 = arith.addf %396, %412 : vector<16x16xf32>
    %c2_173 = arith.constant 2 : index
    %c23_174 = arith.constant 23 : index
    %414 = memref.load %arg1[%c2_173, %c23_174] : memref<4x27xf32, #tpu.memory_space<smem>>
    %415 = vector.broadcast %414 : f32 to vector<16x16xf32>
    %416 = arith.mulf %405, %415 : vector<16x16xf32>
    %417 = arith.addf %400, %416 : vector<16x16xf32>
    %c3_175 = arith.constant 3 : index
    %c23_176 = arith.constant 23 : index
    %418 = memref.load %arg1[%c3_175, %c23_176] : memref<4x27xf32, #tpu.memory_space<smem>>
    %419 = vector.broadcast %418 : f32 to vector<16x16xf32>
    %420 = arith.mulf %405, %419 : vector<16x16xf32>
    %421 = arith.addf %404, %420 : vector<16x16xf32>
    %422 = vector.extract_strided_slice %319 {offsets = [2, 0], sizes = [16, 16], strides = [1, 1]} : vector<18x18xf32> to vector<16x16xf32>
    %c0_177 = arith.constant 0 : index
    %c24 = arith.constant 24 : index
    %423 = memref.load %arg1[%c0_177, %c24] : memref<4x27xf32, #tpu.memory_space<smem>>
    %424 = vector.broadcast %423 : f32 to vector<16x16xf32>
    %425 = arith.mulf %422, %424 : vector<16x16xf32>
    %426 = arith.addf %409, %425 : vector<16x16xf32>
    %c1_178 = arith.constant 1 : index
    %c24_179 = arith.constant 24 : index
    %427 = memref.load %arg1[%c1_178, %c24_179] : memref<4x27xf32, #tpu.memory_space<smem>>
    %428 = vector.broadcast %427 : f32 to vector<16x16xf32>
    %429 = arith.mulf %422, %428 : vector<16x16xf32>
    %430 = arith.addf %413, %429 : vector<16x16xf32>
    %c2_180 = arith.constant 2 : index
    %c24_181 = arith.constant 24 : index
    %431 = memref.load %arg1[%c2_180, %c24_181] : memref<4x27xf32, #tpu.memory_space<smem>>
    %432 = vector.broadcast %431 : f32 to vector<16x16xf32>
    %433 = arith.mulf %422, %432 : vector<16x16xf32>
    %434 = arith.addf %417, %433 : vector<16x16xf32>
    %c3_182 = arith.constant 3 : index
    %c24_183 = arith.constant 24 : index
    %435 = memref.load %arg1[%c3_182, %c24_183] : memref<4x27xf32, #tpu.memory_space<smem>>
    %436 = vector.broadcast %435 : f32 to vector<16x16xf32>
    %437 = arith.mulf %422, %436 : vector<16x16xf32>
    %438 = arith.addf %421, %437 : vector<16x16xf32>
    %439 = vector.extract_strided_slice %319 {offsets = [2, 1], sizes = [16, 16], strides = [1, 1]} : vector<18x18xf32> to vector<16x16xf32>
    %c0_184 = arith.constant 0 : index
    %c25 = arith.constant 25 : index
    %440 = memref.load %arg1[%c0_184, %c25] : memref<4x27xf32, #tpu.memory_space<smem>>
    %441 = vector.broadcast %440 : f32 to vector<16x16xf32>
    %442 = arith.mulf %439, %441 : vector<16x16xf32>
    %443 = arith.addf %426, %442 : vector<16x16xf32>
    %c1_185 = arith.constant 1 : index
    %c25_186 = arith.constant 25 : index
    %444 = memref.load %arg1[%c1_185, %c25_186] : memref<4x27xf32, #tpu.memory_space<smem>>
    %445 = vector.broadcast %444 : f32 to vector<16x16xf32>
    %446 = arith.mulf %439, %445 : vector<16x16xf32>
    %447 = arith.addf %430, %446 : vector<16x16xf32>
    %c2_187 = arith.constant 2 : index
    %c25_188 = arith.constant 25 : index
    %448 = memref.load %arg1[%c2_187, %c25_188] : memref<4x27xf32, #tpu.memory_space<smem>>
    %449 = vector.broadcast %448 : f32 to vector<16x16xf32>
    %450 = arith.mulf %439, %449 : vector<16x16xf32>
    %451 = arith.addf %434, %450 : vector<16x16xf32>
    %c3_189 = arith.constant 3 : index
    %c25_190 = arith.constant 25 : index
    %452 = memref.load %arg1[%c3_189, %c25_190] : memref<4x27xf32, #tpu.memory_space<smem>>
    %453 = vector.broadcast %452 : f32 to vector<16x16xf32>
    %454 = arith.mulf %439, %453 : vector<16x16xf32>
    %455 = arith.addf %438, %454 : vector<16x16xf32>
    %456 = vector.extract_strided_slice %319 {offsets = [2, 2], sizes = [16, 16], strides = [1, 1]} : vector<18x18xf32> to vector<16x16xf32>
    %c0_191 = arith.constant 0 : index
    %c26 = arith.constant 26 : index
    %457 = memref.load %arg1[%c0_191, %c26] : memref<4x27xf32, #tpu.memory_space<smem>>
    %458 = vector.broadcast %457 : f32 to vector<16x16xf32>
    %459 = arith.mulf %456, %458 : vector<16x16xf32>
    %460 = arith.addf %443, %459 : vector<16x16xf32>
    %c1_192 = arith.constant 1 : index
    %c26_193 = arith.constant 26 : index
    %461 = memref.load %arg1[%c1_192, %c26_193] : memref<4x27xf32, #tpu.memory_space<smem>>
    %462 = vector.broadcast %461 : f32 to vector<16x16xf32>
    %463 = arith.mulf %456, %462 : vector<16x16xf32>
    %464 = arith.addf %447, %463 : vector<16x16xf32>
    %c2_194 = arith.constant 2 : index
    %c26_195 = arith.constant 26 : index
    %465 = memref.load %arg1[%c2_194, %c26_195] : memref<4x27xf32, #tpu.memory_space<smem>>
    %466 = vector.broadcast %465 : f32 to vector<16x16xf32>
    %467 = arith.mulf %456, %466 : vector<16x16xf32>
    %468 = arith.addf %451, %467 : vector<16x16xf32>
    %c3_196 = arith.constant 3 : index
    %c26_197 = arith.constant 26 : index
    %469 = memref.load %arg1[%c3_196, %c26_197] : memref<4x27xf32, #tpu.memory_space<smem>>
    %470 = vector.broadcast %469 : f32 to vector<16x16xf32>
    %471 = arith.mulf %456, %470 : vector<16x16xf32>
    %472 = arith.addf %455, %471 : vector<16x16xf32>
    %473 = vector.shape_cast %460 : vector<16x16xf32> to vector<1x16x16xf32>
    %474 = vector.shape_cast %464 : vector<16x16xf32> to vector<1x16x16xf32>
    %475 = vector.shape_cast %468 : vector<16x16xf32> to vector<1x16x16xf32>
    %476 = vector.shape_cast %472 : vector<16x16xf32> to vector<1x16x16xf32>
    %477 = tpu.concatenate %473, %474, %475, %476 in 0 : vector<1x16x16xf32>, vector<1x16x16xf32>, vector<1x16x16xf32>, vector<1x16x16xf32> -> vector<4x16x16xf32>
    %c0_198 = arith.constant 0 : index
    %c0_199 = arith.constant 0 : index
    %c0_200 = arith.constant 0 : index
    %c0_201 = arith.constant 0 : index
    %478 = vector.load %arg5[%c0_198, %c0_199, %c0_200, %c0_201] : memref<2x4x16x16xf32, #tpu.memory_space<vmem>>, vector<1x4x16x16xf32>
    %479 = vector.shape_cast %478 : vector<1x4x16x16xf32> to vector<4x16x16xf32>
    %480 = vector.shape_cast %477 : vector<4x16x16xf32> to vector<1x4x16x16xf32>
    tpu.vector_store %arg5[%c0_198, %c0_199, %c0_200, %c0_201], %480 {strides = array<i32>} : memref<2x4x16x16xf32, #tpu.memory_space<vmem>>, vector<1x4x16x16xf32>,
    %cst_202 = arith.constant dense<0.000000e+00> : vector<4x16xf32>
    %481 = vector.multi_reduction <add>, %477, %cst_202 [2] : vector<4x16x16xf32> to vector<4x16xf32>
    %482 = vector.shape_cast %481 : vector<4x16xf32> to vector<4x16x1xf32>
    %cst_203 = arith.constant dense<0.000000e+00> : vector<4x1xf32>
    %483 = vector.multi_reduction <add>, %482, %cst_203 [1] : vector<4x16x1xf32> to vector<4x1xf32>
    %484 = vector.shape_cast %483 : vector<4x1xf32> to vector<4x1x1xf32>
    %485 = arith.addf %0, %484 : vector<4x1x1xf32>
    %486 = arith.mulf %477, %477 : vector<4x16x16xf32>
    %cst_204 = arith.constant dense<0.000000e+00> : vector<4x16xf32>
    %487 = vector.multi_reduction <add>, %486, %cst_204 [2] : vector<4x16x16xf32> to vector<4x16xf32>
    %488 = vector.shape_cast %487 : vector<4x16xf32> to vector<4x16x1xf32>
    %cst_205 = arith.constant dense<0.000000e+00> : vector<4x1xf32>
    %489 = vector.multi_reduction <add>, %488, %cst_205 [1] : vector<4x16x1xf32> to vector<4x1xf32>
    %490 = vector.shape_cast %489 : vector<4x1xf32> to vector<4x1x1xf32>
    %491 = arith.addf %1, %490 : vector<4x1x1xf32>
    %c1_206 = arith.constant 1 : index
    %c0_207 = arith.constant 0 : index
    %c0_208 = arith.constant 0 : index
    %c0_209 = arith.constant 0 : index
    %492 = vector.load %arg0[%c1_206, %c0_207, %c0_208, %c0_209] : memref<2x3x18x18xf32, #tpu.memory_space<vmem>>, vector<1x3x18x18xf32>
    %493 = vector.shape_cast %492 : vector<1x3x18x18xf32> to vector<3x18x18xf32>
    %cst_210 = arith.constant 0.000000e+00 : f32
    %494 = vector.broadcast %cst_210 : f32 to vector<16x16xf32>
    %cst_211 = arith.constant 0.000000e+00 : f32
    %495 = vector.broadcast %cst_211 : f32 to vector<16x16xf32>
    %cst_212 = arith.constant 0.000000e+00 : f32
    %496 = vector.broadcast %cst_212 : f32 to vector<16x16xf32>
    %cst_213 = arith.constant 0.000000e+00 : f32
    %497 = vector.broadcast %cst_213 : f32 to vector<16x16xf32>
    %498 = vector.extract_strided_slice %493 {offsets = [0, 0, 0], sizes = [1, 18, 18], strides = [1, 1, 1]} : vector<3x18x18xf32> to vector<1x18x18xf32>
    %499 = vector.shape_cast %498 : vector<1x18x18xf32> to vector<18x18xf32>
    %500 = vector.extract_strided_slice %499 {offsets = [0, 0], sizes = [16, 16], strides = [1, 1]} : vector<18x18xf32> to vector<16x16xf32>
    %c0_214 = arith.constant 0 : index
    %c0_215 = arith.constant 0 : index
    %501 = memref.load %arg1[%c0_214, %c0_215] : memref<4x27xf32, #tpu.memory_space<smem>>
    %502 = vector.broadcast %501 : f32 to vector<16x16xf32>
    %503 = arith.mulf %500, %502 : vector<16x16xf32>
    %504 = arith.addf %494, %503 : vector<16x16xf32>
    %c1_216 = arith.constant 1 : index
    %c0_217 = arith.constant 0 : index
    %505 = memref.load %arg1[%c1_216, %c0_217] : memref<4x27xf32, #tpu.memory_space<smem>>
    %506 = vector.broadcast %505 : f32 to vector<16x16xf32>
    %507 = arith.mulf %500, %506 : vector<16x16xf32>
    %508 = arith.addf %495, %507 : vector<16x16xf32>
    %c2_218 = arith.constant 2 : index
    %c0_219 = arith.constant 0 : index
    %509 = memref.load %arg1[%c2_218, %c0_219] : memref<4x27xf32, #tpu.memory_space<smem>>
    %510 = vector.broadcast %509 : f32 to vector<16x16xf32>
    %511 = arith.mulf %500, %510 : vector<16x16xf32>
    %512 = arith.addf %496, %511 : vector<16x16xf32>
    %c3_220 = arith.constant 3 : index
    %c0_221 = arith.constant 0 : index
    %513 = memref.load %arg1[%c3_220, %c0_221] : memref<4x27xf32, #tpu.memory_space<smem>>
    %514 = vector.broadcast %513 : f32 to vector<16x16xf32>
    %515 = arith.mulf %500, %514 : vector<16x16xf32>
    %516 = arith.addf %497, %515 : vector<16x16xf32>
    %517 = vector.extract_strided_slice %499 {offsets = [0, 1], sizes = [16, 16], strides = [1, 1]} : vector<18x18xf32> to vector<16x16xf32>
    %c0_222 = arith.constant 0 : index
    %c1_223 = arith.constant 1 : index
    %518 = memref.load %arg1[%c0_222, %c1_223] : memref<4x27xf32, #tpu.memory_space<smem>>
    %519 = vector.broadcast %518 : f32 to vector<16x16xf32>
    %520 = arith.mulf %517, %519 : vector<16x16xf32>
    %521 = arith.addf %504, %520 : vector<16x16xf32>
    %c1_224 = arith.constant 1 : index
    %c1_225 = arith.constant 1 : index
    %522 = memref.load %arg1[%c1_224, %c1_225] : memref<4x27xf32, #tpu.memory_space<smem>>
    %523 = vector.broadcast %522 : f32 to vector<16x16xf32>
    %524 = arith.mulf %517, %523 : vector<16x16xf32>
    %525 = arith.addf %508, %524 : vector<16x16xf32>
    %c2_226 = arith.constant 2 : index
    %c1_227 = arith.constant 1 : index
    %526 = memref.load %arg1[%c2_226, %c1_227] : memref<4x27xf32, #tpu.memory_space<smem>>
    %527 = vector.broadcast %526 : f32 to vector<16x16xf32>
    %528 = arith.mulf %517, %527 : vector<16x16xf32>
    %529 = arith.addf %512, %528 : vector<16x16xf32>
    %c3_228 = arith.constant 3 : index
    %c1_229 = arith.constant 1 : index
    %530 = memref.load %arg1[%c3_228, %c1_229] : memref<4x27xf32, #tpu.memory_space<smem>>
    %531 = vector.broadcast %530 : f32 to vector<16x16xf32>
    %532 = arith.mulf %517, %531 : vector<16x16xf32>
    %533 = arith.addf %516, %532 : vector<16x16xf32>
    %534 = vector.extract_strided_slice %499 {offsets = [0, 2], sizes = [16, 16], strides = [1, 1]} : vector<18x18xf32> to vector<16x16xf32>
    %c0_230 = arith.constant 0 : index
    %c2_231 = arith.constant 2 : index
    %535 = memref.load %arg1[%c0_230, %c2_231] : memref<4x27xf32, #tpu.memory_space<smem>>
    %536 = vector.broadcast %535 : f32 to vector<16x16xf32>
    %537 = arith.mulf %534, %536 : vector<16x16xf32>
    %538 = arith.addf %521, %537 : vector<16x16xf32>
    %c1_232 = arith.constant 1 : index
    %c2_233 = arith.constant 2 : index
    %539 = memref.load %arg1[%c1_232, %c2_233] : memref<4x27xf32, #tpu.memory_space<smem>>
    %540 = vector.broadcast %539 : f32 to vector<16x16xf32>
    %541 = arith.mulf %534, %540 : vector<16x16xf32>
    %542 = arith.addf %525, %541 : vector<16x16xf32>
    %c2_234 = arith.constant 2 : index
    %c2_235 = arith.constant 2 : index
    %543 = memref.load %arg1[%c2_234, %c2_235] : memref<4x27xf32, #tpu.memory_space<smem>>
    %544 = vector.broadcast %543 : f32 to vector<16x16xf32>
    %545 = arith.mulf %534, %544 : vector<16x16xf32>
    %546 = arith.addf %529, %545 : vector<16x16xf32>
    %c3_236 = arith.constant 3 : index
    %c2_237 = arith.constant 2 : index
    %547 = memref.load %arg1[%c3_236, %c2_237] : memref<4x27xf32, #tpu.memory_space<smem>>
    %548 = vector.broadcast %547 : f32 to vector<16x16xf32>
    %549 = arith.mulf %534, %548 : vector<16x16xf32>
    %550 = arith.addf %533, %549 : vector<16x16xf32>
    %551 = vector.extract_strided_slice %499 {offsets = [1, 0], sizes = [16, 16], strides = [1, 1]} : vector<18x18xf32> to vector<16x16xf32>
    %c0_238 = arith.constant 0 : index
    %c3_239 = arith.constant 3 : index
    %552 = memref.load %arg1[%c0_238, %c3_239] : memref<4x27xf32, #tpu.memory_space<smem>>
    %553 = vector.broadcast %552 : f32 to vector<16x16xf32>
    %554 = arith.mulf %551, %553 : vector<16x16xf32>
    %555 = arith.addf %538, %554 : vector<16x16xf32>
    %c1_240 = arith.constant 1 : index
    %c3_241 = arith.constant 3 : index
    %556 = memref.load %arg1[%c1_240, %c3_241] : memref<4x27xf32, #tpu.memory_space<smem>>
    %557 = vector.broadcast %556 : f32 to vector<16x16xf32>
    %558 = arith.mulf %551, %557 : vector<16x16xf32>
    %559 = arith.addf %542, %558 : vector<16x16xf32>
    %c2_242 = arith.constant 2 : index
    %c3_243 = arith.constant 3 : index
    %560 = memref.load %arg1[%c2_242, %c3_243] : memref<4x27xf32, #tpu.memory_space<smem>>
    %561 = vector.broadcast %560 : f32 to vector<16x16xf32>
    %562 = arith.mulf %551, %561 : vector<16x16xf32>
    %563 = arith.addf %546, %562 : vector<16x16xf32>
    %c3_244 = arith.constant 3 : index
    %c3_245 = arith.constant 3 : index
    %564 = memref.load %arg1[%c3_244, %c3_245] : memref<4x27xf32, #tpu.memory_space<smem>>
    %565 = vector.broadcast %564 : f32 to vector<16x16xf32>
    %566 = arith.mulf %551, %565 : vector<16x16xf32>
    %567 = arith.addf %550, %566 : vector<16x16xf32>
    %568 = vector.extract_strided_slice %499 {offsets = [1, 1], sizes = [16, 16], strides = [1, 1]} : vector<18x18xf32> to vector<16x16xf32>
    %c0_246 = arith.constant 0 : index
    %c4_247 = arith.constant 4 : index
    %569 = memref.load %arg1[%c0_246, %c4_247] : memref<4x27xf32, #tpu.memory_space<smem>>
    %570 = vector.broadcast %569 : f32 to vector<16x16xf32>
    %571 = arith.mulf %568, %570 : vector<16x16xf32>
    %572 = arith.addf %555, %571 : vector<16x16xf32>
    %c1_248 = arith.constant 1 : index
    %c4_249 = arith.constant 4 : index
    %573 = memref.load %arg1[%c1_248, %c4_249] : memref<4x27xf32, #tpu.memory_space<smem>>
    %574 = vector.broadcast %573 : f32 to vector<16x16xf32>
    %575 = arith.mulf %568, %574 : vector<16x16xf32>
    %576 = arith.addf %559, %575 : vector<16x16xf32>
    %c2_250 = arith.constant 2 : index
    %c4_251 = arith.constant 4 : index
    %577 = memref.load %arg1[%c2_250, %c4_251] : memref<4x27xf32, #tpu.memory_space<smem>>
    %578 = vector.broadcast %577 : f32 to vector<16x16xf32>
    %579 = arith.mulf %568, %578 : vector<16x16xf32>
    %580 = arith.addf %563, %579 : vector<16x16xf32>
    %c3_252 = arith.constant 3 : index
    %c4_253 = arith.constant 4 : index
    %581 = memref.load %arg1[%c3_252, %c4_253] : memref<4x27xf32, #tpu.memory_space<smem>>
    %582 = vector.broadcast %581 : f32 to vector<16x16xf32>
    %583 = arith.mulf %568, %582 : vector<16x16xf32>
    %584 = arith.addf %567, %583 : vector<16x16xf32>
    %585 = vector.extract_strided_slice %499 {offsets = [1, 2], sizes = [16, 16], strides = [1, 1]} : vector<18x18xf32> to vector<16x16xf32>
    %c0_254 = arith.constant 0 : index
    %c5_255 = arith.constant 5 : index
    %586 = memref.load %arg1[%c0_254, %c5_255] : memref<4x27xf32, #tpu.memory_space<smem>>
    %587 = vector.broadcast %586 : f32 to vector<16x16xf32>
    %588 = arith.mulf %585, %587 : vector<16x16xf32>
    %589 = arith.addf %572, %588 : vector<16x16xf32>
    %c1_256 = arith.constant 1 : index
    %c5_257 = arith.constant 5 : index
    %590 = memref.load %arg1[%c1_256, %c5_257] : memref<4x27xf32, #tpu.memory_space<smem>>
    %591 = vector.broadcast %590 : f32 to vector<16x16xf32>
    %592 = arith.mulf %585, %591 : vector<16x16xf32>
    %593 = arith.addf %576, %592 : vector<16x16xf32>
    %c2_258 = arith.constant 2 : index
    %c5_259 = arith.constant 5 : index
    %594 = memref.load %arg1[%c2_258, %c5_259] : memref<4x27xf32, #tpu.memory_space<smem>>
    %595 = vector.broadcast %594 : f32 to vector<16x16xf32>
    %596 = arith.mulf %585, %595 : vector<16x16xf32>
    %597 = arith.addf %580, %596 : vector<16x16xf32>
    %c3_260 = arith.constant 3 : index
    %c5_261 = arith.constant 5 : index
    %598 = memref.load %arg1[%c3_260, %c5_261] : memref<4x27xf32, #tpu.memory_space<smem>>
    %599 = vector.broadcast %598 : f32 to vector<16x16xf32>
    %600 = arith.mulf %585, %599 : vector<16x16xf32>
    %601 = arith.addf %584, %600 : vector<16x16xf32>
    %602 = vector.extract_strided_slice %499 {offsets = [2, 0], sizes = [16, 16], strides = [1, 1]} : vector<18x18xf32> to vector<16x16xf32>
    %c0_262 = arith.constant 0 : index
    %c6_263 = arith.constant 6 : index
    %603 = memref.load %arg1[%c0_262, %c6_263] : memref<4x27xf32, #tpu.memory_space<smem>>
    %604 = vector.broadcast %603 : f32 to vector<16x16xf32>
    %605 = arith.mulf %602, %604 : vector<16x16xf32>
    %606 = arith.addf %589, %605 : vector<16x16xf32>
    %c1_264 = arith.constant 1 : index
    %c6_265 = arith.constant 6 : index
    %607 = memref.load %arg1[%c1_264, %c6_265] : memref<4x27xf32, #tpu.memory_space<smem>>
    %608 = vector.broadcast %607 : f32 to vector<16x16xf32>
    %609 = arith.mulf %602, %608 : vector<16x16xf32>
    %610 = arith.addf %593, %609 : vector<16x16xf32>
    %c2_266 = arith.constant 2 : index
    %c6_267 = arith.constant 6 : index
    %611 = memref.load %arg1[%c2_266, %c6_267] : memref<4x27xf32, #tpu.memory_space<smem>>
    %612 = vector.broadcast %611 : f32 to vector<16x16xf32>
    %613 = arith.mulf %602, %612 : vector<16x16xf32>
    %614 = arith.addf %597, %613 : vector<16x16xf32>
    %c3_268 = arith.constant 3 : index
    %c6_269 = arith.constant 6 : index
    %615 = memref.load %arg1[%c3_268, %c6_269] : memref<4x27xf32, #tpu.memory_space<smem>>
    %616 = vector.broadcast %615 : f32 to vector<16x16xf32>
    %617 = arith.mulf %602, %616 : vector<16x16xf32>
    %618 = arith.addf %601, %617 : vector<16x16xf32>
    %619 = vector.extract_strided_slice %499 {offsets = [2, 1], sizes = [16, 16], strides = [1, 1]} : vector<18x18xf32> to vector<16x16xf32>
    %c0_270 = arith.constant 0 : index
    %c7_271 = arith.constant 7 : index
    %620 = memref.load %arg1[%c0_270, %c7_271] : memref<4x27xf32, #tpu.memory_space<smem>>
    %621 = vector.broadcast %620 : f32 to vector<16x16xf32>
    %622 = arith.mulf %619, %621 : vector<16x16xf32>
    %623 = arith.addf %606, %622 : vector<16x16xf32>
    %c1_272 = arith.constant 1 : index
    %c7_273 = arith.constant 7 : index
    %624 = memref.load %arg1[%c1_272, %c7_273] : memref<4x27xf32, #tpu.memory_space<smem>>
    %625 = vector.broadcast %624 : f32 to vector<16x16xf32>
    %626 = arith.mulf %619, %625 : vector<16x16xf32>
    %627 = arith.addf %610, %626 : vector<16x16xf32>
    %c2_274 = arith.constant 2 : index
    %c7_275 = arith.constant 7 : index
    %628 = memref.load %arg1[%c2_274, %c7_275] : memref<4x27xf32, #tpu.memory_space<smem>>
    %629 = vector.broadcast %628 : f32 to vector<16x16xf32>
    %630 = arith.mulf %619, %629 : vector<16x16xf32>
    %631 = arith.addf %614, %630 : vector<16x16xf32>
    %c3_276 = arith.constant 3 : index
    %c7_277 = arith.constant 7 : index
    %632 = memref.load %arg1[%c3_276, %c7_277] : memref<4x27xf32, #tpu.memory_space<smem>>
    %633 = vector.broadcast %632 : f32 to vector<16x16xf32>
    %634 = arith.mulf %619, %633 : vector<16x16xf32>
    %635 = arith.addf %618, %634 : vector<16x16xf32>
    %636 = vector.extract_strided_slice %499 {offsets = [2, 2], sizes = [16, 16], strides = [1, 1]} : vector<18x18xf32> to vector<16x16xf32>
    %c0_278 = arith.constant 0 : index
    %c8_279 = arith.constant 8 : index
    %637 = memref.load %arg1[%c0_278, %c8_279] : memref<4x27xf32, #tpu.memory_space<smem>>
    %638 = vector.broadcast %637 : f32 to vector<16x16xf32>
    %639 = arith.mulf %636, %638 : vector<16x16xf32>
    %640 = arith.addf %623, %639 : vector<16x16xf32>
    %c1_280 = arith.constant 1 : index
    %c8_281 = arith.constant 8 : index
    %641 = memref.load %arg1[%c1_280, %c8_281] : memref<4x27xf32, #tpu.memory_space<smem>>
    %642 = vector.broadcast %641 : f32 to vector<16x16xf32>
    %643 = arith.mulf %636, %642 : vector<16x16xf32>
    %644 = arith.addf %627, %643 : vector<16x16xf32>
    %c2_282 = arith.constant 2 : index
    %c8_283 = arith.constant 8 : index
    %645 = memref.load %arg1[%c2_282, %c8_283] : memref<4x27xf32, #tpu.memory_space<smem>>
    %646 = vector.broadcast %645 : f32 to vector<16x16xf32>
    %647 = arith.mulf %636, %646 : vector<16x16xf32>
    %648 = arith.addf %631, %647 : vector<16x16xf32>
    %c3_284 = arith.constant 3 : index
    %c8_285 = arith.constant 8 : index
    %649 = memref.load %arg1[%c3_284, %c8_285] : memref<4x27xf32, #tpu.memory_space<smem>>
    %650 = vector.broadcast %649 : f32 to vector<16x16xf32>
    %651 = arith.mulf %636, %650 : vector<16x16xf32>
    %652 = arith.addf %635, %651 : vector<16x16xf32>
    %653 = vector.extract_strided_slice %493 {offsets = [1, 0, 0], sizes = [1, 18, 18], strides = [1, 1, 1]} : vector<3x18x18xf32> to vector<1x18x18xf32>
    %654 = vector.shape_cast %653 : vector<1x18x18xf32> to vector<18x18xf32>
    %655 = vector.extract_strided_slice %654 {offsets = [0, 0], sizes = [16, 16], strides = [1, 1]} : vector<18x18xf32> to vector<16x16xf32>
    %c0_286 = arith.constant 0 : index
    %c9_287 = arith.constant 9 : index
    %656 = memref.load %arg1[%c0_286, %c9_287] : memref<4x27xf32, #tpu.memory_space<smem>>
    %657 = vector.broadcast %656 : f32 to vector<16x16xf32>
    %658 = arith.mulf %655, %657 : vector<16x16xf32>
    %659 = arith.addf %640, %658 : vector<16x16xf32>
    %c1_288 = arith.constant 1 : index
    %c9_289 = arith.constant 9 : index
    %660 = memref.load %arg1[%c1_288, %c9_289] : memref<4x27xf32, #tpu.memory_space<smem>>
    %661 = vector.broadcast %660 : f32 to vector<16x16xf32>
    %662 = arith.mulf %655, %661 : vector<16x16xf32>
    %663 = arith.addf %644, %662 : vector<16x16xf32>
    %c2_290 = arith.constant 2 : index
    %c9_291 = arith.constant 9 : index
    %664 = memref.load %arg1[%c2_290, %c9_291] : memref<4x27xf32, #tpu.memory_space<smem>>
    %665 = vector.broadcast %664 : f32 to vector<16x16xf32>
    %666 = arith.mulf %655, %665 : vector<16x16xf32>
    %667 = arith.addf %648, %666 : vector<16x16xf32>
    %c3_292 = arith.constant 3 : index
    %c9_293 = arith.constant 9 : index
    %668 = memref.load %arg1[%c3_292, %c9_293] : memref<4x27xf32, #tpu.memory_space<smem>>
    %669 = vector.broadcast %668 : f32 to vector<16x16xf32>
    %670 = arith.mulf %655, %669 : vector<16x16xf32>
    %671 = arith.addf %652, %670 : vector<16x16xf32>
    %672 = vector.extract_strided_slice %654 {offsets = [0, 1], sizes = [16, 16], strides = [1, 1]} : vector<18x18xf32> to vector<16x16xf32>
    %c0_294 = arith.constant 0 : index
    %c10_295 = arith.constant 10 : index
    %673 = memref.load %arg1[%c0_294, %c10_295] : memref<4x27xf32, #tpu.memory_space<smem>>
    %674 = vector.broadcast %673 : f32 to vector<16x16xf32>
    %675 = arith.mulf %672, %674 : vector<16x16xf32>
    %676 = arith.addf %659, %675 : vector<16x16xf32>
    %c1_296 = arith.constant 1 : index
    %c10_297 = arith.constant 10 : index
    %677 = memref.load %arg1[%c1_296, %c10_297] : memref<4x27xf32, #tpu.memory_space<smem>>
    %678 = vector.broadcast %677 : f32 to vector<16x16xf32>
    %679 = arith.mulf %672, %678 : vector<16x16xf32>
    %680 = arith.addf %663, %679 : vector<16x16xf32>
    %c2_298 = arith.constant 2 : index
    %c10_299 = arith.constant 10 : index
    %681 = memref.load %arg1[%c2_298, %c10_299] : memref<4x27xf32, #tpu.memory_space<smem>>
    %682 = vector.broadcast %681 : f32 to vector<16x16xf32>
    %683 = arith.mulf %672, %682 : vector<16x16xf32>
    %684 = arith.addf %667, %683 : vector<16x16xf32>
    %c3_300 = arith.constant 3 : index
    %c10_301 = arith.constant 10 : index
    %685 = memref.load %arg1[%c3_300, %c10_301] : memref<4x27xf32, #tpu.memory_space<smem>>
    %686 = vector.broadcast %685 : f32 to vector<16x16xf32>
    %687 = arith.mulf %672, %686 : vector<16x16xf32>
    %688 = arith.addf %671, %687 : vector<16x16xf32>
    %689 = vector.extract_strided_slice %654 {offsets = [0, 2], sizes = [16, 16], strides = [1, 1]} : vector<18x18xf32> to vector<16x16xf32>
    %c0_302 = arith.constant 0 : index
    %c11_303 = arith.constant 11 : index
    %690 = memref.load %arg1[%c0_302, %c11_303] : memref<4x27xf32, #tpu.memory_space<smem>>
    %691 = vector.broadcast %690 : f32 to vector<16x16xf32>
    %692 = arith.mulf %689, %691 : vector<16x16xf32>
    %693 = arith.addf %676, %692 : vector<16x16xf32>
    %c1_304 = arith.constant 1 : index
    %c11_305 = arith.constant 11 : index
    %694 = memref.load %arg1[%c1_304, %c11_305] : memref<4x27xf32, #tpu.memory_space<smem>>
    %695 = vector.broadcast %694 : f32 to vector<16x16xf32>
    %696 = arith.mulf %689, %695 : vector<16x16xf32>
    %697 = arith.addf %680, %696 : vector<16x16xf32>
    %c2_306 = arith.constant 2 : index
    %c11_307 = arith.constant 11 : index
    %698 = memref.load %arg1[%c2_306, %c11_307] : memref<4x27xf32, #tpu.memory_space<smem>>
    %699 = vector.broadcast %698 : f32 to vector<16x16xf32>
    %700 = arith.mulf %689, %699 : vector<16x16xf32>
    %701 = arith.addf %684, %700 : vector<16x16xf32>
    %c3_308 = arith.constant 3 : index
    %c11_309 = arith.constant 11 : index
    %702 = memref.load %arg1[%c3_308, %c11_309] : memref<4x27xf32, #tpu.memory_space<smem>>
    %703 = vector.broadcast %702 : f32 to vector<16x16xf32>
    %704 = arith.mulf %689, %703 : vector<16x16xf32>
    %705 = arith.addf %688, %704 : vector<16x16xf32>
    %706 = vector.extract_strided_slice %654 {offsets = [1, 0], sizes = [16, 16], strides = [1, 1]} : vector<18x18xf32> to vector<16x16xf32>
    %c0_310 = arith.constant 0 : index
    %c12_311 = arith.constant 12 : index
    %707 = memref.load %arg1[%c0_310, %c12_311] : memref<4x27xf32, #tpu.memory_space<smem>>
    %708 = vector.broadcast %707 : f32 to vector<16x16xf32>
    %709 = arith.mulf %706, %708 : vector<16x16xf32>
    %710 = arith.addf %693, %709 : vector<16x16xf32>
    %c1_312 = arith.constant 1 : index
    %c12_313 = arith.constant 12 : index
    %711 = memref.load %arg1[%c1_312, %c12_313] : memref<4x27xf32, #tpu.memory_space<smem>>
    %712 = vector.broadcast %711 : f32 to vector<16x16xf32>
    %713 = arith.mulf %706, %712 : vector<16x16xf32>
    %714 = arith.addf %697, %713 : vector<16x16xf32>
    %c2_314 = arith.constant 2 : index
    %c12_315 = arith.constant 12 : index
    %715 = memref.load %arg1[%c2_314, %c12_315] : memref<4x27xf32, #tpu.memory_space<smem>>
    %716 = vector.broadcast %715 : f32 to vector<16x16xf32>
    %717 = arith.mulf %706, %716 : vector<16x16xf32>
    %718 = arith.addf %701, %717 : vector<16x16xf32>
    %c3_316 = arith.constant 3 : index
    %c12_317 = arith.constant 12 : index
    %719 = memref.load %arg1[%c3_316, %c12_317] : memref<4x27xf32, #tpu.memory_space<smem>>
    %720 = vector.broadcast %719 : f32 to vector<16x16xf32>
    %721 = arith.mulf %706, %720 : vector<16x16xf32>
    %722 = arith.addf %705, %721 : vector<16x16xf32>
    %723 = vector.extract_strided_slice %654 {offsets = [1, 1], sizes = [16, 16], strides = [1, 1]} : vector<18x18xf32> to vector<16x16xf32>
    %c0_318 = arith.constant 0 : index
    %c13_319 = arith.constant 13 : index
    %724 = memref.load %arg1[%c0_318, %c13_319] : memref<4x27xf32, #tpu.memory_space<smem>>
    %725 = vector.broadcast %724 : f32 to vector<16x16xf32>
    %726 = arith.mulf %723, %725 : vector<16x16xf32>
    %727 = arith.addf %710, %726 : vector<16x16xf32>
    %c1_320 = arith.constant 1 : index
    %c13_321 = arith.constant 13 : index
    %728 = memref.load %arg1[%c1_320, %c13_321] : memref<4x27xf32, #tpu.memory_space<smem>>
    %729 = vector.broadcast %728 : f32 to vector<16x16xf32>
    %730 = arith.mulf %723, %729 : vector<16x16xf32>
    %731 = arith.addf %714, %730 : vector<16x16xf32>
    %c2_322 = arith.constant 2 : index
    %c13_323 = arith.constant 13 : index
    %732 = memref.load %arg1[%c2_322, %c13_323] : memref<4x27xf32, #tpu.memory_space<smem>>
    %733 = vector.broadcast %732 : f32 to vector<16x16xf32>
    %734 = arith.mulf %723, %733 : vector<16x16xf32>
    %735 = arith.addf %718, %734 : vector<16x16xf32>
    %c3_324 = arith.constant 3 : index
    %c13_325 = arith.constant 13 : index
    %736 = memref.load %arg1[%c3_324, %c13_325] : memref<4x27xf32, #tpu.memory_space<smem>>
    %737 = vector.broadcast %736 : f32 to vector<16x16xf32>
    %738 = arith.mulf %723, %737 : vector<16x16xf32>
    %739 = arith.addf %722, %738 : vector<16x16xf32>
    %740 = vector.extract_strided_slice %654 {offsets = [1, 2], sizes = [16, 16], strides = [1, 1]} : vector<18x18xf32> to vector<16x16xf32>
    %c0_326 = arith.constant 0 : index
    %c14_327 = arith.constant 14 : index
    %741 = memref.load %arg1[%c0_326, %c14_327] : memref<4x27xf32, #tpu.memory_space<smem>>
    %742 = vector.broadcast %741 : f32 to vector<16x16xf32>
    %743 = arith.mulf %740, %742 : vector<16x16xf32>
    %744 = arith.addf %727, %743 : vector<16x16xf32>
    %c1_328 = arith.constant 1 : index
    %c14_329 = arith.constant 14 : index
    %745 = memref.load %arg1[%c1_328, %c14_329] : memref<4x27xf32, #tpu.memory_space<smem>>
    %746 = vector.broadcast %745 : f32 to vector<16x16xf32>
    %747 = arith.mulf %740, %746 : vector<16x16xf32>
    %748 = arith.addf %731, %747 : vector<16x16xf32>
    %c2_330 = arith.constant 2 : index
    %c14_331 = arith.constant 14 : index
    %749 = memref.load %arg1[%c2_330, %c14_331] : memref<4x27xf32, #tpu.memory_space<smem>>
    %750 = vector.broadcast %749 : f32 to vector<16x16xf32>
    %751 = arith.mulf %740, %750 : vector<16x16xf32>
    %752 = arith.addf %735, %751 : vector<16x16xf32>
    %c3_332 = arith.constant 3 : index
    %c14_333 = arith.constant 14 : index
    %753 = memref.load %arg1[%c3_332, %c14_333] : memref<4x27xf32, #tpu.memory_space<smem>>
    %754 = vector.broadcast %753 : f32 to vector<16x16xf32>
    %755 = arith.mulf %740, %754 : vector<16x16xf32>
    %756 = arith.addf %739, %755 : vector<16x16xf32>
    %757 = vector.extract_strided_slice %654 {offsets = [2, 0], sizes = [16, 16], strides = [1, 1]} : vector<18x18xf32> to vector<16x16xf32>
    %c0_334 = arith.constant 0 : index
    %c15_335 = arith.constant 15 : index
    %758 = memref.load %arg1[%c0_334, %c15_335] : memref<4x27xf32, #tpu.memory_space<smem>>
    %759 = vector.broadcast %758 : f32 to vector<16x16xf32>
    %760 = arith.mulf %757, %759 : vector<16x16xf32>
    %761 = arith.addf %744, %760 : vector<16x16xf32>
    %c1_336 = arith.constant 1 : index
    %c15_337 = arith.constant 15 : index
    %762 = memref.load %arg1[%c1_336, %c15_337] : memref<4x27xf32, #tpu.memory_space<smem>>
    %763 = vector.broadcast %762 : f32 to vector<16x16xf32>
    %764 = arith.mulf %757, %763 : vector<16x16xf32>
    %765 = arith.addf %748, %764 : vector<16x16xf32>
    %c2_338 = arith.constant 2 : index
    %c15_339 = arith.constant 15 : index
    %766 = memref.load %arg1[%c2_338, %c15_339] : memref<4x27xf32, #tpu.memory_space<smem>>
    %767 = vector.broadcast %766 : f32 to vector<16x16xf32>
    %768 = arith.mulf %757, %767 : vector<16x16xf32>
    %769 = arith.addf %752, %768 : vector<16x16xf32>
    %c3_340 = arith.constant 3 : index
    %c15_341 = arith.constant 15 : index
    %770 = memref.load %arg1[%c3_340, %c15_341] : memref<4x27xf32, #tpu.memory_space<smem>>
    %771 = vector.broadcast %770 : f32 to vector<16x16xf32>
    %772 = arith.mulf %757, %771 : vector<16x16xf32>
    %773 = arith.addf %756, %772 : vector<16x16xf32>
    %774 = vector.extract_strided_slice %654 {offsets = [2, 1], sizes = [16, 16], strides = [1, 1]} : vector<18x18xf32> to vector<16x16xf32>
    %c0_342 = arith.constant 0 : index
    %c16_343 = arith.constant 16 : index
    %775 = memref.load %arg1[%c0_342, %c16_343] : memref<4x27xf32, #tpu.memory_space<smem>>
    %776 = vector.broadcast %775 : f32 to vector<16x16xf32>
    %777 = arith.mulf %774, %776 : vector<16x16xf32>
    %778 = arith.addf %761, %777 : vector<16x16xf32>
    %c1_344 = arith.constant 1 : index
    %c16_345 = arith.constant 16 : index
    %779 = memref.load %arg1[%c1_344, %c16_345] : memref<4x27xf32, #tpu.memory_space<smem>>
    %780 = vector.broadcast %779 : f32 to vector<16x16xf32>
    %781 = arith.mulf %774, %780 : vector<16x16xf32>
    %782 = arith.addf %765, %781 : vector<16x16xf32>
    %c2_346 = arith.constant 2 : index
    %c16_347 = arith.constant 16 : index
    %783 = memref.load %arg1[%c2_346, %c16_347] : memref<4x27xf32, #tpu.memory_space<smem>>
    %784 = vector.broadcast %783 : f32 to vector<16x16xf32>
    %785 = arith.mulf %774, %784 : vector<16x16xf32>
    %786 = arith.addf %769, %785 : vector<16x16xf32>
    %c3_348 = arith.constant 3 : index
    %c16_349 = arith.constant 16 : index
    %787 = memref.load %arg1[%c3_348, %c16_349] : memref<4x27xf32, #tpu.memory_space<smem>>
    %788 = vector.broadcast %787 : f32 to vector<16x16xf32>
    %789 = arith.mulf %774, %788 : vector<16x16xf32>
    %790 = arith.addf %773, %789 : vector<16x16xf32>
    %791 = vector.extract_strided_slice %654 {offsets = [2, 2], sizes = [16, 16], strides = [1, 1]} : vector<18x18xf32> to vector<16x16xf32>
    %c0_350 = arith.constant 0 : index
    %c17_351 = arith.constant 17 : index
    %792 = memref.load %arg1[%c0_350, %c17_351] : memref<4x27xf32, #tpu.memory_space<smem>>
    %793 = vector.broadcast %792 : f32 to vector<16x16xf32>
    %794 = arith.mulf %791, %793 : vector<16x16xf32>
    %795 = arith.addf %778, %794 : vector<16x16xf32>
    %c1_352 = arith.constant 1 : index
    %c17_353 = arith.constant 17 : index
    %796 = memref.load %arg1[%c1_352, %c17_353] : memref<4x27xf32, #tpu.memory_space<smem>>
    %797 = vector.broadcast %796 : f32 to vector<16x16xf32>
    %798 = arith.mulf %791, %797 : vector<16x16xf32>
    %799 = arith.addf %782, %798 : vector<16x16xf32>
    %c2_354 = arith.constant 2 : index
    %c17_355 = arith.constant 17 : index
    %800 = memref.load %arg1[%c2_354, %c17_355] : memref<4x27xf32, #tpu.memory_space<smem>>
    %801 = vector.broadcast %800 : f32 to vector<16x16xf32>
    %802 = arith.mulf %791, %801 : vector<16x16xf32>
    %803 = arith.addf %786, %802 : vector<16x16xf32>
    %c3_356 = arith.constant 3 : index
    %c17_357 = arith.constant 17 : index
    %804 = memref.load %arg1[%c3_356, %c17_357] : memref<4x27xf32, #tpu.memory_space<smem>>
    %805 = vector.broadcast %804 : f32 to vector<16x16xf32>
    %806 = arith.mulf %791, %805 : vector<16x16xf32>
    %807 = arith.addf %790, %806 : vector<16x16xf32>
    %808 = vector.extract_strided_slice %493 {offsets = [2, 0, 0], sizes = [1, 18, 18], strides = [1, 1, 1]} : vector<3x18x18xf32> to vector<1x18x18xf32>
    %809 = vector.shape_cast %808 : vector<1x18x18xf32> to vector<18x18xf32>
    %810 = vector.extract_strided_slice %809 {offsets = [0, 0], sizes = [16, 16], strides = [1, 1]} : vector<18x18xf32> to vector<16x16xf32>
    %c0_358 = arith.constant 0 : index
    %c18_359 = arith.constant 18 : index
    %811 = memref.load %arg1[%c0_358, %c18_359] : memref<4x27xf32, #tpu.memory_space<smem>>
    %812 = vector.broadcast %811 : f32 to vector<16x16xf32>
    %813 = arith.mulf %810, %812 : vector<16x16xf32>
    %814 = arith.addf %795, %813 : vector<16x16xf32>
    %c1_360 = arith.constant 1 : index
    %c18_361 = arith.constant 18 : index
    %815 = memref.load %arg1[%c1_360, %c18_361] : memref<4x27xf32, #tpu.memory_space<smem>>
    %816 = vector.broadcast %815 : f32 to vector<16x16xf32>
    %817 = arith.mulf %810, %816 : vector<16x16xf32>
    %818 = arith.addf %799, %817 : vector<16x16xf32>
    %c2_362 = arith.constant 2 : index
    %c18_363 = arith.constant 18 : index
    %819 = memref.load %arg1[%c2_362, %c18_363] : memref<4x27xf32, #tpu.memory_space<smem>>
    %820 = vector.broadcast %819 : f32 to vector<16x16xf32>
    %821 = arith.mulf %810, %820 : vector<16x16xf32>
    %822 = arith.addf %803, %821 : vector<16x16xf32>
    %c3_364 = arith.constant 3 : index
    %c18_365 = arith.constant 18 : index
    %823 = memref.load %arg1[%c3_364, %c18_365] : memref<4x27xf32, #tpu.memory_space<smem>>
    %824 = vector.broadcast %823 : f32 to vector<16x16xf32>
    %825 = arith.mulf %810, %824 : vector<16x16xf32>
    %826 = arith.addf %807, %825 : vector<16x16xf32>
    %827 = vector.extract_strided_slice %809 {offsets = [0, 1], sizes = [16, 16], strides = [1, 1]} : vector<18x18xf32> to vector<16x16xf32>
    %c0_366 = arith.constant 0 : index
    %c19_367 = arith.constant 19 : index
    %828 = memref.load %arg1[%c0_366, %c19_367] : memref<4x27xf32, #tpu.memory_space<smem>>
    %829 = vector.broadcast %828 : f32 to vector<16x16xf32>
    %830 = arith.mulf %827, %829 : vector<16x16xf32>
    %831 = arith.addf %814, %830 : vector<16x16xf32>
    %c1_368 = arith.constant 1 : index
    %c19_369 = arith.constant 19 : index
    %832 = memref.load %arg1[%c1_368, %c19_369] : memref<4x27xf32, #tpu.memory_space<smem>>
    %833 = vector.broadcast %832 : f32 to vector<16x16xf32>
    %834 = arith.mulf %827, %833 : vector<16x16xf32>
    %835 = arith.addf %818, %834 : vector<16x16xf32>
    %c2_370 = arith.constant 2 : index
    %c19_371 = arith.constant 19 : index
    %836 = memref.load %arg1[%c2_370, %c19_371] : memref<4x27xf32, #tpu.memory_space<smem>>
    %837 = vector.broadcast %836 : f32 to vector<16x16xf32>
    %838 = arith.mulf %827, %837 : vector<16x16xf32>
    %839 = arith.addf %822, %838 : vector<16x16xf32>
    %c3_372 = arith.constant 3 : index
    %c19_373 = arith.constant 19 : index
    %840 = memref.load %arg1[%c3_372, %c19_373] : memref<4x27xf32, #tpu.memory_space<smem>>
    %841 = vector.broadcast %840 : f32 to vector<16x16xf32>
    %842 = arith.mulf %827, %841 : vector<16x16xf32>
    %843 = arith.addf %826, %842 : vector<16x16xf32>
    %844 = vector.extract_strided_slice %809 {offsets = [0, 2], sizes = [16, 16], strides = [1, 1]} : vector<18x18xf32> to vector<16x16xf32>
    %c0_374 = arith.constant 0 : index
    %c20_375 = arith.constant 20 : index
    %845 = memref.load %arg1[%c0_374, %c20_375] : memref<4x27xf32, #tpu.memory_space<smem>>
    %846 = vector.broadcast %845 : f32 to vector<16x16xf32>
    %847 = arith.mulf %844, %846 : vector<16x16xf32>
    %848 = arith.addf %831, %847 : vector<16x16xf32>
    %c1_376 = arith.constant 1 : index
    %c20_377 = arith.constant 20 : index
    %849 = memref.load %arg1[%c1_376, %c20_377] : memref<4x27xf32, #tpu.memory_space<smem>>
    %850 = vector.broadcast %849 : f32 to vector<16x16xf32>
    %851 = arith.mulf %844, %850 : vector<16x16xf32>
    %852 = arith.addf %835, %851 : vector<16x16xf32>
    %c2_378 = arith.constant 2 : index
    %c20_379 = arith.constant 20 : index
    %853 = memref.load %arg1[%c2_378, %c20_379] : memref<4x27xf32, #tpu.memory_space<smem>>
    %854 = vector.broadcast %853 : f32 to vector<16x16xf32>
    %855 = arith.mulf %844, %854 : vector<16x16xf32>
    %856 = arith.addf %839, %855 : vector<16x16xf32>
    %c3_380 = arith.constant 3 : index
    %c20_381 = arith.constant 20 : index
    %857 = memref.load %arg1[%c3_380, %c20_381] : memref<4x27xf32, #tpu.memory_space<smem>>
    %858 = vector.broadcast %857 : f32 to vector<16x16xf32>
    %859 = arith.mulf %844, %858 : vector<16x16xf32>
    %860 = arith.addf %843, %859 : vector<16x16xf32>
    %861 = vector.extract_strided_slice %809 {offsets = [1, 0], sizes = [16, 16], strides = [1, 1]} : vector<18x18xf32> to vector<16x16xf32>
    %c0_382 = arith.constant 0 : index
    %c21_383 = arith.constant 21 : index
    %862 = memref.load %arg1[%c0_382, %c21_383] : memref<4x27xf32, #tpu.memory_space<smem>>
    %863 = vector.broadcast %862 : f32 to vector<16x16xf32>
    %864 = arith.mulf %861, %863 : vector<16x16xf32>
    %865 = arith.addf %848, %864 : vector<16x16xf32>
    %c1_384 = arith.constant 1 : index
    %c21_385 = arith.constant 21 : index
    %866 = memref.load %arg1[%c1_384, %c21_385] : memref<4x27xf32, #tpu.memory_space<smem>>
    %867 = vector.broadcast %866 : f32 to vector<16x16xf32>
    %868 = arith.mulf %861, %867 : vector<16x16xf32>
    %869 = arith.addf %852, %868 : vector<16x16xf32>
    %c2_386 = arith.constant 2 : index
    %c21_387 = arith.constant 21 : index
    %870 = memref.load %arg1[%c2_386, %c21_387] : memref<4x27xf32, #tpu.memory_space<smem>>
    %871 = vector.broadcast %870 : f32 to vector<16x16xf32>
    %872 = arith.mulf %861, %871 : vector<16x16xf32>
    %873 = arith.addf %856, %872 : vector<16x16xf32>
    %c3_388 = arith.constant 3 : index
    %c21_389 = arith.constant 21 : index
    %874 = memref.load %arg1[%c3_388, %c21_389] : memref<4x27xf32, #tpu.memory_space<smem>>
    %875 = vector.broadcast %874 : f32 to vector<16x16xf32>
    %876 = arith.mulf %861, %875 : vector<16x16xf32>
    %877 = arith.addf %860, %876 : vector<16x16xf32>
    %878 = vector.extract_strided_slice %809 {offsets = [1, 1], sizes = [16, 16], strides = [1, 1]} : vector<18x18xf32> to vector<16x16xf32>
    %c0_390 = arith.constant 0 : index
    %c22_391 = arith.constant 22 : index
    %879 = memref.load %arg1[%c0_390, %c22_391] : memref<4x27xf32, #tpu.memory_space<smem>>
    %880 = vector.broadcast %879 : f32 to vector<16x16xf32>
    %881 = arith.mulf %878, %880 : vector<16x16xf32>
    %882 = arith.addf %865, %881 : vector<16x16xf32>
    %c1_392 = arith.constant 1 : index
    %c22_393 = arith.constant 22 : index
    %883 = memref.load %arg1[%c1_392, %c22_393] : memref<4x27xf32, #tpu.memory_space<smem>>
    %884 = vector.broadcast %883 : f32 to vector<16x16xf32>
    %885 = arith.mulf %878, %884 : vector<16x16xf32>
    %886 = arith.addf %869, %885 : vector<16x16xf32>
    %c2_394 = arith.constant 2 : index
    %c22_395 = arith.constant 22 : index
    %887 = memref.load %arg1[%c2_394, %c22_395] : memref<4x27xf32, #tpu.memory_space<smem>>
    %888 = vector.broadcast %887 : f32 to vector<16x16xf32>
    %889 = arith.mulf %878, %888 : vector<16x16xf32>
    %890 = arith.addf %873, %889 : vector<16x16xf32>
    %c3_396 = arith.constant 3 : index
    %c22_397 = arith.constant 22 : index
    %891 = memref.load %arg1[%c3_396, %c22_397] : memref<4x27xf32, #tpu.memory_space<smem>>
    %892 = vector.broadcast %891 : f32 to vector<16x16xf32>
    %893 = arith.mulf %878, %892 : vector<16x16xf32>
    %894 = arith.addf %877, %893 : vector<16x16xf32>
    %895 = vector.extract_strided_slice %809 {offsets = [1, 2], sizes = [16, 16], strides = [1, 1]} : vector<18x18xf32> to vector<16x16xf32>
    %c0_398 = arith.constant 0 : index
    %c23_399 = arith.constant 23 : index
    %896 = memref.load %arg1[%c0_398, %c23_399] : memref<4x27xf32, #tpu.memory_space<smem>>
    %897 = vector.broadcast %896 : f32 to vector<16x16xf32>
    %898 = arith.mulf %895, %897 : vector<16x16xf32>
    %899 = arith.addf %882, %898 : vector<16x16xf32>
    %c1_400 = arith.constant 1 : index
    %c23_401 = arith.constant 23 : index
    %900 = memref.load %arg1[%c1_400, %c23_401] : memref<4x27xf32, #tpu.memory_space<smem>>
    %901 = vector.broadcast %900 : f32 to vector<16x16xf32>
    %902 = arith.mulf %895, %901 : vector<16x16xf32>
    %903 = arith.addf %886, %902 : vector<16x16xf32>
    %c2_402 = arith.constant 2 : index
    %c23_403 = arith.constant 23 : index
    %904 = memref.load %arg1[%c2_402, %c23_403] : memref<4x27xf32, #tpu.memory_space<smem>>
    %905 = vector.broadcast %904 : f32 to vector<16x16xf32>
    %906 = arith.mulf %895, %905 : vector<16x16xf32>
    %907 = arith.addf %890, %906 : vector<16x16xf32>
    %c3_404 = arith.constant 3 : index
    %c23_405 = arith.constant 23 : index
    %908 = memref.load %arg1[%c3_404, %c23_405] : memref<4x27xf32, #tpu.memory_space<smem>>
    %909 = vector.broadcast %908 : f32 to vector<16x16xf32>
    %910 = arith.mulf %895, %909 : vector<16x16xf32>
    %911 = arith.addf %894, %910 : vector<16x16xf32>
    %912 = vector.extract_strided_slice %809 {offsets = [2, 0], sizes = [16, 16], strides = [1, 1]} : vector<18x18xf32> to vector<16x16xf32>
    %c0_406 = arith.constant 0 : index
    %c24_407 = arith.constant 24 : index
    %913 = memref.load %arg1[%c0_406, %c24_407] : memref<4x27xf32, #tpu.memory_space<smem>>
    %914 = vector.broadcast %913 : f32 to vector<16x16xf32>
    %915 = arith.mulf %912, %914 : vector<16x16xf32>
    %916 = arith.addf %899, %915 : vector<16x16xf32>
    %c1_408 = arith.constant 1 : index
    %c24_409 = arith.constant 24 : index
    %917 = memref.load %arg1[%c1_408, %c24_409] : memref<4x27xf32, #tpu.memory_space<smem>>
    %918 = vector.broadcast %917 : f32 to vector<16x16xf32>
    %919 = arith.mulf %912, %918 : vector<16x16xf32>
    %920 = arith.addf %903, %919 : vector<16x16xf32>
    %c2_410 = arith.constant 2 : index
    %c24_411 = arith.constant 24 : index
    %921 = memref.load %arg1[%c2_410, %c24_411] : memref<4x27xf32, #tpu.memory_space<smem>>
    %922 = vector.broadcast %921 : f32 to vector<16x16xf32>
    %923 = arith.mulf %912, %922 : vector<16x16xf32>
    %924 = arith.addf %907, %923 : vector<16x16xf32>
    %c3_412 = arith.constant 3 : index
    %c24_413 = arith.constant 24 : index
    %925 = memref.load %arg1[%c3_412, %c24_413] : memref<4x27xf32, #tpu.memory_space<smem>>
    %926 = vector.broadcast %925 : f32 to vector<16x16xf32>
    %927 = arith.mulf %912, %926 : vector<16x16xf32>
    %928 = arith.addf %911, %927 : vector<16x16xf32>
    %929 = vector.extract_strided_slice %809 {offsets = [2, 1], sizes = [16, 16], strides = [1, 1]} : vector<18x18xf32> to vector<16x16xf32>
    %c0_414 = arith.constant 0 : index
    %c25_415 = arith.constant 25 : index
    %930 = memref.load %arg1[%c0_414, %c25_415] : memref<4x27xf32, #tpu.memory_space<smem>>
    %931 = vector.broadcast %930 : f32 to vector<16x16xf32>
    %932 = arith.mulf %929, %931 : vector<16x16xf32>
    %933 = arith.addf %916, %932 : vector<16x16xf32>
    %c1_416 = arith.constant 1 : index
    %c25_417 = arith.constant 25 : index
    %934 = memref.load %arg1[%c1_416, %c25_417] : memref<4x27xf32, #tpu.memory_space<smem>>
    %935 = vector.broadcast %934 : f32 to vector<16x16xf32>
    %936 = arith.mulf %929, %935 : vector<16x16xf32>
    %937 = arith.addf %920, %936 : vector<16x16xf32>
    %c2_418 = arith.constant 2 : index
    %c25_419 = arith.constant 25 : index
    %938 = memref.load %arg1[%c2_418, %c25_419] : memref<4x27xf32, #tpu.memory_space<smem>>
    %939 = vector.broadcast %938 : f32 to vector<16x16xf32>
    %940 = arith.mulf %929, %939 : vector<16x16xf32>
    %941 = arith.addf %924, %940 : vector<16x16xf32>
    %c3_420 = arith.constant 3 : index
    %c25_421 = arith.constant 25 : index
    %942 = memref.load %arg1[%c3_420, %c25_421] : memref<4x27xf32, #tpu.memory_space<smem>>
    %943 = vector.broadcast %942 : f32 to vector<16x16xf32>
    %944 = arith.mulf %929, %943 : vector<16x16xf32>
    %945 = arith.addf %928, %944 : vector<16x16xf32>
    %946 = vector.extract_strided_slice %809 {offsets = [2, 2], sizes = [16, 16], strides = [1, 1]} : vector<18x18xf32> to vector<16x16xf32>
    %c0_422 = arith.constant 0 : index
    %c26_423 = arith.constant 26 : index
    %947 = memref.load %arg1[%c0_422, %c26_423] : memref<4x27xf32, #tpu.memory_space<smem>>
    %948 = vector.broadcast %947 : f32 to vector<16x16xf32>
    %949 = arith.mulf %946, %948 : vector<16x16xf32>
    %950 = arith.addf %933, %949 : vector<16x16xf32>
    %c1_424 = arith.constant 1 : index
    %c26_425 = arith.constant 26 : index
    %951 = memref.load %arg1[%c1_424, %c26_425] : memref<4x27xf32, #tpu.memory_space<smem>>
    %952 = vector.broadcast %951 : f32 to vector<16x16xf32>
    %953 = arith.mulf %946, %952 : vector<16x16xf32>
    %954 = arith.addf %937, %953 : vector<16x16xf32>
    %c2_426 = arith.constant 2 : index
    %c26_427 = arith.constant 26 : index
    %955 = memref.load %arg1[%c2_426, %c26_427] : memref<4x27xf32, #tpu.memory_space<smem>>
    %956 = vector.broadcast %955 : f32 to vector<16x16xf32>
    %957 = arith.mulf %946, %956 : vector<16x16xf32>
    %958 = arith.addf %941, %957 : vector<16x16xf32>
    %c3_428 = arith.constant 3 : index
    %c26_429 = arith.constant 26 : index
    %959 = memref.load %arg1[%c3_428, %c26_429] : memref<4x27xf32, #tpu.memory_space<smem>>
    %960 = vector.broadcast %959 : f32 to vector<16x16xf32>
    %961 = arith.mulf %946, %960 : vector<16x16xf32>
    %962 = arith.addf %945, %961 : vector<16x16xf32>
    %963 = vector.shape_cast %950 : vector<16x16xf32> to vector<1x16x16xf32>
    %964 = vector.shape_cast %954 : vector<16x16xf32> to vector<1x16x16xf32>
    %965 = vector.shape_cast %958 : vector<16x16xf32> to vector<1x16x16xf32>
    %966 = vector.shape_cast %962 : vector<16x16xf32> to vector<1x16x16xf32>
    %967 = tpu.concatenate %963, %964, %965, %966 in 0 : vector<1x16x16xf32>, vector<1x16x16xf32>, vector<1x16x16xf32>, vector<1x16x16xf32> -> vector<4x16x16xf32>
    %c1_430 = arith.constant 1 : index
    %c0_431 = arith.constant 0 : index
    %c0_432 = arith.constant 0 : index
    %c0_433 = arith.constant 0 : index
    %968 = vector.load %arg5[%c1_430, %c0_431, %c0_432, %c0_433] : memref<2x4x16x16xf32, #tpu.memory_space<vmem>>, vector<1x4x16x16xf32>
    %969 = vector.shape_cast %968 : vector<1x4x16x16xf32> to vector<4x16x16xf32>
    %970 = vector.shape_cast %967 : vector<4x16x16xf32> to vector<1x4x16x16xf32>
    tpu.vector_store %arg5[%c1_430, %c0_431, %c0_432, %c0_433], %970 {strides = array<i32>} : memref<2x4x16x16xf32, #tpu.memory_space<vmem>>, vector<1x4x16x16xf32>,
    %cst_434 = arith.constant dense<0.000000e+00> : vector<4x16xf32>
    %971 = vector.multi_reduction <add>, %967, %cst_434 [2] : vector<4x16x16xf32> to vector<4x16xf32>
    %972 = vector.shape_cast %971 : vector<4x16xf32> to vector<4x16x1xf32>
    %cst_435 = arith.constant dense<0.000000e+00> : vector<4x1xf32>
    %973 = vector.multi_reduction <add>, %972, %cst_435 [1] : vector<4x16x1xf32> to vector<4x1xf32>
    %974 = vector.shape_cast %973 : vector<4x1xf32> to vector<4x1x1xf32>
    %975 = arith.addf %485, %974 : vector<4x1x1xf32>
    %976 = arith.mulf %967, %967 : vector<4x16x16xf32>
    %cst_436 = arith.constant dense<0.000000e+00> : vector<4x16xf32>
    %977 = vector.multi_reduction <add>, %976, %cst_436 [2] : vector<4x16x16xf32> to vector<4x16xf32>
    %978 = vector.shape_cast %977 : vector<4x16xf32> to vector<4x16x1xf32>
    %cst_437 = arith.constant dense<0.000000e+00> : vector<4x1xf32>
    %979 = vector.multi_reduction <add>, %978, %cst_437 [1] : vector<4x16x1xf32> to vector<4x1xf32>
    %980 = vector.shape_cast %979 : vector<4x1xf32> to vector<4x1x1xf32>
    %981 = arith.addf %491, %980 : vector<4x1x1xf32>
    %cst_438 = arith.constant 0.001953125 : f32
    %982 = vector.broadcast %cst_438 : f32 to vector<4x1x1xf32>
    %983 = arith.mulf %975, %982 : vector<4x1x1xf32>
    %cst_439 = arith.constant 0.001953125 : f32
    %984 = vector.broadcast %cst_439 : f32 to vector<4x1x1xf32>
    %985 = arith.mulf %981, %984 : vector<4x1x1xf32>
    %986 = arith.mulf %983, %983 : vector<4x1x1xf32>
    %987 = arith.subf %985, %986 : vector<4x1x1xf32>
    %c0_440 = arith.constant 0 : index
    %c0_441 = arith.constant 0 : index
    %c0_442 = arith.constant 0 : index
    %988 = vector.load %arg2[%c0_440, %c0_441, %c0_442] : memref<4x1x1xf32, #tpu.memory_space<vmem>>, vector<4x1x1xf32>
    %cst_443 = arith.constant 9.99999974E-6 : f32
    %989 = vector.broadcast %cst_443 : f32 to vector<4x1x1xf32>
    %990 = arith.addf %987, %989 : vector<4x1x1xf32>
    %991 = math.rsqrt %990 : vector<4x1x1xf32>
    %992 = arith.mulf %988, %991 : vector<4x1x1xf32>
    %c0_444 = arith.constant 0 : index
    %c0_445 = arith.constant 0 : index
    %c0_446 = arith.constant 0 : index
    %993 = vector.load %arg3[%c0_444, %c0_445, %c0_446] : memref<4x1x1xf32, #tpu.memory_space<vmem>>, vector<4x1x1xf32>
    %994 = arith.mulf %983, %992 : vector<4x1x1xf32>
    %995 = arith.subf %993, %994 : vector<4x1x1xf32>
    %c0_447 = arith.constant 0 : index
    %c0_448 = arith.constant 0 : index
    %c0_449 = arith.constant 0 : index
    %c0_450 = arith.constant 0 : index
    %996 = vector.load %arg5[%c0_447, %c0_448, %c0_449, %c0_450] : memref<2x4x16x16xf32, #tpu.memory_space<vmem>>, vector<1x4x16x16xf32>
    %997 = vector.shape_cast %996 : vector<1x4x16x16xf32> to vector<4x16x16xf32>
    %998 = vector.broadcast %992 : vector<4x1x1xf32> to vector<4x16x16xf32>
    %999 = arith.mulf %997, %998 : vector<4x16x16xf32>
    %1000 = vector.broadcast %995 : vector<4x1x1xf32> to vector<4x16x16xf32>
    %1001 = arith.addf %999, %1000 : vector<4x16x16xf32>
    %cst_451 = arith.constant 0.000000e+00 : f32
    %1002 = vector.broadcast %cst_451 : f32 to vector<4x16x16xf32>
    %1003 = arith.maximumf %1001, %1002 : vector<4x16x16xf32>
    %cst_452 = arith.constant dense<0.000000e+00> : vector<4x16xf32>
    %1004 = vector.multi_reduction <add>, %1003, %cst_452 [2] : vector<4x16x16xf32> to vector<4x16xf32>
    %1005 = vector.shape_cast %1004 : vector<4x16xf32> to vector<4x16x1xf32>
    %cst_453 = arith.constant dense<0.000000e+00> : vector<4x1xf32>
    %1006 = vector.multi_reduction <add>, %1005, %cst_453 [1] : vector<4x16x1xf32> to vector<4x1xf32>
    %1007 = vector.shape_cast %1006 : vector<4x1xf32> to vector<4x1x1xf32>
    %cst_454 = arith.constant 3.906250e-03 : f32
    %1008 = vector.broadcast %cst_454 : f32 to vector<4x1x1xf32>
    %1009 = arith.mulf %1007, %1008 : vector<4x1x1xf32>
    %c0_455 = arith.constant 0 : index
    %c0_456 = arith.constant 0 : index
    %c0_457 = arith.constant 0 : index
    %c0_458 = arith.constant 0 : index
    %1010 = vector.load %arg4[%c0_455, %c0_456, %c0_457, %c0_458] : memref<2x4x1x1xf32, #tpu.memory_space<vmem>>, vector<1x4x1x1xf32>
    %1011 = vector.shape_cast %1010 : vector<1x4x1x1xf32> to vector<4x1x1xf32>
    %1012 = vector.shape_cast %1009 : vector<4x1x1xf32> to vector<1x4x1x1xf32>
    tpu.vector_store %arg4[%c0_455, %c0_456, %c0_457, %c0_458], %1012 {strides = array<i32>} : memref<2x4x1x1xf32, #tpu.memory_space<vmem>>, vector<1x4x1x1xf32>,
    %c1_459 = arith.constant 1 : index
    %c0_460 = arith.constant 0 : index
    %c0_461 = arith.constant 0 : index
    %c0_462 = arith.constant 0 : index
    %1013 = vector.load %arg5[%c1_459, %c0_460, %c0_461, %c0_462] : memref<2x4x16x16xf32, #tpu.memory_space<vmem>>, vector<1x4x16x16xf32>
    %1014 = vector.shape_cast %1013 : vector<1x4x16x16xf32> to vector<4x16x16xf32>
    %1015 = vector.broadcast %992 : vector<4x1x1xf32> to vector<4x16x16xf32>
    %1016 = arith.mulf %1014, %1015 : vector<4x16x16xf32>
    %1017 = vector.broadcast %995 : vector<4x1x1xf32> to vector<4x16x16xf32>
    %1018 = arith.addf %1016, %1017 : vector<4x16x16xf32>
    %cst_463 = arith.constant 0.000000e+00 : f32
    %1019 = vector.broadcast %cst_463 : f32 to vector<4x16x16xf32>
    %1020 = arith.maximumf %1018, %1019 : vector<4x16x16xf32>
    %cst_464 = arith.constant dense<0.000000e+00> : vector<4x16xf32>
    %1021 = vector.multi_reduction <add>, %1020, %cst_464 [2] : vector<4x16x16xf32> to vector<4x16xf32>
    %1022 = vector.shape_cast %1021 : vector<4x16xf32> to vector<4x16x1xf32>
    %cst_465 = arith.constant dense<0.000000e+00> : vector<4x1xf32>
    %1023 = vector.multi_reduction <add>, %1022, %cst_465 [1] : vector<4x16x1xf32> to vector<4x1xf32>
    %1024 = vector.shape_cast %1023 : vector<4x1xf32> to vector<4x1x1xf32>
    %cst_466 = arith.constant 3.906250e-03 : f32
    %1025 = vector.broadcast %cst_466 : f32 to vector<4x1x1xf32>
    %1026 = arith.mulf %1024, %1025 : vector<4x1x1xf32>
    %c1_467 = arith.constant 1 : index
    %c0_468 = arith.constant 0 : index
    %c0_469 = arith.constant 0 : index
    %c0_470 = arith.constant 0 : index
    %1027 = vector.load %arg4[%c1_467, %c0_468, %c0_469, %c0_470] : memref<2x4x1x1xf32, #tpu.memory_space<vmem>>, vector<1x4x1x1xf32>
    %1028 = vector.shape_cast %1027 : vector<1x4x1x1xf32> to vector<4x1x1xf32>
    %1029 = vector.shape_cast %1026 : vector<4x1x1xf32> to vector<1x4x1x1xf32>
    tpu.vector_store %arg4[%c1_467, %c0_468, %c0_469, %c0_470], %1029 {strides = array<i32>} : memref<2x4x1x1xf32, #tpu.memory_space<vmem>>, vector<1x4x1x1xf32>,
    return
  }
}

</mosaic_0001>

<bundles_post_ra>
// kernel: test_arch_forward.1
= control target key start
LH: loop header
LB: loop body
LE: loop exit
PB: predicated region body
PF: predicated region fallthrough
CT: control target
= control target key end

     0   :  { %9 = vsyncpa [#allocation4], 0  ;;  %s7583_s0 = inlined_call_operand.vmem [shape: f32[2,3,18,18], index: 0, kind: input, shape index: {}]   ;;  %s7584_s1 = inlined_call_operand.vmem [shape: f32[4,27], index: 1, kind: input, shape index: {}]   ;;  %s7585_s2 = inlined_call_operand.vmem [shape: f32[4,1,1], index: 2, kind: input, shape index: {}]   ;;  %s7586_s3 = inlined_call_operand.vmem [shape: f32[4,1,1], index: 3, kind: input, shape index: {}]   ;;  %s7587_s4 = inlined_call_operand.vmem [shape: f32[2,4,1,1], index: 4, kind: output, shape index: {}]  }
   0x1   :  { %s18_s17 = sshll.u32 %s7584_s1, 4  ;;  %s19_s17 = int_to_ptr.vmem [resolvable:$true] %s18_s17 }
   0x2   :  { %s4525_s18 = scalar_lea.vmem %s19_s17, 64  ;;  %p4530_p1 = scmp.lt.s32.totalorder %s19_s17, %s19_s17 }
   0x3   :  { %p4526_p0 = scmp.ne.s32.totalorder %s19_s17, %s4525_s18  ;;  %p4531_p2 = scmp.lt.s32.totalorder %s4525_s18, %s4525_s18 }
   0x5   :  { %p4532_p3 = por %p4531_p2, %p4530_p1 }
   0x7   :  { %p4533_p4 = pnand %p4532_p3, %p4526_p0 }
   0x9   :  { %4536 = shalt.err (!%p4533_p4)
}
   0xa   :  { %s4539_s19 = smov [#allocation3]  }
   0xb   :  { %21 = dma.vmem_to_smem %s19_s17, 64, %s4539_s19, [#allocation4]  }
   0xc   :  { %4537 = dma.done.wait [#allocation4], 64  }
   0xd   :  { %4538 = vsyncadd [#allocation4], 4294967232 }
   0xe   :  { %29 = sfence }
   0xf   :  { %s4268_s20 = sld [smem:[#allocation3 + $0x81]]  ;;  %v4574_v0 = vld [vmem:[%s7583_s0] sm:$0xff]  ;;  %v4579_v1 = vld [vmem:[%s7583_s0 + $0x8] sm:$0xff]  ;;  %s4540_s27 = smov 127   ;;  %v4606_v21 = vld [vmem:[%s7583_s0 + $0x10] sm:$0x3] }
  0x10   :  { %s4267_s21 = sld [smem:[#allocation3 + $0x1]]  ;;  %s4541_s8 = smov 126   ;;  %vm183_vm0 = vcmask 1046528   ;;  %vm420_vm1 = vcmask 1045504   ;;  %vm1865_vm2 = vcmask 130048   ;;  %vm4161_vm3 = vcmask 0  }
  0x11   :  { %s4269_s22 = sld [smem:[#allocation3 + $0x101]] }
  0x12   :  { %s4270_s26 = sld [smem:[#allocation3 + $0x181]] }
  0x13   :  { %s4271_s28 = sld [smem:[#allocation3 + $0x2]] }
  0x14   :  { %s4272_s29 = sld [smem:[#allocation3 + $0x82]] }
  0x15   :  { %v78_v2 = vstv %s4268_s20  ;;  %s4273_s30 = sld [smem:[#allocation3 + $0x102]] }
  0x16   :  { %v79_v3 = vmul.f32 %v78_v2, %v4574_v0  ;;  %v64_v4 = vstv %s4267_s21  ;;  %v80_v6 = vmul.f32 %v78_v2, %v4579_v1  ;;  %s4279_s5 = sld [smem:[#allocation3 + $0x4]] }
  0x17   :  { %v65_v5 = vmul.f32 %v64_v4, %v4574_v0  ;;  %v66_v7 = vmul.f32 %v64_v4, %v4579_v1  ;;  %v92_v8 = vstv %s4269_s22  ;;  %s4274_s6 = sld [smem:[#allocation3 + $0x182]] }
  0x18   :  { %83 = vrot.lane.b32.xlu1 %v79_v3, %s4540_s27  ;;  %v94_v9 = vmul.f32 %v92_v8, %v4579_v1  ;;  %v93_v10 = vmul.f32 %v92_v8, %v4574_v0  ;;  %v106_v11 = vstv %s4270_s26  ;;  %s4280_s7 = sld [smem:[#allocation3 + $0x84]] }
  0x19   :  { %69 = vrot.lane.b32.xlu0 %v65_v5, %s4540_s27  ;;  %v108_v12 = vmul.f32 %v106_v11, %v4579_v1  ;;  %v107_v13 = vmul.f32 %v106_v11, %v4574_v0  ;;  %v120_v14 = vstv %s4271_s28  ;;  %s4281_s9 = sld [smem:[#allocation3 + $0x104]] }
  0x1a   :  { %v122_v15 = vmul.f32 %v120_v14, %v4579_v1  ;;  %v121_v16 = vmul.f32 %v120_v14, %v4574_v0  ;;  %v134_v17 = vstv %s4272_s29  ;;  %s4282_s12 = sld [smem:[#allocation3 + $0x184]] }
  0x1b   :  { %v136_v18 = vmul.f32 %v134_v17, %v4579_v1  ;;  %v135_v19 = vmul.f32 %v134_v17, %v4574_v0  ;;  %v148_v20 = vstv %s4273_s30  ;;  %s4283_s13 = sld [smem:[#allocation3 + $0x5]] }
  0x1c   :  { %85 = vrot.lane.b32.xlu1 %v80_v6, %s4540_s27  ;;  %v245_v22 = vstv %s4279_s5  ;;  %v150_v23 = vmul.f32 %v148_v20, %v4579_v1  ;;  %v149_v24 = vmul.f32 %v148_v20, %v4574_v0  ;;  %s4284_s14 = sld [smem:[#allocation3 + $0x85]] }
  0x1d   :  { %71 = vrot.lane.b32.xlu0 %v66_v7, %s4540_s27  ;;  %v162_v25 = vstv %s4274_s6  ;;  %v247_v26 = vmul.f32 %v245_v22, %v4579_v1  ;;  %v248_v27 = vmul.f32 %v245_v22, %v4606_v21  ;;  %v246_v29 = vmul.f32 %v245_v22, %v4574_v0  ;;  %s4285_s15 = sld [smem:[#allocation3 + $0x105]] }
  0x1e   :  { %v266_v28 = vstv %s4280_s7  ;;  %v164_v30 = vmul.f32 %v162_v25, %v4579_v1  ;;  %v163_v31 = vmul.f32 %v162_v25, %v4574_v0  ;;  %s4286_s16 = sld [smem:[#allocation3 + $0x185]] }
  0x1f   :  { %v268_v32 = vmul.f32 %v266_v28, %v4579_v1  ;;  %v253_v33 = vrot.slane %v247_v26, 1  ;;  %v255_v34 = vrot.slane %v248_v27, 1  ;;  %v269_v35 = vmul.f32 %v266_v28, %v4606_v21  ;;  %s4291_s17 = sld [smem:[#allocation3 + $0x7]] }
  0x20   :  { %99 = vrot.lane.b32.xlu1 %v94_v9, %s4540_s27  ;;  %v287_v36 = vstv %s4281_s9  ;;  %v252_v37 = vrot.slane %v246_v29, 1  ;;  %v267_v38 = vmul.f32 %v266_v28, %v4574_v0  ;;  %v308_v47 = vstv %s4282_s12  ;;  %s4292_s18 = sld [smem:[#allocation3 + $0x87]] }
  0x21   :  { %97 = vrot.lane.b32.xlu0 %v93_v10, %s4540_s27  ;;  %v289_v39 = vmul.f32 %v287_v36, %v4579_v1  ;;  %v290_v40 = vmul.f32 %v287_v36, %v4606_v21  ;;  %v256_v41 = vsel %vm183_vm0, %v253_v33, %v255_v34  ;;  %v274_v42 = vrot.slane %v268_v32, 1  ;;  %s4293_s19 = sld [smem:[#allocation3 + $0x107]] }
  0x22   :  { %v276_v43 = vrot.slane %v269_v35, 1  ;;  %v254_v44 = vsel %vm183_vm0, %v252_v37, %v253_v33  ;;  %v273_v45 = vrot.slane %v267_v38, 1  ;;  %v288_v46 = vmul.f32 %v287_v36, %v4574_v0  ;;  %s4294_s20 = sld [smem:[#allocation3 + $0x187]] }
  0x23   :  { %v295_v48 = vrot.slane %v289_v39, 1  ;;  %v297_v49 = vrot.slane %v290_v40, 1  ;;  %v310_v51 = vmul.f32 %v308_v47, %v4579_v1  ;;  %v311_v52 = vmul.f32 %v308_v47, %v4606_v21  ;;  %s4295_s21 = sld [smem:[#allocation3 + $0x8]] }
  0x24   :  { %113 = vrot.lane.b32.xlu1 %v108_v12, %s4540_s27  ;;  %v277_v50 = vsel %vm183_vm0, %v274_v42, %v276_v43  ;;  %v275_v53 = vsel %vm183_vm0, %v273_v45, %v274_v42  ;;  %v294_v54 = vrot.slane %v288_v46, 1  ;;  %v309_v55 = vmul.f32 %v308_v47, %v4574_v0  ;;  %s4296_s22 = sld [smem:[#allocation3 + $0x88]] }
  0x25   :  { %111 = vrot.lane.b32.xlu0 %v107_v13, %s4540_s27  ;;  %v329_v56 = vstv %s4283_s13  ;;  %v298_v57 = vsel %vm183_vm0, %v295_v48, %v297_v49  ;;  %v350_v58 = vstv %s4284_s14  ;;  %v316_v59 = vrot.slane %v310_v51, 1  ;;  %s4297_s23 = sld [smem:[#allocation3 + $0x108]] }
  0x26   :  { %v318_v60 = vrot.slane %v311_v52, 1  ;;  %v331_v61 = vmul.f32 %v329_v56, %v4579_v1  ;;  %v332_v62 = vmul.f32 %v329_v56, %v4606_v21  ;;  %v296_v63 = vsel %vm183_vm0, %v294_v54, %v295_v48  ;;  %s4298_s24 = sld [smem:[#allocation3 + $0x188]] }
  0x27   :  { %v315_v2 = vrot.slane %v309_v55, 1  ;;  %v330_v3 = vmul.f32 %v329_v56, %v4574_v0  ;;  %v352_v4 = vmul.f32 %v350_v58, %v4579_v1  ;;  %v371_v5 = vstv %s4285_s15  ;;  %s4303_s1 = sld [smem:[#allocation3 + $0xa]] }
  0x28   :  { %127 = vrot.lane.b32.xlu1 %v122_v15, %s4541_s8  ;;  %v319_v6 = vsel %vm183_vm0, %v316_v59, %v318_v60  ;;  %v337_v7 = vrot.slane %v331_v61, 1  ;;  %v339_v8 = vrot.slane %v332_v62, 1  ;;  %v353_v9 = vmul.f32 %v350_v58, %v4606_v21  ;;  %s4304_s25 = sld [smem:[#allocation3 + $0x8a]] }
  0x29   :  { %125 = vrot.lane.b32.xlu0 %v121_v16, %s4541_s8  ;;  %v317_v10 = vsel %vm183_vm0, %v315_v2, %v316_v59  ;;  %v336_v11 = vrot.slane %v330_v3, 1  ;;  %v351_v12 = vmul.f32 %v350_v58, %v4574_v0  ;;  %v373_v13 = vmul.f32 %v371_v5, %v4579_v1  ;;  %s4305_s29 = sld [smem:[#allocation3 + $0x10a]] }
  0x2a   :  { %v374_v14 = vmul.f32 %v371_v5, %v4606_v21  ;;  %v340_v15 = vsel %vm183_vm0, %v337_v7, %v339_v8  ;;  %v358_v16 = vrot.slane %v352_v4, 1  ;;  %v360_v17 = vrot.slane %v353_v9, 1  ;;  %s4306_s6 = sld [smem:[#allocation3 + $0x18a]] }
  0x2b   :  { %v372_v20 = vmul.f32 %v371_v5, %v4574_v0  ;;  %v392_v22 = vstv %s4286_s16  ;;  %v503_v33 = vstv %s4292_s18  ;;  %v524_v42 = vstv %s4293_s19  ;;  %s4307_s7 = sld [smem:[#allocation3 + $0xb]] }
  0x2c   :  { %141 = vrot.lane.b32.xlu1 %v136_v18, %s4541_s8  ;;  %v338_v18 = vsel %vm183_vm0, %v336_v11, %v337_v7  ;;  %v361_v25 = vsel %vm183_vm0, %v358_v16, %v360_v17  ;;  %v394_v26 = vmul.f32 %v392_v22, %v4579_v1  ;;  %v395_v27 = vmul.f32 %v392_v22, %v4606_v21  ;;  %s4308_s9 = sld [smem:[#allocation3 + $0x8b]] }
  0x2d   :  { %139 = vrot.lane.b32.xlu0 %v135_v19, %s4541_s8  ;;  %v357_v19 = vrot.slane %v351_v12, 1  ;;  %v378_v29 = vrot.slane %v372_v20, 1  ;;  %v506_v46 = vmul.f32 %v503_v33, %v4606_v21  ;;  %v504_v49 = vmul.f32 %v503_v33, %v4574_v0  ;;  %s4309_s10 = sld [smem:[#allocation3 + $0x10b]] }
  0x2e   :  { %v400_v34 = vrot.slane %v394_v26, 1  ;;  %v402_v35 = vrot.slane %v395_v27, 1  ;;  %v527_v51 = vmul.f32 %v524_v42, %v4606_v21  ;;  %v545_v58 = vstv %s4294_s20  ;;  %s4315_s11 = sld [smem:[#allocation3 + $0xd]] }
  0x2f   :  { %v359_v28 = vsel %vm183_vm0, %v357_v19, %v358_v16  ;;  %v513_v54 = vrot.slane %v506_v46, 2  ;;  %v510_v56 = vrot.slane %v504_v49, 2  ;;  %v547_v62 = vmul.f32 %v545_v58, %v4579_v1  ;;  %s4310_s12 = sld [smem:[#allocation3 + $0x18b]] }
  0x30   :  { %155 = vrot.lane.b32.xlu1 %v150_v23, %s4541_s8  ;;  %v379_v23 = vrot.slane %v373_v13, 1  ;;  %v403_v43 = vsel %vm183_vm0, %v400_v34, %v402_v35  ;;  %v534_v60 = vrot.slane %v527_v51, 2  ;;  %v546_v4 = vmul.f32 %v545_v58, %v4574_v0  ;;  %s4316_s13 = sld [smem:[#allocation3 + $0x8d]] }
  0x31   :  { %153 = vrot.lane.b32.xlu0 %v149_v24, %s4541_s8  ;;  %v381_v24 = vrot.slane %v374_v14, 1  ;;  %v566_v5 = vstv %s4295_s21  ;;  %v587_v7 = vstv %s4296_s22  ;;  %v553_v8 = vrot.slane %v547_v62, 2  ;;  %s4317_s14 = sld [smem:[#allocation3 + $0x10d]] }
  0x32   :  { %v380_v38 = vsel %vm183_vm0, %v378_v29, %v379_v23  ;;  %v569_v11 = vmul.f32 %v566_v5, %v4606_v21  ;;  %v552_v13 = vrot.slane %v546_v4, 2  ;;  %v567_v14 = vmul.f32 %v566_v5, %v4574_v0  ;;  %s4319_s18 = sld [smem:[#allocation3 + $0xe]] }
  0x33   :  { %v382_v32 = vsel %vm183_vm0, %v379_v23, %v381_v24  ;;  %v590_v16 = vmul.f32 %v587_v7, %v4606_v21  ;;  %v588_v23 = vmul.f32 %v587_v7, %v4574_v0  ;;  %v608_v24 = vstv %s4297_s23  ;;  %s4320_s19 = sld [smem:[#allocation3 + $0x8e]] }
  0x34   :  { %169 = vrot.lane.b32.xlu1 %v164_v30, %s4541_s8  ;;  %v393_v30 = vmul.f32 %v392_v22, %v4574_v0  ;;  %v576_v19 = vrot.slane %v569_v11, 2  ;;  %v554_v20 = vsel %vm420_vm1, %v552_v13, %v553_v8  ;;  %v573_v22 = vrot.slane %v567_v14, 2  ;;  %s4321_s20 = sld [smem:[#allocation3 + $0x10e]] }
  0x35   :  { %167 = vrot.lane.b32.xlu0 %v163_v31, %s4541_s8  ;;  %v482_v31 = vstv %s4291_s17  ;;  %v597_v26 = vrot.slane %v590_v16, 2  ;;  %v611_v29 = vmul.f32 %v608_v24, %v4606_v21  ;;  %v674_v46 = vstv %s4303_s1  ;;  %s4318_s17 = sld [smem:[#allocation3 + $0x18d]] }
  0x36   :  { %v484_v36 = vmul.f32 %v482_v31, %v4579_v1  ;;  %v485_v37 = vmul.f32 %v482_v31, %v4606_v21  ;;  %v399_v39 = vrot.slane %v393_v30, 1  ;;  %v483_v40 = vmul.f32 %v482_v31, %v4574_v0  ;;  %s4322_s21 = sld [smem:[#allocation3 + $0x18e]] }
  0x37   :  { %v594_v31 = vrot.slane %v588_v23, 2  ;;  %v688_v51 = vstv %s4304_s25  ;;  %v758_v4 = vstv %s4309_s10  ;;  %v772_v11 = vstv %s4310_s12  ;;  %s4327_s22 = sld [smem:[#allocation3 + $0x10]] }
  0x38   :  { %259 = vrot.lane.b32.xlu1 %v256_v41, %s4540_s27  ;;  %v505_v41 = vmul.f32 %v503_v33, %v4579_v1  ;;  %v492_v45 = vrot.slane %v485_v37, 2  ;;  %v401_v47 = vsel %vm183_vm0, %v399_v39, %v400_v34  ;;  %v489_v48 = vrot.slane %v483_v40, 2  ;;  %s4328_s23 = sld [smem:[#allocation3 + $0x90]] }
  0x39   :  { %257 = vrot.lane.b32.xlu0 %v254_v44, %s4540_s27  ;;  %v490_v44 = vrot.slane %v484_v36, 2  ;;  %v629_v33 = vstv %s4298_s24  ;;  %v618_v36 = vrot.slane %v611_v29, 2  ;;  %v875_v16 = vstv %s4316_s13  ;;  %s4329_s24 = sld [smem:[#allocation3 + $0x110]] }
  0x3a   :  { %v631_v37 = vmul.f32 %v629_v33, %v4579_v1  ;;  %s4330_s1 = sld [smem:[#allocation3 + $0x190]] }
  0x3b   :  { %v493_v52 = vsel %vm420_vm1, %v490_v44, %v492_v45  ;;  %v491_v55 = vsel %vm420_vm1, %v489_v48, %v490_v44  ;;  %v4736_v48 = vld [vmem:[%s7583_s0 + $0x18] sm:$0xff]  ;;  %s4331_s25 = sld [smem:[#allocation3 + $0x11]] }
  0x3c   :  { %280 = vrot.lane.b32.xlu1 %v277_v50, %s4540_s27  ;;  %v526_v50 = vmul.f32 %v524_v42, %v4579_v1  ;;  %s4332_s26 = sld [smem:[#allocation3 + $0x91]] }
  0x3d   :  { %278 = vrot.lane.b32.xlu0 %v275_v53, %s4540_s27  ;;  %v511_v53 = vrot.slane %v505_v41, 2  ;;  %v630_v41 = vmul.f32 %v629_v33, %v4574_v0  ;;  %s4333_s28 = sld [smem:[#allocation3 + $0x111]] }
  0x3e   :  { %v532_v59 = vrot.slane %v526_v50, 2  ;;  %v675_v50 = vmul.f32 %v674_v46, %v4736_v48  ;;  %s4339_s30 = sld [smem:[#allocation3 + $0x13]] }
  0x3f   :  { %v514_v61 = vsel %vm420_vm1, %v511_v53, %v513_v54  ;;  %v512_v2 = vsel %vm420_vm1, %v510_v56, %v511_v53  ;;  %v689_v53 = vmul.f32 %v688_v51, %v4736_v48  ;;  %v702_v54 = vstv %s4305_s29  ;;  %s4334_s29 = sld [smem:[#allocation3 + $0x191]] }
  0x40   :  { %301 = vrot.lane.b32.xlu1 %v298_v57, %s4540_s27  ;;  %v525_v57 = vmul.f32 %v524_v42, %v4574_v0  ;;  %v703_v56 = vmul.f32 %v702_v54, %v4736_v48  ;;  %s4340_s5 = sld [smem:[#allocation3 + $0x93]] }
  0x41   :  { %299 = vrot.lane.b32.xlu0 %v296_v63, %s4540_s27  ;;  %v548_v63 = vmul.f32 %v545_v58, %v4606_v21  ;;  %s4342_s12 = sld [smem:[#allocation3 + $0x193]] }
  0x42   :  { %v531_v3 = vrot.slane %v525_v57, 2  ;;  %v716_v57 = vstv %s4306_s6  ;;  %s4343_s13 = sld [smem:[#allocation3 + $0x14]] }
  0x43   :  { %v555_v9 = vrot.slane %v548_v63, 2  ;;  %v744_v63 = vstv %s4308_s9  ;;  %s4341_s9 = sld [smem:[#allocation3 + $0x113]] }
  0x44   :  { %322 = vrot.lane.b32.xlu1 %v319_v6, %s4540_s27  ;;  %v535_v6 = vsel %vm420_vm1, %v532_v59, %v534_v60  ;;  %v533_v12 = vsel %vm420_vm1, %v531_v3, %v532_v59  ;;  %v717_v59 = vmul.f32 %v716_v57, %v4736_v48  ;;  %v730_v60 = vstv %s4307_s7  ;;  %s4345_s15 = sld [smem:[#allocation3 + $0x114]] }
  0x45   :  { %320 = vrot.lane.b32.xlu0 %v317_v10, %s4540_s27  ;;  %v568_v10 = vmul.f32 %v566_v5, %v4579_v1  ;;  %v556_v17 = vsel %vm420_vm1, %v553_v8, %v555_v9  ;;  %v731_v62 = vmul.f32 %v730_v60, %v4736_v48  ;;  %v745_v3 = vmul.f32 %v744_v63, %v4736_v48  ;;  %s4351_s16 = sld [smem:[#allocation3 + $0x16]] }
  0x46   :  { %s4368_s6 = sld [smem:[#allocation3 + $0x9a]] }
  0x47   :  { %s4369_s7 = sld [smem:[#allocation3 + $0x11a]] }
  0x48   :  { %343 = vrot.lane.b32.xlu1 %v340_v15, %s4541_s8  ;;  %v589_v15 = vmul.f32 %v587_v7, %v4579_v1  ;;  %v854_v7 = vstv %s4315_s11  ;;  %s5178_s10 = sld [smem:[#allocation3 + $0x3]] }
  0x49   :  { %341 = vrot.lane.b32.xlu0 %v338_v18, %s4541_s8  ;;  %v574_v18 = vrot.slane %v568_v10, 2  ;;  %v759_v10 = vmul.f32 %v758_v4, %v4736_v48  ;;  %s5182_s11 = sld [smem:[#allocation3 + $0x83]] }
  0x4b   :  { %v577_v27 = vsel %vm420_vm1, %v574_v18, %v576_v19  ;;  %v575_v30 = vsel %vm420_vm1, %v573_v22, %v574_v18  ;;  %v773_v19 = vmul.f32 %v772_v11, %v4736_v48 }
  0x4c   :  { %364 = vrot.lane.b32.xlu1 %v361_v25, %s4541_s8  ;;  %v595_v25 = vrot.slane %v589_v15, 2  ;;  %v855_v15 = vmul.f32 %v854_v7, %v4736_v48 }
  0x4d   :  { %362 = vrot.lane.b32.xlu0 %v359_v28, %s4541_s8  ;;  %v610_v28 = vmul.f32 %v608_v24, %v4579_v1  ;;  %v636_v1 = vrot.slane %v630_v41, 2 }
  0x4e   :  { %v598_v34 = vsel %vm420_vm1, %v595_v25, %v597_v26  ;;  %v596_v39 = vsel %vm420_vm1, %v594_v31, %v595_v25 }
  0x4f   :  { %v616_v35 = vrot.slane %v610_v28, 2  ;;  %v876_v28 = vmul.f32 %v875_v16, %v4736_v48 }
  0x50   :  { %385 = vrot.lane.b32.xlu1 %v382_v32, %s4541_s8  ;;  %v609_v32 = vmul.f32 %v608_v24, %v4574_v0  ;;  %v4730_v0 = vld [vmem:[%s7583_s0 + $0x20] sm:$0xff] }
  0x51   :  { %383 = vrot.lane.b32.xlu0 %v380_v38, %s4541_s8  ;;  %v632_v38 = vmul.f32 %v629_v33, %v4606_v21  ;;  %v619_v42 = vsel %vm420_vm1, %v616_v35, %v618_v36  ;;  %v676_v49 = vmul.f32 %v674_v46, %v4730_v0  ;;  %v718_v58 = vmul.f32 %v716_v57, %v4730_v0 }
  0x52   :  { %v615_v40 = vrot.slane %v609_v32, 2  ;;  %v760_v9 = vmul.f32 %v758_v4, %v4730_v0  ;;  %v774_v18 = vmul.f32 %v772_v11, %v4730_v0  ;;  %v877_v24 = vmul.f32 %v875_v16, %v4730_v0 }
  0x53   :  { %v639_v44 = vrot.slane %v632_v38, 2  ;;  %v882_v38 = vrot.slane %v876_v28, 1 }
  0x54   :  { %406 = vrot.lane.b32.xlu1 %v403_v43, %s4541_s8  ;;  %v637_v43 = vrot.slane %v631_v37, 2  ;;  %v617_v45 = vsel %vm420_vm1, %v615_v40, %v616_v35  ;;  %v883_v33 = vrot.slane %v877_v24, 1  ;;  %v917_v35 = vstv %s4318_s17  ;;  %s4346_s17 = sld [smem:[#allocation3 + $0x194]] }
  0x55   :  { %404 = vrot.lane.b32.xlu0 %v401_v47, %s4541_s8 }
  0x56   :  { %v640_v21 = vsel %vm420_vm1, %v637_v43, %v639_v44  ;;  %v638_v47 = vsel %vm420_vm1, %v636_v1, %v637_v43  ;;  %v919_v43 = vmul.f32 %v917_v35, %v4730_v0 }
  0x58   :  { %496 = vrot.lane.b32.xlu1 %v493_v52, %s4540_s27  ;;  %v690_v52 = vmul.f32 %v688_v51, %v4730_v0 }
  0x59   :  { %494 = vrot.lane.b32.xlu0 %v491_v55, %s4540_s27  ;;  %v704_v55 = vmul.f32 %v702_v54, %v4730_v0 }
  0x5c   :  { %517 = vrot.lane.b32.xlu1 %v514_v61, %s4540_s27  ;;  %v732_v61 = vmul.f32 %v730_v60, %v4730_v0 }
  0x5d   :  { %515 = vrot.lane.b32.xlu0 %v512_v2, %s4540_s27  ;;  %v746_v2 = vmul.f32 %v744_v63, %v4730_v0 }
  0x60   :  { %538 = vrot.lane.b32.xlu1 %v535_v6, %s4540_s27  ;;  %v4767_v6 = vld [vmem:[%s7583_s0 + $0x28] sm:$0x3] }
  0x61   :  { %536 = vrot.lane.b32.xlu0 %v533_v12, %s4540_s27  ;;  %v856_v12 = vmul.f32 %v854_v7, %v4730_v0  ;;  %v857_v13 = vmul.f32 %v854_v7, %v4767_v6  ;;  %v878_v25 = vmul.f32 %v875_v16, %v4767_v6  ;;  %v980_v7 = vstv %s4321_s20  ;;  %s5525_s20 = sld [smem:[#allocation3 + $0x18f]] }
  0x63   :  { %v862_v22 = vrot.slane %v856_v12, 1  ;;  %v864_v23 = vrot.slane %v857_v13, 1 }
  0x64   :  { %559 = vrot.lane.b32.xlu1 %v556_v17, %s4540_s27 }
  0x65   :  { %557 = vrot.lane.b32.xlu0 %v554_v20, %s4540_s27  ;;  %v896_v20 = vstv %s4317_s14  ;;  %v865_v32 = vsel %vm183_vm0, %v862_v22, %v864_v23  ;;  %s4344_s14 = sld [smem:[#allocation3 + $0x94]] }
  0x66   :  { %v899_v31 = vmul.f32 %v896_v20, %v4767_v6 }
  0x68   :  { %580 = vrot.lane.b32.xlu1 %v577_v27, %s4541_s8  ;;  %v861_v27 = vrot.slane %v855_v15, 1 }
  0x69   :  { %578 = vrot.lane.b32.xlu0 %v575_v30, %s4541_s8  ;;  %v898_v30 = vmul.f32 %v896_v20, %v4730_v0 }
  0x6a   :  { %v863_v37 = vsel %vm183_vm0, %v861_v27, %v862_v22  ;;  %v1001_v27 = vstv %s4322_s21  ;;  %s5566_s21 = sld [smem:[#allocation3 + $0x12]] }
  0x6b   :  { %v904_v41 = vrot.slane %v898_v30, 1 }
  0x6c   :  { %601 = vrot.lane.b32.xlu1 %v598_v34, %s4541_s8  ;;  %v885_v34 = vrot.slane %v878_v25, 1  ;;  %v981_v25 = vmul.f32 %v980_v7, %v4736_v48 }
  0x6d   :  { %599 = vrot.lane.b32.xlu0 %v596_v39, %s4541_s8  ;;  %v897_v39 = vmul.f32 %v896_v20, %v4736_v48  ;;  %v983_v20 = vmul.f32 %v980_v7, %v4767_v6 }
  0x6e   :  { %v886_v44 = vsel %vm183_vm0, %v883_v33, %v885_v34  ;;  %v1004_v34 = vmul.f32 %v1001_v27, %v4767_v6 }
  0x6f   :  { %v903_v46 = vrot.slane %v897_v39, 1  ;;  %v987_v39 = vrot.slane %v981_v25, 1 }
  0x70   :  { %622 = vrot.lane.b32.xlu1 %v619_v42, %s4541_s8  ;;  %v906_v42 = vrot.slane %v899_v31, 1 }
  0x71   :  { %620 = vrot.lane.b32.xlu0 %v617_v45, %s4541_s8  ;;  %v920_v45 = vmul.f32 %v917_v35, %v4767_v6 }
  0x72   :  { %v907_v51 = vsel %vm183_vm0, %v904_v41, %v906_v42 }
  0x74   :  { %643 = vrot.lane.b32.xlu1 %v640_v21, %s4541_s8  ;;  %v884_v21 = vsel %vm183_vm0, %v882_v38, %v883_v33  ;;  %v1003_v33 = vmul.f32 %v1001_v27, %v4730_v0 }
  0x75   :  { %641 = vrot.lane.b32.xlu0 %v638_v47, %s4541_s8  ;;  %v918_v47 = vmul.f32 %v917_v35, %v4736_v48  ;;  %v1090_v35 = vstv %s4327_s22  ;;  %s4354_s22 = sld [smem:[#allocation3 + $0x196]] }
  0x78   :  { %681 = vrot.lane.b32.xlu1 %v676_v49, %s4540_s27  ;;  %v938_v49 = vstv %s4319_s18  ;;  %s4352_s18 = sld [smem:[#allocation3 + $0x96]] }
  0x79   :  { %679 = vrot.lane.b32.xlu0 %v675_v50, %s4540_s27  ;;  %v940_v54 = vmul.f32 %v938_v49, %v4730_v0  ;;  %v939_v60 = vmul.f32 %v938_v49, %v4736_v48 }
  0x7b   :  { %v945_v11 = vrot.slane %v939_v60, 1 }
  0x7c   :  { %695 = vrot.lane.b32.xlu1 %v690_v52, %s4540_s27  ;;  %v925_v52 = vrot.slane %v919_v43, 1  ;;  %v1092_v43 = vmul.f32 %v1090_v35, %v4730_v0 }
  0x7d   :  { %693 = vrot.lane.b32.xlu0 %v689_v53, %s4540_s27  ;;  %v927_v53 = vrot.slane %v920_v45, 1 }
  0x80   :  { %709 = vrot.lane.b32.xlu1 %v704_v55, %s4540_s27  ;;  %v941_v55 = vmul.f32 %v938_v49, %v4767_v6 }
  0x81   :  { %707 = vrot.lane.b32.xlu0 %v703_v56, %s4540_s27  ;;  %v959_v56 = vstv %s4320_s19  ;;  %s4353_s19 = sld [smem:[#allocation3 + $0x116]] }
  0x82   :  { %v962_v63 = vmul.f32 %v959_v56, %v4767_v6  ;;  %v948_v4 = vrot.slane %v941_v55, 1  ;;  %v960_v12 = vmul.f32 %v959_v56, %v4736_v48  ;;  %v1098_v55 = vrot.slane %v1092_v43, 2 }
  0x84   :  { %723 = vrot.lane.b32.xlu1 %v718_v58, %s4540_s27  ;;  %v905_v58 = vsel %vm183_vm0, %v903_v46, %v904_v41  ;;  %v969_v16 = vrot.slane %v962_v63, 1  ;;  %v966_v24 = vrot.slane %v960_v12, 1  ;;  %v1002_v41 = vmul.f32 %v1001_v27, %v4736_v48 }
  0x85   :  { %721 = vrot.lane.b32.xlu0 %v717_v59, %s4540_s27  ;;  %v924_v59 = vrot.slane %v918_v47, 1  ;;  %v1011_v46 = vrot.slane %v1004_v34, 1 }
  0x88   :  { %737 = vrot.lane.b32.xlu1 %v732_v61, %s4541_s8 }
  0x89   :  { %735 = vrot.lane.b32.xlu0 %v731_v62, %s4541_s8  ;;  %v961_v62 = vmul.f32 %v959_v56, %v4730_v0 }
  0x8a   :  { %v4762_v5 = vpop.permute.xlu1 %83 }
  0x8b   :  { %v4769_v8 = vpop.permute.xlu0 %69  ;;  %v967_v15 = vrot.slane %v961_v62, 1 }
  0x8c   :  { %751 = vrot.lane.b32.xlu1 %v746_v2, %s4541_s8  ;;  %v928_v2 = vsel %vm183_vm0, %v925_v52, %v927_v53  ;;  %v1111_v53 = vstv %s4328_s23  ;;  %s4355_s23 = sld [smem:[#allocation3 + $0x17]] }
  0x8d   :  { %749 = vrot.lane.b32.xlu0 %v745_v3, %s4541_s8  ;;  %v946_v3 = vrot.slane %v940_v54, 1  ;;  %v970_v30 = vsel %vm183_vm0, %v967_v15, %v969_v16  ;;  %v968_v38 = vsel %vm183_vm0, %v966_v24, %v967_v15  ;;  %v1114_v60 = vmul.f32 %v1111_v53, %v4767_v6 }
  0x8e   :  { %v4777_v14 = vpop.permute.xlu1 %85 }
  0x8f   :  { %v4780_v17 = vpop.permute.xlu0 %71  ;;  %v947_v23 = vsel %vm183_vm0, %v945_v11, %v946_v3  ;;  %v1153_v11 = vstv %s4330_s1  ;;  %v1121_v15 = vrot.slane %v1114_v60, 2  ;;  %s4357_s1 = sld [smem:[#allocation3 + $0x117]] }
  0x90   :  { %765 = vrot.lane.b32.xlu1 %v760_v9, %s4541_s8  ;;  %v1155_v27 = vmul.f32 %v1153_v11, %v4730_v0 }
  0x91   :  { %763 = vrot.lane.b32.xlu0 %v759_v10, %s4541_s8  ;;  %v926_v10 = vsel %vm183_vm0, %v924_v59, %v925_v52  ;;  %v1091_v52 = vmul.f32 %v1090_v35, %v4736_v48  ;;  %v1113_v59 = vmul.f32 %v1111_v53, %v4730_v0 }
  0x92   :  { %v4788_v26 = vpop.permute.xlu1 %99 }
  0x93   :  { %v4791_v29 = vpop.permute.xlu0 %97  ;;  %v1119_v12 = vrot.slane %v1113_v59, 2 }
  0x94   :  { %779 = vrot.lane.b32.xlu1 %v774_v18, %s4541_s8  ;;  %v982_v18 = vmul.f32 %v980_v7, %v4730_v0 }
  0x95   :  { %777 = vrot.lane.b32.xlu0 %v773_v19, %s4541_s8  ;;  %v949_v19 = vsel %vm183_vm0, %v946_v3, %v948_v4  ;;  %v1112_v3 = vmul.f32 %v1111_v53, %v4736_v48  ;;  %v1132_v4 = vstv %s4329_s24  ;;  %s4356_s24 = sld [smem:[#allocation3 + $0x97]] }
  0x96   :  { %v4798_v36 = vpop.permute.xlu1 %113  ;;  %v988_v31 = vrot.slane %v982_v18, 1  ;;  %v1134_v16 = vmul.f32 %v1132_v4, %v4730_v0  ;;  %v1135_v18 = vmul.f32 %v1132_v4, %v4767_v6  ;;  %v1133_v24 = vmul.f32 %v1132_v4, %v4736_v48 }
  0x97   :  { %v4802_v40 = vpop.permute.xlu0 %111 }
  0x98   :  { %868 = vrot.lane.b32.xlu1 %v865_v32, %s4540_s27  ;;  %v990_v32 = vrot.slane %v983_v20, 1  ;;  %v989_v49 = vsel %vm183_vm0, %v987_v39, %v988_v31  ;;  %v1154_v39 = vmul.f32 %v1153_v11, %v4736_v48 }
  0x99   :  { %866 = vrot.lane.b32.xlu0 %v863_v37, %s4540_s27 }
  0x9a   :  { %v4809_v1 = vpop.permute.xlu1 %127  ;;  %v991_v45 = vsel %vm183_vm0, %v988_v31, %v990_v32  ;;  %v1122_v31 = vsel %vm420_vm1, %v1119_v12, %v1121_v15  ;;  %v1140_v32 = vrot.slane %v1134_v16, 2  ;;  %v1216_v15 = vstv %s4333_s28  ;;  %s4364_s28 = sld [smem:[#allocation3 + $0x99]] }
  0x9b   :  { %v4813_v50 = vpop.permute.xlu0 %125 }
  0x9c   :  { %889 = vrot.lane.b32.xlu1 %v886_v44, %s4540_s27  ;;  %v1093_v44 = vmul.f32 %v1090_v35, %v4767_v6 }
  0x9d   :  { %887 = vrot.lane.b32.xlu0 %v884_v21, %s4540_s27  ;;  %v1009_v21 = vrot.slane %v1003_v33, 1  ;;  %v1142_v33 = vrot.slane %v1135_v18, 2 }
  0x9e   :  { %v4820_v57 = vpop.permute.xlu1 %141  ;;  %v1100_v56 = vrot.slane %v1093_v44, 2  ;;  %v1161_v44 = vrot.slane %v1155_v27, 2  ;;  %v1219_v27 = vmul.f32 %v1216_v15, %v4767_v6 }
  0x9f   :  { %v4824_v61 = vpop.permute.xlu0 %139 }
  0xa0   :  { %910 = vrot.lane.b32.xlu1 %v907_v51, %s4540_s27  ;;  %v1008_v51 = vrot.slane %v1002_v41, 1  ;;  %v1174_v41 = vstv %s4331_s25  ;;  %s4358_s25 = sld [smem:[#allocation3 + $0x197]] }
  0xa1   :  { %908 = vrot.lane.b32.xlu0 %v905_v58, %s4540_s27  ;;  %v1012_v58 = vsel %vm183_vm0, %v1009_v21, %v1011_v46  ;;  %v1176_v46 = vmul.f32 %v1174_v41, %v4730_v0 }
  0xa2   :  { %v4831_v9 = vpop.permute.xlu1 %155  ;;  %v1010_v63 = vsel %vm183_vm0, %v1008_v51, %v1009_v21  ;;  %v1143_v21 = vsel %vm420_vm1, %v1140_v32, %v1142_v33  ;;  %v1195_v51 = vstv %s4332_s26  ;;  %v1217_v33 = vmul.f32 %v1216_v15, %v4736_v48  ;;  %s4363_s26 = sld [smem:[#allocation3 + $0x19]] }
  0xa3   :  { %v4835_v13 = vpop.permute.xlu0 %153  ;;  %v1197_v59 = vmul.f32 %v1195_v51, %v4730_v0  ;;  %v1198_v60 = vmul.f32 %v1195_v51, %v4767_v6 }
  0xa4   :  { %931 = vrot.lane.b32.xlu1 %v928_v2, %s4540_s27  ;;  %v1097_v2 = vrot.slane %v1091_v52, 2 }
  0xa5   :  { %929 = vrot.lane.b32.xlu0 %v926_v10, %s4540_s27  ;;  %v1101_v10 = vsel %vm420_vm1, %v1098_v55, %v1100_v56  ;;  %v1175_v56 = vmul.f32 %v1174_v41, %v4736_v48  ;;  %v1203_v18 = vrot.slane %v1197_v59, 2 }
  0xa6   :  { %v4842_v22 = vpop.permute.xlu1 %169  ;;  %v1099_v20 = vsel %vm420_vm1, %v1097_v2, %v1098_v55  ;;  %v1160_v55 = vrot.slane %v1154_v39, 2  ;;  %v1182_v2 = vrot.slane %v1176_v46, 2 }
  0xa7   :  { %v4846_v28 = vpop.permute.xlu0 %167 }
  0xa8   :  { %952 = vrot.lane.b32.xlu1 %v949_v19, %s4541_s8 }
  0xa9   :  { %950 = vrot.lane.b32.xlu0 %v947_v23, %s4541_s8  ;;  %v1118_v23 = vrot.slane %v1112_v3, 2 }
  0xaa   :  { %v4853_v37 = vpop.permute.xlu1 %259 }
  0xab   :  { %v4857_v42 = vpop.permute.xlu0 %257  ;;  %v1120_v35 = vsel %vm420_vm1, %v1118_v23, %v1119_v12  ;;  %v1196_v12 = vmul.f32 %v1195_v51, %v4736_v48  ;;  %v1223_v51 = vrot.slane %v1217_v33, 2 }
  0xac   :  { %973 = vrot.lane.b32.xlu1 %v970_v30, %s4541_s8  ;;  %v1156_v30 = vmul.f32 %v1153_v11, %v4767_v6  ;;  %v1181_v11 = vrot.slane %v1175_v56, 2 }
  0xad   :  { %971 = vrot.lane.b32.xlu0 %v968_v38, %s4541_s8  ;;  %v1139_v38 = vrot.slane %v1133_v24, 2  ;;  %v1218_v24 = vmul.f32 %v1216_v15, %v4730_v0  ;;  %v4969_v15 = vld [vmem:[%s7583_s0 + $0x30] sm:$0xff] }
  0xae   :  { %v4864_v47 = vpop.permute.xlu1 %280 }
  0xaf   :  { %v4868_v54 = vpop.permute.xlu0 %278  ;;  %v1141_v53 = vsel %vm420_vm1, %v1139_v38, %v1140_v32  ;;  %v1202_v32 = vrot.slane %v1196_v12, 2 }
  0xb0   :  { %994 = vrot.lane.b32.xlu1 %v991_v45, %s4541_s8  ;;  %v1163_v45 = vrot.slane %v1156_v30, 2 }
  0xb1   :  { %992 = vrot.lane.b32.xlu0 %v989_v49, %s4541_s8  ;;  %v1177_v49 = vmul.f32 %v1174_v41, %v4767_v6  ;;  %v1224_v41 = vrot.slane %v1218_v24, 2  ;;  %v1296_v24 = vstv %s4340_s5  ;;  %s4367_s5 = sld [smem:[#allocation3 + $0x1a]] }
  0xb2   :  { %v4875_v62 = vpop.permute.xlu1 %301  ;;  %v1297_v33 = vmul.f32 %v1296_v24, %v4969_v15 }
  0xb3   :  { %7595 = vst [vmem:[#allocation6_spill] sm:$0xff] %v4875_v62  ;;  %v4879_v7 = vpop.permute.xlu0 %299  ;;  %v1184_v3 = vrot.slane %v1177_v49, 2  ;;  %v1204_v49 = vsel %vm420_vm1, %v1202_v32, %v1203_v18 }
  0xb4   :  { %7596 = vst [vmem:[#allocation7_spill] sm:$0xff] %v4879_v7  ;;  %1015 = vrot.lane.b32.xlu1 %v1012_v58, %s4541_s8 }
  0xb5   :  { %1013 = vrot.lane.b32.xlu0 %v1010_v63, %s4541_s8  ;;  %v1164_v63 = vsel %vm420_vm1, %v1161_v44, %v1163_v45  ;;  %v1185_v23 = vsel %vm420_vm1, %v1182_v2, %v1184_v3  ;;  %v4961_v3 = vld [vmem:[%s7583_s0 + $0x38] sm:$0xff] }
  0xb6   :  { %v4886_v19 = vpop.permute.xlu1 %322  ;;  %v1298_v32 = vmul.f32 %v1296_v24, %v4961_v3 }
  0xb7   :  { %7597 = vst [vmem:[#allocation8_spill] sm:$0xff] %v4886_v19  ;;  %v4890_v25 = vpop.permute.xlu0 %320 }
  0xb8   :  { %7598 = vst [vmem:[#allocation9_spill] sm:$0xff] %v4890_v25  ;;  %1104 = vrot.lane.b32.xlu1 %v1101_v10, %s4540_s27  ;;  %v1162_v10 = vsel %vm420_vm1, %v1160_v55, %v1161_v44  ;;  %v1226_v44 = vrot.slane %v1219_v27, 2 }
  0xb9   :  { %1102 = vrot.lane.b32.xlu0 %v1099_v20, %s4540_s27  ;;  %v1205_v20 = vrot.slane %v1198_v60, 2  ;;  %v1225_v60 = vsel %vm420_vm1, %v1223_v51, %v1224_v41 }
  0xba   :  { %v4897_v34 = vpop.permute.xlu1 %343  ;;  %v1227_v56 = vsel %vm420_vm1, %v1224_v41, %v1226_v44 }
  0xbb   :  { %7599 = vst [vmem:[#allocation10_spill] sm:$0xff] %v4897_v34  ;;  %v4901_v43 = vpop.permute.xlu0 %341  ;;  %v1206_v39 = vsel %vm420_vm1, %v1203_v18, %v1205_v20 }
  0xbc   :  { %7600 = vst [vmem:[#allocation11_spill] sm:$0xff] %v4901_v43  ;;  %1125 = vrot.lane.b32.xlu1 %v1122_v31, %s4540_s27  ;;  %v1183_v31 = vsel %vm420_vm1, %v1181_v11, %v1182_v2 }
  0xbd   :  { %1123 = vrot.lane.b32.xlu0 %v1120_v35, %s4540_s27  ;;  %v1237_v35 = vstv %s4334_s29  ;;  %s4365_s29 = sld [smem:[#allocation3 + $0x119]] }
  0xbe   :  { %v4908_v52 = vpop.permute.xlu1 %364  ;;  %v1239_v45 = vmul.f32 %v1237_v35, %v4730_v0 }
  0xbf   :  { %7601 = vst [vmem:[#allocation12_spill] sm:$0xff] %v4908_v52  ;;  %v4912_v58 = vpop.permute.xlu0 %362 }
  0xc0   :  { %7602 = vst [vmem:[#allocation13_spill] sm:$0xff] %v4912_v58  ;;  %1146 = vrot.lane.b32.xlu1 %v1143_v21, %s4540_s27  ;;  %v1240_v21 = vmul.f32 %v1237_v35, %v4767_v6  ;;  %v1245_v59 = vrot.slane %v1239_v45, 2 }
  0xc1   :  { %1144 = vrot.lane.b32.xlu0 %v1141_v53, %s4540_s27  ;;  %v1238_v53 = vmul.f32 %v1237_v35, %v4736_v48  ;;  %v1310_v35 = vstv %s4341_s9  ;;  %s4370_s9 = sld [smem:[#allocation3 + $0x19a]] }
  0xc2   :  { %v4919_v4 = vpop.permute.xlu1 %385  ;;  %v1247_v0 = vrot.slane %v1240_v21, 2  ;;  %v1312_v44 = vmul.f32 %v1310_v35, %v4961_v3  ;;  %v1311_v45 = vmul.f32 %v1310_v35, %v4969_v15  ;;  %v1324_v21 = vstv %s4342_s12  ;;  %v5022_v35 = vld [vmem:[%s7583_s0 + $0x40] sm:$0x3]  ;;  %s5189_s12 = sld [smem:[#allocation3 + $0x80]] }
  0xc3   :  { %7603 = vst [vmem:[#allocation14_spill] sm:$0xff] %v4919_v4  ;;  %v4923_v16 = vpop.permute.xlu0 %383 }
  0xc4   :  { %7604 = vst [vmem:[#allocation15_spill] sm:$0xff] %v4923_v16  ;;  %1167 = vrot.lane.b32.xlu1 %v1164_v63, %s4540_s27  ;;  %v1244_v63 = vrot.slane %v1238_v53, 2  ;;  %v1248_v48 = vsel %vm420_vm1, %v1245_v59, %v1247_v0  ;;  %v1326_v53 = vmul.f32 %v1324_v21, %v4961_v3 }
  0xc5   :  { %1165 = vrot.lane.b32.xlu0 %v1162_v10, %s4540_s27  ;;  %v1282_v10 = vstv %s4339_s30  ;;  %s4366_s30 = sld [smem:[#allocation3 + $0x199]] }
  0xc6   :  { %v4930_v30 = vpop.permute.xlu1 %406  ;;  %v1246_v12 = vsel %vm420_vm1, %v1244_v63, %v1245_v59  ;;  %v1284_v20 = vmul.f32 %v1282_v10, %v4961_v3  ;;  %v1338_v59 = vstv %s4343_s13  ;;  %s5195_s13 = sld [smem:[#allocation3]] }
  0xc7   :  { %7605 = vst [vmem:[#allocation16_spill] sm:$0xff] %v4930_v30  ;;  %v4934_v38 = vpop.permute.xlu0 %404  ;;  %v1340_v63 = vmul.f32 %v1338_v59, %v4961_v3 }
  0xc8   :  { %7606 = vst [vmem:[#allocation17_spill] sm:$0xff] %v4934_v38  ;;  %1188 = vrot.lane.b32.xlu1 %v1185_v23, %s4541_s8  ;;  %v1283_v23 = vmul.f32 %v1282_v10, %v4969_v15  ;;  %v1352_v10 = vstv %s4344_s14  ;;  %s5199_s14 = sld [smem:[#allocation3 + $0x100]] }
  0xc9   :  { %1186 = vrot.lane.b32.xlu0 %v1183_v31, %s4541_s8  ;;  %v1353_v24 = vmul.f32 %v1352_v10, %v4969_v15 }
  0xca   :  { %v4941_v46 = vpop.permute.xlu1 %496 }
  0xcb   :  { %7607 = vst [vmem:[#allocation18_spill] sm:$0xff] %v4941_v46  ;;  %v4945_v55 = vpop.permute.xlu0 %494 }
  0xcc   :  { %7608 = vst [vmem:[#allocation19_spill] sm:$0xff] %v4945_v55  ;;  %1209 = vrot.lane.b32.xlu1 %v1206_v39, %s4541_s8 }
  0xcd   :  { %1207 = vrot.lane.b32.xlu0 %v1204_v49, %s4541_s8 }
  0xce   :  { %v4950_v6 = vpop.permute.xlu1 %517 }
  0xcf   :  { %7609 = vst [vmem:[#allocation20_spill] sm:$0xff] %v4950_v6  ;;  %v4953_v2 = vpop.permute.xlu0 %515 }
  0xd0   :  { %7610 = vst [vmem:[#allocation21_spill] sm:$0xff] %v4953_v2  ;;  %1230 = vrot.lane.b32.xlu1 %v1227_v56, %s4541_s8  ;;  %v1325_v56 = vmul.f32 %v1324_v21, %v4969_v15 }
  0xd1   :  { %1228 = vrot.lane.b32.xlu0 %v1225_v60, %s4541_s8 }
  0xd2   :  { %v4963_v11 = vpop.permute.xlu1 %538 }
  0xd3   :  { %7611 = vst [vmem:[#allocation22_spill] sm:$0xff] %v4963_v11  ;;  %v4971_v18 = vpop.permute.xlu0 %536 }
  0xd4   :  { %7612 = vst [vmem:[#allocation23_spill] sm:$0xff] %v4971_v18  ;;  %1251 = vrot.lane.b32.xlu1 %v1248_v48, %s4541_s8  ;;  %v1339_v48 = vmul.f32 %v1338_v59, %v4969_v15 }
  0xd5   :  { %1249 = vrot.lane.b32.xlu0 %v1246_v12, %s4541_s8 }
  0xd6   :  { %v4977_v27 = vpop.permute.xlu1 %559 }
  0xd7   :  { %7613 = vst [vmem:[#allocation24_spill] sm:$0xff] %v4977_v27  ;;  %v4979_v31 = vpop.permute.xlu0 %557 }
  0xd8   :  { %7614 = vst [vmem:[#allocation25_spill] sm:$0xff] %v4979_v31  ;;  %1289 = vrot.lane.b32.xlu1 %v1284_v20, %s4540_s27 }
  0xd9   :  { %1287 = vrot.lane.b32.xlu0 %v1283_v23, %s4540_s27  ;;  %v1354_v23 = vmul.f32 %v1352_v10, %v4961_v3 }
  0xda   :  { %v4985_v39 = vpop.permute.xlu1 %580 }
  0xdb   :  { %7615 = vst [vmem:[#allocation26_spill] sm:$0xff] %v4985_v39  ;;  %v4987_v41 = vpop.permute.xlu0 %578 }
  0xdc   :  { %7616 = vst [vmem:[#allocation27_spill] sm:$0xff] %v4987_v41  ;;  %1303 = vrot.lane.b32.xlu1 %v1298_v32, %s4540_s27  ;;  %v1366_v32 = vstv %s4345_s15  ;;  %s5203_s15 = sld [smem:[#allocation3 + $0x103]] }
  0xdd   :  { %1301 = vrot.lane.b32.xlu0 %v1297_v33, %s4540_s27  ;;  %v1368_v21 = vmul.f32 %v1366_v32, %v4961_v3 }
  0xde   :  { %v4993_v49 = vpop.permute.xlu1 %601 }
  0xdf   :  { %7617 = vst [vmem:[#allocation28_spill] sm:$0xff] %v4993_v49  ;;  %v4995_v51 = vpop.permute.xlu0 %599 }
  0xe0   :  { %7618 = vst [vmem:[#allocation29_spill] sm:$0xff] %v4995_v51  ;;  %1317 = vrot.lane.b32.xlu1 %v1312_v44, %s4540_s27  ;;  %v1462_v44 = vstv %s4351_s16  ;;  %v1525_v51 = vstv %s4354_s22  ;;  %s5208_s16 = sld [smem:[#allocation3 + $0x180]] }
  0xe1   :  { %1315 = vrot.lane.b32.xlu0 %v1311_v45, %s4540_s27  ;;  %v1464_v59 = vmul.f32 %v1462_v44, %v4961_v3  ;;  %v1463_v10 = vmul.f32 %v1462_v44, %v4969_v15  ;;  %s5574_s22 = sld [smem:[#allocation3 + $0x92]] }
  0xe2   :  { %v5001_v0 = vpop.permute.xlu1 %622 }
  0xe3   :  { %7619 = vst [vmem:[#allocation30_spill] sm:$0xff] %v5001_v0  ;;  %v5003_v60 = vpop.permute.xlu0 %620  ;;  %v1469_v0 = vrot.slane %v1463_v10, 1 }
  0xe4   :  { %7620 = vst [vmem:[#allocation31_spill] sm:$0xff] %v5003_v60  ;;  %1331 = vrot.lane.b32.xlu1 %v1326_v53, %s4540_s27  ;;  %v1367_v53 = vmul.f32 %v1366_v32, %v4969_v15  ;;  %v1470_v32 = vrot.slane %v1464_v59, 1 }
  0xe5   :  { %1329 = vrot.lane.b32.xlu0 %v1325_v56, %s4540_s27  ;;  %v1380_v56 = vstv %s4346_s17  ;;  %s5463_s17 = sld [smem:[#allocation3 + $0xf]] }
  0xe6   :  { %v5009_v12 = vpop.permute.xlu1 %643  ;;  %v1471_v10 = vsel %vm183_vm0, %v1469_v0, %v1470_v32 }
  0xe7   :  { %7621 = vst [vmem:[#allocation32_spill] sm:$0xff] %v5009_v12  ;;  %v5011_v20 = vpop.permute.xlu0 %641 }
  0xe8   :  { %7622 = vst [vmem:[#allocation33_spill] sm:$0xff] %v5011_v20  ;;  %1345 = vrot.lane.b32.xlu1 %v1340_v63, %s4541_s8  ;;  %v1465_v63 = vmul.f32 %v1462_v44, %v5022_v35  ;;  %v1483_v20 = vstv %s4352_s18  ;;  %s5498_s18 = sld [smem:[#allocation3 + $0x8f]] }
  0xe9   :  { %1343 = vrot.lane.b32.xlu0 %v1339_v48, %s4541_s8 }
  0xea   :  { %v5017_v33 = vpop.permute.xlu1 %681  ;;  %v1472_v60 = vrot.slane %v1465_v63, 1 }
  0xeb   :  { %7623 = vst [vmem:[#allocation34_spill] sm:$0xff] %v5017_v33  ;;  %v5024_v45 = vpop.permute.xlu0 %679  ;;  %v1485_v33 = vmul.f32 %v1483_v20, %v4961_v3 }
  0xec   :  { %7624 = vst [vmem:[#allocation35_spill] sm:$0xff] %v5024_v45  ;;  %1359 = vrot.lane.b32.xlu1 %v1354_v23, %s4541_s8  ;;  %v1382_v23 = vmul.f32 %v1380_v56, %v4961_v3  ;;  %v1504_v45 = vstv %s4353_s19  ;;  %s5227_s19 = sld [smem:[#allocation3 + $0x183]] }
  0xed   :  { %1357 = vrot.lane.b32.xlu0 %v1353_v24, %s4541_s8  ;;  %v1381_v24 = vmul.f32 %v1380_v56, %v4969_v15  ;;  %v1506_v56 = vmul.f32 %v1504_v45, %v4961_v3  ;;  %v1491_v59 = vrot.slane %v1485_v33, 1  ;;  %v1507_v49 = vmul.f32 %v1504_v45, %v5022_v35 }
  0xee   :  { %v5032_v48 = vpop.permute.xlu1 %695 }
  0xef   :  { %7625 = vst [vmem:[#allocation36_spill] sm:$0xff] %v5032_v48  ;;  %v5035_v12 = vpop.permute.xlu0 %693  ;;  %v1486_v48 = vmul.f32 %v1483_v20, %v5022_v35 }
  0xf0   :  { %7626 = vst [vmem:[#allocation37_spill] sm:$0xff] %v5035_v12  ;;  %1373 = vrot.lane.b32.xlu1 %v1368_v21, %s4541_s8  ;;  %v1484_v12 = vmul.f32 %v1483_v20, %v4969_v15 }
  0xf1   :  { %1371 = vrot.lane.b32.xlu0 %v1367_v53, %s4541_s8  ;;  %v1473_v53 = vsel %vm183_vm0, %v1470_v32, %v1472_v60  ;;  %v1493_v63 = vrot.slane %v1486_v48, 1  ;;  %v1528_v60 = vmul.f32 %v1525_v51, %v5022_v35  ;;  %v1512_v48 = vrot.slane %v1506_v56, 1 }
  0xf2   :  { %v5043_v44 = vpop.permute.xlu1 %709  ;;  %v1490_v20 = vrot.slane %v1484_v12, 1  ;;  %v1526_v32 = vmul.f32 %v1525_v51, %v4969_v15 }
  0xf3   :  { %7627 = vst [vmem:[#allocation38_spill] sm:$0xff] %v5043_v44  ;;  %v5046_v21 = vpop.permute.xlu0 %707  ;;  %v1494_v33 = vsel %vm183_vm0, %v1491_v59, %v1493_v63  ;;  %v1546_v44 = vstv %s4355_s23  ;;  %v1535_v27 = vrot.slane %v1528_v60, 1  ;;  %s5582_s23 = sld [smem:[#allocation3 + $0x15]] }
  0xf4   :  { %7628 = vst [vmem:[#allocation39_spill] sm:$0xff] %v5046_v21  ;;  %1387 = vrot.lane.b32.xlu1 %v1382_v23, %s4541_s8  ;;  %v1505_v21 = vmul.f32 %v1504_v45, %v4969_v15  ;;  %v1492_v12 = vsel %vm183_vm0, %v1490_v20, %v1491_v59  ;;  %v1549_v56 = vmul.f32 %v1546_v44, %v5022_v35  ;;  %v1567_v20 = vstv %s4356_s24  ;;  %s5246_s24 = sld [smem:[#allocation3 + $0x6]] }
  0xf5   :  { %1385 = vrot.lane.b32.xlu0 %v1381_v24, %s4541_s8  ;;  %v1527_v24 = vmul.f32 %v1525_v51, %v4961_v3  ;;  %v1532_v51 = vrot.slane %v1526_v32, 1  ;;  %v1547_v59 = vmul.f32 %v1546_v44, %v4969_v15  ;;  %v1568_v32 = vmul.f32 %v1567_v20, %v4969_v15 }
  0xf6   :  { %v5053_v31 = vpop.permute.xlu1 %723  ;;  %v1511_v45 = vrot.slane %v1505_v21, 1 }
  0xf7   :  { %7629 = vst [vmem:[#allocation40_spill] sm:$0xff] %v5053_v31  ;;  %v5057_v23 = vpop.permute.xlu0 %721  ;;  %v1514_v31 = vrot.slane %v1507_v49, 1 }
  0xf8   :  { %7630 = vst [vmem:[#allocation41_spill] sm:$0xff] %v5057_v23  ;;  %1476 = vrot.lane.b32.xlu1 %v1473_v53, %s4540_s27  ;;  %v1533_v23 = vrot.slane %v1527_v24, 1  ;;  %v1513_v21 = vsel %vm183_vm0, %v1511_v45, %v1512_v48  ;;  %v1553_v45 = vrot.slane %v1547_v59, 1  ;;  %v1574_v59 = vrot.slane %v1568_v32, 1 }
  0xf9   :  { %1474 = vrot.lane.b32.xlu0 %v1471_v10, %s4540_s27  ;;  %v1548_v10 = vmul.f32 %v1546_v44, %v4961_v3  ;;  %v1515_v49 = vsel %vm183_vm0, %v1512_v48, %v1514_v31  ;;  %v1556_v31 = vrot.slane %v1549_v56, 1  ;;  %v1698_v32 = vstv %s4363_s26  ;;  %s5263_s26 = sld [smem:[#allocation3 + $0x186]] }
  0xfa   :  { %v5064_v0 = vpop.permute.xlu1 %737  ;;  %v1536_v24 = vsel %vm183_vm0, %v1533_v23, %v1535_v27  ;;  %v1534_v44 = vsel %vm183_vm0, %v1532_v51, %v1533_v23 }
  0xfb   :  { %7631 = vst [vmem:[#allocation42_spill] sm:$0xff] %v5064_v0  ;;  %v5068_v53 = vpop.permute.xlu0 %735  ;;  %v1554_v60 = vrot.slane %v1548_v10, 1 }
  0xfc   :  { %7632 = vst [vmem:[#allocation43_spill] sm:$0xff] %v5068_v53  ;;  %1497 = vrot.lane.b32.xlu1 %v1494_v33, %s4540_s27  ;;  %v1588_v53 = vstv %s4357_s1  ;;  %s5251_s1 = sld [smem:[#allocation3 + $0x86]] }
  0xfd   :  { %1495 = vrot.lane.b32.xlu0 %v1492_v12, %s4540_s27  ;;  %v1569_v12 = vmul.f32 %v1567_v20, %v4961_v3  ;;  %v1590_v27 = vmul.f32 %v1588_v53, %v4961_v3  ;;  %v1591_v10 = vmul.f32 %v1588_v53, %v5022_v35  ;;  %v1557_v56 = vsel %vm183_vm0, %v1554_v60, %v1556_v31 }
  0xfe   :  { %v5075_v63 = vpop.permute.xlu1 %751  ;;  %v1555_v51 = vsel %vm183_vm0, %v1553_v45, %v1554_v60 }
  0xff   :  { %7633 = vst [vmem:[#allocation44_spill] sm:$0xff] %v5075_v63  ;;  %v5079_v33 = vpop.permute.xlu0 %749  ;;  %v1570_v63 = vmul.f32 %v1567_v20, %v5022_v35  ;;  %v1589_v20 = vmul.f32 %v1588_v53, %v4969_v15  ;;  %v1598_v0 = vrot.slane %v1591_v10, 1 }
 0x100   :  { %7634 = vst [vmem:[#allocation45_spill] sm:$0xff] %v5079_v33  ;;  %1518 = vrot.lane.b32.xlu1 %v1515_v49, %s4540_s27  ;;  %v1609_v33 = vstv %s4358_s25  ;;  %s5257_s25 = sld [smem:[#allocation3 + $0x106]] }
 0x101   :  { %1516 = vrot.lane.b32.xlu0 %v1513_v21, %s4540_s27  ;;  %v1575_v21 = vrot.slane %v1569_v12, 1  ;;  %v1612_v31 = vmul.f32 %v1609_v33, %v5022_v35  ;;  %v1595_v45 = vrot.slane %v1589_v20, 1  ;;  %v1610_v53 = vmul.f32 %v1609_v33, %v4969_v15 }
 0x102   :  { %v5086_v48 = vpop.permute.xlu1 %765  ;;  %v431_v6 = vstv %s5251_s1  ;;  %s5595_s1 = sld [smem:[#allocation3 + $0x192]] }
 0x103   :  { %7635 = vst [vmem:[#allocation46_spill] sm:$0xff] %v5086_v48  ;;  %v5090_v49 = vpop.permute.xlu0 %763  ;;  %v1577_v48 = vrot.slane %v1570_v63, 1  ;;  %v1576_v60 = vsel %vm183_vm0, %v1574_v59, %v1575_v21  ;;  %v1719_v59 = vstv %s4364_s28  ;;  %s5324_s28 = sld [smem:[#allocation3 + $0x9]] }
 0x104   :  { %7636 = vst [vmem:[#allocation47_spill] sm:$0xff] %v5090_v49  ;;  %1539 = vrot.lane.b32.xlu1 %v1536_v24, %s4540_s27  ;;  %v1596_v49 = vrot.slane %v1590_v27, 1 }
 0x105   :  { %1537 = vrot.lane.b32.xlu0 %v1534_v44, %s4540_s27  ;;  %v1611_v44 = vmul.f32 %v1609_v33, %v4961_v3  ;;  %v1578_v63 = vsel %vm183_vm0, %v1575_v21, %v1577_v48  ;;  %v1619_v48 = vrot.slane %v1612_v31, 1  ;;  %v1701_v21 = vmul.f32 %v1698_v32, %v5022_v35 }
 0x106   :  { %v5097_v23 = vpop.permute.xlu1 %779  ;;  %v1599_v27 = vsel %vm183_vm0, %v1596_v49, %v1598_v0  ;;  %v1597_v33 = vsel %vm183_vm0, %v1595_v45, %v1596_v49  ;;  %v1721_v0 = vmul.f32 %v1719_v59, %v4961_v3 }
 0x107   :  { %7637 = vst [vmem:[#allocation48_spill] sm:$0xff] %v5097_v23  ;;  %v5101_v24 = vpop.permute.xlu0 %777  ;;  %v1617_v10 = vrot.slane %v1611_v44, 1  ;;  %v1699_v23 = vmul.f32 %v1698_v32, %v4969_v15 }
 0x108   :  { %7638 = vst [vmem:[#allocation49_spill] sm:$0xff] %v5101_v24  ;;  %1560 = vrot.lane.b32.xlu1 %v1557_v56, %s4541_s8  ;;  %v1616_v24 = vrot.slane %v1610_v53, 1  ;;  %v1720_v53 = vmul.f32 %v1719_v59, %v4969_v15 }
 0x109   :  { %1558 = vrot.lane.b32.xlu0 %v1555_v51, %s4541_s8  ;;  %v1700_v51 = vmul.f32 %v1698_v32, %v4961_v3  ;;  %v1620_v44 = vsel %vm183_vm0, %v1617_v10, %v1619_v48  ;;  %v1705_v45 = vrot.slane %v1699_v23, 2  ;;  %v1740_v32 = vstv %s4365_s29  ;;  %s5330_s29 = sld [smem:[#allocation3 + $0xc]] }
 0x10a   :  { %v5108_v12 = vpop.permute.xlu1 %868  ;;  %v1618_v49 = vsel %vm183_vm0, %v1616_v24, %v1617_v10  ;;  %v1743_v24 = vmul.f32 %v1740_v32, %v5022_v35 }
 0x10b   :  { %7639 = vst [vmem:[#allocation50_spill] sm:$0xff] %v5108_v12  ;;  %v5112_v56 = vpop.permute.xlu0 %866  ;;  %v1706_v31 = vrot.slane %v1700_v51, 2 }
 0x10c   :  { %7640 = vst [vmem:[#allocation51_spill] sm:$0xff] %v5112_v56  ;;  %1581 = vrot.lane.b32.xlu1 %v1578_v63, %s4541_s8  ;;  %v1722_v56 = vmul.f32 %v1719_v59, %v5022_v35  ;;  %v1726_v59 = vrot.slane %v1720_v53, 2 }
 0x10d   :  { %1579 = vrot.lane.b32.xlu0 %v1576_v60, %s4541_s8  ;;  %v1708_v60 = vrot.slane %v1701_v21, 2  ;;  %v1742_v21 = vmul.f32 %v1740_v32, %v4961_v3  ;;  %v1707_v10 = vsel %vm420_vm1, %v1705_v45, %v1706_v31 }
 0x10e   :  { %v5119_v20 = vpop.permute.xlu1 %889  ;;  %v1729_v51 = vrot.slane %v1722_v56, 2 }
 0x10f   :  { %7641 = vst [vmem:[#allocation52_spill] sm:$0xff] %v5119_v20  ;;  %v5123_v63 = vpop.permute.xlu0 %887  ;;  %v1709_v48 = vsel %vm420_vm1, %v1706_v31, %v1708_v60 }
 0x110   :  { %7642 = vst [vmem:[#allocation53_spill] sm:$0xff] %v5123_v63  ;;  %1602 = vrot.lane.b32.xlu1 %v1599_v27, %s4541_s8  ;;  %v1761_v63 = vstv %s4366_s30  ;;  %s5338_s30 = sld [smem:[#allocation3 + $0x89]] }
 0x111   :  { %1600 = vrot.lane.b32.xlu0 %v1597_v33, %s4541_s8  ;;  %v1727_v33 = vrot.slane %v1721_v0, 2  ;;  %v1763_v0 = vmul.f32 %v1761_v63, %v4961_v3  ;;  %v1764_v56 = vmul.f32 %v1761_v63, %v5022_v35  ;;  %v1762_v53 = vmul.f32 %v1761_v63, %v4969_v15 }
 0x112   :  { %v5130_v20 = vpop.permute.xlu1 %910 }
 0x113   :  { %7643 = vst [vmem:[#allocation54_spill] sm:$0xff] %v5130_v20  ;;  %v5134_v27 = vpop.permute.xlu0 %908  ;;  %v1730_v60 = vsel %vm420_vm1, %v1727_v33, %v1729_v51  ;;  %v1750_v20 = vrot.slane %v1743_v24, 2  ;;  %v1728_v31 = vsel %vm420_vm1, %v1726_v59, %v1727_v33  ;;  %v1771_v12 = vrot.slane %v1764_v56, 2 }
 0x114   :  { %7644 = vst [vmem:[#allocation55_spill] sm:$0xff] %v5134_v27  ;;  %1623 = vrot.lane.b32.xlu1 %v1620_v44, %s4541_s8  ;;  %v1741_v27 = vmul.f32 %v1740_v32, %v4969_v15  ;;  %v1782_v32 = vstv %s4367_s5  ;;  %v1803_v33 = vstv %s4368_s6  ;;  %s5345_s5 = sld [smem:[#allocation3 + $0x109]] }
 0x115   :  { %1621 = vrot.lane.b32.xlu0 %v1618_v49, %s4541_s8  ;;  %v1748_v49 = vrot.slane %v1742_v21, 2  ;;  %v1784_v21 = vmul.f32 %v1782_v32, %v4961_v3  ;;  %v1785_v24 = vmul.f32 %v1782_v32, %v5022_v35  ;;  %v1783_v59 = vmul.f32 %v1782_v32, %v4969_v15  ;;  %s5349_s6 = sld [smem:[#allocation3 + $0x189]] }
 0x116   :  { %v5141_v23 = vpop.permute.xlu1 %931  ;;  %v1747_v45 = vrot.slane %v1741_v27, 2  ;;  %v1824_v32 = vstv %s4369_s7  ;;  %s5354_s7 = sld [smem:[#allocation3 + $0x8c]] }
 0x117   :  { %7645 = vst [vmem:[#allocation56_spill] sm:$0xff] %v5141_v23  ;;  %v5145_v44 = vpop.permute.xlu0 %929  ;;  %v1751_v51 = vsel %vm420_vm1, %v1748_v49, %v1750_v20  ;;  %v1806_v20 = vmul.f32 %v1803_v33, %v5022_v35 }
 0x118   :  { %7646 = vst [vmem:[#allocation57_spill] sm:$0xff] %v5145_v44  ;;  %1712 = vrot.lane.b32.xlu1 %v1709_v48, %s4540_s27  ;;  %v1769_v44 = vrot.slane %v1763_v0, 2  ;;  %v1749_v63 = vsel %vm420_vm1, %v1747_v45, %v1748_v49  ;;  %v1805_v0 = vmul.f32 %v1803_v33, %v4961_v3  ;;  %v1789_v45 = vrot.slane %v1783_v59, 2 }
 0x119   :  { %1710 = vrot.lane.b32.xlu0 %v1707_v10, %s4540_s27  ;;  %v1768_v10 = vrot.slane %v1762_v53, 2  ;;  %v1804_v53 = vmul.f32 %v1803_v33, %v4969_v15 }
 0x11a   :  { %v5152_v23 = vpop.permute.xlu1 %952  ;;  %v1772_v56 = vsel %vm420_vm1, %v1769_v44, %v1771_v12  ;;  %v1813_v12 = vrot.slane %v1806_v20, 2 }
 0x11b   :  { %7647 = vst [vmem:[#allocation58_spill] sm:$0xff] %v5152_v23  ;;  %v5156_v48 = vpop.permute.xlu0 %950  ;;  %v1770_v49 = vsel %vm420_vm1, %v1768_v10, %v1769_v44  ;;  %v1826_v44 = vmul.f32 %v1824_v32, %v4961_v3  ;;  %v1810_v59 = vrot.slane %v1804_v53, 2 }
 0x11c   :  { %7648 = vst [vmem:[#allocation59_spill] sm:$0xff] %v5156_v48  ;;  %1733 = vrot.lane.b32.xlu1 %v1730_v60, %s4540_s27 }
 0x11d   :  { %1731 = vrot.lane.b32.xlu0 %v1728_v31, %s4540_s27  ;;  %v1790_v31 = vrot.slane %v1784_v21, 2  ;;  %v1832_v20 = vrot.slane %v1826_v44, 2 }
 0x11e   :  { %v5163_v27 = vpop.permute.xlu1 %973 }
 0x11f   :  { %7649 = vst [vmem:[#allocation60_spill] sm:$0xff] %v5163_v27  ;;  %v5167_v60 = vpop.permute.xlu0 %971  ;;  %v1792_v27 = vrot.slane %v1785_v24, 2  ;;  %v1827_v24 = vmul.f32 %v1824_v32, %v5022_v35  ;;  %v1791_v10 = vsel %vm420_vm1, %v1789_v45, %v1790_v31 }
 0x120   :  { %7650 = vst [vmem:[#allocation61_spill] sm:$0xff] %v5167_v60  ;;  %1754 = vrot.lane.b32.xlu1 %v1751_v51, %s4540_s27 }
 0x121   :  { %1752 = vrot.lane.b32.xlu0 %v1749_v63, %s4540_s27  ;;  %v1811_v63 = vrot.slane %v1805_v0, 2  ;;  %v1793_v21 = vsel %vm420_vm1, %v1790_v31, %v1792_v27  ;;  %v1834_v31 = vrot.slane %v1827_v24, 2  ;;  %v5224_v24 = vld [vmem:[%s7583_s0 + $0x8] sm:$0xff] }
 0x122   :  { %v5174_v48 = vpop.permute.xlu1 %994 }
 0x123   :  { %7651 = vst [vmem:[#allocation62_spill] sm:$0xff] %v5174_v48  ;;  %v5180_v51 = vpop.permute.xlu0 %992  ;;  %v1814_v27 = vsel %vm420_vm1, %v1811_v63, %v1813_v12  ;;  %v176_v12 = vstv %s5178_s10  ;;  %v194_v48 = vstv %s5182_s11  ;;  %s5398_s10 = sld [smem:[#allocation3 + $0x18c]] }
 0x124   :  { %7652 = vst [vmem:[#allocation63_spill] sm:$0xff] %v5180_v51  ;;  %1775 = vrot.lane.b32.xlu1 %v1772_v56, %s4540_s27  ;;  %v1825_v51 = vmul.f32 %v1824_v32, %v4969_v15  ;;  %v1845_v56 = vstv %s4370_s9  ;;  %v1812_v32 = vsel %vm420_vm1, %v1810_v59, %v1811_v63  ;;  %v5235_v59 = vld [vmem:[%s7583_s0 + $0x10] sm:$0x3]  ;;  %s5374_s9 = sld [smem:[#allocation3 + $0x10c]] }
 0x125   :  { %1773 = vrot.lane.b32.xlu0 %v1770_v49, %s4540_s27  ;;  %v1847_v49 = vmul.f32 %v1845_v56, %v4961_v3  ;;  %v1848_v45 = vmul.f32 %v1845_v56, %v5022_v35  ;;  %v1835_v3 = vsel %vm420_vm1, %v1832_v20, %v1834_v31  ;;  %v434_v46 = vmul.f32 %v5235_v59, %v431_v6  ;;  %s5773_s11 = sld [smem:[#allocation3 + $0x98]] }
 0x126   :  { %v5191_v33 = vpop.permute.xlu1 %1015 }
 0x127   :  { %7653 = vst [vmem:[#allocation64_spill] sm:$0xff] %v5191_v33  ;;  %v5197_v0 = vpop.permute.xlu0 %1013  ;;  %v1853_v35 = vrot.slane %v1847_v49, 2  ;;  %v1855_v44 = vrot.slane %v1848_v45, 2  ;;  %v196_v49 = vmul.f32 %v5224_v24, %v194_v48 }
 0x128   :  { %7654 = vst [vmem:[#allocation65_spill] sm:$0xff] %v5197_v0  ;;  %1796 = vrot.lane.b32.xlu1 %v1793_v21, %s4541_s8  ;;  %v1831_v0 = vrot.slane %v1825_v51, 2  ;;  %v1846_v21 = vmul.f32 %v1845_v56, %v4969_v15  ;;  %v178_v51 = vmul.f32 %v5224_v24, %v176_v12  ;;  %v179_v56 = vmul.f32 %v5235_v59, %v176_v12 }
 0x129   :  { %1794 = vrot.lane.b32.xlu0 %v1791_v10, %s4541_s8  ;;  %v202_v18 = vrot.slane %v196_v49, 1 }
 0x12a   :  { %v5210_v53 = vpop.permute.xlu1 %1104  ;;  %v1833_v63 = vsel %vm420_vm1, %v1831_v0, %v1832_v20  ;;  %v1852_v10 = vrot.slane %v1846_v21, 2  ;;  %v197_v0 = vmul.f32 %v5235_v59, %v194_v48  ;;  %v40_v21 = vstv %s5195_s13  ;;  %s5864_s13 = sld [smem:[#allocation3 + $0x198]] }
 0x12b   :  { %7655 = vst [vmem:[#allocation66_spill] sm:$0xff] %v5210_v53  ;;  %v5215_v33 = vpop.permute.xlu0 %1102  ;;  %v58_v53 = vstv %s5208_s16  ;;  %v185_v60 = vrot.slane %v178_v51, 1  ;;  %v187_v23 = vrot.slane %v179_v56, 1  ;;  %s4412_s16 = sld [smem:[#allocation3 + $0x88]] }
 0x12c   :  { %7656 = vst [vmem:[#allocation67_spill] sm:$0xff] %v5215_v33  ;;  %1817 = vrot.lane.b32.xlu1 %v1814_v27, %s4541_s8  ;;  %v5241_v27 = vld [vmem:[%s7583_s0] sm:$0xff]  ;;  %v52_v33 = vstv %s5199_s14  ;;  %v204_v41 = vrot.slane %v197_v0, 1  ;;  %v5295_v0 = vmul.f32 %v5224_v24, %v58_v53  ;;  %s4383_s14 = sld [smem:[#allocation3 + $0x1]] }
 0x12d   :  { %1815 = vrot.lane.b32.xlu0 %v1812_v32, %s4541_s8  ;;  %v177_v31 = vmul.f32 %v5241_v27, %v176_v12  ;;  %v195_v45 = vmul.f32 %v5241_v27, %v194_v48  ;;  %v46_v32 = vstv %s5189_s12  ;;  %v1856_v12 = vsel %vm420_vm1, %v1853_v35, %v1855_v44  ;;  %s5799_s12 = sld [smem:[#allocation3 + $0x118]] }
 0x12e   :  { %v5229_v15 = vpop.permute.xlu1 %1125  ;;  %v1854_v48 = vsel %vm420_vm1, %v1852_v10, %v1853_v35  ;;  %v5274_v44 = vmul.f32 %v5224_v24, %v46_v32  ;;  %v5281_v35 = vmul.f32 %v5241_v27, %v40_v21  ;;  %v5284_v10 = vmul.f32 %v5224_v24, %v40_v21 }
 0x12f   :  { %7657 = vst [vmem:[#allocation68_spill] sm:$0xff] %v5229_v15  ;;  %v5248_v20 = vpop.permute.xlu0 %1123  ;;  %v211_v15 = vstv %s5203_s15  ;;  %v201_v51 = vrot.slane %v195_v45, 1  ;;  %v5287_v56 = vmul.f32 %v5224_v24, %v52_v33  ;;  %v5292_v49 = vmul.f32 %v5241_v27, %v52_v33  ;;  %s4384_s15 = sld [smem:[#allocation3 + $0x81]] }
 0x130   :  { %7658 = vst [vmem:[#allocation69_spill] sm:$0xff] %v5248_v20  ;;  %1838 = vrot.lane.b32.xlu1 %v1835_v3, %s4541_s8  ;;  %v184_v3 = vrot.slane %v177_v31, 1  ;;  %v5277_v39 = vmul.f32 %v5224_v24, %v211_v15  ;;  %v214_v31 = vmul.f32 %v5235_v59, %v211_v15  ;;  %v5298_v45 = vmul.f32 %v5241_v27, %v58_v53 }
 0x131   :  { %1836 = vrot.lane.b32.xlu0 %v1833_v63, %s4541_s8  ;;  %v5271_v63 = vmul.f32 %v5241_v27, %v46_v32  ;;  %v228_v32 = vstv %s5227_s19  ;;  %v5310_v33 = vsel %vm183_vm0, %v202_v18, %v204_v41  ;;  %v5316_v2 = vsel %vm183_vm0, %v201_v51, %v202_v18  ;;  %s5507_s19 = sld [smem:[#allocation3 + $0x10f]] }
 0x132   :  { %v5265_v20 = vpop.permute.xlu1 %1146  ;;  %v219_v53 = vrot.slane %v5277_v39, 1  ;;  %v230_v55 = vmul.f32 %v5224_v24, %v228_v32  ;;  %v229_v41 = vmul.f32 %v5241_v27, %v228_v32  ;;  %v465_v51 = vstv %s5263_s26  ;;  %s5616_s26 = sld [smem:[#allocation3 + $0x115]] }
 0x133   :  { %7659 = vst [vmem:[#allocation70_spill] sm:$0xff] %v5265_v20  ;;  %v5268_v11 = vpop.permute.xlu0 %1144  ;;  %v432_v38 = vmul.f32 %v5241_v27, %v431_v6  ;;  %v467_v52 = vmul.f32 %v5224_v24, %v465_v51  ;;  %v468_v43 = vmul.f32 %v5235_v59, %v465_v51 }
 0x134   :  { %7660 = vst [vmem:[#allocation71_spill] sm:$0xff] %v5268_v11  ;;  %1859 = vrot.lane.b32.xlu1 %v1856_v12, %s4541_s8  ;;  %v5304_v12 = vsel %vm183_vm0, %v185_v60, %v187_v23  ;;  %v5307_v11 = vsel %vm183_vm0, %v184_v3, %v185_v60  ;;  %v221_v23 = vrot.slane %v214_v31, 1  ;;  %v231_v60 = vmul.f32 %v5235_v59, %v228_v32 }
 0x135   :  { %1857 = vrot.lane.b32.xlu0 %v1854_v48, %s4541_s8  ;;  %v413_v48 = vstv %s5246_s24  ;;  %v448_v3 = vstv %s5257_s25  ;;  %v433_v31 = vmul.f32 %v5224_v24, %v431_v6  ;;  %v235_v6 = vrot.slane %v229_v41, 1  ;;  %s5585_s24 = sld [smem:[#allocation3 + $0x112]] }
 0x136   :  { %v5301_v21 = vpop.permute.xlu1 %1167  ;;  %v416_v18 = vmul.f32 %v5235_v59, %v413_v48  ;;  %v450_v16 = vmul.f32 %v5224_v24, %v448_v3  ;;  %v451_v4 = vmul.f32 %v5235_v59, %v448_v3  ;;  %v449_v58 = vmul.f32 %v5241_v27, %v448_v3  ;;  %s5600_s25 = sld [smem:[#allocation3 + $0x95]] }
 0x137   :  { %7661 = vst [vmem:[#allocation72_spill] sm:$0xff] %v5301_v21  ;;  %v5313_v20 = vpop.permute.xlu0 %1165  ;;  %v212_v21 = vmul.f32 %v5241_v27, %v211_v15  ;;  %v414_v15 = vmul.f32 %v5241_v27, %v413_v48  ;;  %v439_v34 = vrot.slane %v433_v31, 2  ;;  %v441_v3 = vrot.slane %v434_v46, 2 }
 0x138   :  { %7662 = vst [vmem:[#allocation73_spill] sm:$0xff] %v5313_v20  ;;  %v415_v20 = vmul.f32 %v5224_v24, %v413_v48  ;;  %v236_v48 = vrot.slane %v230_v55, 1  ;;  %v438_v62 = vrot.slane %v432_v38, 2  ;;  %v5359_v24 = vsel %vm183_vm0, %v219_v53, %v221_v23 }
 0x139   :  { %v218_v30 = vrot.slane %v212_v21, 1  ;;  %v466_v21 = vmul.f32 %v5241_v27, %v465_v51  ;;  %v421_v7 = vrot.slane %v414_v15, 2  ;;  %v456_v59 = vrot.slane %v450_v16, 2 }
 0x13a   :  { %v5332_v39 = vpop.permute.xlu1 %1188  ;;  %v422_v25 = vrot.slane %v415_v20, 2  ;;  %v458_v20 = vrot.slane %v451_v4, 2  ;;  %v473_v46 = vrot.slane %v467_v52, 2  ;;  %v475_v38 = vrot.slane %v468_v43, 2 }
 0x13b   :  { %7663 = vst [vmem:[#allocation74_spill] sm:$0xff] %v5332_v39  ;;  %v5340_v32 = vpop.permute.xlu0 %1186  ;;  %v238_v39 = vrot.slane %v231_v60, 1  ;;  %v455_v60 = vrot.slane %v449_v58, 2  ;;  %v5362_v27 = vsel %vm183_vm0, %v218_v30, %v219_v53  ;;  %v472_v16 = vrot.slane %v466_v21, 2 }
 0x13c   :  { %7664 = vst [vmem:[#allocation75_spill] sm:$0xff] %v5340_v32  ;;  %v424_v32 = vrot.slane %v416_v18, 2  ;;  %v5368_v18 = vsel %vm183_vm0, %v235_v6, %v236_v48  ;;  %v786_v4 = vstv %s5330_s29  ;;  %v5379_v30 = vsel %vm420_vm1, %v421_v7, %v422_v25  ;;  %s4425_s29 = sld [smem:[#allocation3 + $0x10b]] }
 0x13d   :  { %v5365_v41 = vsel %vm183_vm0, %v236_v48, %v238_v39  ;;  %v5382_v52 = vsel %vm420_vm1, %v439_v34, %v441_v3  ;;  %v5385_v43 = vsel %vm420_vm1, %v438_v62, %v439_v34  ;;  %v650_v53 = vstv %s5324_s28  ;;  %v5407_v62 = vld [vmem:[%s7583_s0 + $0x20] sm:$0xff]  ;;  %v5413_v48 = vld [vmem:[%s7583_s0 + $0x28] sm:$0x3]  ;;  %s4424_s28 = sld [smem:[#allocation3 + $0x8b]] }
 0x13e   :  { %v5352_v19 = vpop.permute.xlu1 %1209  ;;  %v5371_v23 = vsel %vm420_vm1, %v422_v25, %v424_v32  ;;  %v5391_v39 = vsel %vm420_vm1, %v456_v59, %v458_v20  ;;  %v5394_v15 = vsel %vm420_vm1, %v455_v60, %v456_v59  ;;  %v656_v31 = vstv %s5338_s30  ;;  %v5425_v59 = vld [vmem:[%s7583_s0 + $0x18] sm:$0xff]  ;;  %s4397_s30 = sld [smem:[#allocation3 + $0x104]] }
 0x13f   :  { %7665 = vst [vmem:[#allocation76_spill] sm:$0xff] %v5352_v19  ;;  %v5356_v55 = vpop.permute.xlu0 %1207  ;;  %v662_v32 = vstv %s5345_s5  ;;  %v5401_v7 = vsel %vm420_vm1, %v473_v46, %v475_v38  ;;  %v668_v25 = vstv %s5349_s6  ;;  %v788_v34 = vmul.f32 %v5407_v62, %v786_v4  ;;  %s4398_s5 = sld [smem:[#allocation3 + $0x184]] }
 0x140   :  { %7666 = vst [vmem:[#allocation77_spill] sm:$0xff] %v5356_v55  ;;  %v789_v6 = vmul.f32 %v5413_v48, %v786_v4  ;;  %v5417_v21 = vsel %vm420_vm1, %v472_v16, %v473_v46  ;;  %v5420_v3 = vmul.f32 %v5407_v62, %v650_v53  ;;  %v5428_v20 = vmul.f32 %v5425_v59, %v650_v53  ;;  %s4399_s6 = sld [smem:[#allocation3 + $0x5]] }
 0x141   :  { %v787_v60 = vmul.f32 %v5425_v59, %v786_v4  ;;  %v5437_v46 = vmul.f32 %v5425_v59, %v656_v31  ;;  %v5440_v16 = vmul.f32 %v5407_v62, %v662_v32  ;;  %v76_v53 = vadd.f32 %v4780_v17, %v5284_v10 }
 0x142   :  { %v5376_v58 = vpop.permute.xlu1 %1230  ;;  %v5448_v4 = vmul.f32 %v5425_v59, %v662_v32  ;;  %v5454_v19 = vmul.f32 %v5425_v59, %v668_v25 }
 0x143   :  { %7667 = vst [vmem:[#allocation78_spill] sm:$0xff] %v5376_v58  ;;  %v5388_v51 = vpop.permute.xlu0 %1228  ;;  %7670 = vst [vmem:[#allocation81_spill] sm:$0xff] %v5437_v46  ;;  %v803_v58 = vstv %s5354_s7  ;;  %v794_v46 = vrot.slane %v788_v34, 1  ;;  %v132_v17 = vadd.f32 %v4809_v1, %v76_v53  ;;  %v793_v10 = vrot.slane %v787_v60, 1  ;;  %s4400_s7 = sld [smem:[#allocation3 + $0x85]] }
 0x144   :  { %7668 = vst [vmem:[#allocation79_spill] sm:$0xff] %v5388_v51  ;;  %v5434_v51 = vmul.f32 %v5407_v62, %v656_v31  ;;  %7671 = vst [vmem:[#allocation82_spill] sm:$0xff] %v5440_v16  ;;  %v89_v31 = vadd.f32 %v4762_v5, %v5271_v63  ;;  %v75_v16 = vadd.f32 %v4769_v8, %v5281_v35  ;;  %v837_v60 = vstv %s5398_s10  ;;  %s5717_s10 = sld [smem:[#allocation3 + $0x18]] }
 0x145   :  { %7673 = vst [vmem:[#allocation84_spill] sm:$0xff] %v5448_v4  ;;  %v805_v32 = vmul.f32 %v5407_v62, %v803_v58  ;;  %v820_v4 = vstv %s5374_s9  ;;  %v104_v5 = vadd.f32 %v4788_v26, %v5287_v56  ;;  %v103_v8 = vadd.f32 %v4791_v29, %v5292_v49  ;;  %s5684_s9 = sld [smem:[#allocation3 + $0x195]] }
 0x146   :  { %v5431_v38 = vpop.permute.xlu1 %1251  ;;  %v806_v63 = vmul.f32 %v5413_v48, %v803_v58  ;;  %v118_v35 = vadd.f32 %v4798_v36, %v5295_v0  ;;  %v117_v34 = vadd.f32 %v4802_v40, %v5298_v45  ;;  %v822_v29 = vmul.f32 %v5407_v62, %v820_v4 }
 0x147   :  { %7669 = vst [vmem:[#allocation80_spill] sm:$0xff] %v5431_v38  ;;  %v5443_v55 = vpop.permute.xlu0 %1249  ;;  %v5451_v38 = vmul.f32 %v5407_v62, %v668_v25  ;;  %v90_v25 = vadd.f32 %v4777_v14, %v5274_v44  ;;  %v131_v14 = vadd.f32 %v4813_v50, %v75_v16  ;;  %v823_v44 = vmul.f32 %v5413_v48, %v820_v4 }
 0x148   :  { %7672 = vst [vmem:[#allocation83_spill] sm:$0xff] %v5443_v55  ;;  %v796_v55 = vrot.slane %v789_v6, 1  ;;  %v804_v6 = vmul.f32 %v5425_v59, %v803_v58  ;;  %v192_v56 = vadd.f32 %v5304_v12, %v132_v17  ;;  %v5490_v49 = vsel %vm183_vm0, %v793_v10, %v794_v46 }
 0x149   :  { %7674 = vst [vmem:[#allocation85_spill] sm:$0xff] %v5451_v38  ;;  %v811_v36 = vrot.slane %v805_v32, 1  ;;  %v821_v40 = vmul.f32 %v5425_v59, %v820_v4  ;;  %v146_v45 = vadd.f32 %v4820_v57, %v90_v25  ;;  %v813_v50 = vrot.slane %v806_v63, 1 }
 0x14a   :  { %v5465_v38 = vpop.permute.xlu1 %1289  ;;  %v5484_v26 = vsel %vm183_vm0, %v794_v46, %v796_v55  ;;  %v839_v55 = vmul.f32 %v5407_v62, %v837_v60  ;;  %v840_v58 = vmul.f32 %v5413_v48, %v837_v60  ;;  %v145_v12 = vadd.f32 %v4824_v61, %v89_v31 }
 0x14b   :  { %v5474_v1 = vpop.permute.xlu0 %1287  ;;  %v160_v46 = vadd.f32 %v4831_v9, %v104_v5  ;;  %v810_v53 = vrot.slane %v804_v6, 1  ;;  %v838_v4 = vmul.f32 %v5425_v59, %v837_v60  ;;  %v159_v17 = vadd.f32 %v4835_v13, %v103_v8 }
 0x14c   :  { %v191_v57 = vadd.f32 %v5307_v11, %v131_v14  ;;  %v828_v10 = vrot.slane %v822_v29, 1  ;;  %v830_v32 = vrot.slane %v823_v44, 1  ;;  %v174_v25 = vadd.f32 %v4842_v22, %v118_v35 }
 0x14d   :  { %v173_v63 = vadd.f32 %v4846_v28, %v117_v34  ;;  %v209_v9 = vadd.f32 %v5310_v33, %v146_v45  ;;  %v5516_v31 = vsel %vm183_vm0, %v811_v36, %v813_v50  ;;  %v845_v13 = vrot.slane %v839_v55, 1 }
 0x14e   :  { %v5493_v0 = vpop.permute.xlu1 %1303  ;;  %v847_v5 = vrot.slane %v840_v58, 1  ;;  %v208_v8 = vadd.f32 %v5316_v2, %v145_v12  ;;  %v226_v6 = vadd.f32 %v5359_v24, %v160_v46  ;;  %v5523_v22 = vsel %vm183_vm0, %v810_v53, %v811_v36  ;;  %v7682_v58 = vld [vmem:[#allocation10_spill] sm:$0xff]  ;;  %v7683_v53 = vld [vmem:[#allocation7_spill] sm:$0xff] }
 0x14f   :  { %7675 = vst [vmem:[#allocation86_spill] sm:$0xff] %v5493_v0  ;;  %v5500_v16 = vpop.permute.xlu0 %1301  ;;  %v1022_v0 = vstv %s5463_s17  ;;  %v844_v28 = vrot.slane %v838_v4, 1  ;;  %v225_v33 = vadd.f32 %v5362_v27, %v159_v17  ;;  %v5529_v35 = vsel %vm183_vm0, %v828_v10, %v830_v32  ;;  %v7685_v32 = vld [vmem:[#allocation9_spill] sm:$0xff]  ;;  %s4413_s17 = sld [smem:[#allocation3 + $0x108]] }
 0x150   :  { %7676 = vst [vmem:[#allocation87_spill] sm:$0xff] %v5500_v16  ;;  %v827_v16 = vrot.slane %v821_v40, 1  ;;  %v1024_v34 = vmul.f32 %v5407_v62, %v1022_v0  ;;  %v1025_v60 = vmul.f32 %v5413_v48, %v1022_v0  ;;  %v264_v2 = vadd.f32 %v4853_v37, %v192_v56 }
 0x151   :  { %v243_v24 = vadd.f32 %v5365_v41, %v174_v25  ;;  %v242_v14 = vadd.f32 %v5368_v18, %v173_v63  ;;  %v263_v27 = vadd.f32 %v4857_v42, %v191_v57  ;;  %v5543_v36 = vsel %vm183_vm0, %v845_v13, %v847_v5  ;;  %v7681_v18 = vld [vmem:[#allocation6_spill] sm:$0xff]  ;;  %v7684_v57 = vld [vmem:[#allocation8_spill] sm:$0xff]  ;;  %v7686_v63 = vld [vmem:[#allocation11_spill] sm:$0xff] }
 0x152   :  { %v5512_v61 = vpop.permute.xlu1 %1317  ;;  %v5537_v29 = vsel %vm183_vm0, %v827_v16, %v828_v10  ;;  %v1023_v40 = vmul.f32 %v5425_v59, %v1022_v0  ;;  %v1039_v45 = vstv %s5498_s18  ;;  %v285_v37 = vadd.f32 %v4864_v47, %v209_v9  ;;  %s4385_s18 = sld [smem:[#allocation3 + $0x101]] }
 0x153   :  { %7677 = vst [vmem:[#allocation88_spill] sm:$0xff] %v5512_v61  ;;  %v5518_v11 = vpop.permute.xlu0 %1315  ;;  %v284_v41 = vadd.f32 %v4868_v54, %v208_v8  ;;  %v306_v56 = vadd.f32 %v7681_v18, %v226_v6  ;;  %v5553_v55 = vsel %vm183_vm0, %v844_v28, %v845_v13  ;;  %v348_v16 = vadd.f32 %v7682_v58, %v264_v2  ;;  %v7688_v2 = vld [vmem:[#allocation13_spill] sm:$0xff] }
 0x154   :  { %7678 = vst [vmem:[#allocation89_spill] sm:$0xff] %v5518_v11  ;;  %v1030_v42 = vrot.slane %v1024_v34, 2  ;;  %v1032_v12 = vrot.slane %v1025_v60, 2  ;;  %v1056_v46 = vstv %s5507_s19  ;;  %v305_v0 = vadd.f32 %v7683_v53, %v225_v33  ;;  %v7687_v34 = vld [vmem:[#allocation12_spill] sm:$0xff]  ;;  %v7711_v11 = vld [vmem:[#allocation23_spill] sm:$0xff]  ;;  %s4419_s19 = sld [smem:[#allocation3 + $0xa]] }
 0x155   :  { %v1041_v4 = vmul.f32 %v5407_v62, %v1039_v45  ;;  %v1042_v17 = vmul.f32 %v5413_v48, %v1039_v45  ;;  %v1040_v47 = vmul.f32 %v5425_v59, %v1039_v45  ;;  %v327_v10 = vadd.f32 %v7684_v57, %v243_v24 }
 0x156   :  { %v5539_v44 = vpop.permute.xlu1 %1331  ;;  %v326_v25 = vadd.f32 %v7685_v32, %v242_v14  ;;  %v347_v9 = vadd.f32 %v7686_v63, %v263_v27  ;;  %v1029_v13 = vrot.slane %v1023_v40, 2  ;;  %v1058_v8 = vmul.f32 %v5407_v62, %v1056_v46  ;;  %v7689_v40 = vld [vmem:[#allocation14_spill] sm:$0xff]  ;;  %v7694_v63 = vld [vmem:[#allocation17_spill] sm:$0xff] }
 0x157   :  { %7679 = vst [vmem:[#allocation90_spill] sm:$0xff] %v5539_v44  ;;  %v5547_v50 = vpop.permute.xlu0 %1329  ;;  %v1059_v6 = vmul.f32 %v5413_v48, %v1056_v46  ;;  %v1057_v28 = vmul.f32 %v5425_v59, %v1056_v46  ;;  %v1073_v33 = vstv %s5525_s20  ;;  %v369_v60 = vadd.f32 %v7687_v34, %v285_v37  ;;  %s4420_s20 = sld [smem:[#allocation3 + $0x8a]] }
 0x158   :  { %7680 = vst [vmem:[#allocation91_spill] sm:$0xff] %v5547_v50  ;;  %v368_v24 = vadd.f32 %v7688_v2, %v284_v41  ;;  %v429_v14 = vadd.f32 %v5371_v23, %v348_v16  ;;  %v5580_v27 = vsel %vm420_vm1, %v1030_v42, %v1032_v12  ;;  %v390_v45 = vadd.f32 %v7689_v40, %v306_v56  ;;  %v7692_v56 = vld [vmem:[#allocation15_spill] sm:$0xff] }
 0x159   :  { %v1047_v18 = vrot.slane %v1041_v4, 2  ;;  %v1049_v58 = vrot.slane %v1042_v17, 2  ;;  %v1046_v53 = vrot.slane %v1040_v47, 2  ;;  %v5590_v37 = vsel %vm420_vm1, %v1029_v13, %v1030_v42  ;;  %v7693_v42 = vld [vmem:[#allocation16_spill] sm:$0xff] }
 0x15a   :  { %v5561_v54 = vpop.permute.xlu1 %1345  ;;  %v1075_v41 = vmul.f32 %v5407_v62, %v1073_v33  ;;  %v1076_v23 = vmul.f32 %v5413_v48, %v1073_v33  ;;  %v1074_v16 = vmul.f32 %v5425_v59, %v1073_v33  ;;  %v389_v4 = vadd.f32 %v7692_v56, %v305_v0 }
 0x15b   :  { %v5568_v5 = vpop.permute.xlu0 %1343  ;;  %v1064_v17 = vrot.slane %v1058_v8, 2  ;;  %v1066_v47 = vrot.slane %v1059_v6, 2  ;;  %v1063_v57 = vrot.slane %v1057_v28, 2  ;;  %v411_v32 = vadd.f32 %v7693_v42, %v327_v10  ;;  %v5672_v42 = vld [vmem:[%s7583_s0 + $0x40] sm:$0x3] }
 0x15c   :  { %v410_v62 = vadd.f32 %v7694_v63, %v326_v25  ;;  %v428_v48 = vadd.f32 %v5379_v30, %v347_v9  ;;  %v446_v59 = vadd.f32 %v5382_v52, %v369_v60  ;;  %v445_v13 = vadd.f32 %v5385_v43, %v368_v24  ;;  %v7697_v60 = vld [vmem:[#allocation18_spill] sm:$0xff] }
 0x15d   :  { %v463_v33 = vadd.f32 %v5391_v39, %v390_v45  ;;  %v5609_v0 = vsel %vm420_vm1, %v1047_v18, %v1049_v58  ;;  %v5612_v8 = vsel %vm420_vm1, %v1046_v53, %v1047_v18  ;;  %v1081_v10 = vrot.slane %v1075_v41, 2  ;;  %v7698_v18 = vld [vmem:[#allocation19_spill] sm:$0xff] }
 0x15e   :  { %v5587_v46 = vpop.permute.xlu1 %1359  ;;  %v1083_v30 = vrot.slane %v1076_v23, 2  ;;  %v1080_v25 = vrot.slane %v1074_v16, 2  ;;  %v1258_v52 = vstv %s5566_s21  ;;  %v462_v43 = vadd.f32 %v5394_v15, %v389_v4  ;;  %v5637_v15 = vld [vmem:[%s7583_s0 + $0x38] sm:$0xff]  ;;  %s4386_s21 = sld [smem:[#allocation3 + $0x181]] }
 0x15f   :  { %7690 = vst [vmem:[#allocation6_spill] sm:$0xff] %v5587_v46  ;;  %v5597_v12 = vpop.permute.xlu0 %1357  ;;  %v5623_v39 = vsel %vm420_vm1, %v1064_v17, %v1066_v47  ;;  %v5626_v28 = vsel %vm420_vm1, %v1063_v57, %v1064_v17  ;;  %v1264_v34 = vstv %s5574_s22  ;;  %v501_v2 = vadd.f32 %v7697_v60, %v429_v14  ;;  %v5645_v14 = vld [vmem:[%s7583_s0 + $0x30] sm:$0xff]  ;;  %s4387_s22 = sld [smem:[#allocation3 + $0x2]] }
 0x160   :  { %7691 = vst [vmem:[#allocation10_spill] sm:$0xff] %v5597_v12  ;;  %v480_v24 = vadd.f32 %v5401_v7, %v411_v32  ;;  %v479_v40 = vadd.f32 %v5417_v21, %v410_v62  ;;  %v1394_v45 = vstv %s5582_s23  ;;  %v500_v58 = vadd.f32 %v7698_v18, %v428_v48  ;;  %v7701_v62 = vld [vmem:[#allocation20_spill] sm:$0xff]  ;;  %s4388_s23 = sld [smem:[#allocation3 + $0x82]] }
 0x161   :  { %v5640_v53 = vmul.f32 %v5637_v15, %v1258_v52  ;;  %v5648_v7 = vmul.f32 %v5645_v14, %v1258_v52  ;;  %v1270_v21 = vstv %s5585_s24  ;;  %v5654_v23 = vsel %vm420_vm1, %v1081_v10, %v1083_v30  ;;  %s4389_s24 = sld [smem:[#allocation3 + $0x102]] }
 0x162   :  { %v5614_v6 = vpop.permute.xlu1 %1373  ;;  %v5657_v16 = vsel %vm420_vm1, %v1080_v25, %v1081_v10  ;;  %v5660_v56 = vmul.f32 %v5637_v15, %v1264_v34  ;;  %v1276_v4 = vstv %s5595_s1  ;;  %v5666_v47 = vmul.f32 %v5645_v14, %v1264_v34  ;;  %v7702_v10 = vld [vmem:[#allocation21_spill] sm:$0xff]  ;;  %v7704_v34 = vld [vmem:[#allocation26_spill] sm:$0xff]  ;;  %s4395_s1 = sld [smem:[#allocation3 + $0x4]] }
 0x163   :  { %7695 = vst [vmem:[#allocation7_spill] sm:$0xff] %v5614_v6  ;;  %v5619_v9 = vpop.permute.xlu0 %1371  ;;  %v1396_v57 = vmul.f32 %v5637_v15, %v1394_v45  ;;  %v1397_v32 = vmul.f32 %v5672_v42, %v1394_v45  ;;  %v1411_v63 = vstv %s5600_s25  ;;  %v522_v48 = vadd.f32 %v7701_v62, %v446_v59  ;;  %v7707_v62 = vld [vmem:[#allocation22_spill] sm:$0xff]  ;;  %s4396_s25 = sld [smem:[#allocation3 + $0x84]] }
 0x164   :  { %7696 = vst [vmem:[#allocation8_spill] sm:$0xff] %v5619_v9  ;;  %v521_v30 = vadd.f32 %v7702_v10, %v445_v13  ;;  %v5679_v25 = vmul.f32 %v5637_v15, %v1270_v21  ;;  %v5682_v52 = vmul.f32 %v5645_v14, %v1270_v21  ;;  %v585_v60 = vadd.f32 %v7704_v34, %v501_v2  ;;  %v7710_v2 = vld [vmem:[#allocation27_spill] sm:$0xff] }
 0x165   :  { %v5688_v18 = vmul.f32 %v5637_v15, %v1276_v4  ;;  %v1428_v59 = vstv %s5616_s26  ;;  %v543_v13 = vadd.f32 %v7707_v62, %v463_v33  ;;  %v5696_v10 = vmul.f32 %v5645_v14, %v1276_v4  ;;  %v7713_v62 = vld [vmem:[#allocation25_spill] sm:$0xff]  ;;  %s4390_s26 = sld [smem:[#allocation3 + $0x182]] }
 0x166   :  { %v5651_v41 = vpop.permute.xlu1 %1387  ;;  %7703 = vst [vmem:[#allocation12_spill] sm:$0xff] %v5682_v52  ;;  %v1413_v21 = vmul.f32 %v5637_v15, %v1411_v63  ;;  %v1414_v44 = vmul.f32 %v5672_v42, %v1411_v63  ;;  %v584_v34 = vadd.f32 %v7710_v2, %v500_v58  ;;  %v1402_v9 = vrot.slane %v1396_v57, 1  ;;  %v7715_v57 = vld [vmem:[#allocation28_spill] sm:$0xff]  ;;  %v7718_v2 = vld [vmem:[#allocation30_spill] sm:$0xff] }
 0x167   :  { %7699 = vst [vmem:[#allocation9_spill] sm:$0xff] %v5651_v41  ;;  %v5663_v17 = vpop.permute.xlu0 %1385  ;;  %7705 = vst [vmem:[#allocation13_spill] sm:$0xff] %v5688_v18  ;;  %v1395_v41 = vmul.f32 %v5645_v14, %v1394_v45  ;;  %v1404_v6 = vrot.slane %v1397_v32, 1  ;;  %v1412_v18 = vmul.f32 %v5645_v14, %v1411_v63  ;;  %v542_v45 = vadd.f32 %v7711_v11, %v462_v43  ;;  %v7716_v63 = vld [vmem:[#allocation29_spill] sm:$0xff] }
 0x168   :  { %7700 = vst [vmem:[#allocation11_spill] sm:$0xff] %v5663_v17  ;;  %7708 = vst [vmem:[#allocation15_spill] sm:$0xff] %v5696_v10  ;;  %v1430_v33 = vmul.f32 %v5637_v15, %v1428_v59  ;;  %v1431_v4 = vmul.f32 %v5672_v42, %v1428_v59  ;;  %v563_v10 = vadd.f32 %v7713_v62, %v479_v40  ;;  %v1419_v43 = vrot.slane %v1413_v21, 1  ;;  %v7719_v62 = vld [vmem:[#allocation34_spill] sm:$0xff] }
 0x169   :  { %v1401_v12 = vrot.slane %v1395_v41, 1  ;;  %v1429_v58 = vmul.f32 %v5645_v14, %v1428_v59  ;;  %v606_v32 = vadd.f32 %v7715_v57, %v522_v48  ;;  %v605_v11 = vadd.f32 %v7716_v63, %v521_v30  ;;  %v7720_v30 = vld [vmem:[#allocation31_spill] sm:$0xff] }
 0x16a   :  { %v5690_v17 = vpop.permute.xlu1 %1476  ;;  %v627_v40 = vadd.f32 %v7718_v2, %v543_v13  ;;  %v5722_v41 = vsel %vm183_vm0, %v1402_v9, %v1404_v6  ;;  %v1438_v48 = vrot.slane %v1431_v4, 1  ;;  %v1445_v57 = vstv %s5684_s9  ;;  %v7723_v6 = vld [vmem:[#allocation81_spill] sm:$0xff]  ;;  %s4401_s9 = sld [smem:[#allocation3 + $0x105]] }
 0x16b   :  { %7706 = vst [vmem:[#allocation14_spill] sm:$0xff] %v5690_v17  ;;  %v5698_v50 = vpop.permute.xlu0 %1474  ;;  %v7712_v17 = vld [vmem:[#allocation24_spill] sm:$0xff]  ;;  %v626_v21 = vadd.f32 %v7720_v30, %v542_v45  ;;  %v1435_v13 = vrot.slane %v1429_v58, 1  ;;  %v7726_v45 = vld [vmem:[#allocation43_spill] sm:$0xff]  ;;  %v7730_v30 = vld [vmem:[#allocation37_spill] sm:$0xff] }
 0x16c   :  { %7709 = vst [vmem:[#allocation16_spill] sm:$0xff] %v5698_v50  ;;  %v564_v61 = vadd.f32 %v7712_v17, %v480_v24  ;;  %v654_v50 = vadd.f32 %v5420_v3, %v585_v60  ;;  %v1421_v24 = vrot.slane %v1414_v44, 1  ;;  %v653_v3 = vadd.f32 %v5428_v20, %v584_v34  ;;  %v7721_v44 = vld [vmem:[#allocation35_spill] sm:$0xff] }
 0x16d   :  { %v1418_v60 = vrot.slane %v1412_v18, 1  ;;  %v660_v20 = vadd.f32 %v5434_v51, %v606_v32  ;;  %v659_v34 = vadd.f32 %v7723_v6, %v605_v11  ;;  %v7724_v18 = vld [vmem:[#allocation42_spill] sm:$0xff]  ;;  %v7727_v51 = vld [vmem:[#allocation32_spill] sm:$0xff] }
 0x16e   :  { %v5710_v52 = vpop.permute.xlu1 %1497  ;;  %v686_v59 = vadd.f32 %v7719_v62, %v654_v50  ;;  %v685_v63 = vadd.f32 %v7721_v44, %v653_v3  ;;  %v5737_v50 = vsel %vm183_vm0, %v1419_v43, %v1421_v24  ;;  %v648_v58 = vadd.f32 %v7727_v51, %v564_v61  ;;  %v7728_v32 = vld [vmem:[#allocation36_spill] sm:$0xff]  ;;  %v7729_v62 = vld [vmem:[#allocation82_spill] sm:$0xff] }
 0x16f   :  { %7714 = vst [vmem:[#allocation17_spill] sm:$0xff] %v5710_v52  ;;  %v5715_v17 = vpop.permute.xlu0 %1495  ;;  %v1436_v52 = vrot.slane %v1430_v33, 1  ;;  %v5743_v3 = vsel %vm183_vm0, %v1418_v60, %v1419_v43  ;;  %v700_v11 = vadd.f32 %v7728_v32, %v660_v20  ;;  %v699_v44 = vadd.f32 %v7730_v30, %v659_v34  ;;  %v7735_v51 = vld [vmem:[#allocation44_spill] sm:$0xff] }
 0x170   :  { %7717 = vst [vmem:[#allocation18_spill] sm:$0xff] %v5715_v17  ;;  %v5729_v17 = vsel %vm183_vm0, %v1401_v12, %v1402_v9  ;;  %v742_v2 = vadd.f32 %v7724_v18, %v686_v59  ;;  %v741_v4 = vadd.f32 %v7726_v45, %v685_v63  ;;  %v1447_v12 = vmul.f32 %v5637_v15, %v1445_v57  ;;  %v7731_v63 = vld [vmem:[#allocation84_spill] sm:$0xff]  ;;  %v7734_v45 = vld [vmem:[#allocation33_spill] sm:$0xff] }
 0x171   :  { %v1448_v9 = vmul.f32 %v5672_v42, %v1445_v57  ;;  %v666_v59 = vadd.f32 %v7729_v62, %v627_v40  ;;  %v5751_v24 = vsel %vm183_vm0, %v1436_v52, %v1438_v48  ;;  %v665_v6 = vadd.f32 %v7731_v63, %v626_v21  ;;  %v7737_v62 = vld [vmem:[#allocation45_spill] sm:$0xff] }
 0x172   :  { %v5731_v46 = vpop.permute.xlu1 %1518  ;;  %v5756_v43 = vsel %vm183_vm0, %v1435_v13, %v1436_v52  ;;  %v1446_v18 = vmul.f32 %v5645_v14, %v1445_v57  ;;  %v647_v61 = vadd.f32 %v7734_v45, %v563_v10  ;;  %v756_v20 = vadd.f32 %v7735_v51, %v700_v11  ;;  %v7738_v13 = vld [vmem:[#allocation38_spill] sm:$0xff]  ;;  %v7740_v57 = vld [vmem:[#allocation85_spill] sm:$0xff] }
 0x173   :  { %7722 = vst [vmem:[#allocation19_spill] sm:$0xff] %v5731_v46  ;;  %v5739_v33 = vpop.permute.xlu0 %1516  ;;  %7732 = vst [vmem:[#allocation21_spill] sm:$0xff] %v5756_v43  ;;  %v801_v40 = vadd.f32 %v5484_v26, %v742_v2  ;;  %v1630_v48 = vstv %s5717_s10  ;;  %v755_v34 = vadd.f32 %v7737_v62, %v699_v44  ;;  %v800_v21 = vadd.f32 %v5490_v49, %v741_v4  ;;  %v7741_v10 = vld [vmem:[#allocation50_spill] sm:$0xff]  ;;  %v7742_v26 = vld [vmem:[#allocation51_spill] sm:$0xff]  ;;  %s4402_s10 = sld [smem:[#allocation3 + $0x185]] }
 0x174   :  { %7725 = vst [vmem:[#allocation20_spill] sm:$0xff] %v5739_v33  ;;  %v1453_v30 = vrot.slane %v1447_v12, 1  ;;  %v1455_v52 = vrot.slane %v1448_v9, 1  ;;  %v714_v63 = vadd.f32 %v7738_v13, %v666_v59  ;;  %v672_v46 = vadd.f32 %v7740_v57, %v648_v58  ;;  %v7743_v9 = vld [vmem:[#allocation46_spill] sm:$0xff]  ;;  %v7746_v13 = vld [vmem:[#allocation59_spill] sm:$0xff] }
 0x175   :  { %v873_v45 = vadd.f32 %v7741_v10, %v801_v40  ;;  %v872_v2 = vadd.f32 %v7742_v26, %v800_v21  ;;  %v1632_v44 = vmul.f32 %v5637_v15, %v1630_v48  ;;  %v1633_v49 = vmul.f32 %v5672_v42, %v1630_v48  ;;  %v7745_v40 = vld [vmem:[#allocation47_spill] sm:$0xff]  ;;  %v7747_v26 = vld [vmem:[#allocation40_spill] sm:$0xff] }
 0x176   :  { %v5758_v60 = vpop.permute.xlu1 %1539  ;;  %v1631_v4 = vmul.f32 %v5645_v14, %v1630_v48  ;;  %v671_v12 = vadd.f32 %v5454_v19, %v647_v61  ;;  %v770_v59 = vadd.f32 %v7743_v9, %v714_v63  ;;  %v818_v58 = vadd.f32 %v5516_v31, %v756_v20  ;;  %v7748_v48 = vld [vmem:[#allocation41_spill] sm:$0xff]  ;;  %v7749_v19 = vld [vmem:[#allocation52_spill] sm:$0xff] }
 0x177   :  { %7733 = vst [vmem:[#allocation26_spill] sm:$0xff] %v5758_v60  ;;  %v5764_v32 = vpop.permute.xlu0 %1537  ;;  %v7739_v60 = vld [vmem:[#allocation39_spill] sm:$0xff]  ;;  %v817_v21 = vadd.f32 %v5523_v22, %v755_v34  ;;  %v956_v57 = vadd.f32 %v7746_v13, %v872_v2  ;;  %v1452_v10 = vrot.slane %v1446_v18, 1  ;;  %v5794_v63 = vsel %vm183_vm0, %v1453_v30, %v1455_v52  ;;  %v7750_v31 = vld [vmem:[#allocation53_spill] sm:$0xff]  ;;  %v7751_v18 = vld [vmem:[#allocation48_spill] sm:$0xff] }
 0x178   :  { %7736 = vst [vmem:[#allocation22_spill] sm:$0xff] %v5764_v32  ;;  %v713_v33 = vadd.f32 %v7739_v60, %v665_v6  ;;  %v7744_v6 = vld [vmem:[#allocation58_spill] sm:$0xff]  ;;  %v728_v32 = vadd.f32 %v7747_v26, %v672_v46  ;;  %v727_v43 = vadd.f32 %v7748_v48, %v671_v12  ;;  %v894_v61 = vadd.f32 %v7749_v19, %v818_v58  ;;  %v7752_v2 = vld [vmem:[#allocation60_spill] sm:$0xff]  ;;  %v7757_v19 = vld [vmem:[#allocation55_spill] sm:$0xff] }
 0x179   :  { %v957_v60 = vadd.f32 %v7744_v6, %v873_v45  ;;  %v893_v20 = vadd.f32 %v7750_v31, %v817_v21  ;;  %v1638_v9 = vrot.slane %v1632_v44, 2  ;;  %v1637_v22 = vrot.slane %v1631_v4, 2  ;;  %v7753_v6 = vld [vmem:[#allocation49_spill] sm:$0xff]  ;;  %v7755_v4 = vld [vmem:[#allocation54_spill] sm:$0xff] }
 0x17a   :  { %v5776_v11 = vpop.permute.xlu1 %1560  ;;  %v769_v62 = vadd.f32 %v7745_v40, %v713_v33  ;;  %v1640_v33 = vrot.slane %v1633_v49, 2  ;;  %v784_v34 = vadd.f32 %v7751_v18, %v728_v32  ;;  %v835_v46 = vadd.f32 %v5529_v35, %v770_v59  ;;  %v7754_v44 = vld [vmem:[#allocation61_spill] sm:$0xff]  ;;  %v7756_v48 = vld [vmem:[#allocation66_spill] sm:$0xff] }
 0x17b   :  { %v5785_v51 = vpop.permute.xlu0 %1558  ;;  %v978_v12 = vadd.f32 %v7752_v2, %v894_v61  ;;  %v1037_v58 = vadd.f32 %v5580_v27, %v957_v60  ;;  %v783_v40 = vadd.f32 %v7753_v6, %v727_v43  ;;  %v977_v13 = vadd.f32 %v7754_v44, %v893_v20  ;;  %v7758_v60 = vld [vmem:[#allocation67_spill] sm:$0xff] }
 0x17c   :  { %v834_v21 = vadd.f32 %v5537_v29, %v769_v62  ;;  %v1036_v49 = vadd.f32 %v5590_v37, %v956_v57  ;;  %v915_v26 = vadd.f32 %v7755_v4, %v835_v46  ;;  %v5814_v35 = vsel %vm183_vm0, %v1452_v10, %v1453_v30  ;;  %v7759_v62 = vld [vmem:[#allocation62_spill] sm:$0xff]  ;;  %v7761_v2 = vld [vmem:[#allocation63_spill] sm:$0xff]  ;;  %v7766_v4 = vld [vmem:[#allocation69_spill] sm:$0xff] }
 0x17d   :  { %v1109_v32 = vadd.f32 %v7756_v48, %v1037_v58  ;;  %v1647_v59 = vstv %s5773_s11  ;;  %v5822_v29 = vsel %vm420_vm1, %v1638_v9, %v1640_v33  ;;  %v5825_v43 = vsel %vm420_vm1, %v1637_v22, %v1638_v9  ;;  %v7760_v10 = vld [vmem:[#allocation74_spill] sm:$0xff]  ;;  %v7762_v6 = vld [vmem:[#allocation75_spill] sm:$0xff]  ;;  %v7763_v22 = vld [vmem:[#allocation56_spill] sm:$0xff]  ;;  %s4407_s11 = sld [smem:[#allocation3 + $0x7]] }
 0x17e   :  { %v5797_v45 = vpop.permute.xlu1 %1581  ;;  %v914_v27 = vadd.f32 %v7757_v19, %v834_v21  ;;  %v1108_v61 = vadd.f32 %v7758_v60, %v1036_v49  ;;  %v852_v37 = vadd.f32 %v5543_v36, %v784_v34  ;;  %v999_v57 = vadd.f32 %v7759_v62, %v915_v26  ;;  %v7764_v36 = vld [vmem:[#allocation68_spill] sm:$0xff] }
 0x17f   :  { %v5805_v52 = vpop.permute.xlu0 %1579  ;;  %v1054_v30 = vadd.f32 %v5609_v0, %v978_v12  ;;  %v1193_v20 = vadd.f32 %v7760_v10, %v1109_v32  ;;  %v851_v46 = vadd.f32 %v5553_v55, %v783_v40  ;;  %v1053_v33 = vadd.f32 %v5612_v8, %v977_v13  ;;  %v7765_v12 = vld [vmem:[#allocation57_spill] sm:$0xff]  ;;  %v7767_v8 = vld [vmem:[#allocation64_spill] sm:$0xff] }
 0x180   :  { %v998_v58 = vadd.f32 %v7761_v2, %v914_v27  ;;  %v1192_v9 = vadd.f32 %v7762_v6, %v1108_v61  ;;  %v936_v21 = vadd.f32 %v7763_v22, %v852_v37  ;;  %v1649_v44 = vmul.f32 %v5637_v15, %v1647_v59  ;;  %v7768_v19 = vld [vmem:[#allocation76_spill] sm:$0xff]  ;;  %v7769_v37 = vld [vmem:[#allocation65_spill] sm:$0xff] }
 0x181   :  { %v1130_v34 = vadd.f32 %v7764_v36, %v1054_v30  ;;  %v1650_v0 = vmul.f32 %v5672_v42, %v1647_v59  ;;  %v935_v49 = vadd.f32 %v7765_v12, %v851_v46  ;;  %v1129_v26 = vadd.f32 %v7766_v4, %v1053_v33  ;;  %v7770_v10 = vld [vmem:[#allocation77_spill] sm:$0xff] }
 0x182   :  { %v5819_v31 = vpop.permute.xlu1 %1602  ;;  %v1648_v55 = vmul.f32 %v5645_v14, %v1647_v59  ;;  %v1664_v40 = vstv %s5799_s12  ;;  %v1020_v13 = vadd.f32 %v7767_v8, %v936_v21  ;;  %v1071_v32 = vadd.f32 %v5623_v39, %v999_v57  ;;  %v7771_v59 = vld [vmem:[#allocation70_spill] sm:$0xff]  ;;  %v7772_v57 = vld [vmem:[#allocation71_spill] sm:$0xff]  ;;  %s4408_s12 = sld [smem:[#allocation3 + $0x87]] }
 0x183   :  { %v5831_v18 = vpop.permute.xlu0 %1600  ;;  %v1214_v27 = vadd.f32 %v7768_v19, %v1130_v34  ;;  %v1262_v60 = vadd.f32 %v5640_v53, %v1193_v20  ;;  %v1019_v62 = vadd.f32 %v7769_v37, %v935_v49  ;;  %v1070_v30 = vadd.f32 %v5626_v28, %v998_v58  ;;  %v7776_v8 = vld [vmem:[#allocation86_spill] sm:$0xff]  ;;  %v7778_v19 = vld [vmem:[#allocation87_spill] sm:$0xff]  ;;  %v7779_v37 = vld [vmem:[#allocation80_spill] sm:$0xff] }
 0x184   :  { %v1213_v46 = vadd.f32 %v7770_v10, %v1129_v26  ;;  %v1261_v2 = vadd.f32 %v5648_v7, %v1192_v9  ;;  %v1151_v33 = vadd.f32 %v7771_v59, %v1071_v32  ;;  %v1655_v22 = vrot.slane %v1649_v44, 2  ;;  %v7773_v7 = vld [vmem:[#allocation78_spill] sm:$0xff]  ;;  %v7775_v26 = vld [vmem:[#allocation72_spill] sm:$0xff]  ;;  %v7777_v32 = vld [vmem:[#allocation73_spill] sm:$0xff] }
 0x185   :  { %v1294_v6 = vadd.f32 %v5465_v38, %v1262_v60  ;;  %v1657_v39 = vrot.slane %v1650_v0, 2  ;;  %v1150_v21 = vadd.f32 %v7772_v57, %v1070_v30  ;;  %v1654_v36 = vrot.slane %v1648_v55, 2  ;;  %v7780_v30 = vld [vmem:[#allocation6_spill] sm:$0xff] }
 0x186   :  { %v5843_v48 = vpop.permute.xlu1 %1623  ;;  %v1293_v53 = vadd.f32 %v5474_v1, %v1261_v2  ;;  %v1666_v34 = vmul.f32 %v5637_v15, %v1664_v40  ;;  %v1088_v28 = vadd.f32 %v5654_v23, %v1020_v13  ;;  %v1235_v58 = vadd.f32 %v7773_v7, %v1151_v33  ;;  %v7774_v1 = vld [vmem:[#allocation79_spill] sm:$0xff]  ;;  %v7782_v33 = vld [vmem:[#allocation12_spill] sm:$0xff] }
 0x187   :  { %v5851_v61 = vpop.permute.xlu0 %1621  ;;  %v1268_v9 = vadd.f32 %v5660_v56, %v1214_v27  ;;  %v1350_v38 = vadd.f32 %v5561_v54, %v1294_v6  ;;  %v1087_v0 = vadd.f32 %v5657_v16, %v1019_v62  ;;  %v1234_v12 = vadd.f32 %v7774_v1, %v1150_v21  ;;  %v7781_v2 = vld [vmem:[#allocation83_spill] sm:$0xff] }
 0x188   :  { %v1267_v49 = vadd.f32 %v5666_v47, %v1213_v46  ;;  %v1349_v4 = vadd.f32 %v5568_v5, %v1293_v53  ;;  %v1172_v55 = vadd.f32 %v7775_v26, %v1088_v28  ;;  %v1667_v13 = vmul.f32 %v5672_v42, %v1664_v40  ;;  %v7788_v26 = vld [vmem:[#allocation13_spill] sm:$0xff] }
 0x189   :  { %v1308_v23 = vadd.f32 %v7776_v8, %v1268_v9  ;;  %v1665_v56 = vmul.f32 %v5645_v14, %v1664_v40  ;;  %v1171_v54 = vadd.f32 %v7777_v32, %v1087_v0  ;;  %v1658_v16 = vsel %vm420_vm1, %v1655_v22, %v1657_v39  ;;  %v7783_v39 = vld [vmem:[#allocation10_spill] sm:$0xff]  ;;  %v7787_v0 = vld [vmem:[#allocation16_spill] sm:$0xff] }
 0x18a   :  { %v5861_v20 = vpop.permute.xlu1 %1712  ;;  %v1307_v27 = vadd.f32 %v7778_v19, %v1267_v49  ;;  %v1656_v47 = vsel %vm420_vm1, %v1654_v36, %v1655_v22  ;;  %v1256_v5 = vadd.f32 %v7779_v37, %v1172_v55  ;;  %v1274_v62 = vadd.f32 %v5679_v25, %v1235_v58  ;;  %v7784_v22 = vld [vmem:[#allocation88_spill] sm:$0xff]  ;;  %v7785_v36 = vld [vmem:[#allocation14_spill] sm:$0xff]  ;;  %v7786_v58 = vld [vmem:[#allocation89_spill] sm:$0xff] }
 0x18b   :  { %v5870_v44 = vpop.permute.xlu0 %1710  ;;  %v1364_v10 = vadd.f32 %v7780_v30, %v1308_v23  ;;  %v1409_v46 = vadd.f32 %v5722_v41, %v1350_v38  ;;  %v1255_v59 = vadd.f32 %v7781_v2, %v1171_v54  ;;  %v1273_v6 = vadd.f32 %v7782_v33, %v1234_v12  ;;  %v7789_v55 = vld [vmem:[#allocation7_spill] sm:$0xff]  ;;  %v7791_v32 = vld [vmem:[#allocation8_spill] sm:$0xff] }
 0x18c   :  { %v1363_v57 = vadd.f32 %v7783_v39, %v1307_v27  ;;  %v1408_v21 = vadd.f32 %v5729_v17, %v1349_v4  ;;  %v1322_v53 = vadd.f32 %v7784_v22, %v1274_v62  ;;  %v1672_v25 = vrot.slane %v1666_v34, 2  ;;  %v7790_v34 = vld [vmem:[#allocation15_spill] sm:$0xff]  ;;  %v7793_v62 = vld [vmem:[#allocation17_spill] sm:$0xff] }
 0x18d   :  { %v1481_v28 = vadd.f32 %v7785_v36, %v1409_v46  ;;  %v1674_v7 = vrot.slane %v1667_v13, 2  ;;  %v1321_v9 = vadd.f32 %v7786_v58, %v1273_v6  ;;  %v1671_v1 = vrot.slane %v1665_v56, 2  ;;  %v7792_v56 = vld [vmem:[#allocation90_spill] sm:$0xff]  ;;  %v7798_v36 = vld [vmem:[#allocation21_spill] sm:$0xff]  ;;  %v7799_v58 = vld [vmem:[#allocation19_spill] sm:$0xff] }
 0x18e   :  { %v5883_v60 = vpop.permute.xlu1 %1733  ;;  %v1480_v41 = vadd.f32 %v7787_v0, %v1408_v21  ;;  %v1681_v49 = vstv %s5864_s13  ;;  %v1280_v12 = vadd.f32 %v7788_v26, %v1256_v5  ;;  %v1378_v8 = vadd.f32 %v7789_v55, %v1322_v53  ;;  %v7795_v46 = vld [vmem:[#allocation18_spill] sm:$0xff]  ;;  %v7797_v53 = vld [vmem:[#allocation11_spill] sm:$0xff]  ;;  %s4409_s13 = sld [smem:[#allocation3 + $0x107]] }
 0x18f   :  { %v5890_v40 = vpop.permute.xlu0 %1731  ;;  %v1426_v17 = vadd.f32 %v5737_v50, %v1364_v10  ;;  %v1565_v4 = vadd.f32 %v5776_v11, %v1481_v28  ;;  %v1279_v13 = vadd.f32 %v7790_v34, %v1255_v59  ;;  %v1377_v54 = vadd.f32 %v7791_v32, %v1321_v9  ;;  %v7794_v10 = vld [vmem:[#allocation91_spill] sm:$0xff]  ;;  %v7802_v32 = vld [vmem:[#allocation22_spill] sm:$0xff] }
 0x190   :  { %v1425_v19 = vadd.f32 %v5743_v3, %v1363_v57  ;;  %v1564_v27 = vadd.f32 %v5785_v51, %v1480_v41  ;;  %v1336_v37 = vadd.f32 %v7792_v56, %v1280_v12  ;;  %v1675_v30 = vsel %vm420_vm1, %v1672_v25, %v1674_v7  ;;  %v7796_v3 = vld [vmem:[#allocation9_spill] sm:$0xff]  ;;  %v7800_v41 = vld [vmem:[#allocation20_spill] sm:$0xff] }
 0x191   :  { %v1502_v5 = vadd.f32 %v7793_v62, %v1426_v17  ;;  %v1683_v50 = vmul.f32 %v5637_v15, %v1681_v49  ;;  %v1335_v11 = vadd.f32 %v7794_v10, %v1279_v13  ;;  %v1673_v59 = vsel %vm420_vm1, %v1671_v1, %v1672_v25 }
 0x192   :  { %v5900_v38 = vpop.permute.xlu1 %1754  ;;  %v1501_v2 = vadd.f32 %v7795_v46, %v1425_v19  ;;  %v1684_v33 = vmul.f32 %v5672_v42, %v1681_v49  ;;  %v1392_v39 = vadd.f32 %v7796_v3, %v1336_v37  ;;  %v1443_v51 = vadd.f32 %v5751_v24, %v1378_v8 }
 0x193   :  { %v5907_v23 = vpop.permute.xlu0 %1752  ;;  %v1586_v57 = vadd.f32 %v5797_v45, %v1502_v5  ;;  %v1645_v21 = vadd.f32 %v5822_v29, %v1565_v4  ;;  %v1391_v15 = vadd.f32 %v7797_v53, %v1335_v11  ;;  %v1442_v28 = vadd.f32 %v7798_v36, %v1377_v54 }
 0x194   :  { %v1585_v7 = vadd.f32 %v5805_v52, %v1501_v2  ;;  %v1644_v25 = vadd.f32 %v5825_v43, %v1564_v27  ;;  %v1523_v42 = vadd.f32 %v7799_v58, %v1443_v51  ;;  %v1689_v0 = vrot.slane %v1683_v50, 2 }
 0x195   :  { %v1717_v9 = vadd.f32 %v5861_v20, %v1645_v21  ;;  %v1682_v24 = vmul.f32 %v5645_v14, %v1681_v49  ;;  %v1522_v45 = vadd.f32 %v7800_v41, %v1442_v28  ;;  %v1691_v1 = vrot.slane %v1684_v33, 2  ;;  %v7801_v49 = vld [vmem:[#allocation26_spill] sm:$0xff] }
 0x196   :  { %v1776_v6 = vpop.permute.xlu1 %1775  ;;  %v1716_v29 = vadd.f32 %v5870_v44, %v1644_v25  ;;  %v1460_v12 = vadd.f32 %v5794_v63, %v1392_v39  ;;  %v1607_v52 = vadd.f32 %v5819_v31, %v1523_v42  ;;  %v1662_v55 = vadd.f32 %v1658_v16, %v1586_v57 }
 0x197   :  { %v1774_v22 = vpop.permute.xlu0 %1773  ;;  %v1459_v17 = vadd.f32 %v5814_v35, %v1391_v15  ;;  %v1606_v20 = vadd.f32 %v5831_v18, %v1522_v45  ;;  %v1661_v4 = vadd.f32 %v1656_v47, %v1585_v7  ;;  %v1688_v13 = vrot.slane %v1682_v24, 2 }
 0x198   :  { %v1544_v34 = vadd.f32 %v7801_v49, %v1460_v12  ;;  %v1738_v44 = vadd.f32 %v5883_v60, %v1662_v55  ;;  %v1679_v54 = vadd.f32 %v1675_v30, %v1607_v52  ;;  %v1692_v37 = vsel %vm420_vm1, %v1689_v0, %v1691_v1  ;;  %v5975_v12 = vld [vmem:[%s7583_s0 + $0x48] sm:$0xff] }
 0x199   :  { %v1543_v31 = vadd.f32 %v7802_v32, %v1459_v17  ;;  %v1737_v16 = vadd.f32 %v5890_v40, %v1661_v4  ;;  %v1678_v56 = vadd.f32 %v1673_v59, %v1606_v20  ;;  %v1690_v5 = vsel %vm420_vm1, %v1688_v13, %v1689_v0  ;;  %v5983_v17 = vld [vmem:[%s7583_s0 + $0x50] sm:$0xff] }
 0x19a   :  { %v1797_v26 = vpop.permute.xlu1 %1796  ;;  %v1628_v47 = vadd.f32 %v5843_v48, %v1544_v34  ;;  %v1759_v40 = vadd.f32 %v5900_v38, %v1679_v54  ;;  %v2029_v52 = vstv %s4383_s14  ;;  %v2085_v32 = vstv %s4387_s22  ;;  %s4410_s14 = sld [smem:[#allocation3 + $0x187]] }
 0x19b   :  { %v1801_v43 = vadd.f32 %v1797_v26, %v1717_v9  ;;  %v1795_v8 = vpop.permute.xlu0 %1794  ;;  %v1627_v27 = vadd.f32 %v5851_v61, %v1543_v31  ;;  %v1758_v50 = vadd.f32 %v5907_v23, %v1678_v56  ;;  %v2030_v55 = vmul.f32 %v5975_v12, %v2029_v52  ;;  %s4449_s22 = sld [smem:[#allocation3 + $0x111]] }
 0x19c   :  { %v1800_v14 = vadd.f32 %v1795_v8, %v1716_v29  ;;  %v1696_v10 = vadd.f32 %v1692_v37, %v1628_v47  ;;  %v2031_v4 = vmul.f32 %v5983_v17, %v2029_v52  ;;  %v2087_v31 = vmul.f32 %v5983_v17, %v2085_v32 }
 0x19d   :  { %1867 = vst.msk [vmem:[#allocation2 + $0x8] sm:$0xff] %vm1865_vm2, %v1801_v43  ;;  %v1877_v63 = vsel %vm1865_vm2, %v1801_v43, 0.0  ;;  %v1695_v46 = vadd.f32 %v1690_v5, %v1627_v27  ;;  %v1931_v28 = vmul.f32 %v1801_v43, %v1801_v43  ;;  %v2043_v43 = vstv %s4384_s15  ;;  %s4411_s15 = sld [smem:[#allocation3 + $0x8]] }
 0x19e   :  { %1866 = vst.msk [vmem:[#allocation2] sm:$0xff] %vm1865_vm2, %v1800_v14  ;;  %v1818_v35 = vpop.permute.xlu1 %1817  ;;  %1878 = vadd.xlane.f32.xlu1 %v1877_v63  ;;  %v1874_v18 = vsel %vm1865_vm2, %v1800_v14, 0.0  ;;  %v1780_v59 = vadd.f32 %v1776_v6, %v1696_v10  ;;  %v2044_v8 = vmul.f32 %v5975_v12, %v2043_v43  ;;  %v2045_v20 = vmul.f32 %v5983_v17, %v2043_v43 }
 0x19f   :  { %v1822_v19 = vadd.f32 %v1818_v35, %v1738_v44  ;;  %v1816_v60 = vpop.permute.xlu0 %1815  ;;  %1875 = vadd.xlane.f32.xlu0 %v1874_v18  ;;  %v1779_v38 = vadd.f32 %v1774_v22, %v1695_v46  ;;  %v1930_v22 = vmul.f32 %v1800_v14, %v1800_v14  ;;  %v1941_v25 = vsel %vm1865_vm2, %v1931_v28, 0.0 }
 0x1a0   :  { %v1821_v62 = vadd.f32 %v1816_v60, %v1737_v16  ;;  %v2057_v14 = vstv %s4385_s18  ;;  %v2071_v44 = vstv %s4386_s21  ;;  %v2086_v16 = vmul.f32 %v5975_v12, %v2085_v32  ;;  %s4414_s18 = sld [smem:[#allocation3 + $0x188]] }
 0x1a1   :  { %1869 = vst.msk [vmem:[#allocation2 + $0x18] sm:$0xff] %vm1865_vm2, %v1822_v19  ;;  %v1883_v3 = vsel %vm1865_vm2, %v1822_v19, 0.0  ;;  %v1938_v53 = vsel %vm1865_vm2, %v1930_v22, 0.0  ;;  %v1933_v42 = vmul.f32 %v1822_v19, %v1822_v19  ;;  %v2059_v49 = vmul.f32 %v5983_v17, %v2057_v14  ;;  %v6007_v19 = vld [vmem:[%s7583_s0 + $0x58] sm:$0x3]  ;;  %s4448_s21 = sld [smem:[#allocation3 + $0x91]] }
 0x1a2   :  { %1868 = vst.msk [vmem:[#allocation2 + $0x10] sm:$0xff] %vm1865_vm2, %v1821_v62  ;;  %v1839_v48 = vpop.permute.xlu1 %1838  ;;  %v1880_v30 = vsel %vm1865_vm2, %v1821_v62, 0.0  ;;  %v1932_v36 = vmul.f32 %v1821_v62, %v1821_v62  ;;  %v2058_v34 = vmul.f32 %v5975_v12, %v2057_v14  ;;  %v2073_v13 = vmul.f32 %v5983_v17, %v2071_v44 }
 0x1a3   :  { %v1843_v11 = vadd.f32 %v1839_v48, %v1759_v40  ;;  %v1837_v61 = vpop.permute.xlu0 %1836  ;;  %1881 = vadd.xlane.f32.xlu0 %v1880_v30  ;;  %v1947_v0 = vsel %vm1865_vm2, %v1933_v42, 0.0  ;;  %v2072_v63 = vmul.f32 %v5975_v12, %v2071_v44  ;;  %v2099_v35 = vstv %s4388_s23  ;;  %s4450_s23 = sld [smem:[#allocation3 + $0x191]] }
 0x1a4   :  { %v1842_v2 = vadd.f32 %v1837_v61, %v1758_v50  ;;  %v1944_v7 = vsel %vm1865_vm2, %v1932_v36, 0.0  ;;  %v2101_v18 = vmul.f32 %v5983_v17, %v2099_v35  ;;  %v2100_v47 = vmul.f32 %v5975_v12, %v2099_v35 }
 0x1a5   :  { %1871 = vst.msk [vmem:[#allocation2 + $0x28] sm:$0xff] %vm1865_vm2, %v1843_v11  ;;  %v1889_v21 = vsel %vm1865_vm2, %v1843_v11, 0.0  ;;  %v1935_v41 = vmul.f32 %v1843_v11, %v1843_v11  ;;  %v2113_v54 = vstv %s4389_s24  ;;  %v2209_v60 = vstv %s4395_s1  ;;  %s4421_s1 = sld [smem:[#allocation3 + $0x10a]] }
 0x1a6   :  { %1870 = vst.msk [vmem:[#allocation2 + $0x20] sm:$0xff] %vm1865_vm2, %v1842_v2  ;;  %v1860_v33 = vpop.permute.xlu1 %1859  ;;  %v1886_v23 = vsel %vm1865_vm2, %v1842_v2, 0.0  ;;  %v1934_v58 = vmul.f32 %v1842_v2, %v1842_v2  ;;  %v2115_v27 = vmul.f32 %v5983_v17, %v2113_v54  ;;  %v2114_v56 = vmul.f32 %v5975_v12, %v2113_v54  ;;  %s4455_s24 = sld [smem:[#allocation3 + $0x13]] }
 0x1a7   :  { %v1864_v39 = vadd.f32 %v1860_v33, %v1780_v59  ;;  %v1858_v51 = vpop.permute.xlu0 %1857  ;;  %1887 = vadd.xlane.f32.xlu1 %v1886_v23  ;;  %1884 = vadd.xlane.f32.xlu0 %v1883_v3  ;;  %v1953_v29 = vsel %vm1865_vm2, %v1935_v41, 0.0  ;;  %v2212_v37 = vmul.f32 %v6007_v19, %v2209_v60  ;;  %v2230_v62 = vstv %s4396_s25  ;;  %s4422_s25 = sld [smem:[#allocation3 + $0x18a]] }
 0x1a8   :  { %v1863_v57 = vadd.f32 %v1858_v51, %v1779_v38  ;;  %v1950_v9 = vsel %vm1865_vm2, %v1934_v58, 0.0  ;;  %v2127_v40 = vstv %s4390_s26  ;;  %v2210_v5 = vmul.f32 %v5975_v12, %v2209_v60  ;;  %s4423_s26 = sld [smem:[#allocation3 + $0xb]] }
 0x1a9   :  { %1873 = vst.msk [vmem:[#allocation2 + $0x38] sm:$0xff] %vm1865_vm2, %v1864_v39  ;;  %v1895_v15 = vsel %vm1865_vm2, %v1864_v39, 0.0  ;;  %v1937_v1 = vmul.f32 %v1864_v39, %v1864_v39  ;;  %v2211_v50 = vmul.f32 %v5983_v17, %v2209_v60  ;;  %v2129_v48 = vmul.f32 %v5983_v17, %v2127_v40 }
 0x1aa   :  { %1872 = vst.msk [vmem:[#allocation2 + $0x30] sm:$0xff] %vm1865_vm2, %v1863_v57  ;;  %v1892_v6 = vsel %vm1865_vm2, %v1863_v57, 0.0  ;;  %v1936_v24 = vmul.f32 %v1863_v57, %v1863_v57  ;;  %v2231_v30 = vmul.f32 %v5975_v12, %v2230_v62  ;;  %v2232_v10 = vmul.f32 %v5983_v17, %v2230_v62 }
 0x1ab   :  { %1893 = vadd.xlane.f32.xlu1 %v1892_v6  ;;  %1890 = vadd.xlane.f32.xlu0 %v1889_v21  ;;  %v1959_v26 = vsel %vm1865_vm2, %v1937_v1, 0.0  ;;  %v2128_v11 = vmul.f32 %v5975_v12, %v2127_v40  ;;  %v2219_v61 = vrot.slane %v2212_v37, 1  ;;  %v2233_v46 = vmul.f32 %v6007_v19, %v2230_v62 }
 0x1ac   :  { %v1956_v45 = vsel %vm1865_vm2, %v1936_v24, 0.0  ;;  %v2216_v2 = vrot.slane %v2210_v5, 1  ;;  %v2217_v59 = vrot.slane %v2211_v50, 1  ;;  %v2251_v38 = vstv %s4397_s30  ;;  %s4431_s30 = sld [smem:[#allocation3 + $0xd]] }
 0x1ad   :  { %v2237_v33 = vrot.slane %v2231_v30, 1  ;;  %v2238_v23 = vrot.slane %v2232_v10, 1  ;;  %v2240_v39 = vrot.slane %v2233_v46, 1  ;;  %v2254_v51 = vmul.f32 %v6007_v19, %v2251_v38 }
 0x1ae   :  { %v2220_v3 = vsel %vm183_vm0, %v2217_v59, %v2219_v61  ;;  %v2218_v57 = vsel %vm183_vm0, %v2216_v2, %v2217_v59  ;;  %v2252_v6 = vmul.f32 %v5975_v12, %v2251_v38  ;;  %v2253_v21 = vmul.f32 %v5983_v17, %v2251_v38 }
 0x1af   :  { %1939 = vadd.xlane.f32.xlu1 %v1938_v53  ;;  %1896 = vadd.xlane.f32.xlu0 %v1895_v15  ;;  %v2272_v22 = vstv %s4398_s5  ;;  %v2239_v53 = vsel %vm183_vm0, %v2237_v33, %v2238_v23  ;;  %v2241_v15 = vsel %vm183_vm0, %v2238_v23, %v2240_v39  ;;  %v2261_v36 = vrot.slane %v2254_v51, 1  ;;  %s4432_s5 = sld [smem:[#allocation3 + $0x8d]] }
 0x1b0   :  { %v2275_v28 = vmul.f32 %v6007_v19, %v2272_v22  ;;  %v2259_v58 = vrot.slane %v2253_v21, 1  ;;  %v2273_v42 = vmul.f32 %v5975_v12, %v2272_v22  ;;  %v2356_v35 = vstv %s4402_s10  ;;  %s4433_s10 = sld [smem:[#allocation3 + $0x10d]] }
 0x1b1   :  { %v2359_v40 = vmul.f32 %v6007_v19, %v2356_v35  ;;  %v2445_v30 = vstv %s4407_s11  ;;  %v2466_v23 = vstv %s4408_s12  ;;  %s4434_s11 = sld [smem:[#allocation3 + $0x18d]] }
 0x1b2   :  { %v2262_v41 = vsel %vm183_vm0, %v2259_v58, %v2261_v36  ;;  %v2448_v2 = vmul.f32 %v6007_v19, %v2445_v30  ;;  %v2446_v38 = vmul.f32 %v5975_v12, %v2445_v30  ;;  %v2447_v33 = vmul.f32 %v5983_v17, %v2445_v30  ;;  %s4435_s12 = sld [smem:[#allocation3 + $0xe]] }
 0x1b3   :  { %1945 = vadd.xlane.f32.xlu1 %v1944_v7  ;;  %1942 = vadd.xlane.f32.xlu0 %v1941_v25  ;;  %v2293_v7 = vstv %s4399_s6  ;;  %v2258_v25 = vrot.slane %v2252_v6, 1  ;;  %v2366_v46 = vrot.slane %v2359_v40, 1  ;;  %v2487_v6 = vstv %s4409_s13  ;;  %s6181_s6 = sld [smem:[#allocation3 + $0x18b]] }
 0x1b4   :  { %v2295_v24 = vmul.f32 %v5983_v17, %v2293_v7  ;;  %v2455_v51 = vrot.slane %v2448_v2, 2  ;;  %v2452_v21 = vrot.slane %v2446_v38, 2  ;;  %v2488_v36 = vmul.f32 %v5975_v12, %v2487_v6  ;;  %s4436_s13 = sld [smem:[#allocation3 + $0x8e]] }
 0x1b5   :  { %v2260_v1 = vsel %vm183_vm0, %v2258_v25, %v2259_v58  ;;  %v2490_v58 = vmul.f32 %v6007_v19, %v2487_v6 }
 0x1b7   :  { %1951 = vadd.xlane.f32.xlu1 %v1950_v9  ;;  %1948 = vadd.xlane.f32.xlu0 %v1947_v0  ;;  %v2274_v9 = vmul.f32 %v5983_v17, %v2272_v22  ;;  %v2294_v0 = vmul.f32 %v5975_v12, %v2293_v7  ;;  %v2453_v22 = vrot.slane %v2447_v33, 2 }
 0x1b9   :  { %v2280_v52 = vrot.slane %v2274_v9, 1  ;;  %v2300_v43 = vrot.slane %v2294_v0, 1 }
 0x1bb   :  { %1957 = vadd.xlane.f32.xlu1 %v1956_v45  ;;  %1954 = vadd.xlane.f32.xlu0 %v1953_v29  ;;  %v2282_v45 = vrot.slane %v2275_v28, 1  ;;  %v2296_v29 = vmul.f32 %v6007_v19, %v2293_v7  ;;  %v2489_v28 = vmul.f32 %v5983_v17, %v2487_v6  ;;  %v2456_v7 = vsel %vm420_vm1, %v2453_v22, %v2455_v51 }
 0x1bf   :  { %1960 = vadd.xlane.f32.xlu0 %v1959_v26  ;;  %v2279_v26 = vrot.slane %v2273_v42, 1  ;;  %v2454_v42 = vsel %vm420_vm1, %v2452_v21, %v2453_v22 }
 0x1cc   :  { %2034 = vrot.lane.b32.xlu1 %v2030_v55, %s4540_s27  ;;  %v2314_v55 = vstv %s4400_s7  ;;  %s6415_s7 = sld [smem:[#allocation3 + $0x80]] }
 0x1cd   :  { %v2317_v14 = vmul.f32 %v6007_v19, %v2314_v55  ;;  %v2316_v44 = vmul.f32 %v5983_v17, %v2314_v55 }
 0x1d0   :  { %2048 = vrot.lane.b32.xlu1 %v2044_v8, %s4540_s27  ;;  %v2301_v8 = vrot.slane %v2295_v24, 1  ;;  %v2508_v24 = vstv %s4410_s14  ;;  %s4437_s14 = sld [smem:[#allocation3 + $0x10e]] }
 0x1d4   :  { %2050 = vrot.lane.b32.xlu1 %v2045_v20, %s4540_s27  ;;  %v2283_v20 = vsel %vm183_vm0, %v2280_v52, %v2282_v45  ;;  %v2495_v45 = vrot.slane %v2489_v28, 2 }
 0x1d5   :  { %2036 = vrot.lane.b32.xlu0 %v2031_v4, %s4540_s27  ;;  %v2303_v4 = vrot.slane %v2296_v29, 1 }
 0x1d7   :  { %v2304_v32 = vsel %vm183_vm0, %v2301_v8, %v2303_v4 }
 0x1d8   :  { %2064 = vrot.lane.b32.xlu1 %v2059_v49, %s4540_s27  ;;  %v2281_v49 = vsel %vm183_vm0, %v2279_v26, %v2280_v52  ;;  %v2511_v26 = vmul.f32 %v6007_v19, %v2508_v24 }
 0x1d9   :  { %2062 = vrot.lane.b32.xlu0 %v2058_v34, %s4540_s27  ;;  %v2315_v34 = vmul.f32 %v5975_v12, %v2314_v55  ;;  %v2509_v55 = vmul.f32 %v5975_v12, %v2508_v24 }
 0x1dc   :  { %2078 = vrot.lane.b32.xlu1 %v2073_v13, %s4540_s27  ;;  %v2335_v13 = vstv %s4401_s9  ;;  %s6419_s9 = sld [smem:[#allocation3 + $0x14]] }
 0x1dd   :  { %2076 = vrot.lane.b32.xlu0 %v2072_v63, %s4540_s27  ;;  %v2302_v63 = vsel %vm183_vm0, %v2300_v43, %v2301_v8  ;;  %v2336_v54 = vmul.f32 %v5975_v12, %v2335_v13  ;;  %v2337_v60 = vmul.f32 %v5983_v17, %v2335_v13  ;;  %v2510_v43 = vmul.f32 %v5983_v17, %v2508_v24 }
 0x1de   :  { %v2529_v8 = vstv %s4411_s15  ;;  %s4438_s15 = sld [smem:[#allocation3 + $0x18e]] }
 0x1df   :  { %v2342_v50 = vrot.slane %v2336_v54, 1 }
 0x1e0   :  { %2092 = vrot.lane.b32.xlu1 %v2087_v31, %s4541_s8  ;;  %v2324_v31 = vrot.slane %v2317_v14, 1  ;;  %v2518_v14 = vrot.slane %v2511_v26, 2 }
 0x1e1   :  { %2090 = vrot.lane.b32.xlu0 %v2086_v16, %s4541_s8  ;;  %v2338_v16 = vmul.f32 %v6007_v19, %v2335_v13  ;;  %v2516_v13 = vrot.slane %v2510_v43, 2 }
 0x1e3   :  { %v2345_v62 = vrot.slane %v2338_v16, 1  ;;  %v2519_v16 = vsel %vm420_vm1, %v2516_v13, %v2518_v14 }
 0x1e4   :  { %2106 = vrot.lane.b32.xlu1 %v2101_v18, %s4541_s8  ;;  %v2321_v18 = vrot.slane %v2315_v34, 1  ;;  %v2550_v34 = vstv %s4412_s16  ;;  %s4443_s16 = sld [smem:[#allocation3 + $0x10]] }
 0x1e5   :  { %2104 = vrot.lane.b32.xlu0 %v2100_v47, %s4541_s8  ;;  %v2322_v47 = vrot.slane %v2316_v44, 1  ;;  %v2515_v44 = vrot.slane %v2509_v55, 2 }
 0x1e7   :  { %v2325_v37 = vsel %vm183_vm0, %v2322_v47, %v2324_v31  ;;  %v2323_v5 = vsel %vm183_vm0, %v2321_v18, %v2322_v47  ;;  %v2551_v31 = vmul.f32 %v5975_v12, %v2550_v34  ;;  %v2552_v18 = vmul.f32 %v5983_v17, %v2550_v34 }
 0x1e8   :  { %2120 = vrot.lane.b32.xlu1 %v2115_v27, %s4541_s8  ;;  %v2357_v27 = vmul.f32 %v5975_v12, %v2356_v35  ;;  %v2553_v47 = vmul.f32 %v6007_v19, %v2550_v34  ;;  %v2517_v54 = vsel %vm420_vm1, %v2515_v44, %v2516_v13  ;;  %v2707_v13 = vstv %s4424_s28  ;;  %s6796_s28 = sld [smem:[#allocation3 + $0x199]] }
 0x1e9   :  { %2118 = vrot.lane.b32.xlu0 %v2114_v56, %s4541_s8  ;;  %v2358_v56 = vmul.f32 %v5983_v17, %v2356_v35  ;;  %v2558_v40 = vrot.slane %v2552_v18, 2  ;;  %v6194_v18 = vld [vmem:[%s7583_s0 + $0x70] sm:$0x3] }
 0x1ea   :  { %v2363_v10 = vrot.slane %v2357_v27, 1 }
 0x1ec   :  { %2134 = vrot.lane.b32.xlu1 %v2129_v48, %s4541_s8  ;;  %v2343_v48 = vrot.slane %v2337_v60, 1 }
 0x1ed   :  { %2132 = vrot.lane.b32.xlu0 %v2128_v11, %s4541_s8  ;;  %v2364_v11 = vrot.slane %v2358_v56, 1  ;;  %v2571_v56 = vstv %s4413_s17  ;;  %s4444_s17 = sld [smem:[#allocation3 + $0x90]] }
 0x1ee   :  { %v2346_v61 = vsel %vm183_vm0, %v2343_v48, %v2345_v62  ;;  %v2344_v59 = vsel %vm183_vm0, %v2342_v50, %v2343_v48  ;;  %v2574_v50 = vmul.f32 %v6007_v19, %v2571_v56  ;;  %v2572_v30 = vmul.f32 %v5975_v12, %v2571_v56 }
 0x1ef   :  { %v2367_v39 = vsel %vm183_vm0, %v2364_v11, %v2366_v46 }
 0x1f0   :  { %2223 = vrot.lane.b32.xlu1 %v2220_v3, %s4540_s27  ;;  %v2365_v3 = vsel %vm183_vm0, %v2363_v10, %v2364_v11  ;;  %v2573_v10 = vmul.f32 %v5983_v17, %v2571_v56  ;;  %v2592_v11 = vstv %s4414_s18  ;;  %v2581_v2 = vrot.slane %v2574_v50, 2  ;;  %s4445_s18 = sld [smem:[#allocation3 + $0x110]] }
 0x1f1   :  { %2221 = vrot.lane.b32.xlu0 %v2218_v57, %s4540_s27  ;;  %v2469_v57 = vmul.f32 %v6007_v19, %v2466_v23  ;;  %v2578_v38 = vrot.slane %v2572_v30, 2 }
 0x1f2   :  { %v2579_v33 = vrot.slane %v2573_v10, 2 }
 0x1f3   :  { %v2476_v25 = vrot.slane %v2469_v57, 2 }
 0x1f4   :  { %2244 = vrot.lane.b32.xlu1 %v2241_v15, %s4540_s27  ;;  %v2468_v15 = vmul.f32 %v5983_v17, %v2466_v23  ;;  %v2580_v57 = vsel %vm420_vm1, %v2578_v38, %v2579_v33 }
 0x1f5   :  { %2242 = vrot.lane.b32.xlu0 %v2239_v53, %s4540_s27  ;;  %v2467_v53 = vmul.f32 %v5975_v12, %v2466_v23  ;;  %v2593_v23 = vmul.f32 %v5975_v12, %v2592_v11 }
 0x1f6   :  { %v2474_v0 = vrot.slane %v2468_v15, 2  ;;  %v2637_v15 = vstv %s4419_s19  ;;  %s4446_s19 = sld [smem:[#allocation3 + $0x190]] }
 0x1f7   :  { %v2473_v9 = vrot.slane %v2467_v53, 2  ;;  %v2599_v6 = vrot.slane %v2593_v23, 2  ;;  %v6139_v53 = vld [vmem:[%s7583_s0 + $0x60] sm:$0xff]  ;;  %v2859_v23 = vstv %s4433_s10  ;;  %s6421_s10 = sld [smem:[#allocation3 + $0x100]] }
 0x1f8   :  { %2265 = vrot.lane.b32.xlu1 %v2262_v41, %s4540_s27  ;;  %v2494_v41 = vrot.slane %v2488_v36, 2  ;;  %v2477_v29 = vsel %vm420_vm1, %v2474_v0, %v2476_v25  ;;  %v2638_v25 = vmul.f32 %v6139_v53, %v2637_v15 }
 0x1f9   :  { %2263 = vrot.lane.b32.xlu0 %v2260_v1, %s4540_s27  ;;  %v2497_v1 = vrot.slane %v2490_v58, 2  ;;  %v2475_v52 = vsel %vm420_vm1, %v2473_v9, %v2474_v0  ;;  %v2651_v58 = vstv %s4420_s20  ;;  %s4447_s20 = sld [smem:[#allocation3 + $0x11]] }
 0x1fa   :  { %v2652_v24 = vmul.f32 %v6139_v53, %v2651_v58 }
 0x1fb   :  { %v2498_v4 = vsel %vm420_vm1, %v2495_v45, %v2497_v1 }
 0x1fc   :  { %2286 = vrot.lane.b32.xlu1 %v2283_v20, %s4540_s27  ;;  %v2496_v20 = vsel %vm420_vm1, %v2494_v41, %v2495_v45  ;;  %v2665_v41 = vstv %s4421_s1  ;;  %s4456_s1 = sld [smem:[#allocation3 + $0x93]] }
 0x1fd   :  { %2284 = vrot.lane.b32.xlu0 %v2281_v49, %s4540_s27  ;;  %v2532_v49 = vmul.f32 %v6007_v19, %v2529_v8  ;;  %v2666_v26 = vmul.f32 %v6139_v53, %v2665_v41 }
 0x1ff   :  { %v2539_v35 = vrot.slane %v2532_v49, 2 }
 0x200   :  { %2307 = vrot.lane.b32.xlu1 %v2304_v32, %s4541_s8  ;;  %v2531_v32 = vmul.f32 %v5983_v17, %v2529_v8 }
 0x201   :  { %2305 = vrot.lane.b32.xlu0 %v2302_v63, %s4541_s8  ;;  %v2530_v63 = vmul.f32 %v5975_v12, %v2529_v8 }
 0x202   :  { %v2537_v27 = vrot.slane %v2531_v32, 2 }
 0x203   :  { %v2536_v60 = vrot.slane %v2530_v63, 2 }
 0x204   :  { %2328 = vrot.lane.b32.xlu1 %v2325_v37, %s4541_s8  ;;  %v2557_v37 = vrot.slane %v2551_v31, 2  ;;  %v2540_v62 = vsel %vm420_vm1, %v2537_v27, %v2539_v35  ;;  %v2721_v35 = vstv %s4425_s29  ;;  %s6532_s29 = sld [smem:[#allocation3 + $0x116]] }
 0x205   :  { %2326 = vrot.lane.b32.xlu0 %v2323_v5, %s4541_s8  ;;  %v2560_v5 = vrot.slane %v2553_v47, 2  ;;  %v2538_v48 = vsel %vm420_vm1, %v2536_v60, %v2537_v27  ;;  %v2817_v47 = vstv %s4431_s30  ;;  %v2722_v56 = vmul.f32 %v6139_v53, %v2721_v35  ;;  %s4457_s30 = sld [smem:[#allocation3 + $0x113]] }
 0x207   :  { %v2561_v46 = vsel %vm420_vm1, %v2558_v40, %v2560_v5  ;;  %v2818_v5 = vmul.f32 %v6139_v53, %v2817_v47 }
 0x208   :  { %2349 = vrot.lane.b32.xlu1 %v2346_v61, %s4541_s8  ;;  %v2559_v61 = vsel %vm420_vm1, %v2557_v37, %v2558_v40  ;;  %v2820_v37 = vmul.f32 %v6194_v18, %v2817_v47  ;;  %v2735_v40 = vstv %s6181_s6  ;;  %s6407_s6 = sld [smem:[#allocation3]] }
 0x209   :  { %2347 = vrot.lane.b32.xlu0 %v2344_v59, %s4541_s8  ;;  %v2595_v59 = vmul.f32 %v6007_v19, %v2592_v11  ;;  %v2824_v38 = vrot.slane %v2818_v5, 1 }
 0x20b   :  { %v2602_v51 = vrot.slane %v2595_v59, 2 }
 0x20c   :  { %2370 = vrot.lane.b32.xlu1 %v2367_v39, %s4541_s8  ;;  %v2582_v39 = vsel %vm420_vm1, %v2579_v33, %v2581_v2  ;;  %v2827_v2 = vrot.slane %v2820_v37, 1 }
 0x20d   :  { %2368 = vrot.lane.b32.xlu0 %v2365_v3, %s4541_s8  ;;  %v2594_v3 = vmul.f32 %v5983_v17, %v2592_v11  ;;  %v6133_v17 = vld [vmem:[%s7583_s0 + $0x68] sm:$0xff] }
 0x20e   :  { %v2653_v0 = vmul.f32 %v6133_v17, %v2651_v58  ;;  %v2667_v1 = vmul.f32 %v6133_v17, %v2665_v41  ;;  %v2709_v31 = vmul.f32 %v6133_v17, %v2707_v13  ;;  %v2723_v27 = vmul.f32 %v6133_v17, %v2721_v35 }
 0x20f   :  { %v2600_v21 = vrot.slane %v2594_v3, 2  ;;  %v2819_v50 = vmul.f32 %v6133_v17, %v2817_v47  ;;  %v2737_v10 = vmul.f32 %v6133_v17, %v2735_v40 }
 0x210   :  { %2459 = vrot.lane.b32.xlu1 %v2456_v7, %s4540_s27  ;;  %v2639_v7 = vmul.f32 %v6133_v17, %v2637_v15  ;;  %v2860_v15 = vmul.f32 %v6139_v53, %v2859_v23 }
 0x211   :  { %2457 = vrot.lane.b32.xlu0 %v2454_v42, %s4540_s27  ;;  %v2603_v12 = vsel %vm420_vm1, %v2600_v21, %v2602_v51  ;;  %v2601_v22 = vsel %vm420_vm1, %v2599_v6, %v2600_v21  ;;  %v2825_v33 = vrot.slane %v2819_v50, 1 }
 0x213   :  { %v2828_v6 = vsel %vm183_vm0, %v2825_v33, %v2827_v2 }
 0x214   :  { %2480 = vrot.lane.b32.xlu1 %v2477_v29, %s4540_s27 }
 0x215   :  { %2478 = vrot.lane.b32.xlu0 %v2475_v52, %s4540_s27  ;;  %v2679_v52 = vstv %s4422_s25 }
 0x216   :  { %v2681_v8 = vmul.f32 %v6133_v17, %v2679_v52 }
 0x218   :  { %2501 = vrot.lane.b32.xlu1 %v2498_v4, %s4540_s27  ;;  %v2693_v4 = vstv %s4423_s26 }
 0x219   :  { %2499 = vrot.lane.b32.xlu0 %v2496_v20, %s4540_s27  ;;  %v2680_v20 = vmul.f32 %v6139_v53, %v2679_v52  ;;  %v2695_v34 = vmul.f32 %v6133_v17, %v2693_v4  ;;  %v2694_v44 = vmul.f32 %v6139_v53, %v2693_v4  ;;  %v2901_v52 = vstv %s4435_s12  ;;  %s4392_s12 = sld [smem:[#allocation3 + $0x83]] }
 0x21c   :  { %2522 = vrot.lane.b32.xlu1 %v2519_v16, %s4540_s27  ;;  %v2708_v16 = vmul.f32 %v6139_v53, %v2707_v13 }
 0x21d   :  { %2520 = vrot.lane.b32.xlu0 %v2517_v54, %s4540_s27 }
 0x220   :  { %2543 = vrot.lane.b32.xlu1 %v2540_v62, %s4541_s8  ;;  %v2838_v62 = vstv %s4432_s5  ;;  %s4458_s5 = sld [smem:[#allocation3 + $0x193]] }
 0x221   :  { %2541 = vrot.lane.b32.xlu0 %v2538_v48, %s4541_s8  ;;  %v2839_v11 = vmul.f32 %v6139_v53, %v2838_v62  ;;  %v2841_v59 = vmul.f32 %v6194_v18, %v2838_v62 }
 0x223   :  { %v2845_v51 = vrot.slane %v2839_v11, 1  ;;  %v2848_v21 = vrot.slane %v2841_v59, 1 }
 0x224   :  { %2564 = vrot.lane.b32.xlu1 %v2561_v46, %s4541_s8  ;;  %v2736_v46 = vmul.f32 %v6139_v53, %v2735_v40  ;;  %v2922_v40 = vstv %s4436_s13  ;;  %s6431_s13 = sld [smem:[#allocation3 + $0x94]] }
 0x225   :  { %2562 = vrot.lane.b32.xlu0 %v2559_v61, %s4541_s8  ;;  %v2840_v61 = vmul.f32 %v6133_v17, %v2838_v62  ;;  %v2925_v2 = vmul.f32 %v6194_v18, %v2922_v40 }
 0x227   :  { %v6141_v36 = vpop.xlane.xlu1 %1878 }
 0x228   :  { %v6125_v19 = vpop.xlane.xlu0 %1875  ;;  %2585 = vrot.lane.b32.xlu1 %v2582_v39, %s4541_s8  ;;  %7804 = vst [vmem:[#allocation23_spill] sm:$0xff] %v6141_v36 }
 0x229   :  { %7803 = vst [vmem:[#allocation27_spill] sm:$0xff] %v6125_v19  ;;  %2583 = vrot.lane.b32.xlu0 %v2580_v57, %s4541_s8  ;;  %v2846_v57 = vrot.slane %v2840_v61, 1 }
 0x22b   :  { %v2849_v41 = vsel %vm183_vm0, %v2846_v57, %v2848_v21 }
 0x22c   :  { %v6143_v28 = vpop.xlane.xlu0 %1881  ;;  %2606 = vrot.lane.b32.xlu1 %v2603_v12, %s4541_s8  ;;  %v2862_v12 = vmul.f32 %v6194_v18, %v2859_v23 }
 0x22d   :  { %7805 = vst [vmem:[#allocation24_spill] sm:$0xff] %v6143_v28  ;;  %2604 = vrot.lane.b32.xlu0 %v2601_v22, %s4541_s8  ;;  %v2826_v22 = vsel %vm183_vm0, %v2824_v38, %v2825_v33  ;;  %v2923_v38 = vmul.f32 %v6139_v53, %v2922_v40  ;;  %v2924_v33 = vmul.f32 %v6133_v17, %v2922_v40 }
 0x230   :  { %v6149_v42 = vpop.xlane.xlu1 %1887  ;;  %v6151_v9 = vpop.xlane.xlu0 %1884  ;;  %2644 = vrot.lane.b32.xlu1 %v2639_v7, %s4540_s27  ;;  %v2861_v7 = vmul.f32 %v6133_v17, %v2859_v23  ;;  %v2943_v23 = vstv %s4437_s14  ;;  %s6433_s14 = sld [smem:[#allocation3 + $0x180]] }
 0x231   :  { %7806 = vst [vmem:[#allocation25_spill] sm:$0xff] %v6149_v42  ;;  %7807 = vst [vmem:[#allocation28_spill] sm:$0xff] %v6151_v9  ;;  %2642 = vrot.lane.b32.xlu0 %v2638_v25, %s4540_s27  ;;  %v2880_v25 = vstv %s4434_s11  ;;  %s4391_s11 = sld [smem:[#allocation3 + $0x3]] }
 0x232   :  { %v2881_v4 = vmul.f32 %v6139_v53, %v2880_v25 }
 0x234   :  { %v6157_v45 = vpop.xlane.xlu1 %1893  ;;  %v6159_v29 = vpop.xlane.xlu0 %1890  ;;  %2658 = vrot.lane.b32.xlu1 %v2653_v0, %s4540_s27  ;;  %v2887_v37 = vrot.slane %v2881_v4, 1 }
 0x235   :  { %7808 = vst [vmem:[#allocation29_spill] sm:$0xff] %v6157_v45  ;;  %7809 = vst [vmem:[#allocation30_spill] sm:$0xff] %v6159_v29  ;;  %2656 = vrot.lane.b32.xlu0 %v2652_v24, %s4540_s27  ;;  %v2847_v24 = vsel %vm183_vm0, %v2845_v51, %v2846_v57 }
 0x238   :  { %v6165_v55 = vpop.xlane.xlu1 %1939  ;;  %v6167_v43 = vpop.xlane.xlu0 %1896  ;;  %2672 = vrot.lane.b32.xlu1 %v2667_v1, %s4540_s27  ;;  %v2869_v1 = vrot.slane %v2862_v12, 1  ;;  %v2932_v12 = vrot.slane %v2925_v2, 1 }
 0x239   :  { %7810 = vst [vmem:[#allocation34_spill] sm:$0xff] %v6165_v55  ;;  %7811 = vst [vmem:[#allocation31_spill] sm:$0xff] %v6167_v43  ;;  %2670 = vrot.lane.b32.xlu0 %v2666_v26, %s4540_s27  ;;  %v2883_v26 = vmul.f32 %v6194_v18, %v2880_v25  ;;  %v2158_v43 = vstv %s4392_s12  ;;  %v7844_v55 = vstv %s6407_s6  ;;  %s6620_s12 = sld [smem:[#allocation3 + $0x186]] }
 0x23b   :  { %v2890_v47 = vrot.slane %v2883_v26, 1 }
 0x23c   :  { %v6173_v14 = vpop.xlane.xlu1 %1945  ;;  %v6175_v49 = vpop.xlane.xlu0 %1942  ;;  %2686 = vrot.lane.b32.xlu1 %v2681_v8, %s4540_s27  ;;  %v2866_v8 = vrot.slane %v2860_v15, 1  ;;  %v2964_v15 = vstv %s4438_s15  ;;  %s6441_s15 = sld [smem:[#allocation3 + $0x103]] }
 0x23d   :  { %7812 = vst [vmem:[#allocation35_spill] sm:$0xff] %v6173_v14  ;;  %7813 = vst [vmem:[#allocation81_spill] sm:$0xff] %v6175_v49  ;;  %2684 = vrot.lane.b32.xlu0 %v2680_v20, %s4540_s27  ;;  %v2867_v20 = vrot.slane %v2861_v7, 1  ;;  %v2929_v7 = vrot.slane %v2923_v38, 1  ;;  %v3315_v14 = vstv %s6431_s13  ;;  %v2023_v49 = vstv %s6433_s14  ;;  %s6641_s13 = sld [smem:[#allocation3 + $0x117]] }
 0x23e   :  { %s6660_s14 = sld [smem:[#allocation3 + $0x197]] }
 0x23f   :  { %v2870_v35 = vsel %vm183_vm0, %v2867_v20, %v2869_v1 }
 0x240   :  { %v6183_v63 = vpop.xlane.xlu1 %1951  ;;  %v6185_v32 = vpop.xlane.xlu0 %1948  ;;  %2700 = vrot.lane.b32.xlu1 %v2695_v34, %s4541_s8  ;;  %v2882_v34 = vmul.f32 %v6133_v17, %v2880_v25  ;;  %v2930_v25 = vrot.slane %v2924_v33, 1 }
 0x241   :  { %7814 = vst [vmem:[#allocation42_spill] sm:$0xff] %v6183_v63  ;;  %7815 = vst [vmem:[#allocation43_spill] sm:$0xff] %v6185_v32  ;;  %2698 = vrot.lane.b32.xlu0 %v2694_v44, %s4541_s8  ;;  %v2017_v32 = vstv %s6421_s10  ;;  %s6591_s10 = sld [smem:[#allocation3 + $0x106]] }
 0x242   :  { %v2888_v62 = vrot.slane %v2882_v34, 1  ;;  %v2967_v34 = vmul.f32 %v6194_v18, %v2964_v15 }
 0x244   :  { %v6196_v54 = vpop.xlane.xlu1 %1957  ;;  %v6198_v60 = vpop.xlane.xlu0 %1954  ;;  %2714 = vrot.lane.b32.xlu1 %v2709_v31, %s4541_s8  ;;  %v2902_v31 = vmul.f32 %v6139_v53, %v2901_v52  ;;  %v2891_v61 = vsel %vm183_vm0, %v2888_v62, %v2890_v47  ;;  %v2889_v59 = vsel %vm183_vm0, %v2887_v37, %v2888_v62  ;;  %v3053_v47 = vstv %s4443_s16  ;;  %s6446_s16 = sld [smem:[#allocation3 + $0x114]] }
 0x245   :  { %7816 = vst [vmem:[#allocation32_spill] sm:$0xff] %v6196_v54  ;;  %7817 = vst [vmem:[#allocation36_spill] sm:$0xff] %v6198_v60  ;;  %2712 = vrot.lane.b32.xlu0 %v2708_v16, %s4541_s8  ;;  %v2903_v16 = vmul.f32 %v6133_v17, %v2901_v52  ;;  %v3055_v2 = vmul.f32 %v6133_v17, %v3053_v47 }
 0x247   :  { %v2909_v11 = vrot.slane %v2903_v16, 1 }
 0x248   :  { %v6208_v48 = vpop.permute.xlu1 %2034  ;;  %v6210_v30 = vpop.xlane.xlu0 %1960  ;;  %2728 = vrot.lane.b32.xlu1 %v2723_v27, %s4541_s8  ;;  %v2904_v27 = vmul.f32 %v6194_v18, %v2901_v52  ;;  %v2965_v52 = vmul.f32 %v6139_v53, %v2964_v15 }
 0x249   :  { %7818 = vst [vmem:[#allocation82_spill] sm:$0xff] %v6210_v30  ;;  %2726 = vrot.lane.b32.xlu0 %v2722_v56, %s4541_s8  ;;  %v2868_v56 = vsel %vm183_vm0, %v2866_v8, %v2867_v20  ;;  %v2966_v8 = vmul.f32 %v6133_v17, %v2964_v15  ;;  %v2933_v20 = vsel %vm183_vm0, %v2930_v25, %v2932_v12 }
 0x24a   :  { %v2971_v37 = vrot.slane %v2965_v52, 1 }
 0x24b   :  { %v2972_v62 = vrot.slane %v2966_v8, 1 }
 0x24c   :  { %v6219_v3 = vpop.permute.xlu1 %2048  ;;  %v6221_v39 = vpop.permute.xlu0 %2036  ;;  %2742 = vrot.lane.b32.xlu1 %v2737_v10, %s4541_s8  ;;  %v2908_v10 = vrot.slane %v2902_v31, 1  ;;  %v2931_v31 = vsel %vm183_vm0, %v2929_v7, %v2930_v25  ;;  %v3061_v7 = vrot.slane %v3055_v2, 2 }
 0x24d   :  { %7819 = vst [vmem:[#allocation37_spill] sm:$0xff] %v6221_v39  ;;  %2740 = vrot.lane.b32.xlu0 %v2736_v46, %s4541_s8  ;;  %v2911_v46 = vrot.slane %v2904_v27, 1  ;;  %v3329_v39 = vstv %s6446_s16  ;;  %s6687_s16 = sld [smem:[#allocation3 + $0x89]] }
 0x24f   :  { %v2912_v21 = vsel %vm183_vm0, %v2909_v11, %v2911_v46  ;;  %v3054_v46 = vmul.f32 %v6139_v53, %v3053_v47 }
 0x250   :  { %v6230_v58 = vpop.permute.xlu1 %2050  ;;  %v6232_v0 = vpop.permute.xlu0 %2062  ;;  %2831 = vrot.lane.b32.xlu1 %v2828_v6, %s4540_s27  ;;  %v2910_v6 = vsel %vm183_vm0, %v2908_v10, %v2909_v11  ;;  %v2974_v10 = vrot.slane %v2967_v34, 1  ;;  %v3056_v11 = vmul.f32 %v6194_v18, %v3053_v47 }
 0x251   :  { %2829 = vrot.lane.b32.xlu0 %v2826_v22, %s4540_s27  ;;  %v2946_v22 = vmul.f32 %v6194_v18, %v2943_v23  ;;  %v3060_v15 = vrot.slane %v3054_v46, 2 }
 0x253   :  { %v2953_v4 = vrot.slane %v2946_v22, 1  ;;  %v3095_v22 = vstv %s4445_s18  ;;  %s6462_s18 = sld [smem:[#allocation3 + $0x96]] }
 0x254   :  { %v6241_v44 = vpop.permute.xlu1 %2064  ;;  %v6243_v13 = vpop.permute.xlu0 %2076  ;;  %2852 = vrot.lane.b32.xlu1 %v2849_v41, %s4540_s27  ;;  %v2945_v41 = vmul.f32 %v6133_v17, %v2943_v23  ;;  %v3096_v8 = vmul.f32 %v6139_v53, %v3095_v22 }
 0x255   :  { %2850 = vrot.lane.b32.xlu0 %v2847_v24, %s4540_s27  ;;  %v2944_v24 = vmul.f32 %v6139_v53, %v2943_v23  ;;  %v2973_v23 = vsel %vm183_vm0, %v2971_v37, %v2972_v62  ;;  %v3116_v37 = vstv %s4446_s19  ;;  %s6466_s19 = sld [smem:[#allocation3 + $0x194]] }
 0x256   :  { %v3119_v2 = vmul.f32 %v6194_v18, %v3116_v37 }
 0x257   :  { %v2950_v16 = vrot.slane %v2944_v24, 1 }
 0x258   :  { %v6252_v5 = vpop.permute.xlu1 %2078  ;;  %v6254_v50 = vpop.permute.xlu0 %2090  ;;  %2873 = vrot.lane.b32.xlu1 %v2870_v35, %s4540_s27  ;;  %v2951_v35 = vrot.slane %v2945_v41, 1 }
 0x259   :  { %2871 = vrot.lane.b32.xlu0 %v2868_v56, %s4540_s27 }
 0x25a   :  { %v2954_v40 = vsel %vm183_vm0, %v2951_v35, %v2953_v4 }
 0x25c   :  { %v6263_v51 = vpop.permute.xlu1 %2092  ;;  %v6265_v57 = vpop.permute.xlu0 %2104  ;;  %2894 = vrot.lane.b32.xlu1 %v2891_v61, %s4540_s27  ;;  %v2952_v61 = vsel %vm183_vm0, %v2950_v16, %v2951_v35  ;;  %v3062_v16 = vsel %vm420_vm1, %v3060_v15, %v3061_v7 }
 0x25d   :  { %7820 = vst [vmem:[#allocation84_spill] sm:$0xff] %v6263_v51  ;;  %2892 = vrot.lane.b32.xlu0 %v2889_v59, %s4540_s27  ;;  %v3074_v59 = vstv %s4444_s17  ;;  %s6448_s17 = sld [smem:[#allocation3 + $0x16]] }
 0x25e   :  { %v3077_v12 = vmul.f32 %v6194_v18, %v3074_v59  ;;  %v3075_v25 = vmul.f32 %v6139_v53, %v3074_v59  ;;  %v3076_v24 = vmul.f32 %v6133_v17, %v3074_v59 }
 0x260   :  { %v6274_v1 = vpop.permute.xlu1 %2106  ;;  %v6276_v26 = vpop.permute.xlu0 %2118  ;;  %2915 = vrot.lane.b32.xlu1 %v2912_v21, %s4541_s8  ;;  %v3063_v21 = vrot.slane %v3056_v11, 2  ;;  %v3084_v34 = vrot.slane %v3077_v12, 2  ;;  %v3081_v35 = vrot.slane %v3075_v25, 2  ;;  %v3082_v47 = vrot.slane %v3076_v24, 2 }
 0x261   :  { %2913 = vrot.lane.b32.xlu0 %v2910_v6, %s4541_s8  ;;  %v2975_v6 = vsel %vm183_vm0, %v2972_v62, %v2974_v10  ;;  %v3102_v10 = vrot.slane %v3096_v8, 2  ;;  %v3126_v25 = vrot.slane %v3119_v2, 2  ;;  %v3158_v8 = vstv %s4448_s21  ;;  %s6721_s21 = sld [smem:[#allocation3 + $0x99]] }
 0x262   :  { %v3064_v4 = vsel %vm420_vm1, %v3061_v7, %v3063_v21  ;;  %v3083_v59 = vsel %vm420_vm1, %v3081_v35, %v3082_v47  ;;  %v3137_v21 = vstv %s4447_s20  ;;  %s6714_s20 = sld [smem:[#allocation3 + $0x189]] }
 0x263   :  { %v3140_v24 = vmul.f32 %v6194_v18, %v3137_v21 }
 0x264   :  { %v6285_v27 = vpop.permute.xlu1 %2120  ;;  %v6287_v56 = vpop.permute.xlu0 %2132  ;;  %2936 = vrot.lane.b32.xlu1 %v2933_v20, %s4541_s8  ;;  %v3097_v20 = vmul.f32 %v6133_v17, %v3095_v22 }
 0x265   :  { %7821 = vst [vmem:[#allocation33_spill] sm:$0xff] %v6285_v27  ;;  %2934 = vrot.lane.b32.xlu0 %v2931_v31, %s4541_s8  ;;  %v3098_v31 = vmul.f32 %v6194_v18, %v3095_v22 }
 0x266   :  { %v3103_v11 = vrot.slane %v3097_v20, 2 }
 0x267   :  { %v3105_v46 = vrot.slane %v3098_v31, 2  ;;  %v3139_v31 = vmul.f32 %v6133_v17, %v3137_v21 }
 0x268   :  { %v6296_v38 = vpop.permute.xlu1 %2134  ;;  %v6298_v33 = vpop.permute.xlu0 %2221  ;;  %2957 = vrot.lane.b32.xlu1 %v2954_v40, %s4541_s8  ;;  %v3104_v15 = vsel %vm420_vm1, %v3102_v10, %v3103_v11  ;;  %v3147_v10 = vrot.slane %v3140_v24, 2 }
 0x269   :  { %7822 = vst [vmem:[#allocation44_spill] sm:$0xff] %v6296_v38  ;;  %2955 = vrot.lane.b32.xlu0 %v2952_v61, %s4541_s8  ;;  %v3085_v61 = vsel %vm420_vm1, %v3082_v47, %v3084_v34  ;;  %v3106_v7 = vsel %vm420_vm1, %v3103_v11, %v3105_v46  ;;  %v3138_v34 = vmul.f32 %v6139_v53, %v3137_v21  ;;  %v3467_v38 = vstv %s6532_s29  ;;  %s6810_s29 = sld [smem:[#allocation3 + $0x10c]] }
 0x26a   :  { %v3159_v47 = vmul.f32 %v6139_v53, %v3158_v8  ;;  %v3160_v11 = vmul.f32 %v6133_v17, %v3158_v8 }
 0x26b   :  { %v3144_v2 = vrot.slane %v3138_v34, 2 }
 0x26c   :  { %v6307_v41 = vpop.permute.xlu1 %2223  ;;  %v6309_v52 = vpop.permute.xlu0 %2242  ;;  %2978 = vrot.lane.b32.xlu1 %v2975_v6, %s4541_s8  ;;  %v3118_v6 = vmul.f32 %v6133_v17, %v3116_v37 }
 0x26d   :  { %7823 = vst [vmem:[#allocation45_spill] sm:$0xff] %v6307_v41  ;;  %2976 = vrot.lane.b32.xlu0 %v2973_v23, %s4541_s8  ;;  %v3117_v23 = vmul.f32 %v6139_v53, %v3116_v37 }
 0x26f   :  { %v3123_v20 = vrot.slane %v3117_v23, 2  ;;  %v3179_v23 = vstv %s4449_s22  ;;  %s6731_s22 = sld [smem:[#allocation3 + $0x8c]] }
 0x270   :  { %v6318_v62 = vpop.permute.xlu1 %2244  ;;  %v6320_v40 = vpop.permute.xlu0 %2263  ;;  %3067 = vrot.lane.b32.xlu1 %v3064_v4, %s4540_s27  ;;  %v3124_v4 = vrot.slane %v3118_v6, 2  ;;  %v3181_v34 = vmul.f32 %v6133_v17, %v3179_v23 }
 0x271   :  { %7824 = vst [vmem:[#allocation38_spill] sm:$0xff] %v6318_v62  ;;  %3065 = vrot.lane.b32.xlu0 %v3062_v16, %s4540_s27 }
 0x272   :  { %v3127_v37 = vsel %vm420_vm1, %v3124_v4, %v3126_v25  ;;  %v3125_v46 = vsel %vm420_vm1, %v3123_v20, %v3124_v4  ;;  %v3166_v25 = vrot.slane %v3160_v11, 2  ;;  %v3180_v4 = vmul.f32 %v6139_v53, %v3179_v23 }
 0x274   :  { %v6329_v12 = vpop.permute.xlu1 %2265  ;;  %v6331_v22 = vpop.permute.xlu0 %2284  ;;  %3088 = vrot.lane.b32.xlu1 %v3085_v61, %s4540_s27  ;;  %v3161_v61 = vmul.f32 %v6194_v18, %v3158_v8  ;;  %v3182_v8 = vmul.f32 %v6194_v18, %v3179_v23 }
 0x275   :  { %7825 = vst [vmem:[#allocation39_spill] sm:$0xff] %v6329_v12  ;;  %3086 = vrot.lane.b32.xlu0 %v3083_v59, %s4540_s27  ;;  %v3145_v59 = vrot.slane %v3139_v31, 2  ;;  %v3200_v31 = vstv %s4450_s23  ;;  %v3343_v12 = vstv %s6466_s19  ;;  %s6708_s19 = sld [smem:[#allocation3 + $0x109]] }
 0x276   :  { %v3168_v24 = vrot.slane %v3161_v61, 2  ;;  %v3203_v11 = vmul.f32 %v6194_v18, %v3200_v31  ;;  %v3186_v61 = vrot.slane %v3180_v4, 2  ;;  %s6741_s23 = sld [smem:[#allocation3 + $0x119]] }
 0x277   :  { %v3146_v20 = vsel %vm420_vm1, %v3144_v2, %v3145_v59  ;;  %v3201_v2 = vmul.f32 %v6139_v53, %v3200_v31 }
 0x278   :  { %v6340_v16 = vpop.permute.xlu1 %2286  ;;  %v6342_v35 = vpop.permute.xlu0 %2305  ;;  %3109 = vrot.lane.b32.xlu1 %v3106_v7, %s4540_s27  ;;  %v3165_v7 = vrot.slane %v3159_v47, 2 }
 0x279   :  { %7826 = vst [vmem:[#allocation85_spill] sm:$0xff] %v6340_v16  ;;  %3107 = vrot.lane.b32.xlu0 %v3104_v15, %s4540_s27  ;;  %v3148_v15 = vsel %vm420_vm1, %v3145_v59, %v3147_v10  ;;  %v3189_v10 = vrot.slane %v3182_v8, 2  ;;  %v3202_v59 = vmul.f32 %v6133_v17, %v3200_v31  ;;  %v3245_v31 = vstv %s4455_s24  ;;  %s6485_s24 = sld [smem:[#allocation3 + $0x183]] }
 0x27a   :  { %v3167_v47 = vsel %vm420_vm1, %v3165_v7, %v3166_v25  ;;  %v3446_v16 = vstv %s6462_s18  ;;  %s6706_s18 = sld [smem:[#allocation3 + $0xc]] }
 0x27c   :  { %v6351_v6 = vpop.permute.xlu1 %2307  ;;  %v6353_v21 = vpop.permute.xlu0 %2326  ;;  %3130 = vrot.lane.b32.xlu1 %v3127_v37, %s4540_s27  ;;  %v3169_v37 = vsel %vm420_vm1, %v3166_v25, %v3168_v24  ;;  %v3207_v25 = vrot.slane %v3201_v2, 2  ;;  %v3208_v24 = vrot.slane %v3202_v59, 2 }
 0x27d   :  { %7827 = vst [vmem:[#allocation50_spill] sm:$0xff] %v6351_v6  ;;  %3128 = vrot.lane.b32.xlu0 %v3125_v46, %s4540_s27  ;;  %v3187_v46 = vrot.slane %v3181_v34, 2  ;;  %v6397_v34 = vld [vmem:[%s7583_s0 + $0x78] sm:$0xff] }
 0x27e   :  { %v3209_v4 = vsel %vm420_vm1, %v3207_v25, %v3208_v24  ;;  %v3316_v6 = vmul.f32 %v6397_v34, %v3315_v14 }
 0x27f   :  { %v3190_v7 = vsel %vm420_vm1, %v3187_v46, %v3189_v10  ;;  %v3188_v18 = vsel %vm420_vm1, %v3186_v61, %v3187_v46  ;;  %v3259_v61 = vstv %s4456_s1 }
 0x280   :  { %v6362_v30 = vpop.permute.xlu1 %2328  ;;  %v6364_v54 = vpop.permute.xlu0 %2347  ;;  %3151 = vrot.lane.b32.xlu1 %v3148_v15, %s4541_s8  ;;  %v3210_v15 = vrot.slane %v3203_v11, 2  ;;  %v3246_v11 = vmul.f32 %v6397_v34, %v3245_v31 }
 0x281   :  { %7828 = vst [vmem:[#allocation51_spill] sm:$0xff] %v6362_v30  ;;  %3149 = vrot.lane.b32.xlu0 %v3146_v20, %s4541_s8  ;;  %v6391_v20 = vld [vmem:[%s7583_s0 + $0x80] sm:$0xff] }
 0x282   :  { %v3211_v8 = vsel %vm420_vm1, %v3208_v24, %v3210_v15  ;;  %v3247_v10 = vmul.f32 %v6391_v20, %v3245_v31  ;;  %v3261_v59 = vmul.f32 %v6391_v20, %v3259_v61  ;;  %v3273_v15 = vstv %s4457_s30  ;;  %s6538_s30 = sld [smem:[#allocation3 + $0x6]] }
 0x283   :  { %v3275_v24 = vmul.f32 %v6391_v20, %v3273_v15  ;;  %v3317_v19 = vmul.f32 %v6391_v20, %v3315_v14 }
 0x284   :  { %v6373_v23 = vpop.permute.xlu1 %2349  ;;  %v6375_v60 = vpop.permute.xlu0 %2368  ;;  %3172 = vrot.lane.b32.xlu1 %v3169_v37, %s4541_s8 }
 0x285   :  { %7829 = vst [vmem:[#allocation46_spill] sm:$0xff] %v6373_v23  ;;  %7830 = vst [vmem:[#allocation58_spill] sm:$0xff] %v6375_v60  ;;  %3170 = vrot.lane.b32.xlu0 %v3167_v47, %s4541_s8  ;;  %v2428_v60 = vstv %s6620_s12  ;;  %s6919_s12 = sld [smem:[#allocation3 + $0x19a]] }
 0x288   :  { %v6381_v53 = vpop.permute.xlu1 %2370  ;;  %v6383_v17 = vpop.permute.xlu0 %2457  ;;  %3193 = vrot.lane.b32.xlu1 %v3190_v7, %s4541_s8  ;;  %v3260_v7 = vmul.f32 %v6397_v34, %v3259_v61 }
 0x289   :  { %7831 = vst [vmem:[#allocation47_spill] sm:$0xff] %v6381_v53  ;;  %7832 = vst [vmem:[#allocation59_spill] sm:$0xff] %v6383_v17  ;;  %3191 = vrot.lane.b32.xlu0 %v3188_v18, %s4541_s8 }
 0x28c   :  { %v6399_v47 = vpop.permute.xlu1 %2459  ;;  %v6401_v37 = vpop.permute.xlu0 %2478  ;;  %3214 = vrot.lane.b32.xlu1 %v3211_v8, %s4541_s8  ;;  %v3274_v8 = vmul.f32 %v6397_v34, %v3273_v15 }
 0x28d   :  { %7833 = vst [vmem:[#allocation40_spill] sm:$0xff] %v6399_v47  ;;  %3212 = vrot.lane.b32.xlu0 %v3209_v4, %s4541_s8  ;;  %v3287_v4 = vstv %s4458_s5  ;;  %v2175_v47 = vstv %s6441_s15  ;;  %s6561_s5 = sld [smem:[#allocation3 + $0x196]] }
 0x28e   :  { %v3288_v61 = vmul.f32 %v6397_v34, %v3287_v4  ;;  %s6682_s15 = sld [smem:[#allocation3 + $0x9]] }
 0x290   :  { %v6409_v46 = vpop.permute.xlu1 %2480  ;;  %v6411_v2 = vpop.permute.xlu0 %2499  ;;  %3252 = vrot.lane.b32.xlu1 %v3247_v10, %s4540_s27 }
 0x291   :  { %7834 = vst [vmem:[#allocation41_spill] sm:$0xff] %v6409_v46  ;;  %7835 = vst [vmem:[#allocation52_spill] sm:$0xff] %v6411_v2  ;;  %3250 = vrot.lane.b32.xlu0 %v3246_v11, %s4540_s27  ;;  %v3289_v11 = vmul.f32 %v6391_v20, %v3287_v4  ;;  %v2011_v4 = vstv %s6415_s7  ;;  %s6563_s7 = sld [smem:[#allocation3 + $0x86]] }
 0x294   :  { %v6423_v18 = vpop.permute.xlu1 %2501  ;;  %v6425_v25 = vpop.permute.xlu0 %2520  ;;  %3266 = vrot.lane.b32.xlu1 %v3261_v59, %s4540_s27  ;;  %v3301_v59 = vstv %s6419_s9  ;;  %s6576_s9 = sld [smem:[#allocation3 + $0x17]] }
 0x295   :  { %7836 = vst [vmem:[#allocation53_spill] sm:$0xff] %v6423_v18  ;;  %7837 = vst [vmem:[#allocation48_spill] sm:$0xff] %v6425_v25  ;;  %3264 = vrot.lane.b32.xlu0 %v3260_v7, %s4540_s27  ;;  %v6450_v7 = vstv %s4391_s11  ;;  %v3302_v45 = vmul.f32 %v6397_v34, %v3301_v59  ;;  %s6614_s11 = sld [smem:[#allocation3 + $0x97]] }
 0x296   :  { %7840 = vst [vmem:[#allocation61_spill] sm:$0xff] %v6450_v7 }
 0x298   :  { %v6435_v31 = vpop.permute.xlu1 %2522  ;;  %v6437_v10 = vpop.permute.xlu0 %2541  ;;  %3280 = vrot.lane.b32.xlu1 %v3275_v24, %s4540_s27 }
 0x299   :  { %7838 = vst [vmem:[#allocation60_spill] sm:$0xff] %v6435_v31  ;;  %7839 = vst [vmem:[#allocation49_spill] sm:$0xff] %v6437_v10  ;;  %3278 = vrot.lane.b32.xlu0 %v3274_v8, %s4540_s27  ;;  %v3303_v8 = vmul.f32 %v6391_v20, %v3301_v59 }
 0x29c   :  { %v6452_v15 = vpop.permute.xlu1 %2543  ;;  %v6454_v24 = vpop.permute.xlu0 %2562  ;;  %3294 = vrot.lane.b32.xlu1 %v3289_v11, %s4540_s27  ;;  %v6472_v11 = vld [vmem:[%s7583_s0 + $0x48] sm:$0xff] }
 0x29d   :  { %7841 = vst [vmem:[#allocation54_spill] sm:$0xff] %v6452_v15  ;;  %7842 = vst [vmem:[#allocation66_spill] sm:$0xff] %v6454_v24  ;;  %3292 = vrot.lane.b32.xlu0 %v3288_v61, %s4540_s27  ;;  %v2142_v63 = vmul.f32 %v6472_v11, %v6450_v7  ;;  %v6479_v61 = vld [vmem:[%s7583_s0 + $0x50] sm:$0xff]  ;;  %v6490_v29 = vmul.f32 %v6472_v11, %v7844_v55  ;;  %v6493_v42 = vmul.f32 %v6472_v11, %v2011_v4 }
 0x29e   :  { %v6483_v59 = vmul.f32 %v6479_v61, %v6450_v7  ;;  %v2159_v9 = vmul.f32 %v6472_v11, %v2158_v43  ;;  %v6503_v15 = vmul.f32 %v6479_v61, %v2011_v4  ;;  %v6506_v55 = vmul.f32 %v6472_v11, %v2017_v32  ;;  %v6522_v4 = vld [vmem:[%s7583_s0 + $0x88] sm:$0x3] }
 0x29f   :  { %v6512_v41 = vmul.f32 %v6479_v61, %v2017_v32  ;;  %v6515_v51 = vmul.f32 %v6472_v11, %v2023_v49  ;;  %v2148_v7 = vrot.slane %v2142_v63, 1  ;;  %v3425_v32 = vstv %s6448_s17  ;;  %s6696_s17 = sld [smem:[#allocation3 + $0x19]] }
 0x2a0   :  { %7843 = vst [vmem:[#allocation55_spill] sm:$0xff] %v6483_v59  ;;  %v6496_v28 = vpop.permute.xlu1 %2564  ;;  %v6498_v36 = vpop.permute.xlu0 %2583  ;;  %3308 = vrot.lane.b32.xlu1 %v3303_v8, %s4541_s8  ;;  %v2160_v8 = vmul.f32 %v6479_v61, %v2158_v43  ;;  %v6535_v18 = vmul.f32 %v6479_v61, %v2023_v49  ;;  %v2176_v63 = vmul.f32 %v6472_v11, %v2175_v47 }
 0x2a1   :  { %7845 = vst [vmem:[#allocation67_spill] sm:$0xff] %v6496_v28  ;;  %7846 = vst [vmem:[#allocation62_spill] sm:$0xff] %v6498_v36  ;;  %3306 = vrot.lane.b32.xlu0 %v3302_v45, %s4541_s8  ;;  %v6528_v45 = vld [vmem:[%s7583_s0 + $0x58] sm:$0x3]  ;;  %v2165_v28 = vrot.slane %v2159_v9, 1  ;;  %v2177_v46 = vmul.f32 %v6479_v61, %v2175_v47  ;;  %v3330_v49 = vmul.f32 %v6397_v34, %v3329_v39 }
 0x2a2   :  { %v2161_v14 = vmul.f32 %v6528_v45, %v2158_v43  ;;  %v3331_v43 = vmul.f32 %v6391_v20, %v3329_v39  ;;  %v3428_v9 = vmul.f32 %v6522_v4, %v3425_v32  ;;  %v2166_v23 = vrot.slane %v2160_v8, 1 }
 0x2a3   :  { %v3427_v10 = vmul.f32 %v6391_v20, %v3425_v32  ;;  %v2178_v30 = vmul.f32 %v6528_v45, %v2175_v47  ;;  %v2182_v39 = vrot.slane %v2176_v63, 1  ;;  %v2183_v47 = vrot.slane %v2177_v46, 1 }
 0x2a4   :  { %v6540_v31 = vpop.permute.xlu1 %2585  ;;  %v6542_v53 = vpop.permute.xlu0 %2604  ;;  %3322 = vrot.lane.b32.xlu1 %v3317_v19, %s4541_s8  ;;  %v2168_v25 = vrot.slane %v2161_v14, 1  ;;  %v3344_v14 = vmul.f32 %v6397_v34, %v3343_v12  ;;  %v3435_v63 = vrot.slane %v3428_v9, 1  ;;  %v6589_v9 = vstv %s6538_s30  ;;  %s6824_s30 = sld [smem:[#allocation3 + $0x1a]] }
 0x2a5   :  { %7847 = vst [vmem:[#allocation74_spill] sm:$0xff] %v6540_v31  ;;  %7848 = vst [vmem:[#allocation63_spill] sm:$0xff] %v6542_v53  ;;  %3320 = vrot.lane.b32.xlu0 %v3316_v6, %s4541_s8  ;;  %v3426_v31 = vmul.f32 %v6397_v34, %v3425_v32  ;;  %v7849_v53 = vrot.slane %v6483_v59, 1  ;;  %v2192_v6 = vstv %s6485_s24  ;;  %v3345_v32 = vmul.f32 %v6391_v20, %v3343_v12 }
 0x2a6   :  { %v3449_v59 = vmul.f32 %v6522_v4, %v3446_v16  ;;  %v3433_v17 = vrot.slane %v3427_v10, 1  ;;  %v6583_v62 = vsel %vm183_vm0, %v2166_v23, %v2168_v25  ;;  %v2185_v46 = vrot.slane %v2178_v30, 1  ;;  %7853 = vst [vmem:[#allocation57_spill] sm:$0xff] %v6589_v9 }
 0x2a7   :  { %v6557_v19 = vsel %vm183_vm0, %v2148_v7, %v7849_v53  ;;  %v3447_v53 = vmul.f32 %v6397_v34, %v3446_v16  ;;  %v3448_v7 = vmul.f32 %v6391_v20, %v3446_v16  ;;  %7852 = vst [vmem:[#allocation68_spill] sm:$0xff] %v6583_v62  ;;  %v2195_v12 = vmul.f32 %v6528_v45, %v2192_v6 }
 0x2a8   :  { %v6565_v8 = vpop.permute.xlu1 %2606  ;;  %v6567_v36 = vpop.permute.xlu0 %2642  ;;  %3336 = vrot.lane.b32.xlu1 %v3331_v43, %s4541_s8  ;;  %v6579_v43 = vsel %vm183_vm0, %v2165_v28, %v2166_v23  ;;  %v6599_v30 = vsel %vm183_vm0, %v2182_v39, %v2183_v47  ;;  %v3436_v25 = vsel %vm183_vm0, %v3433_v17, %v3435_v63  ;;  %v3456_v10 = vrot.slane %v3449_v59, 1 }
 0x2a9   :  { %7850 = vst [vmem:[#allocation75_spill] sm:$0xff] %v6565_v8  ;;  %7851 = vst [vmem:[#allocation56_spill] sm:$0xff] %v6567_v36  ;;  %3334 = vrot.lane.b32.xlu0 %v3330_v49, %s4541_s8  ;;  %v2193_v8 = vmul.f32 %v6472_v11, %v2192_v6  ;;  %v3432_v36 = vrot.slane %v3426_v31, 1  ;;  %v2194_v49 = vmul.f32 %v6479_v61, %v2192_v6  ;;  %v3453_v31 = vrot.slane %v3447_v53, 1 }
 0x2aa   :  { %v3454_v23 = vrot.slane %v3448_v7, 1  ;;  %v3470_v6 = vmul.f32 %v6522_v4, %v3467_v38  ;;  %v2378_v39 = vmul.f32 %v6472_v11, %v6589_v9  ;;  %v6611_v7 = vmul.f32 %v6479_v61, %v6589_v9 }
 0x2ab   :  { %v2199_v2 = vrot.slane %v2193_v8, 1  ;;  %v2200_v53 = vrot.slane %v2194_v49, 1  ;;  %v6617_v59 = vsel %vm183_vm0, %v2183_v47, %v2185_v46  ;;  %v3509_v46 = vstv %s6576_s9  ;;  %s7338_s9 = sld [smem:[#allocation3 + $0x98]] }
 0x2ac   :  { %v6593_v16 = vpop.permute.xlu1 %2644  ;;  %v6595_v28 = vpop.permute.xlu0 %2656  ;;  %3350 = vrot.lane.b32.xlu1 %v3345_v32, %s4541_s8  ;;  %v3469_v32 = vmul.f32 %v6391_v20, %v3467_v38  ;;  %7856 = vst [vmem:[#allocation76_spill] sm:$0xff] %v6611_v7  ;;  %7857 = vst [vmem:[#allocation65_spill] sm:$0xff] %v6617_v59  ;;  %v3455_v63 = vsel %vm183_vm0, %v3453_v31, %v3454_v23  ;;  %v3457_v49 = vsel %vm183_vm0, %v3454_v23, %v3456_v10 }
 0x2ad   :  { %7854 = vst [vmem:[#allocation69_spill] sm:$0xff] %v6593_v16  ;;  %7855 = vst [vmem:[#allocation64_spill] sm:$0xff] %v6595_v28  ;;  %3348 = vrot.lane.b32.xlu0 %v3344_v14, %s4541_s8  ;;  %v3434_v16 = vsel %vm183_vm0, %v3432_v36, %v3433_v17  ;;  %v3468_v28 = vmul.f32 %v6397_v34, %v3467_v38  ;;  %v3488_v14 = vstv %s6561_s5  ;;  %v2202_v36 = vrot.slane %v2195_v12, 1  ;;  %s6841_s5 = sld [smem:[#allocation3 + $0x9a]] }
 0x2ae   :  { %v2394_v17 = vstv %s6563_s7  ;;  %v3477_v9 = vrot.slane %v3470_v6, 1  ;;  %v3491_v47 = vmul.f32 %v6522_v4, %v3488_v14  ;;  %v3475_v59 = vrot.slane %v3469_v32, 1 }
 0x2af   :  { %v3474_v12 = vrot.slane %v3468_v28, 1  ;;  %v3489_v62 = vmul.f32 %v6397_v34, %v3488_v14  ;;  %v6644_v23 = vsel %vm183_vm0, %v2200_v53, %v2202_v36  ;;  %v2411_v28 = vstv %s6591_s10  ;;  %s6874_s10 = sld [smem:[#allocation3 + $0x18c]] }
 0x2b0   :  { %v6622_v38 = vpop.permute.xlu1 %2658  ;;  %v6624_v8 = vpop.permute.xlu0 %2670  ;;  %3439 = vrot.lane.b32.xlu1 %v3436_v25, %s4540_s27  ;;  %v2384_v25 = vrot.slane %v2378_v39, 2  ;;  %7860 = vst [vmem:[#allocation71_spill] sm:$0xff] %v6644_v23  ;;  %v3511_v32 = vmul.f32 %v6391_v20, %v3509_v46  ;;  %v6655_v39 = vmul.f32 %v6479_v61, %v2394_v17  ;;  %v3512_v36 = vmul.f32 %v6522_v4, %v3509_v46 }
 0x2b1   :  { %7858 = vst [vmem:[#allocation77_spill] sm:$0xff] %v6622_v38  ;;  %7859 = vst [vmem:[#allocation70_spill] sm:$0xff] %v6624_v8  ;;  %3437 = vrot.lane.b32.xlu0 %v3434_v16, %s4540_s27  ;;  %v3490_v38 = vmul.f32 %v6391_v20, %v3488_v14  ;;  %v6635_v8 = vsel %vm183_vm0, %v2199_v2, %v2200_v53  ;;  %v6639_v16 = vmul.f32 %v6472_v11, %v2394_v17 }
 0x2b2   :  { %v3510_v2 = vmul.f32 %v6397_v34, %v3509_v46  ;;  %v3478_v53 = vsel %vm183_vm0, %v3475_v59, %v3477_v9  ;;  %v3498_v14 = vrot.slane %v3491_v47, 1  ;;  %v3476_v31 = vsel %vm183_vm0, %v3474_v12, %v3475_v59 }
 0x2b3   :  { %v7863_v23 = vrot.slane %v6611_v7, 2  ;;  %v2412_v9 = vmul.f32 %v6472_v11, %v2411_v28  ;;  %v3530_v47 = vstv %s6614_s11  ;;  %v6673_v46 = vmul.f32 %v6479_v61, %v2411_v28  ;;  %s6884_s11 = sld [smem:[#allocation3 + $0x11a]] }
 0x2b4   :  { %v6647_v10 = vpop.permute.xlu1 %2672  ;;  %v6649_v6 = vpop.permute.xlu0 %2684  ;;  %3460 = vrot.lane.b32.xlu1 %v3457_v49, %s4540_s27  ;;  %v2397_v49 = vmul.f32 %v6528_v45, %v2394_v17  ;;  %v3517_v59 = vrot.slane %v3511_v32, 1  ;;  %v3532_v32 = vmul.f32 %v6391_v20, %v3530_v47 }
 0x2b5   :  { %7861 = vst [vmem:[#allocation78_spill] sm:$0xff] %v6647_v10  ;;  %7862 = vst [vmem:[#allocation79_spill] sm:$0xff] %v6649_v6  ;;  %3458 = vrot.lane.b32.xlu0 %v3455_v63, %s4540_s27  ;;  %v3495_v10 = vrot.slane %v3489_v62, 1  ;;  %v3496_v6 = vrot.slane %v3490_v38, 1  ;;  %v6667_v24 = vsel %vm420_vm1, %v2384_v25, %v7863_v23  ;;  %v2401_v63 = vrot.slane %v6639_v16, 2 }
 0x2b6   :  { %v3516_v62 = vrot.slane %v3510_v2, 1  ;;  %v2402_v38 = vrot.slane %v6655_v39, 2  ;;  %v3519_v25 = vrot.slane %v3512_v36, 1  ;;  %v3533_v16 = vmul.f32 %v6522_v4, %v3530_v47 }
 0x2b7   :  { %v3499_v12 = vsel %vm183_vm0, %v3496_v6, %v3498_v14  ;;  %v2404_v23 = vrot.slane %v2397_v49, 2  ;;  %v3497_v7 = vsel %vm183_vm0, %v3495_v10, %v3496_v6  ;;  %v3531_v2 = vmul.f32 %v6397_v34, %v3530_v47 }
 0x2b8   :  { %v6676_v27 = vpop.permute.xlu1 %2686  ;;  %v6678_v17 = vpop.permute.xlu0 %2698  ;;  %3481 = vrot.lane.b32.xlu1 %v3478_v53, %s4540_s27  ;;  %v2414_v39 = vmul.f32 %v6528_v45, %v2411_v28  ;;  %v2429_v53 = vmul.f32 %v6472_v11, %v2428_v60  ;;  %v3551_v14 = vstv %s6641_s13  ;;  %v2418_v36 = vrot.slane %v2412_v9, 2  ;;  %s6979_s13 = sld [smem:[#allocation3 + $0xf]] }
 0x2b9   :  { %7864 = vst [vmem:[#allocation72_spill] sm:$0xff] %v6676_v27  ;;  %7865 = vst [vmem:[#allocation86_spill] sm:$0xff] %v6678_v17  ;;  %3479 = vrot.lane.b32.xlu0 %v3476_v31, %s4540_s27  ;;  %v2430_v31 = vmul.f32 %v6479_v61, %v2428_v60  ;;  %v2419_v49 = vrot.slane %v6673_v46, 2  ;;  %v2431_v27 = vmul.f32 %v6528_v45, %v2428_v60  ;;  %v3540_v61 = vrot.slane %v3533_v16, 1 }
 0x2ba   :  { %v3518_v28 = vsel %vm183_vm0, %v3516_v62, %v3517_v59  ;;  %v3520_v11 = vsel %vm183_vm0, %v3517_v59, %v3519_v25  ;;  %v3554_v9 = vmul.f32 %v6522_v4, %v3551_v14  ;;  %v3572_v60 = vstv %s6660_s14  ;;  %s7004_s14 = sld [smem:[#allocation3 + $0x10f]] }
 0x2bb   :  { %v3537_v45 = vrot.slane %v3531_v2, 1  ;;  %v3538_v47 = vrot.slane %v3532_v32, 1  ;;  %v3552_v46 = vmul.f32 %v6397_v34, %v3551_v14  ;;  %v3553_v62 = vmul.f32 %v6391_v20, %v3551_v14 }
 0x2bc   :  { %v6700_v10 = vpop.permute.xlu1 %2700  ;;  %v6702_v6 = vpop.permute.xlu0 %2712  ;;  %3502 = vrot.lane.b32.xlu1 %v3499_v12, %s4540_s27  ;;  %v6719_v12 = vsel %vm420_vm1, %v2401_v63, %v2402_v38  ;;  %v2435_v17 = vrot.slane %v2429_v53, 2  ;;  %v6724_v59 = vsel %vm420_vm1, %v2402_v38, %v2404_v23  ;;  %v2438_v25 = vrot.slane %v2431_v27, 2 }
 0x2bd   :  { %7866 = vst [vmem:[#allocation73_spill] sm:$0xff] %v6700_v10  ;;  %7867 = vst [vmem:[#allocation87_spill] sm:$0xff] %v6702_v6  ;;  %3500 = vrot.lane.b32.xlu0 %v3497_v7, %s4540_s27  ;;  %v2421_v10 = vrot.slane %v2414_v39, 2  ;;  %v2436_v7 = vrot.slane %v2430_v31, 2  ;;  %v3573_v63 = vmul.f32 %v6397_v34, %v3572_v60  ;;  %v3574_v32 = vmul.f32 %v6391_v20, %v3572_v60 }
 0x2be   :  { %7868 = vst [vmem:[#allocation80_spill] sm:$0xff] %v6724_v59  ;;  %v6736_v39 = vsel %vm420_vm1, %v2418_v36, %v2419_v49  ;;  %v3541_v27 = vsel %vm183_vm0, %v3538_v47, %v3540_v61  ;;  %v3561_v38 = vrot.slane %v3554_v9, 1  ;;  %v3575_v23 = vmul.f32 %v6522_v4, %v3572_v60 }
 0x2bf   :  { %v3539_v31 = vsel %vm183_vm0, %v3537_v45, %v3538_v47  ;;  %v3558_v14 = vrot.slane %v3552_v46, 1  ;;  %v6749_v36 = vsel %vm420_vm1, %v2435_v17, %v2436_v7  ;;  %v6754_v61 = vsel %vm420_vm1, %v2436_v7, %v2438_v25  ;;  %v6767_v17 = vld [vmem:[%s7583_s0 + $0x60] sm:$0xff] }
 0x2c0   :  { %v6726_v16 = vpop.permute.xlu1 %2714  ;;  %v6728_v2 = vpop.permute.xlu0 %2726  ;;  %3523 = vrot.lane.b32.xlu1 %v3520_v11, %s4541_s8  ;;  %v3559_v11 = vrot.slane %v3553_v62, 1  ;;  %7872 = vst [vmem:[#allocation10_spill] sm:$0xff] %v6754_v61  ;;  %v6761_v53 = vstv %s6706_s18  ;;  %v3579_v45 = vrot.slane %v3573_v63, 1  ;;  %v3582_v62 = vrot.slane %v3575_v23, 1  ;;  %s7173_s18 = sld [smem:[#allocation3 + $0x112]] }
 0x2c1   :  { %7869 = vst [vmem:[#allocation6_spill] sm:$0xff] %v6726_v16  ;;  %7870 = vst [vmem:[#allocation83_spill] sm:$0xff] %v6728_v2  ;;  %3521 = vrot.lane.b32.xlu0 %v3518_v28, %s4541_s8  ;;  %v6746_v16 = vsel %vm420_vm1, %v2419_v49, %v2421_v10  ;;  %v2619_v28 = vstv %s6687_s16  ;;  %v3661_v2 = vstv %s6696_s17  ;;  %v3580_v49 = vrot.slane %v3574_v32, 1  ;;  %s7036_s16 = sld [smem:[#allocation3 + $0x18f]] }
 0x2c2   :  { %7871 = vst [vmem:[#allocation12_spill] sm:$0xff] %v6746_v16  ;;  %7875 = vst [vmem:[#allocation89_spill] sm:$0xff] %v6761_v53  ;;  %v7876_v10 = vstv %s6682_s15  ;;  %v3562_v46 = vsel %vm183_vm0, %v3559_v11, %v3561_v38  ;;  %v3664_v7 = vmul.f32 %v6522_v4, %v3661_v2  ;;  %v6778_v25 = vmul.f32 %v6767_v17, %v2619_v28  ;;  %v6789_v38 = vld [vmem:[%s7583_s0 + $0x68] sm:$0xff]  ;;  %s7148_s17 = sld [smem:[#allocation3 + $0x92]] }
 0x2c3   :  { %v6772_v47 = vmul.f32 %v6767_v17, %v7876_v10  ;;  %v3560_v63 = vsel %vm183_vm0, %v3558_v14, %v3559_v11  ;;  %v3662_v32 = vmul.f32 %v6397_v34, %v3661_v2  ;;  %v2625_v10 = vstv %s6708_s19 }
 0x2c4   :  { %v6756_v9 = vpop.permute.xlu1 %2728  ;;  %v6758_v60 = vpop.permute.xlu0 %2740  ;;  %3544 = vrot.lane.b32.xlu1 %v3541_v27, %s4541_s8  ;;  %7878 = vst [vmem:[#allocation13_spill] sm:$0xff] %v6778_v25  ;;  %v3663_v27 = vmul.f32 %v6391_v20, %v3661_v2  ;;  %v6793_v23 = vmul.f32 %v6789_v38, %v6761_v53  ;;  %v6799_v14 = vmul.f32 %v6789_v38, %v2619_v28  ;;  %v2631_v2 = vstv %s6714_s20 }
 0x2c5   :  { %7873 = vst [vmem:[#allocation88_spill] sm:$0xff] %v6756_v9  ;;  %7874 = vst [vmem:[#allocation14_spill] sm:$0xff] %v6758_v60  ;;  %3542 = vrot.lane.b32.xlu0 %v3539_v31, %s4541_s8  ;;  %v2750_v9 = vmul.f32 %v6767_v17, %v6761_v53  ;;  %v3682_v31 = vstv %s6721_s21  ;;  %v2766_v60 = vstv %s6731_s22  ;;  %v3581_v16 = vsel %vm183_vm0, %v3579_v45, %v3580_v49  ;;  %s7192_s21 = sld [smem:[#allocation3 + $0x192]] }
 0x2c6   :  { %7877 = vst [vmem:[#allocation16_spill] sm:$0xff] %v6772_v47  ;;  %7879 = vst [vmem:[#allocation7_spill] sm:$0xff] %v6793_v23  ;;  %v3583_v53 = vsel %vm183_vm0, %v3580_v49, %v3582_v62  ;;  %v3671_v47 = vrot.slane %v3664_v7, 2  ;;  %v3685_v28 = vmul.f32 %v6522_v4, %v3682_v31  ;;  %v3668_v59 = vrot.slane %v3662_v32, 2 }
 0x2c7   :  { %7880 = vst [vmem:[#allocation15_spill] sm:$0xff] %v6799_v14  ;;  %v3703_v14 = vstv %s6741_s23  ;;  %v3669_v6 = vrot.slane %v3663_v27, 2  ;;  %v6821_v45 = vmul.f32 %v6789_v38, %v2625_v10  ;;  %v2767_v62 = vmul.f32 %v6767_v17, %v2766_v60 }
 0x2c8   :  { %v6802_v11 = vpop.permute.xlu1 %2742  ;;  %v6804_v61 = vpop.permute.xlu0 %2829  ;;  %3565 = vrot.lane.b32.xlu1 %v3562_v46, %s4541_s8  ;;  %v6818_v46 = vmul.f32 %v6767_v17, %v2625_v10  ;;  %v2768_v7 = vmul.f32 %v6789_v38, %v2766_v60  ;;  %v3704_v27 = vmul.f32 %v6397_v34, %v3703_v14  ;;  %v3705_v10 = vmul.f32 %v6391_v20, %v3703_v14 }
 0x2c9   :  { %7881 = vst [vmem:[#allocation8_spill] sm:$0xff] %v6802_v11  ;;  %7882 = vst [vmem:[#allocation90_spill] sm:$0xff] %v6804_v61  ;;  %3563 = vrot.lane.b32.xlu0 %v3560_v63, %s4541_s8  ;;  %v3683_v11 = vmul.f32 %v6397_v34, %v3682_v31  ;;  %v3684_v61 = vmul.f32 %v6391_v20, %v3682_v31  ;;  %v2756_v63 = vrot.slane %v2750_v9, 1  ;;  %v3692_v25 = vrot.slane %v3685_v28, 2 }
 0x2ca   :  { %7883 = vst [vmem:[#allocation17_spill] sm:$0xff] %v6818_v46  ;;  %7884 = vst [vmem:[#allocation91_spill] sm:$0xff] %v6821_v45  ;;  %v6836_v9 = vmul.f32 %v6767_v17, %v2631_v2  ;;  %v3672_v31 = vsel %vm420_vm1, %v3669_v6, %v3671_v47  ;;  %v6844_v45 = vmul.f32 %v6789_v38, %v2631_v2  ;;  %v3724_v28 = vstv %s6796_s28  ;;  %s4465_s28 = sld [smem:[#allocation3 + $0x115]] }
 0x2cb   :  { %v3690_v46 = vrot.slane %v3684_v61, 2 }
 0x2cc   :  { %v6826_v49 = vpop.permute.xlu1 %2831  ;;  %v6830_v32 = vpop.permute.xlu0 %2850  ;;  %3586 = vrot.lane.b32.xlu1 %v3583_v53, %s4541_s8  ;;  %7887 = vst [vmem:[#allocation11_spill] sm:$0xff] %v6836_v9  ;;  %7888 = vst [vmem:[#allocation21_spill] sm:$0xff] %v6844_v45  ;;  %v3670_v53 = vsel %vm420_vm1, %v3668_v59, %v3669_v6  ;;  %v2040_v9 = vadd.f32 %v6208_v48, %v6490_v29  ;;  %v2773_v45 = vrot.slane %v2767_v62, 1  ;;  %v2774_v6 = vrot.slane %v2768_v7, 1 }
 0x2cd   :  { %7885 = vst [vmem:[#allocation18_spill] sm:$0xff] %v6826_v49  ;;  %7886 = vst [vmem:[#allocation9_spill] sm:$0xff] %v6830_v32  ;;  %3584 = vrot.lane.b32.xlu0 %v3581_v16, %s4541_s8  ;;  %v3706_v49 = vmul.f32 %v6522_v4, %v3703_v14  ;;  %v3689_v32 = vrot.slane %v3683_v11, 2  ;;  %v7889_v16 = vrot.slane %v6793_v23, 1  ;;  %v6857_v14 = vld [vmem:[%s7583_s0 + $0x70] sm:$0x3]  ;;  %v6867_v11 = vstv %s6810_s29 }
 0x2ce   :  { %v2769_v2 = vmul.f32 %v6857_v14, %v2766_v60  ;;  %v3710_v29 = vrot.slane %v3704_v27, 2  ;;  %v3711_v48 = vrot.slane %v3705_v10, 2  ;;  %v3727_v60 = vmul.f32 %v6522_v4, %v3724_v28  ;;  %s4466_s29 = sld [smem:[#allocation3 + $0x195]] }
 0x2cf   :  { %v6852_v47 = vsel %vm183_vm0, %v2756_v63, %v7889_v16  ;;  %v3693_v63 = vsel %vm420_vm1, %v3690_v46, %v3692_v25  ;;  %v3713_v16 = vrot.slane %v3706_v49, 2  ;;  %v2054_v62 = vadd.f32 %v6219_v3, %v6493_v42 }
 0x2d0   :  { %v6861_v59 = vpop.permute.xlu1 %2852  ;;  %v6863_v61 = vpop.permute.xlu0 %2871  ;;  %3675 = vrot.lane.b32.xlu1 %v3672_v31, %s4540_s27  ;;  %v3691_v7 = vsel %vm420_vm1, %v3689_v32, %v3690_v46  ;;  %v3725_v31 = vmul.f32 %v6397_v34, %v3724_v28  ;;  %v3726_v27 = vmul.f32 %v6391_v20, %v3724_v28  ;;  %v2055_v10 = vadd.f32 %v6230_v58, %v6503_v15 }
 0x2d1   :  { %3673 = vrot.lane.b32.xlu0 %v3670_v53, %s4540_s27  ;;  %v2068_v25 = vadd.f32 %v6232_v0, %v6506_v55  ;;  %v2776_v49 = vrot.slane %v2769_v2, 1  ;;  %v3745_v53 = vstv %s6824_s30  ;;  %v2110_v42 = vadd.f32 %v6265_v57, %v2054_v62  ;;  %s4475_s30 = sld [smem:[#allocation3 + $0x18]] }
 0x2d2   :  { %v6888_v3 = vsel %vm183_vm0, %v2773_v45, %v2774_v6  ;;  %v6892_v46 = vmul.f32 %v6767_v17, %v6867_v11  ;;  %v3712_v0 = vsel %vm420_vm1, %v3710_v29, %v3711_v48  ;;  %v3714_v15 = vsel %vm420_vm1, %v3711_v48, %v3713_v16 }
 0x2d3   :  { %v3734_v57 = vrot.slane %v3727_v60, 2  ;;  %v3748_v55 = vmul.f32 %v6522_v4, %v3745_v53  ;;  %v3766_v45 = vstv %s6841_s5  ;;  %v3731_v2 = vrot.slane %v3725_v31, 2 }
 0x2d4   :  { %v6894_v32 = vpop.permute.xlu1 %2873  ;;  %v6896_v58 = vpop.permute.xlu0 %2892  ;;  %3696 = vrot.lane.b32.xlu1 %v3693_v63, %s4540_s27  ;;  %v3732_v28 = vrot.slane %v3726_v27, 2  ;;  %v3746_v62 = vmul.f32 %v6397_v34, %v3745_v53  ;;  %v3747_v23 = vmul.f32 %v6391_v20, %v3745_v53  ;;  %v2082_v29 = vadd.f32 %v6243_v13, %v6515_v51 }
 0x2d5   :  { %7890 = vst [vmem:[#allocation19_spill] sm:$0xff] %v6894_v32  ;;  %3694 = vrot.lane.b32.xlu0 %v3691_v7, %s4540_s27  ;;  %v6908_v32 = vadd.f32 %v6241_v44, %v6512_v41  ;;  %v6913_v63 = vsel %vm183_vm0, %v2774_v6, %v2776_v49  ;;  %v6917_v48 = vmul.f32 %v6789_v38, %v6867_v11  ;;  %v3755_v6 = vrot.slane %v3748_v55, 2 }
 0x2d6   :  { %v2124_v16 = vadd.f32 %v6276_v26, %v2068_v25  ;;  %v3767_v13 = vmul.f32 %v6397_v34, %v3766_v45  ;;  %v3768_v51 = vmul.f32 %v6391_v20, %v3766_v45  ;;  %v2172_v41 = vadd.f32 %v6579_v43, %v2110_v42 }
 0x2d7   :  { %v3735_v26 = vsel %vm420_vm1, %v3732_v28, %v3734_v57  ;;  %v3769_v31 = vmul.f32 %v6522_v4, %v3766_v45  ;;  %v2096_v27 = vadd.f32 %v6254_v50, %v2040_v9  ;;  %v3733_v25 = vsel %vm420_vm1, %v3731_v2, %v3732_v28 }
 0x2d8   :  { %v6923_v7 = vpop.permute.xlu1 %2894  ;;  %v6925_v44 = vpop.permute.xlu0 %2913  ;;  %3717 = vrot.lane.b32.xlu1 %v3714_v15, %s4540_s27  ;;  %v3752_v49 = vrot.slane %v3746_v62, 2  ;;  %v3753_v53 = vrot.slane %v3747_v23, 2  ;;  %v2248_v15 = vadd.f32 %v6309_v52, %v2172_v41  ;;  %v2791_v60 = vrot.slane %v6917_v48, 1 }
 0x2d9   :  { %7891 = vst [vmem:[#allocation20_spill] sm:$0xff] %v6923_v7  ;;  %3715 = vrot.lane.b32.xlu0 %v3712_v0, %s4540_s27  ;;  %v6939_v7 = vstv %s6874_s10  ;;  %v3787_v43 = vstv %s6884_s11  ;;  %v2138_v42 = vadd.f32 %v6287_v56, %v2082_v29  ;;  %v2189_v0 = vadd.f32 %v6599_v30, %v2124_v16  ;;  %s7374_s10 = sld [smem:[#allocation3 + $0x198]] }
 0x2da   :  { %v3773_v50 = vrot.slane %v3767_v13, 2  ;;  %v3774_v23 = vrot.slane %v3768_v51, 2  ;;  %v2332_v52 = vadd.f32 %v6353_v21, %v2248_v15  ;;  %v3756_v9 = vsel %vm420_vm1, %v3753_v53, %v3755_v6 }
 0x2db   :  { %v3776_v45 = vrot.slane %v3769_v31, 2  ;;  %v3790_v56 = vmul.f32 %v6522_v4, %v3787_v43  ;;  %v2155_v30 = vadd.f32 %v6557_v19, %v2096_v27  ;;  %v3754_v2 = vsel %vm420_vm1, %v3752_v49, %v3753_v53 }
 0x2dc   :  { %v6944_v57 = vpop.permute.xlu1 %2915  ;;  %v6946_v55 = vpop.permute.xlu0 %2934  ;;  %3738 = vrot.lane.b32.xlu1 %v3735_v26, %s4540_s27  ;;  %v3788_v28 = vmul.f32 %v6397_v34, %v3787_v43  ;;  %v3789_v62 = vmul.f32 %v6391_v20, %v3787_v43  ;;  %v2111_v29 = vadd.f32 %v6274_v1, %v2055_v10  ;;  %v2269_v16 = vadd.f32 %v6320_v40, %v2189_v0  ;;  %v7892_v43 = vld [vmem:[#allocation33_spill] sm:$0xff] }
 0x2dd   :  { %3736 = vrot.lane.b32.xlu0 %v3733_v25, %s4540_s27  ;;  %v6961_v21 = vmul.f32 %v6767_v17, %v6939_v7  ;;  %s6963_s27 = sld [smem:[#allocation3 + $0x8f]]  ;;  %v3808_v13 = vstv %s6919_s12  ;;  %v2227_v51 = vadd.f32 %v6298_v33, %v2155_v30  ;;  %v2206_v19 = vadd.f32 %v6635_v8, %v2138_v42 }
 0x2de   :  { %v3775_v1 = vsel %vm420_vm1, %v3773_v50, %v3774_v23  ;;  %v3811_v40 = vmul.f32 %v6522_v4, %v3808_v13  ;;  %v2353_v10 = vadd.f32 %v6364_v54, %v2269_v16  ;;  %v2408_v6 = vadd.f32 %v6719_v12, %v2332_v52  ;;  %v7897_v16 = vld [vmem:[#allocation44_spill] sm:$0xff] }
 0x2df   :  { %v3777_v33 = vsel %vm420_vm1, %v3774_v23, %v3776_v45  ;;  %v3797_v31 = vrot.slane %v3790_v56, 2  ;;  %v3794_v8 = vrot.slane %v3788_v28, 2  ;;  %v3795_v27 = vrot.slane %v3789_v62, 2  ;;  %v7894_v23 = vld [vmem:[#allocation66_spill] sm:$0xff] }
 0x2e0   :  { %v6968_v41 = vpop.permute.xlu1 %2936  ;;  %v6970_v26 = vpop.permute.xlu0 %2955  ;;  %3759 = vrot.lane.b32.xlu1 %v3756_v9, %s4541_s8  ;;  %v3809_v25 = vmul.f32 %v6397_v34, %v3808_v13  ;;  %v3810_v49 = vmul.f32 %v6391_v20, %v3808_v13  ;;  %v2290_v53 = vadd.f32 %v6331_v22, %v2206_v19  ;;  %v2311_v4 = vadd.f32 %v6342_v35, %v2227_v51  ;;  %v7893_v35 = vld [vmem:[#allocation58_spill] sm:$0xff]  ;;  %v7899_v19 = vld [vmem:[#allocation65_spill] sm:$0xff] }
 0x2e1   :  { %3757 = vrot.lane.b32.xlu0 %v3754_v2, %s4541_s8  ;;  %v2484_v54 = vadd.f32 %v6401_v37, %v2408_v6  ;;  %v6988_v12 = vmul.f32 %v6789_v38, %v6939_v7  ;;  %v2083_v15 = vadd.f32 %v6252_v5, %v6535_v18  ;;  %v2125_v42 = vadd.f32 %v7892_v43, %v6908_v32  ;;  %v7895_v18 = vld [vmem:[#allocation68_spill] sm:$0xff]  ;;  %v7898_v13 = vld [vmem:[#allocation38_spill] sm:$0xff] }
 0x2e2   :  { %v2807_v34 = vrot.slane %v6961_v21, 1  ;;  %v3818_v22 = vrot.slane %v3811_v40, 2  ;;  %v2374_v37 = vadd.f32 %v7893_v35, %v2290_v53  ;;  %v2425_v50 = vadd.f32 %v6736_v39, %v2353_v10  ;;  %v7896_v2 = vld [vmem:[#allocation52_spill] sm:$0xff]  ;;  %v7900_v10 = vld [vmem:[#allocation59_spill] sm:$0xff] }
 0x2e3   :  { %v2568_v52 = vadd.f32 %v7894_v23, %v2484_v54  ;;  %v3798_v5 = vsel %vm420_vm1, %v3795_v27, %v3797_v31  ;;  %v2173_v32 = vadd.f32 %v7895_v18, %v2111_v29  ;;  %v3796_v9 = vsel %vm420_vm1, %v3794_v8, %v3795_v27  ;;  %v7901_v31 = vld [vmem:[#allocation62_spill] sm:$0xff]  ;;  %v7902_v27 = vld [vmem:[#allocation13_spill] sm:$0xff]  ;;  %v7904_v43 = vld [vmem:[#allocation48_spill] sm:$0xff] }
 0x2e4   :  { %v6995_v0 = vpop.permute.xlu1 %2957  ;;  %v6997_v20 = vpop.permute.xlu0 %2976  ;;  %3780 = vrot.lane.b32.xlu1 %v3777_v33, %s4541_s8  ;;  %v3815_v45 = vrot.slane %v3809_v25, 2  ;;  %v3816_v56 = vrot.slane %v3810_v49, 2  ;;  %v2391_v30 = vadd.f32 %v6667_v24, %v2311_v4  ;;  %v2505_v28 = vadd.f32 %v7896_v2, %v2425_v50  ;;  %v7903_v49 = vld [vmem:[#allocation51_spill] sm:$0xff]  ;;  %v7906_v35 = vld [vmem:[#allocation64_spill] sm:$0xff] }
 0x2e5   :  { %3778 = vrot.lane.b32.xlu0 %v3775_v1, %s4541_s8  ;;  %v7594_v39 = vrot.slane %v6988_v12, 1  ;;  %v7013_v62 = vstv %s6963_s27  ;;  %v2139_v21 = vadd.f32 %v7897_v16, %v2083_v15  ;;  %v2249_v51 = vadd.f32 %v7898_v13, %v2173_v32  ;;  %v7907_v23 = vld [vmem:[#allocation39_spill] sm:$0xff] }
 0x2e6   :  { %v2190_v1 = vadd.f32 %v7899_v19, %v2125_v42  ;;  %v3819_v24 = vsel %vm420_vm1, %v3816_v56, %v3818_v22  ;;  %v2463_v6 = vadd.f32 %v7900_v10, %v2391_v30  ;;  %v2442_v33 = vadd.f32 %v6749_v36, %v2374_v37  ;;  %v7905_v42 = vld [vmem:[#allocation49_spill] sm:$0xff]  ;;  %v7909_v30 = vld [vmem:[#allocation63_spill] sm:$0xff]  ;;  %v7914_v10 = vld [vmem:[#allocation80_spill] sm:$0xff] }
 0x2e7   :  { %v2589_v8 = vadd.f32 %v7901_v31, %v2505_v28  ;;  %v2622_v25 = vadd.f32 %v7902_v27, %v2568_v52  ;;  %v2333_v53 = vadd.f32 %v7903_v49, %v2249_v51  ;;  %v7031_v4 = vstv %s6979_s13  ;;  %v7910_v28 = vld [vmem:[#allocation17_spill] sm:$0xff]  ;;  %v7911_v16 = vld [vmem:[#allocation87_spill] sm:$0xff]  ;;  %v7916_v27 = vld [vmem:[#allocation70_spill] sm:$0xff] }
 0x2e8   :  { %v7018_v29 = vpop.permute.xlu1 %2978  ;;  %v7020_v40 = vpop.permute.xlu0 %3065  ;;  %3801 = vrot.lane.b32.xlu1 %v3798_v5, %s4541_s8  ;;  %v3003_v54 = vmul.f32 %v6767_v17, %v7013_v62  ;;  %v3817_v15 = vsel %vm420_vm1, %v3815_v45, %v3816_v56  ;;  %v2526_v36 = vadd.f32 %v7904_v43, %v2442_v33  ;;  %v2547_v22 = vadd.f32 %v7905_v42, %v2463_v6  ;;  %v7917_v43 = vld [vmem:[#allocation85_spill] sm:$0xff] }
 0x2e9   :  { %3799 = vrot.lane.b32.xlu0 %v3796_v9, %s4541_s8  ;;  %v2662_v37 = vadd.f32 %v7906_v35, %v2622_v25  ;;  %v7043_v50 = vmul.f32 %v6789_v38, %v7013_v62  ;;  %v2270_v52 = vadd.f32 %v7907_v23, %v2190_v1  ;;  %v7908_v5 = vrot.slane %v6892_v46, 1  ;;  %v7913_v1 = vld [vmem:[#allocation46_spill] sm:$0xff] }
 0x2ea   :  { %v7053_v32 = vmul.f32 %v6857_v14, %v6867_v11  ;;  %v2809_v9 = vsel %vm183_vm0, %v2807_v34, %v7594_v39  ;;  %v2610_v2 = vadd.f32 %v7909_v30, %v2526_v36  ;;  %v2628_v46 = vadd.f32 %v7910_v28, %v2589_v8  ;;  %v7912_v11 = vld [vmem:[#allocation71_spill] sm:$0xff]  ;;  %v7918_v36 = vld [vmem:[#allocation41_spill] sm:$0xff] }
 0x2eb   :  { %v2792_v18 = vsel %vm183_vm0, %v7908_v5, %v2791_v60  ;;  %v2718_v13 = vadd.f32 %v7911_v16, %v2662_v37  ;;  %v7067_v51 = vstv %s7004_s14  ;;  %v2207_v19 = vadd.f32 %v7912_v11, %v2139_v21  ;;  %v7919_v37 = vld [vmem:[#allocation56_spill] sm:$0xff]  ;;  %v7921_v5 = vld [vmem:[#allocation83_spill] sm:$0xff]  ;;  %v7927_v39 = vld [vmem:[#allocation9_spill] sm:$0xff] }
 0x2ec   :  { %v7058_v45 = vpop.permute.xlu1 %3067  ;;  %v7060_v56 = vpop.permute.xlu0 %3086  ;;  %3822 = vrot.lane.b32.xlu1 %v3819_v24, %s4541_s8  ;;  %v2354_v34 = vadd.f32 %v7913_v1, %v2270_v52  ;;  %v2409_v6 = vadd.f32 %v7914_v10, %v2333_v53  ;;  %v7075_v33 = vmul.f32 %v6767_v17, %v7031_v4  ;;  %v7915_v24 = vld [vmem:[#allocation16_spill] sm:$0xff]  ;;  %v2676_v8 = vadd.f32 %v7916_v27, %v2628_v46  ;;  %v7922_v46 = vld [vmem:[#allocation47_spill] sm:$0xff] }
 0x2ed   :  { %3820 = vrot.lane.b32.xlu0 %v3817_v15, %s4541_s8  ;;  %v2616_v31 = vadd.f32 %v7915_v24, %v2547_v22  ;;  %v3009_v25 = vrot.slane %v3003_v54, 2  ;;  %v3010_v49 = vrot.slane %v7043_v50, 2  ;;  %v2291_v15 = vadd.f32 %v7917_v43, %v2207_v19  ;;  %v7920_v54 = vld [vmem:[#allocation11_spill] sm:$0xff]  ;;  %v7923_v11 = vld [vmem:[#allocation12_spill] sm:$0xff]  ;;  %v7926_v43 = vld [vmem:[#allocation86_spill] sm:$0xff]  ;;  %s7133_s8 = sld [smem:[#allocation3 + $0x12]] }
 0x2ee   :  { %v2485_v21 = vadd.f32 %v7918_v36, %v2409_v6  ;;  %v3020_v53 = vmul.f32 %v6767_v17, %v7067_v51  ;;  %v7088_v35 = vmul.f32 %v6789_v38, %v7067_v51  ;;  %v2634_v52 = vadd.f32 %v7920_v54, %v2610_v2  ;;  %v7924_v1 = vld [vmem:[#allocation67_spill] sm:$0xff] }
 0x2ef   :  { %v2648_v23 = vadd.f32 %v7919_v37, %v2616_v31  ;;  %v2732_v30 = vadd.f32 %v7921_v5, %v2676_v8  ;;  %v2780_v28 = vadd.f32 %v6888_v3, %v2718_v13  ;;  %v2375_v16 = vadd.f32 %v7922_v46, %v2291_v15  ;;  %v7925_v24 = vld [vmem:[#allocation79_spill] sm:$0xff]  ;;  %v7928_v8 = vld [vmem:[#allocation53_spill] sm:$0xff] }
 0x2f0   :  { %v7082_v42 = vpop.permute.xlu1 %3088  ;;  %v7090_v22 = vpop.permute.xlu0 %3107  ;;  %v2426_v19 = vadd.f32 %v7923_v11, %v2354_v34  ;;  %v2569_v10 = vadd.f32 %v7924_v1, %v2485_v21  ;;  %v7100_v6 = vstv %s7036_s16  ;;  %v2690_v27 = vadd.f32 %v7925_v24, %v2634_v52  ;;  %v7931_v11 = vld [vmem:[#allocation74_spill] sm:$0xff] }
 0x2f1   :  { %v2704_v36 = vadd.f32 %v7926_v43, %v2648_v23  ;;  %v2856_v31 = vadd.f32 %v7927_v39, %v2780_v28  ;;  %v7107_v2 = vmul.f32 %v6789_v38, %v7031_v4  ;;  %v3011_v13 = vsel %vm420_vm1, %v3009_v25, %v3010_v49  ;;  %v7929_v23 = vld [vmem:[#allocation14_spill] sm:$0xff]  ;;  %v7932_v25 = vld [vmem:[#allocation15_spill] sm:$0xff] }
 0x2f2   :  { %v2506_v3 = vadd.f32 %v7928_v8, %v2426_v19  ;;  %v3026_v34 = vrot.slane %v3020_v53, 2  ;;  %v3027_v15 = vrot.slane %v7088_v35, 2  ;;  %v2746_v54 = vadd.f32 %v7929_v23, %v2690_v27  ;;  %v7930_v28 = vld [vmem:[#allocation10_spill] sm:$0xff]  ;;  %v7936_v23 = vld [vmem:[#allocation75_spill] sm:$0xff] }
 0x2f3   :  { %v2797_v39 = vadd.f32 %v2792_v18, %v2732_v30  ;;  %v2940_v52 = vadd.f32 %v6946_v55, %v2856_v31  ;;  %v3037_v5 = vmul.f32 %v6767_v17, %v7100_v6  ;;  %v2443_v46 = vadd.f32 %v7930_v28, %v2375_v16  ;;  %v7933_v17 = vld [vmem:[#allocation60_spill] sm:$0xff]  ;;  %v7934_v16 = vld [vmem:[#allocation77_spill] sm:$0xff]  ;;  %v7937_v28 = vld [vmem:[#allocation91_spill] sm:$0xff] }
 0x2f4   :  { %v7114_v21 = vpop.permute.xlu1 %3109  ;;  %v7116_v37 = vpop.permute.xlu0 %3128  ;;  %v2590_v19 = vadd.f32 %v7931_v11, %v2506_v3  ;;  %v2623_v53 = vadd.f32 %v7932_v25, %v2569_v10  ;;  %v7127_v1 = vmul.f32 %v6789_v38, %v7100_v6  ;;  %v2763_v24 = vadd.f32 %v6852_v47, %v2704_v36 }
 0x2f5   :  { %v2877_v27 = vadd.f32 %v6863_v61, %v2797_v39  ;;  %v2793_v18 = vrot.slane %v7053_v32, 1  ;;  %v2992_v55 = vrot.slane %v7075_v33, 2  ;;  %v2527_v30 = vadd.f32 %v7933_v17, %v2443_v46  ;;  %v7935_v61 = vld [vmem:[#allocation90_spill] sm:$0xff] }
 0x2f6   :  { %v2663_v43 = vadd.f32 %v7934_v16, %v2623_v53  ;;  %v2993_v10 = vrot.slane %v7107_v2, 2  ;;  %v3028_v31 = vsel %vm420_vm1, %v3026_v34, %v3027_v15  ;;  %v2835_v36 = vadd.f32 %v7935_v61, %v2763_v24  ;;  %v7938_v53 = vld [vmem:[#allocation6_spill] sm:$0xff] }
 0x2f7   :  { %v2814_v32 = vadd.f32 %v2809_v9, %v2746_v54  ;;  %v2961_v33 = vadd.f32 %v6970_v26, %v2877_v27  ;;  %v3016_v3 = vadd.f32 %v3011_v13, %v2940_v52  ;;  %v2611_v39 = vadd.f32 %v7936_v23, %v2527_v30  ;;  %v7939_v54 = vld [vmem:[#allocation78_spill] sm:$0xff]  ;;  %v7940_v27 = vld [vmem:[#allocation21_spill] sm:$0xff] }
 0x2f8   :  { %v7141_v8 = vpop.permute.xlu1 %3130  ;;  %v3150_v47 = vpop.permute.xlu0 %3149  ;;  %v2629_v46 = vadd.f32 %v7937_v28, %v2590_v19  ;;  %v3043_v11 = vrot.slane %v3037_v5, 2  ;;  %v3044_v25 = vrot.slane %v7127_v1, 2  ;;  %v2719_v34 = vadd.f32 %v7938_v53, %v2663_v43  ;;  %v7941_v43 = vld [vmem:[#allocation88_spill] sm:$0xff] }
 0x2f9   :  { %v2898_v17 = vadd.f32 %v6896_v58, %v2814_v32  ;;  %v2919_v16 = vadd.f32 %v6925_v44, %v2835_v36  ;;  %v3092_v9 = vadd.f32 %v7060_v56, %v3016_v3  ;;  %v2803_v13 = vmul.f32 %v6857_v14, %v6939_v7  ;;  %v7942_v32 = vld [vmem:[#allocation72_spill] sm:$0xff] }
 0x2fa   :  { %v2677_v26 = vadd.f32 %v7939_v54, %v2629_v46  ;;  %v2994_v52 = vsel %vm420_vm1, %v2992_v55, %v2993_v10  ;;  %v3005_v5 = vmul.f32 %v6857_v14, %v7013_v62  ;;  %v3033_v24 = vadd.f32 %v3028_v31, %v2961_v33 }
 0x2fb   :  { %v2982_v44 = vadd.f32 %v6997_v20, %v2898_v17  ;;  %v2635_v30 = vadd.f32 %v7940_v27, %v2611_v39  ;;  %v2794_v7 = vsel %vm183_vm0, %v2791_v60, %v2793_v18  ;;  %v3045_v55 = vsel %vm420_vm1, %v3043_v11, %v3044_v25 }
 0x2fc   :  { %v7162_v19 = vpop.permute.xlu1 %3151  ;;  %v3171_v58 = vpop.permute.xlu0 %3170  ;;  %v2733_v61 = vadd.f32 %v7941_v43, %v2677_v26  ;;  %v2781_v62 = vadd.f32 %v6913_v63, %v2719_v34  ;;  %v2999_v20 = vadd.f32 %v2994_v52, %v2919_v16  ;;  %v3113_v31 = vadd.f32 %v7090_v22, %v3033_v24  ;;  %v7186_v22 = vld [vmem:[%s7583_s0 + $0x78] sm:$0xff] }
 0x2fd   :  { %v3176_v56 = vadd.f32 %v3171_v58, %v3092_v9  ;;  %v3221_v36 = vstv %s7133_s8  ;;  %v2691_v33 = vadd.f32 %v7942_v32, %v2635_v30  ;;  %v2810_v3 = vrot.slane %v2803_v13, 1 }
 0x2fe   :  { %v3012_v48 = vrot.slane %v3005_v5, 2  ;;  %v3022_v60 = vmul.f32 %v6857_v14, %v7067_v51  ;;  %v2857_v39 = vadd.f32 %v6861_v59, %v2781_v62  ;;  %v3071_v28 = vadd.f32 %v7020_v40, %v2999_v20  ;;  %v7943_v51 = vld [vmem:[#allocation8_spill] sm:$0xff] }
 0x2ff   :  { %v3050_v63 = vadd.f32 %v3045_v55, %v2982_v44  ;;  %v2798_v11 = vadd.f32 %v2794_v7, %v2733_v61  ;;  %v3222_v53 = vmul.f32 %v7186_v22, %v3221_v36  ;;  %v3227_v34 = vstv %s7148_s17  ;;  %v7945_v44 = vld [vmem:[#allocation19_spill] sm:$0xff]  ;;  %v7946_v7 = vld [vmem:[#allocation20_spill] sm:$0xff] }
 0x300   :  { %v3173_v18 = vpop.permute.xlu1 %3172  ;;  %v3192_v23 = vpop.permute.xlu0 %3191  ;;  %v2747_v17 = vadd.f32 %v7943_v51, %v2691_v33  ;;  %v2941_v59 = vadd.f32 %v6968_v41, %v2857_v39  ;;  %v3155_v16 = vadd.f32 %v3150_v47, %v3071_v28  ;;  %v7944_v9 = vrot.slane %v6988_v12, 1 }
 0x301   :  { %v3197_v46 = vadd.f32 %v3192_v23, %v3113_v31  ;;  %v3134_v40 = vadd.f32 %v7116_v37, %v3050_v63  ;;  %v3013_v26 = vsel %vm420_vm1, %v3010_v49, %v3012_v48  ;;  %v3029_v13 = vrot.slane %v3022_v60, 2  ;;  %v7219_v31 = vld [vmem:[%s7583_s0 + $0x80] sm:$0xff] }
 0x302   :  { %v2811_v54 = vsel %vm183_vm0, %v7944_v9, %v2810_v3  ;;  %v3039_v52 = vmul.f32 %v6857_v14, %v7100_v6  ;;  %v2878_v24 = vadd.f32 %v7945_v44, %v2798_v11  ;;  %v3228_v37 = vmul.f32 %v7186_v22, %v3227_v34 }
 0x303   :  { %v3233_v47 = vstv %s7173_s18  ;;  %v2815_v12 = vadd.f32 %v2811_v54, %v2747_v17  ;;  %v3017_v30 = vadd.f32 %v3013_v26, %v2941_v59  ;;  %v3224_v50 = vadd.f32 %v3222_v53, %v3155_v16 }
 0x304   :  { %v3194_v5 = vpop.permute.xlu1 %3193  ;;  %v3213_v58 = vpop.permute.xlu0 %3212  ;;  %v2962_v27 = vadd.f32 %v6995_v0, %v2878_v24  ;;  %v3030_v49 = vsel %vm420_vm1, %v3027_v15, %v3029_v13  ;;  %v3046_v43 = vrot.slane %v3039_v52, 2  ;;  %v3229_v0 = vmul.f32 %v7219_v31, %v3227_v34 }
 0x305   :  { %v3218_v41 = vadd.f32 %v3213_v58, %v3134_v40  ;;  %v2899_v55 = vadd.f32 %v7946_v7, %v2815_v12  ;;  %v3093_v62 = vadd.f32 %v7082_v42, %v3017_v30  ;;  %v3234_v35 = vmul.f32 %v7186_v22, %v3233_v47 }
 0x306   :  { %v3239_v32 = vstv %s7192_s21  ;;  %v3034_v33 = vadd.f32 %v3030_v49, %v2962_v27  ;;  %v3230_v48 = vadd.f32 %v3228_v37, %v3176_v56  ;;  %v3047_v42 = vsel %vm420_vm1, %v3044_v25, %v3046_v43  ;;  %v7949_v27 = vld [vmem:[#allocation37_spill] sm:$0xff]  ;;  %v7950_v43 = vld [vmem:[#allocation84_spill] sm:$0xff] }
 0x307   :  { %v2983_v15 = vadd.f32 %v7018_v29, %v2899_v55  ;;  %v3177_v3 = vadd.f32 %v3173_v18, %v3093_v62  ;;  %v3235_v63 = vmul.f32 %v7219_v31, %v3233_v47  ;;  %v3240_v11 = vmul.f32 %v7186_v22, %v3239_v32  ;;  %v7953_v62 = vld [vmem:[#allocation57_spill] sm:$0xff] }
 0x308   :  { %v3215_v6 = vpop.permute.xlu1 %3214  ;;  %v3251_v61 = vpop.permute.xlu0 %3250  ;;  %v3114_v39 = vadd.f32 %v7114_v21, %v3034_v33  ;;  %v3236_v18 = vadd.f32 %v3234_v35, %v3197_v46  ;;  %v3241_v16 = vmul.f32 %v7219_v31, %v3239_v32  ;;  %v4522_v46 = vld [vmem:[%s7583_s0 + $0x58] sm:$0x3]  ;;  %v7948_v58 = vstv %s6407_s6  ;;  %s4463_s6 = sld [smem:[#allocation3 + $0x15]] }
 0x309   :  { %v7214_v20 = vadd.f32 %v3251_v61, %v3224_v50  ;;  %v3051_v53 = vadd.f32 %v3047_v42, %v2983_v15  ;;  %v3231_v34 = vadd.f32 %v3229_v0, %v3177_v3  ;;  %v3242_v40 = vadd.f32 %v3240_v11, %v3218_v41  ;;  %v7951_v61 = vld [vmem:[#allocation55_spill] sm:$0xff]  ;;  %v7954_v3 = vld [vmem:[#allocation45_spill] sm:$0xff]  ;;  %v7956_v11 = vld [vmem:[#allocation76_spill] sm:$0xff] }
 0x30a   :  { %v3198_v29 = vadd.f32 %v3194_v5, %v3114_v39  ;;  %v4523_v5 = vld [vmem:[%s7583_s0 + $0x50] sm:$0xff]  ;;  %v7952_v7 = vrot.slane %v7951_v61, 1  ;;  %v2380_v0 = vmul.f32 %v4522_v46, %v7953_v62  ;;  %v7955_v39 = vld [vmem:[#allocation50_spill] sm:$0xff] }
 0x30b   :  { %v3135_v25 = vadd.f32 %v7141_v8, %v3051_v53  ;;  %v7947_v8 = vld [vmem:[#allocation61_spill] sm:$0xff]  ;;  %v2007_v44 = vmul.f32 %v4523_v5, %v7948_v58  ;;  %v7957_v53 = vrot.slane %v7956_v11, 2 }
 0x30c   :  { %v7228_v60 = vpop.permute.xlu1 %3252  ;;  %v3265_v23 = vpop.permute.xlu0 %3264  ;;  %v3237_v59 = vadd.f32 %v3235_v63, %v3198_v29  ;;  %v2144_v52 = vmul.f32 %v4522_v46, %v7947_v8  ;;  %v2387_v33 = vrot.slane %v2380_v0, 2  ;;  %v7961_v46 = vld [vmem:[#allocation89_spill] sm:$0xff] }
 0x30d   :  { %v7231_v28 = vadd.f32 %v3265_v23, %v3230_v48  ;;  %v3219_v21 = vadd.f32 %v3215_v6, %v3135_v25  ;;  %v2041_v30 = vadd.f32 %v7949_v27, %v2007_v44  ;;  %v2752_v8 = vmul.f32 %v6857_v14, %v7961_v46 }
 0x30e   :  { %v2151_v12 = vrot.slane %v2144_v52, 1  ;;  %v2388_v29 = vsel %vm420_vm1, %v7957_v53, %v2387_v33  ;;  %v7966_v33 = vld [vmem:[#allocation18_spill] sm:$0xff] }
 0x30f   :  { %v3243_v24 = vadd.f32 %v3241_v16, %v3219_v21  ;;  %v2097_v6 = vadd.f32 %v7950_v43, %v2041_v30  ;;  %v2759_v44 = vrot.slane %v2752_v8, 1  ;;  %v7963_v30 = vld [vmem:[#allocation73_spill] sm:$0xff] }
 0x310   :  { %v3267_v56 = vpop.permute.xlu1 %3266  ;;  %v3279_v1 = vpop.permute.xlu0 %3278  ;;  %v2152_v55 = vsel %vm183_vm0, %v7952_v7, %v2151_v12  ;;  %v2988_v7 = vmul.f32 %v6857_v14, %v7031_v4 }
 0x311   :  { %v7236_v51 = vadd.f32 %v3267_v56, %v3231_v34  ;;  %v7238_v17 = vadd.f32 %v3279_v1, %v3236_v18  ;;  %v2156_v15 = vadd.f32 %v2152_v55, %v2097_v6  ;;  %v7958_v1 = vld [vmem:[#allocation40_spill] sm:$0xff] }
 0x313   :  { %v2228_v48 = vadd.f32 %v7954_v3, %v2156_v15  ;;  %v2995_v15 = vrot.slane %v2988_v7, 2  ;;  %v3593_v7 = vstv %s4475_s30 }
 0x314   :  { %v3281_v9 = vpop.permute.xlu1 %3280  ;;  %v3293_v54 = vpop.permute.xlu0 %3292 }
 0x315   :  { %v7241_v26 = vadd.f32 %v3281_v9, %v3237_v59  ;;  %v7243_v13 = vadd.f32 %v3293_v54, %v3242_v40  ;;  %v2312_v63 = vadd.f32 %v7955_v39, %v2228_v48  ;;  %v7959_v40 = vld [vmem:[#allocation54_spill] sm:$0xff]  ;;  %v7960_v9 = vstv %s6682_s15  ;;  %s4464_s15 = sld [smem:[#allocation3 + $0x95]] }
 0x316   :  { %v2615_v54 = vmul.f32 %v6789_v38, %v7960_v9  ;;  %v7964_v38 = vld [vmem:[#allocation7_spill] sm:$0xff]  ;;  %v3357_v48 = vstv %s4463_s6  ;;  %v2996_v14 = vsel %vm420_vm1, %v2993_v10, %v2995_v15 }
 0x317   :  { %v2392_v56 = vadd.f32 %v2388_v29, %v2312_v63  ;;  %v7965_v6 = vrot.slane %v7964_v38, 1  ;;  %v3358_v4 = vmul.f32 %v7186_v22, %v3357_v48  ;;  %v3359_v29 = vmul.f32 %v7219_v31, %v3357_v48 }
 0x318   :  { %v3295_v41 = vpop.permute.xlu1 %3294  ;;  %v7254_v37 = vpop.permute.xlu0 %3306 }
 0x319   :  { %v7256_v47 = vadd.f32 %v3295_v41, %v3243_v24  ;;  %v2464_v25 = vadd.f32 %v7958_v1, %v2392_v56  ;;  %v7962_v24 = vld [vmem:[#allocation69_spill] sm:$0xff]  ;;  %v2760_v61 = vsel %vm183_vm0, %v7965_v6, %v2759_v44  ;;  %v7329_v56 = vld [vmem:[%s7583_s0 + $0x88] sm:$0x3]  ;;  %v3364_v9 = vrot.slane %v3358_v4, 1  ;;  %s7342_s0 = sld [smem:[#allocation3 + $0x118]] }
 0x31a   :  { %v3360_v1 = vmul.f32 %v7329_v56, %v3357_v48  ;;  %v3365_v8 = vrot.slane %v3359_v29, 1  ;;  %v3408_v44 = vstv %s4466_s29  ;;  %v3594_v4 = vmul.f32 %v7186_v22, %v3593_v7 }
 0x31b   :  { %v2548_v16 = vadd.f32 %v7959_v40, %v2464_v25  ;;  %v3374_v53 = vstv %s4464_s15  ;;  %v3595_v29 = vmul.f32 %v7219_v31, %v3593_v7 }
 0x31c   :  { %v7259_v50 = vpop.permute.xlu1 %3308  ;;  %v7261_v49 = vpop.permute.xlu0 %3320  ;;  %v3375_v25 = vmul.f32 %v7186_v22, %v3374_v53 }
 0x31d   :  { %v2617_v58 = vadd.f32 %v2615_v54, %v2548_v16  ;;  %v3391_v16 = vstv %s4465_s28  ;;  %v3377_v54 = vmul.f32 %v7329_v56, %v3374_v53 }
 0x31e   :  { %v3394_v15 = vmul.f32 %v7329_v56, %v3391_v16 }
 0x31f   :  { %v2649_v41 = vadd.f32 %v7962_v24, %v2617_v58  ;;  %v3367_v58 = vrot.slane %v3360_v1, 1  ;;  %v3381_v24 = vrot.slane %v3375_v25, 1 }
 0x320   :  { %v7268_v35 = vpop.permute.xlu1 %3322  ;;  %v7270_v32 = vpop.permute.xlu0 %3334 }
 0x321   :  { %v2705_v43 = vadd.f32 %v7963_v30, %v2649_v41  ;;  %v3392_v30 = vmul.f32 %v7186_v22, %v3391_v16  ;;  %v3368_v48 = vsel %vm183_vm0, %v3365_v8, %v3367_v58 }
 0x323   :  { %v2764_v0 = vadd.f32 %v2760_v61, %v2705_v43  ;;  %v3223_v61 = vmul.f32 %v7219_v31, %v3221_v36  ;;  %v3398_v36 = vrot.slane %v3392_v30, 1  ;;  %v3627_v30 = vstv %s7342_s0 }
 0x324   :  { %v7273_v42 = vpop.permute.xlu1 %3336  ;;  %v7275_v23 = vpop.permute.xlu0 %3348 }
 0x325   :  { %v2836_v3 = vadd.f32 %v7966_v33, %v2764_v0  ;;  %v3384_v0 = vrot.slane %v3377_v54, 1  ;;  %v3409_v33 = vmul.f32 %v7186_v22, %v3408_v44  ;;  %v3401_v54 = vrot.slane %v3394_v15, 1 }
 0x327   :  { %v2920_v11 = vadd.f32 %v6944_v57, %v2836_v3  ;;  %v3376_v57 = vmul.f32 %v7219_v31, %v3374_v53  ;;  %v3366_v3 = vsel %vm183_vm0, %v3364_v9, %v3365_v8  ;;  %v3596_v8 = vmul.f32 %v7329_v56, %v3593_v7 }
 0x328   :  { %v7281_v34 = vpop.permute.xlu1 %3350  ;;  %v7283_v18 = vpop.permute.xlu0 %3437 }
 0x329   :  { %v3000_v10 = vadd.f32 %v2996_v14, %v2920_v11  ;;  %v3382_v41 = vrot.slane %v3376_v57, 1  ;;  %v3410_v11 = vmul.f32 %v7219_v31, %v3408_v44  ;;  %v3312_v57 = vadd.f32 %v7254_v37, %v7214_v20 }
 0x32a   :  { %v3603_v15 = vrot.slane %v3596_v8, 2 }
 0x32b   :  { %v3072_v46 = vadd.f32 %v7058_v45, %v3000_v10  ;;  %v3393_v45 = vmul.f32 %v7219_v31, %v3391_v16  ;;  %v3383_v53 = vsel %vm183_vm0, %v3381_v24, %v3382_v41  ;;  %v3610_v16 = vstv %s7338_s9 }
 0x32c   :  { %v7286_v21 = vpop.permute.xlu1 %3439  ;;  %v7288_v59 = vpop.permute.xlu0 %3458  ;;  %v3385_v9 = vsel %vm183_vm0, %v3382_v41, %v3384_v0  ;;  %v3611_v20 = vmul.f32 %v7186_v22, %v3610_v16  ;;  %v3612_v37 = vmul.f32 %v7219_v31, %v3610_v16  ;;  %v3371_v7 = vadd.f32 %v3366_v3, %v3312_v57 }
 0x32d   :  { %v3156_v6 = vadd.f32 %v7162_v19, %v3072_v46  ;;  %v3411_v19 = vmul.f32 %v7329_v56, %v3408_v44  ;;  %v3399_v10 = vrot.slane %v3393_v45, 1  ;;  %v3415_v46 = vrot.slane %v3409_v33, 1 }
 0x32e   :  { %v3416_v44 = vrot.slane %v3410_v11, 1  ;;  %v3613_v33 = vmul.f32 %v7329_v56, %v3610_v16  ;;  %v3628_v11 = vmul.f32 %v7186_v22, %v3627_v30  ;;  %v3617_v3 = vrot.slane %v3611_v20, 2 }
 0x32f   :  { %v3225_v25 = vadd.f32 %v3223_v61, %v3156_v6  ;;  %v3418_v24 = vrot.slane %v3411_v19, 1  ;;  %v3601_v6 = vrot.slane %v3595_v29, 2  ;;  %v3400_v0 = vsel %vm183_vm0, %v3398_v36, %v3399_v10 }
 0x330   :  { %v7296_v52 = vpop.permute.xlu1 %3460  ;;  %v7298_v5 = vpop.permute.xlu0 %3479  ;;  %v7389_v19 = vmul.f32 %v7219_v31, %v3627_v30  ;;  %v3402_v29 = vsel %vm183_vm0, %v3399_v10, %v3401_v54  ;;  %v3618_v36 = vrot.slane %v3612_v37, 2  ;;  %v3644_v20 = vstv %s7374_s10 }
 0x331   :  { %v3257_v58 = vadd.f32 %v7228_v60, %v3225_v25  ;;  %v3326_v60 = vadd.f32 %v7261_v49, %v7231_v28  ;;  %v3419_v25 = vsel %vm183_vm0, %v3416_v44, %v3418_v24  ;;  %v3327_v28 = vadd.f32 %v7268_v35, %v7236_v51 }
 0x332   :  { %v3604_v8 = vsel %vm420_vm1, %v3601_v6, %v3603_v15  ;;  %v3634_v51 = vrot.slane %v3628_v11, 2  ;;  %v3635_v35 = vrot.slane %v7389_v19, 2  ;;  %v3630_v24 = vmul.f32 %v7329_v56, %v3627_v30 }
 0x333   :  { %v3313_v45 = vadd.f32 %v7259_v50, %v3257_v58  ;;  %v3417_v50 = vsel %vm183_vm0, %v3415_v46, %v3416_v44  ;;  %v3388_v54 = vadd.f32 %v3383_v53, %v3326_v60  ;;  %v3620_v58 = vrot.slane %v3613_v33, 2 }
 0x334   :  { %v7301_v12 = vpop.permute.xlu1 %3481  ;;  %v7303_v27 = vpop.permute.xlu0 %3500  ;;  %v3636_v60 = vsel %vm420_vm1, %v3634_v51, %v3635_v35 }
 0x335   :  { %v3372_v10 = vadd.f32 %v3368_v48, %v3313_v45  ;;  %v3464_v44 = vadd.f32 %v7288_v59, %v3388_v54  ;;  %v3619_v48 = vsel %vm420_vm1, %v3617_v3, %v3618_v36 }
 0x338   :  { %v7311_v55 = vpop.permute.xlu1 %3502  ;;  %v7313_v62 = vpop.permute.xlu0 %3521 }
 0x33c   :  { %v7316_v39 = vpop.permute.xlu1 %3523  ;;  %v7318_v63 = vpop.permute.xlu0 %3542 }
 0x33d   :  { %v3548_v59 = vadd.f32 %v7318_v63, %v3464_v44 }
 0x340   :  { %v7334_v40 = vpop.permute.xlu1 %3544  ;;  %v7336_v2 = vpop.permute.xlu0 %3563 }
 0x344   :  { %v7345_v43 = vpop.permute.xlu1 %3565  ;;  %v7347_v38 = vpop.permute.xlu0 %3584 }
 0x348   :  { %v7361_v14 = vpop.permute.xlu1 %3586  ;;  %v7365_v1 = vpop.permute.xlu0 %3673 }
 0x349   :  { %7967 = vst [vmem:[#allocation26_spill] sm:$0xff] %v7361_v14  ;;  %v3600_v14 = vrot.slane %v3594_v4, 2  ;;  %v3443_v4 = vadd.f32 %v7283_v18, %v3371_v7  ;;  %v3340_v18 = vadd.f32 %v7270_v32, %v7238_v17  ;;  %v3341_v17 = vadd.f32 %v7273_v42, %v7241_v26 }
 0x34a   :  { %v3354_v32 = vadd.f32 %v7275_v23, %v7243_v13  ;;  %v3621_v26 = vsel %vm420_vm1, %v3618_v36, %v3620_v58  ;;  %v3645_v42 = vmul.f32 %v7186_v22, %v3644_v20  ;;  %v3646_v13 = vmul.f32 %v7219_v31, %v3644_v20 }
 0x34b   :  { %v3602_v49 = vsel %vm420_vm1, %v3600_v14, %v3601_v6  ;;  %v3527_v46 = vadd.f32 %v7313_v62, %v3443_v4  ;;  %v3444_v14 = vadd.f32 %v7286_v21, %v3372_v10  ;;  %v3389_v62 = vadd.f32 %v3385_v9, %v3327_v28 }
 0x34c   :  { %v7376_v61 = vpop.permute.xlu1 %3675  ;;  %v7380_v41 = vpop.permute.xlu0 %3694  ;;  %v3405_v37 = vadd.f32 %v3400_v0, %v3340_v18  ;;  %v3637_v7 = vrot.slane %v3630_v24, 2  ;;  %v3406_v63 = vadd.f32 %v3402_v29, %v3341_v17  ;;  %v3422_v0 = vadd.f32 %v3417_v50, %v3354_v32 }
 0x34d   :  { %v3528_v21 = vadd.f32 %v7316_v39, %v3444_v14  ;;  %v3607_v30 = vadd.f32 %v3602_v49, %v3527_v46  ;;  %v3465_v45 = vadd.f32 %v7296_v52, %v3389_v62  ;;  %v3355_v39 = vadd.f32 %v7281_v34, %v7256_v47 }
 0x34e   :  { %v3485_v23 = vadd.f32 %v7298_v5, %v3405_v37  ;;  %v3624_v31 = vadd.f32 %v3619_v48, %v3548_v59  ;;  %v3486_v5 = vadd.f32 %v7301_v12, %v3406_v63  ;;  %v3652_v4 = vrot.slane %v3646_v13, 2 }
 0x34f   :  { %v3679_v9 = vadd.f32 %v7365_v1, %v3607_v30  ;;  %v3549_v52 = vadd.f32 %v7334_v40, %v3465_v45  ;;  %v3608_v11 = vadd.f32 %v3604_v8, %v3528_v21  ;;  %v3651_v1 = vrot.slane %v3645_v42, 2 }
 0x350   :  { %v7398_v57 = vpop.permute.xlu1 %3696  ;;  %v7400_v16 = vpop.permute.xlu0 %3715  ;;  %v3569_v22 = vadd.f32 %v7336_v2, %v3485_v23  ;;  %v3647_v28 = vmul.f32 %v7329_v56, %v3644_v20  ;;  %v3506_v49 = vadd.f32 %v7303_v27, %v3422_v0  ;;  %v3700_v34 = vadd.f32 %v7380_v41, %v3624_v31  ;;  %v7968_v51 = vld [vmem:[#allocation26_spill] sm:$0xff] }
 0x351   :  { %v3680_v47 = vadd.f32 %v7376_v61, %v3608_v11  ;;  %v3423_v2 = vadd.f32 %v3419_v25, %v3355_v39  ;;  %v3570_v29 = vadd.f32 %v7345_v43, %v3486_v5  ;;  %v3625_v50 = vadd.f32 %v3621_v26, %v3549_v52 }
 0x352   :  { %v3638_v12 = vsel %vm420_vm1, %v3635_v35, %v3637_v7  ;;  %v3590_v56 = vadd.f32 %v7347_v38, %v3506_v49  ;;  %v3641_v27 = vadd.f32 %v3636_v60, %v3569_v22  ;;  %v3653_v10 = vsel %vm420_vm1, %v3651_v1, %v3652_v4  ;;  %v7970_v49 = vld [vmem:[#allocation23_spill] sm:$0xff] }
 0x353   :  { %v3507_v41 = vadd.f32 %v7311_v55, %v3423_v2  ;;  %v3654_v54 = vrot.slane %v3647_v28, 2  ;;  %v3701_v25 = vadd.f32 %v7398_v57, %v3625_v50  ;;  %v3642_v8 = vadd.f32 %v3638_v12, %v3570_v29  ;;  %v7969_v28 = vld [vmem:[#allocation27_spill] sm:$0xff] }
 0x354   :  { %v7416_v53 = vpop.permute.xlu1 %3717  ;;  %v7418_v6 = vpop.permute.xlu0 %3736  ;;  %v3721_v43 = vadd.f32 %v7400_v16, %v3641_v27  ;;  %v3658_v14 = vadd.f32 %v3653_v10, %v3590_v56  ;;  %v4542_v1 = vmov 0  }
 0x355   :  { %v3591_v35 = vadd.f32 %v7968_v51, %v3507_v41  ;;  %v3655_v16 = vsel %vm420_vm1, %v3652_v4, %v3654_v54  ;;  %v3722_v24 = vadd.f32 %v7416_v53, %v3642_v8  ;;  %4495 = vset.pattern.permute.xlu1 %v4542_v1  ;;  %4496 = vset.pattern.permute.xlu0 %v4542_v1  ;;  %v7984_v1 = vld [vmem:[#allocation82_spill] sm:$0xff] }
 0x356   :  { %v3742_v20 = vadd.f32 %v7418_v6, %v3658_v14 }
 0x357   :  { %v3659_v37 = vadd.f32 %v3655_v16, %v3591_v35 }
 0x358   :  { %v3739_v15 = vpop.permute.xlu1 %3738  ;;  %v3758_v33 = vpop.permute.xlu0 %3757 }
 0x359   :  { %v3763_v19 = vadd.f32 %v3758_v33, %v3679_v9  ;;  %v3743_v30 = vadd.f32 %v3739_v15, %v3659_v37 }
 0x35b   :  { %3829 = vst.msk [vmem:[#allocation2 + $0x40] sm:$0xff] %vm1865_vm2, %v3763_v19  ;;  %v3837_v40 = vsel %vm1865_vm2, %v3763_v19, 0.0  ;;  %v3893_v45 = vmul.f32 %v3763_v19, %v3763_v19 }
 0x35c   :  { %v3760_v3 = vpop.permute.xlu1 %3759  ;;  %3838 = vadd.xlane.f32.xlu0 %v3837_v40  ;;  %v3779_v36 = vpop.permute.xlu0 %3778  ;;  %v7972_v40 = vld [vmem:[#allocation28_spill] sm:$0xff] }
 0x35d   :  { %v3764_v18 = vadd.f32 %v3760_v3, %v3680_v47  ;;  %v3784_v61 = vadd.f32 %v3779_v36, %v3700_v34  ;;  %v3901_v23 = vsel %vm1865_vm2, %v3893_v45, 0.0  ;;  %v1898_v47 = vadd.f32 %v7970_v49, %v7969_v28  ;;  %v7971_v34 = vld [vmem:[#allocation24_spill] sm:$0xff]  ;;  %v7973_v3 = vld [vmem:[#allocation25_spill] sm:$0xff]  ;;  %v7974_v36 = vld [vmem:[#allocation30_spill] sm:$0xff] }
 0x35e   :  { %v1905_v2 = vadd.f32 %v7972_v40, %v7971_v34  ;;  %v1912_v56 = vadd.f32 %v7974_v36, %v7973_v3  ;;  %v7981_v45 = vld [vmem:[#allocation42_spill] sm:$0xff] }
 0x35f   :  { %3830 = vst.msk [vmem:[#allocation2 + $0x48] sm:$0xff] %vm1865_vm2, %v3764_v18  ;;  %3831 = vst.msk [vmem:[#allocation2 + $0x50] sm:$0xff] %vm1865_vm2, %v3784_v61  ;;  %v3840_v46 = vsel %vm1865_vm2, %v3764_v18, 0.0  ;;  %v3843_v38 = vsel %vm1865_vm2, %v3784_v61, 0.0  ;;  %v3894_v9 = vmul.f32 %v3764_v18, %v3764_v18  ;;  %v3895_v60 = vmul.f32 %v3784_v61, %v3784_v61 }
 0x360   :  { %v3781_v58 = vpop.permute.xlu1 %3780  ;;  %3841 = vadd.xlane.f32.xlu1 %v3840_v46  ;;  %3844 = vadd.xlane.f32.xlu0 %v3843_v38  ;;  %v3800_v55 = vpop.permute.xlu0 %3799  ;;  %v1899_v12 = vrot.slane %v1898_v47, 4  ;;  %v1906_v18 = vrot.slane %v1905_v2, 4  ;;  %v7975_v46 = vld [vmem:[#allocation34_spill] sm:$0xff]  ;;  %v7976_v38 = vld [vmem:[#allocation81_spill] sm:$0xff] }
 0x361   :  { %v3785_v44 = vadd.f32 %v3781_v58, %v3701_v25  ;;  %v3805_v57 = vadd.f32 %v3800_v55, %v3721_v43  ;;  %v3904_v7 = vsel %vm1865_vm2, %v3894_v9, 0.0  ;;  %v3907_v39 = vsel %vm1865_vm2, %v3895_v60, 0.0  ;;  %v7977_v58 = vld [vmem:[#allocation35_spill] sm:$0xff] }
 0x362   :  { %v1900_v54 = vadd.f32 %v1899_v12, %v1898_v47  ;;  %v1913_v25 = vrot.slane %v1912_v56, 4  ;;  %v1962_v8 = vadd.f32 %v7976_v38, %v7975_v46  ;;  %v7978_v55 = vld [vmem:[#allocation43_spill] sm:$0xff]  ;;  %v1907_v14 = vadd.f32 %v1906_v18, %v1905_v2 }
 0x363   :  { %3832 = vst.msk [vmem:[#allocation2 + $0x58] sm:$0xff] %vm1865_vm2, %v3785_v44  ;;  %3833 = vst.msk [vmem:[#allocation2 + $0x60] sm:$0xff] %vm1865_vm2, %v3805_v57  ;;  %v3846_v17 = vsel %vm1865_vm2, %v3785_v44, 0.0  ;;  %v3849_v32 = vsel %vm1865_vm2, %v3805_v57, 0.0  ;;  %v3896_v63 = vmul.f32 %v3785_v44, %v3785_v44  ;;  %v3897_v0 = vmul.f32 %v3805_v57, %v3805_v57  ;;  %v7979_v44 = vld [vmem:[#allocation29_spill] sm:$0xff]  ;;  %v7980_v57 = vld [vmem:[#allocation31_spill] sm:$0xff] }
 0x364   :  { %v3802_v62 = vpop.permute.xlu1 %3801  ;;  %3847 = vadd.xlane.f32.xlu0 %v3846_v17  ;;  %3850 = vadd.xlane.f32.xlu1 %v3849_v32  ;;  %v3821_v48 = vpop.permute.xlu0 %3820  ;;  %v1969_v51 = vadd.f32 %v7978_v55, %v7977_v58  ;;  %v1919_v16 = vadd.f32 %v7980_v57, %v7979_v44  ;;  %v1901_v32 = vrot.slane %v1900_v54, 2 }
 0x365   :  { %v3806_v21 = vadd.f32 %v3802_v62, %v3722_v24  ;;  %v3826_v59 = vadd.f32 %v3821_v48, %v3742_v20  ;;  %v3910_v52 = vsel %vm1865_vm2, %v3896_v63, 0.0  ;;  %v3913_v15 = vsel %vm1865_vm2, %v3897_v0, 0.0 }
 0x366   :  { %v1914_v62 = vadd.f32 %v1913_v25, %v1912_v56 }
 0x367   :  { %3834 = vst.msk [vmem:[#allocation2 + $0x68] sm:$0xff] %vm1865_vm2, %v3806_v21  ;;  %3835 = vst.msk [vmem:[#allocation2 + $0x70] sm:$0xff] %vm1865_vm2, %v3826_v59  ;;  %v3852_v53 = vsel %vm1865_vm2, %v3806_v21, 0.0  ;;  %v3855_v6 = vsel %vm1865_vm2, %v3826_v59, 0.0  ;;  %v3898_v33 = vmul.f32 %v3806_v21, %v3806_v21  ;;  %v3899_v22 = vmul.f32 %v3826_v59, %v3826_v59 }
 0x368   :  { %v3823_v26 = vpop.permute.xlu1 %3822  ;;  %3853 = vadd.xlane.f32.xlu0 %v3852_v53  ;;  %3856 = vadd.xlane.f32.xlu1 %v3855_v6  ;;  %v1963_v21 = vrot.slane %v1962_v8, 4  ;;  %v1970_v59 = vrot.slane %v1969_v51, 4  ;;  %v1908_v53 = vrot.slane %v1907_v14, 2  ;;  %v1920_v6 = vrot.slane %v1919_v16, 4 }
 0x369   :  { %v3827_v42 = vadd.f32 %v3823_v26, %v3743_v30  ;;  %v3916_v11 = vsel %vm1865_vm2, %v3898_v33, 0.0  ;;  %v3919_v31 = vsel %vm1865_vm2, %v3899_v22, 0.0  ;;  %v7982_v26 = vld [vmem:[#allocation36_spill] sm:$0xff] }
 0x36a   :  { %v1909_v22 = vadd.f32 %v1908_v53, %v1907_v14 }
 0x36b   :  { %3836 = vst.msk [vmem:[#allocation2 + $0x78] sm:$0xff] %vm1865_vm2, %v3827_v42  ;;  %v3858_v13 = vsel %vm1865_vm2, %v3827_v42, 0.0  ;;  %v3900_v19 = vmul.f32 %v3827_v42, %v3827_v42  ;;  %v1976_v42 = vadd.f32 %v7982_v26, %v7981_v45 }
 0x36c   :  { %3859 = vadd.xlane.f32.xlu0 %v3858_v13  ;;  %3902 = vadd.xlane.f32.xlu1 %v3901_v23  ;;  %v1910_v56 = vrot.slane %v1909_v22, 1 }
 0x36d   :  { %v3922_v5 = vsel %vm1865_vm2, %v3900_v19, 0.0 }
 0x36e   :  { %v1911_v44 = vadd.f32 %v1910_v56, %v1909_v22 }
 0x370   :  { %3905 = vadd.xlane.f32.xlu0 %v3904_v7  ;;  %3908 = vadd.xlane.f32.xlu1 %v3907_v39  ;;  %v1902_v7 = vadd.f32 %v1901_v32, %v1900_v54  ;;  %v1915_v39 = vrot.slane %v1914_v62, 2 }
 0x372   :  { %v1903_v40 = vrot.slane %v1902_v7, 1  ;;  %v1916_v2 = vadd.f32 %v1915_v39, %v1914_v62 }
 0x374   :  { %3911 = vadd.xlane.f32.xlu0 %v3910_v52  ;;  %3914 = vadd.xlane.f32.xlu1 %v3913_v15  ;;  %v1964_v52 = vadd.f32 %v1963_v21, %v1962_v8  ;;  %v1971_v15 = vadd.f32 %v1970_v59, %v1969_v51  ;;  %v1917_v46 = vrot.slane %v1916_v2, 1 }
 0x376   :  { %v1972_v12 = vrot.slane %v1971_v15, 2 }
 0x378   :  { %3917 = vadd.xlane.f32.xlu0 %v3916_v11  ;;  %3920 = vadd.xlane.f32.xlu1 %v3919_v31  ;;  %v1921_v11 = vadd.f32 %v1920_v6, %v1919_v16  ;;  %v1977_v31 = vrot.slane %v1976_v42, 4  ;;  %v1973_v55 = vadd.f32 %v1972_v12, %v1971_v15 }
 0x37a   :  { %v1978_v18 = vadd.f32 %v1977_v31, %v1976_v42  ;;  %v1974_v6 = vrot.slane %v1973_v55, 1 }
 0x37c   :  { %3923 = vadd.xlane.f32.xlu0 %v3922_v5  ;;  %v7983_v5 = vld [vmem:[#allocation32_spill] sm:$0xff]  ;;  %v1979_v16 = vrot.slane %v1978_v18, 2 }
 0x3e5   :  { %v3839_v4 = vpop.xlane.xlu0 %3838 }
 0x3e9   :  { %v3842_v29 = vpop.xlane.xlu1 %3841  ;;  %v3845_v50 = vpop.xlane.xlu0 %3844 }
 0x3ea   :  { %v3861_v27 = vadd.f32 %v3842_v29, %v3839_v4  ;;  %v1983_v4 = vadd.f32 %v7984_v1, %v7983_v5 }
 0x3ec   :  { %v3862_v61 = vrot.slane %v3861_v27, 4 }
 0x3ed   :  { %v3851_v41 = vpop.xlane.xlu1 %3850  ;;  %v3848_v10 = vpop.xlane.xlu0 %3847 }
 0x3ee   :  { %v3868_v43 = vadd.f32 %v3848_v10, %v3845_v50  ;;  %v3863_v35 = vadd.f32 %v3862_v61, %v3861_v27  ;;  %v1965_v50 = vrot.slane %v1964_v52, 2  ;;  %v1922_v27 = vrot.slane %v1921_v11, 2 }
 0x3ef   :  { %v1984_v61 = vrot.slane %v1983_v4, 4 }
 0x3f0   :  { %v3869_v24 = vrot.slane %v3868_v43, 4  ;;  %v3864_v30 = vrot.slane %v3863_v35, 2  ;;  %v1966_v58 = vadd.f32 %v1965_v50, %v1964_v52  ;;  %v1923_v57 = vadd.f32 %v1922_v27, %v1921_v11 }
 0x3f1   :  { %v3857_v20 = vpop.xlane.xlu1 %3856  ;;  %v3854_v17 = vpop.xlane.xlu0 %3853 }
 0x3f2   :  { %v3870_v48 = vadd.f32 %v3869_v24, %v3868_v43  ;;  %v3875_v37 = vadd.f32 %v3854_v17, %v3851_v41  ;;  %v3865_v33 = vadd.f32 %v3864_v30, %v3863_v35  ;;  %v1904_v43 = vadd.f32 %v1903_v40, %v1902_v7 }
 0x3f3   :  { %v1967_v53 = vrot.slane %v1966_v58, 1  ;;  %v1924_v42 = vrot.slane %v1923_v57, 1 }
 0x3f4   :  { %v3876_v13 = vrot.slane %v3875_v37, 4  ;;  %v3871_v23 = vrot.slane %v3870_v48, 2  ;;  %v3866_v3 = vrot.slane %v3865_v33, 1 }
 0x3f5   :  { %v3903_v9 = vpop.xlane.xlu1 %3902  ;;  %v3860_v60 = vpop.xlane.xlu0 %3859  ;;  %v1968_v31 = vadd.f32 %v1967_v53, %v1966_v58  ;;  %v1925_v56 = vadd.f32 %v1924_v42, %v1923_v57  ;;  %v3973_v42 = vld [vmem:[%s7585_s2] sm:$0x1] }
 0x3f6   :  { %v3877_v63 = vadd.f32 %v3876_v13, %v3875_v37  ;;  %v3882_v0 = vadd.f32 %v3860_v60, %v3857_v20  ;;  %v3872_v28 = vadd.f32 %v3871_v23, %v3870_v48  ;;  %v3867_v51 = vadd.f32 %v3866_v3, %v3865_v33 }
 0x3f7   :  { %v1985_v20 = vadd.f32 %v1984_v61, %v1983_v4  ;;  %v1918_v37 = vadd.f32 %v1917_v46, %v1916_v2  ;;  %v1980_v13 = vadd.f32 %v1979_v16, %v1978_v18 }
 0x3f8   :  { %v3883_v19 = vrot.slane %v3882_v0, 4  ;;  %v3878_v49 = vrot.slane %v3877_v63, 2  ;;  %v3873_v41 = vrot.slane %v3872_v28, 1  ;;  %v3889_v45 = vadd.f32 %v3867_v51, %v1904_v43 }
 0x3f9   :  { %v3909_v47 = vpop.xlane.xlu1 %3908  ;;  %v3906_v34 = vpop.xlane.xlu0 %3905  ;;  %v1986_v60 = vrot.slane %v1985_v20, 2  ;;  %v1981_v4 = vrot.slane %v1980_v13, 1 }
 0x3fa   :  { %v3884_v29 = vadd.f32 %v3883_v19, %v3882_v0  ;;  %v3925_v36 = vadd.f32 %v3906_v34, %v3903_v9  ;;  %v3879_v10 = vadd.f32 %v3878_v49, %v3877_v63  ;;  %v3874_v17 = vadd.f32 %v3873_v41, %v3872_v28 }
 0x3fb   :  { %v1975_v19 = vadd.f32 %v1974_v6, %v1973_v55  ;;  %v7489_v5 = vmul.f32 0.001953125, %v3889_v45  ;;  %v1987_v34 = vadd.f32 %v1986_v60, %v1985_v20  ;;  %v1982_v61 = vadd.f32 %v1981_v4, %v1980_v13  ;;  %v3974_v60 = vld [vmem:[%s7585_s2 + $0x1] sm:$0x1] }
 0x3fc   :  { %v3926_v54 = vrot.slane %v3925_v36, 4  ;;  %v3885_v38 = vrot.slane %v3884_v29, 2  ;;  %v3880_v32 = vrot.slane %v3879_v10, 1  ;;  %v3890_v7 = vadd.f32 %v3874_v17, %v1911_v44 }
 0x3fd   :  { %v3912_v25 = vpop.xlane.xlu0 %3911  ;;  %v3915_v14 = vpop.xlane.xlu1 %3914  ;;  %v3965_v27 = vmul.f32 %v7489_v5, %v7489_v5 }
 0x3fe   :  { %v3932_v8 = vadd.f32 %v3912_v25, %v3909_v47  ;;  %v3927_v35 = vadd.f32 %v3926_v54, %v3925_v36  ;;  %v3886_v21 = vadd.f32 %v3885_v38, %v3884_v29  ;;  %v3881_v39 = vadd.f32 %v3880_v32, %v3879_v10 }
 0x3ff   :  { %v7491_v40 = vmul.f32 0.001953125, %v3890_v7  ;;  %v1988_v25 = vrot.slane %v1987_v34, 1 }
 0x400   :  { %v3933_v24 = vrot.slane %v3932_v8, 4  ;;  %v3928_v62 = vrot.slane %v3927_v35, 2  ;;  %v3887_v15 = vrot.slane %v3886_v21, 1  ;;  %v3891_v2 = vadd.f32 %v3881_v39, %v1918_v37 }
 0x401   :  { %v3918_v48 = vpop.xlane.xlu0 %3917  ;;  %v3921_v0 = vpop.xlane.xlu1 %3920  ;;  %v3966_v43 = vmul.f32 %v7491_v40, %v7491_v40  ;;  %v1989_v16 = vadd.f32 %v1988_v25, %v1987_v34  ;;  %v3990_v34 = vld [vmem:[%s7586_s3 + $0x1] sm:$0x1] }
 0x402   :  { %v3934_v59 = vadd.f32 %v3933_v24, %v3932_v8  ;;  %v3939_v30 = vadd.f32 %v3918_v48, %v3915_v14  ;;  %v3929_v26 = vadd.f32 %v3928_v62, %v3927_v35  ;;  %v3888_v50 = vadd.f32 %v3887_v15, %v3886_v21  ;;  %v4001_v25 = vld [vmem:[#allocation2] sm:$0xff] }
 0x403   :  { %v3959_v46 = vmul.f32 0.001953125, %v3891_v2  ;;  %v4013_v21 = vlaneseq }
 0x404   :  { %v3935_v23 = vrot.slane %v3934_v59, 2  ;;  %v3940_v9 = vrot.slane %v3939_v30, 4  ;;  %v3930_v63 = vrot.slane %v3929_v26, 1  ;;  %v3892_v8 = vadd.f32 %v3888_v50, %v1925_v56 }
 0x405   :  { %v3924_v52 = vpop.xlane.xlu0 %3923  ;;  %v3967_v24 = vmul.f32 %v3959_v46, %v3959_v46  ;;  %v4014_v45 = vshrl.u32 %v4013_v21, 7 }
 0x406   :  { %v3936_v33 = vadd.f32 %v3935_v23, %v3934_v59  ;;  %v3941_v22 = vadd.f32 %v3940_v9, %v3939_v30  ;;  %v3946_v11 = vadd.f32 %v3924_v52, %v3921_v0  ;;  %v3931_v1 = vadd.f32 %v3930_v63, %v3929_v26  ;;  %v3975_v0 = vld [vmem:[%s7585_s2 + $0x2] sm:$0x1] }
 0x407   :  { %v3960_v20 = vmul.f32 0.001953125, %v3892_v8  ;;  %v4015_v13 = vsub.s32 0, %v4014_v45  ;;  %v4166_v45 = vld [vmem:[#allocation2 + $0x40] sm:$0xff] }
 0x408   :  { %v3937_v28 = vrot.slane %v3936_v33, 1  ;;  %v3942_v49 = vrot.slane %v3941_v22, 2  ;;  %v3947_v47 = vrot.slane %v3946_v11, 4  ;;  %v3953_v29 = vadd.f32 %v3931_v1, %v1968_v31  ;;  %v3989_v1 = vld [vmem:[%s7586_s3] sm:$0x1] }
 0x409   :  { %v3968_v59 = vmul.f32 %v3960_v20, %v3960_v20 }
 0x40a   :  { %v3938_v12 = vadd.f32 %v3937_v28, %v3936_v33  ;;  %v3943_v3 = vadd.f32 %v3942_v49, %v3941_v22  ;;  %v3948_v36 = vadd.f32 %v3947_v47, %v3946_v11  ;;  %v3961_v18 = vmul.f32 0.001953125, %v3953_v29  ;;  %v3976_v22 = vld [vmem:[%s7585_s2 + $0x3] sm:$0x1] }
 0x40c   :  { %v3954_v41 = vadd.f32 %v3938_v12, %v1975_v19  ;;  %v3944_v10 = vrot.slane %v3943_v3, 1  ;;  %v3949_v54 = vrot.slane %v3948_v36, 2  ;;  %v3969_v38 = vsub.f32 %v3961_v18, %v3965_v27 }
 0x40e   :  { %v3962_v58 = vmul.f32 0.001953125, %v3954_v41  ;;  %v3945_v55 = vadd.f32 %v3944_v10, %v3943_v3  ;;  %v3950_v51 = vadd.f32 %v3949_v54, %v3948_v36  ;;  %v3977_v35 = vadd.f32 1e-05, %v3969_v38  ;;  %v4002_v54 = vld [vmem:[#allocation2 + $0x8] sm:$0xff] }
 0x410   :  { %v3970_v14 = vsub.f32 %v3962_v58, %v3966_v43  ;;  %v3955_v44 = vadd.f32 %v3945_v55, %v1982_v61  ;;  %v3951_v57 = vrot.slane %v3950_v51, 1  ;;  %4497 = vrsqrt.f32 %v3977_v35  ;;  %v4004_v35 = vld [vmem:[#allocation2 + $0x18] sm:$0xff] }
 0x412   :  { %v3978_v17 = vadd.f32 1e-05, %v3970_v14  ;;  %v3963_v32 = vmul.f32 0.001953125, %v3955_v44  ;;  %v3952_v62 = vadd.f32 %v3951_v57, %v3950_v51  ;;  %v4003_v51 = vld [vmem:[#allocation2 + $0x10] sm:$0xff] }
 0x414   :  { %4499 = vrsqrt.f32 %v3978_v17  ;;  %v3971_v48 = vsub.f32 %v3963_v32, %v3967_v24  ;;  %v3956_v37 = vadd.f32 %v3952_v62, %v1989_v16 }
 0x416   :  { %v3979_v30 = vadd.f32 1e-05, %v3971_v48  ;;  %v3964_v53 = vmul.f32 0.001953125, %v3956_v37  ;;  %v4005_v48 = vld [vmem:[#allocation2 + $0x20] sm:$0xff]  ;;  %v4006_v37 = vld [vmem:[#allocation2 + $0x28] sm:$0xff] }
 0x418   :  { %4501 = vrsqrt.f32 %v3979_v30  ;;  %v3972_v6 = vsub.f32 %v3964_v53, %v3968_v59 }
 0x41a   :  { %v3980_v26 = vadd.f32 1e-05, %v3972_v6 }
 0x41c   :  { %4503 = vrsqrt.f32 %v3980_v26  ;;  %v4167_v26 = vld [vmem:[#allocation2 + $0x48] sm:$0xff] }
 0x41d   :  { %v4498_v23 = vpop.eup %4497 }
 0x41e   :  { %v3985_v9 = vmul.f32 %v4498_v23, %v3973_v42 }
 0x420   :  { %v4016_v39 = vrot.slane %v3985_v9, %v4015_v13  ;;  %v3993_v31 = vmul.f32 %v3985_v9, %v7489_v5  ;;  %v3991_v5 = vld [vmem:[%s7586_s3 + $0x2] sm:$0x1] }
 0x421   :  { %v4500_v7 = vpop.eup %4499 }
 0x422   :  { %v3986_v63 = vmul.f32 %v4500_v7, %v3974_v60  ;;  %4030 = vperm.xlu1 %4495, %v4016_v39   ;;  %v3997_v49 = vsub.f32 %v3989_v1, %v3993_v31  ;;  %v4007_v39 = vld [vmem:[#allocation2 + $0x30] sm:$0xff]  ;;  %v4169_v1 = vld [vmem:[#allocation2 + $0x58] sm:$0xff] }
 0x424   :  { %v4020_v52 = vrot.slane %v3986_v63, %v4015_v13  ;;  %v3994_v47 = vmul.f32 %v3986_v63, %v7491_v40  ;;  %v4060_v2 = vrot.slane %v3997_v49, %v4015_v13  ;;  %v3992_v40 = vld [vmem:[%s7586_s3 + $0x3] sm:$0x1]  ;;  %v4008_v63 = vld [vmem:[#allocation2 + $0x38] sm:$0xff] }
 0x425   :  { %v4502_v15 = vpop.eup %4501 }
 0x426   :  { %4034 = vperm.xlu0 %4496, %v4020_v52   ;;  %v3987_v33 = vmul.f32 %v4502_v15, %v3975_v0  ;;  %v3998_v29 = vsub.f32 %v3990_v34, %v3994_v47 }
 0x428   :  { %v4024_v11 = vrot.slane %v3987_v33, %v4015_v13  ;;  %v3995_v50 = vmul.f32 %v3987_v33, %v3959_v46  ;;  %v4064_v12 = vrot.slane %v3998_v29, %v4015_v13 }
 0x429   :  { %v4504_v19 = vpop.eup %4503 }
 0x42a   :  { %4038 = vperm.xlu1 %4495, %v4024_v11   ;;  %v3988_v4 = vmul.f32 %v4504_v19, %v3976_v22  ;;  %v3999_v3 = vsub.f32 %v3991_v5, %v3995_v50  ;;  %v4168_v19 = vld [vmem:[#allocation2 + $0x50] sm:$0xff] }
 0x42c   :  { %v4028_v28 = vrot.slane %v3988_v4, %v4015_v13  ;;  %v3996_v36 = vmul.f32 %v3988_v4, %v3960_v20  ;;  %v4068_v56 = vrot.slane %v3999_v3, %v4015_v13 }
 0x42e   :  { %4042 = vperm.xlu1 %4495, %v4028_v28   ;;  %v4000_v27 = vsub.f32 %v3992_v40, %v3996_v36 }
 0x430   :  { %v4072_v18 = vrot.slane %v4000_v27, %v4015_v13  ;;  %v4170_v27 = vld [vmem:[#allocation2 + $0x60] sm:$0xff] }
 0x432   :  { %4074 = vperm.xlu1 %4495, %v4060_v2  }
 0x436   :  { %4078 = vperm.xlu1 %4495, %v4064_v12  }
 0x43a   :  { %4082 = vperm.xlu1 %4495, %v4068_v56  }
 0x43e   :  { %4086 = vperm.xlu1 %4495, %v4072_v18   ;;  %v4171_v18 = vld [vmem:[#allocation2 + $0x68] sm:$0xff] }
 0x49d   :  { %v4031_v61 = vpop.permute.xlu1 %4030 }
 0x49e   :  { %v4045_v43 = vmul.f32 %v4031_v61, %v4001_v25  ;;  %v4046_v46 = vmul.f32 %v4031_v61, %v4002_v54  ;;  %v4174_v60 = vmul.f32 %v4166_v45, %v4031_v61  ;;  %v4175_v7 = vmul.f32 %v4167_v26, %v4031_v61 }
 0x4a1   :  { %v4035_v38 = vpop.permute.xlu0 %4034 }
 0x4a2   :  { %v4047_v14 = vmul.f32 %v4035_v38, %v4003_v51  ;;  %v4048_v44 = vmul.f32 %v4035_v38, %v4004_v35  ;;  %v4176_v34 = vmul.f32 %v4168_v19, %v4035_v38  ;;  %v4177_v2 = vmul.f32 %v4169_v1, %v4035_v38  ;;  %v4173_v51 = vld [vmem:[#allocation2 + $0x78] sm:$0xff] }
 0x4a5   :  { %v7523_v41 = vpop.permute.xlu1 %4038 }
 0x4a6   :  { %v4049_v21 = vmul.f32 %v7523_v41, %v4005_v48  ;;  %v4050_v59 = vmul.f32 %v7523_v41, %v4006_v37  ;;  %v4178_v61 = vmul.f32 %v4170_v27, %v7523_v41  ;;  %v4179_v54 = vmul.f32 %v4171_v18, %v7523_v41 }
 0x4a9   :  { %v7525_v10 = vpop.permute.xlu1 %4042 }
 0x4aa   :  { %v4051_v0 = vmul.f32 %v7525_v10, %v4007_v39  ;;  %v4052_v52 = vmul.f32 %v7525_v10, %v4008_v63 }
 0x4ad   :  { %v4075_v8 = vpop.permute.xlu1 %4074 }
 0x4ae   :  { %v4090_v58 = vadd.f32 %v4075_v8, %v4046_v46  ;;  %v4089_v55 = vadd.f32 %v4075_v8, %v4045_v43  ;;  %v4183_v11 = vadd.f32 %v4175_v7, %v4075_v8  ;;  %v4182_v31 = vadd.f32 %v4174_v60, %v4075_v8 }
 0x4b0   :  { %v4098_v57 = vmax.f32 %v4090_v58, 0.0  ;;  %v4097_v16 = vmax.f32 %v4089_v55, 0.0  ;;  %v4191_v40 = vmax.f32 %v4183_v11, 0.0  ;;  %v4190_v56 = vmax.f32 %v4182_v31, 0.0  ;;  %v4172_v55 = vld [vmem:[#allocation2 + $0x70] sm:$0xff] }
 0x4b1   :  { %v4079_v24 = vpop.permute.xlu1 %4078  ;;  %v4180_v35 = vmul.f32 %v4172_v55, %v7525_v10 }
 0x4b2   :  { %v4108_v20 = vsel %vm1865_vm2, %v4098_v57, 0.0  ;;  %v4105_v17 = vsel %vm1865_vm2, %v4097_v16, 0.0  ;;  %v4092_v32 = vadd.f32 %v4079_v24, %v4048_v44  ;;  %v4091_v62 = vadd.f32 %v4079_v24, %v4047_v14 }
 0x4b3   :  { %4109 = vadd.xlane.f32.xlu0 %v4108_v20  ;;  %4106 = vadd.xlane.f32.xlu1 %v4105_v17  ;;  %v4185_v5 = vadd.f32 %v4177_v2, %v4079_v24  ;;  %v4184_v12 = vadd.f32 %v4176_v34, %v4079_v24  ;;  %v4201_v46 = vsel %vm1865_vm2, %v4191_v40, 0.0  ;;  %v4198_v38 = vsel %vm1865_vm2, %v4190_v56, 0.0 }
 0x4b4   :  { %v4100_v30 = vmax.f32 %v4092_v32, 0.0  ;;  %v4099_v53 = vmax.f32 %v4091_v62, 0.0  ;;  %v4181_v14 = vmul.f32 %v4173_v51, %v7525_v10 }
 0x4b5   :  { %v4083_v6 = vpop.permute.xlu1 %4082  ;;  %v4193_v25 = vmax.f32 %v4185_v5, 0.0  ;;  %v4192_v43 = vmax.f32 %v4184_v12, 0.0 }
 0x4b6   :  { %v4114_v42 = vsel %vm1865_vm2, %v4100_v30, 0.0  ;;  %v4111_v13 = vsel %vm1865_vm2, %v4099_v53, 0.0  ;;  %v4094_v23 = vadd.f32 %v4083_v6, %v4050_v59  ;;  %v4093_v9 = vadd.f32 %v4083_v6, %v4049_v21 }
 0x4b7   :  { %4115 = vadd.xlane.f32.xlu0 %v4114_v42  ;;  %4112 = vadd.xlane.f32.xlu1 %v4111_v13  ;;  %v4187_v8 = vadd.f32 %v4179_v54, %v4083_v6  ;;  %v4186_v58 = vadd.f32 %v4178_v61, %v4083_v6  ;;  %v4207_v44 = vsel %vm1865_vm2, %v4193_v25, 0.0  ;;  %v4204_v41 = vsel %vm1865_vm2, %v4192_v43, 0.0 }
 0x4b8   :  { %v4102_v15 = vmax.f32 %v4094_v23, 0.0  ;;  %v4101_v33 = vmax.f32 %v4093_v9, 0.0 }
 0x4b9   :  { %v4087_v22 = vpop.permute.xlu1 %4086  ;;  %v4195_v57 = vmax.f32 %v4187_v8, 0.0  ;;  %v4194_v16 = vmax.f32 %v4186_v58, 0.0 }
 0x4ba   :  { %v4120_v4 = vsel %vm1865_vm2, %v4102_v15, 0.0  ;;  %v4117_v28 = vsel %vm1865_vm2, %v4101_v33, 0.0  ;;  %v4096_v49 = vadd.f32 %v4087_v22, %v4052_v52  ;;  %v4095_v47 = vadd.f32 %v4087_v22, %v4051_v0 }
 0x4bb   :  { %4121 = vadd.xlane.f32.xlu0 %v4120_v4  ;;  %4118 = vadd.xlane.f32.xlu1 %v4117_v28  ;;  %v4189_v24 = vadd.f32 %v4181_v14, %v4087_v22  ;;  %v4188_v20 = vadd.f32 %v4180_v35, %v4087_v22  ;;  %v4213_v17 = vsel %vm1865_vm2, %v4195_v57, 0.0  ;;  %v4210_v32 = vsel %vm1865_vm2, %v4194_v16, 0.0 }
 0x4bc   :  { %v4104_v29 = vmax.f32 %v4096_v49, 0.0  ;;  %v4103_v50 = vmax.f32 %v4095_v47, 0.0 }
 0x4bd   :  { %v4197_v62 = vmax.f32 %v4189_v24, 0.0  ;;  %v4196_v48 = vmax.f32 %v4188_v20, 0.0 }
 0x4be   :  { %v4126_v3 = vsel %vm1865_vm2, %v4104_v29, 0.0  ;;  %v4123_v36 = vsel %vm1865_vm2, %v4103_v50, 0.0 }
 0x4bf   :  { %4127 = vadd.xlane.f32.xlu0 %v4126_v3  ;;  %4124 = vadd.xlane.f32.xlu1 %v4123_v36  ;;  %v4219_v10 = vsel %vm1865_vm2, %v4197_v62, 0.0  ;;  %v4216_v37 = vsel %vm1865_vm2, %v4196_v48, 0.0 }
 0x4c3   :  { %4202 = vadd.xlane.f32.xlu0 %v4201_v46  ;;  %4199 = vadd.xlane.f32.xlu1 %v4198_v38 }
 0x4c7   :  { %4208 = vadd.xlane.f32.xlu0 %v4207_v44  ;;  %4205 = vadd.xlane.f32.xlu1 %v4204_v41 }
 0x4cb   :  { %4214 = vadd.xlane.f32.xlu0 %v4213_v17  ;;  %4211 = vadd.xlane.f32.xlu1 %v4210_v32 }
 0x4cf   :  { %4220 = vadd.xlane.f32.xlu0 %v4219_v10  ;;  %4217 = vadd.xlane.f32.xlu1 %v4216_v37 }
 0x53c   :  { %v4110_v21 = vpop.xlane.xlu0 %4109  ;;  %v4107_v59 = vpop.xlane.xlu1 %4106 }
 0x53d   :  { %v4129_v30 = vadd.f32 %v4110_v21, %v4107_v59 }
 0x53f   :  { %v4130_v53 = vrot.slane %v4129_v30, 4 }
 0x540   :  { %v4116_v6 = vpop.xlane.xlu0 %4115  ;;  %v4113_v45 = vpop.xlane.xlu1 %4112 }
 0x541   :  { %v4131_v26 = vadd.f32 %v4130_v53, %v4129_v30  ;;  %v4136_v42 = vadd.f32 %v4116_v6, %v4113_v45 }
 0x543   :  { %v4132_v13 = vrot.slane %v4131_v26, 2  ;;  %v4137_v23 = vrot.slane %v4136_v42, 4 }
 0x544   :  { %v4122_v9 = vpop.xlane.xlu0 %4121  ;;  %v4119_v60 = vpop.xlane.xlu1 %4118 }
 0x545   :  { %v4133_v7 = vadd.f32 %v4132_v13, %v4131_v26  ;;  %v4138_v39 = vadd.f32 %v4137_v23, %v4136_v42  ;;  %v4143_v63 = vadd.f32 %v4122_v9, %v4119_v60 }
 0x547   :  { %v4134_v0 = vrot.slane %v4133_v7, 1  ;;  %v4139_v52 = vrot.slane %v4138_v39, 2  ;;  %v4144_v15 = vrot.slane %v4143_v63, 4 }
 0x548   :  { %v4128_v33 = vpop.xlane.xlu0 %4127  ;;  %v4125_v22 = vpop.xlane.xlu1 %4124 }
 0x549   :  { %v4135_v11 = vadd.f32 %v4134_v0, %v4133_v7  ;;  %v4140_v31 = vadd.f32 %v4139_v52, %v4138_v39  ;;  %v4145_v19 = vadd.f32 %v4144_v15, %v4143_v63  ;;  %v4150_v1 = vadd.f32 %v4128_v33, %v4125_v22 }
 0x54b   :  { %v4157_v4 = vmul.f32 0.00390625, %v4135_v11  ;;  %v4141_v28 = vrot.slane %v4140_v31, 1  ;;  %v4146_v49 = vrot.slane %v4145_v19, 2  ;;  %v4151_v47 = vrot.slane %v4150_v1, 4 }
 0x54c   :  { %v4203_v34 = vpop.xlane.xlu0 %4202  ;;  %v4200_v2 = vpop.xlane.xlu1 %4199 }
 0x54d   :  { %4162 = vst.msk [vmem:[%s7587_s4] sm:$0x1] %vm4161_vm3, %v4157_v4  ;;  %v4142_v29 = vadd.f32 %v4141_v28, %v4140_v31  ;;  %v4147_v50 = vadd.f32 %v4146_v49, %v4145_v19  ;;  %v4152_v5 = vadd.f32 %v4151_v47, %v4150_v1  ;;  %v4222_v12 = vadd.f32 %v4203_v34, %v4200_v2 }
 0x54f   :  { %v4158_v3 = vmul.f32 0.00390625, %v4142_v29  ;;  %v4148_v36 = vrot.slane %v4147_v50, 1  ;;  %v4153_v40 = vrot.slane %v4152_v5, 2  ;;  %v4223_v56 = vrot.slane %v4222_v12, 4 }
 0x550   :  { %v4209_v27 = vpop.xlane.xlu0 %4208  ;;  %v4206_v18 = vpop.xlane.xlu1 %4205 }
 0x551   :  { %4163 = vst.msk [vmem:[%s7587_s4 + $0x1] sm:$0x1] %vm4161_vm3, %v4158_v3  ;;  %v4149_v61 = vadd.f32 %v4148_v36, %v4147_v50  ;;  %v4154_v54 = vadd.f32 %v4153_v40, %v4152_v5  ;;  %v4224_v25 = vadd.f32 %v4223_v56, %v4222_v12  ;;  %v4229_v43 = vadd.f32 %v4209_v27, %v4206_v18 }
 0x553   :  { %v4159_v46 = vmul.f32 0.00390625, %v4149_v61  ;;  %v4155_v38 = vrot.slane %v4154_v54, 1  ;;  %v4225_v8 = vrot.slane %v4224_v25, 2  ;;  %v4230_v58 = vrot.slane %v4229_v43, 4 }
 0x554   :  { %v4215_v55 = vpop.xlane.xlu0 %4214  ;;  %v4212_v51 = vpop.xlane.xlu1 %4211 }
 0x555   :  { %4164 = vst.msk [vmem:[%s7587_s4 + $0x2] sm:$0x1] %vm4161_vm3, %v4159_v46  ;;  %v4156_v35 = vadd.f32 %v4155_v38, %v4154_v54  ;;  %v4226_v14 = vadd.f32 %v4225_v8, %v4224_v25  ;;  %v4231_v44 = vadd.f32 %v4230_v58, %v4229_v43  ;;  %v4236_v41 = vadd.f32 %v4215_v55, %v4212_v51 }
 0x557   :  { %v4160_v57 = vmul.f32 0.00390625, %v4156_v35  ;;  %v4227_v16 = vrot.slane %v4226_v14, 1  ;;  %v4232_v24 = vrot.slane %v4231_v44, 2  ;;  %v4237_v20 = vrot.slane %v4236_v41, 4 }
 0x558   :  { %v4221_v17 = vpop.xlane.xlu0 %4220  ;;  %v4218_v32 = vpop.xlane.xlu1 %4217 }
 0x559   :  { %4165 = vst.msk [vmem:[%s7587_s4 + $0x3] sm:$0x1] %vm4161_vm3, %v4160_v57  ;;  %v4228_v62 = vadd.f32 %v4227_v16, %v4226_v14  ;;  %v4233_v48 = vadd.f32 %v4232_v24, %v4231_v44  ;;  %v4238_v10 = vadd.f32 %v4237_v20, %v4236_v41  ;;  %v4243_v37 = vadd.f32 %v4221_v17, %v4218_v32 }
 0x55b   :  { %v4250_v21 = vmul.f32 0.00390625, %v4228_v62  ;;  %v4234_v59 = vrot.slane %v4233_v48, 1  ;;  %v4239_v30 = vrot.slane %v4238_v10, 2  ;;  %v4244_v53 = vrot.slane %v4243_v37, 4 }
 0x55d   :  { %4487 = vst.msk [vmem:[%s7587_s4 + $0x4] sm:$0x1] %vm4161_vm3, %v4250_v21  ;;  %v4235_v6 = vadd.f32 %v4234_v59, %v4233_v48  ;;  %v4240_v45 = vadd.f32 %v4239_v30, %v4238_v10  ;;  %v4245_v26 = vadd.f32 %v4244_v53, %v4243_v37 }
 0x55f   :  { %v4251_v42 = vmul.f32 0.00390625, %v4235_v6  ;;  %v4241_v13 = vrot.slane %v4240_v45, 1  ;;  %v4246_v23 = vrot.slane %v4245_v26, 2 }
 0x561   :  { %4488 = vst.msk [vmem:[%s7587_s4 + $0x5] sm:$0x1] %vm4161_vm3, %v4251_v42  ;;  %v4242_v9 = vadd.f32 %v4241_v13, %v4240_v45  ;;  %v4247_v60 = vadd.f32 %v4246_v23, %v4245_v26 }
 0x563   :  { %v4252_v7 = vmul.f32 0.00390625, %v4242_v9  ;;  %v4248_v39 = vrot.slane %v4247_v60, 1 }
 0x565   :  { %4489 = vst.msk [vmem:[%s7587_s4 + $0x6] sm:$0x1] %vm4161_vm3, %v4252_v7  ;;  %v4249_v63 = vadd.f32 %v4248_v39, %v4247_v60 }
 0x567   :  { %v4253_v0 = vmul.f32 0.00390625, %v4249_v63 }
 0x569   :  { %4490 = vst.msk [vmem:[%s7587_s4 + $0x7] sm:$0x1] %vm4161_vm3, %v4253_v0 }
 0x56a   :  { %4263 = vsyncpa [#allocation4], 1 }

</bundles_post_ra>
